<compile_context>
chip_gen: v7x
topology: tpu7x:2x2x1
jax: 0.10.0
libtpu: 0.0.40
codegen_flags: <defaults>
</compile_context>

<pallas_src>
import numpy as np

import jax
import jax.numpy as jnp
from jax.experimental import pallas as pl
from jax.experimental.pallas import tpu as pltpu

OUT_LANES = 128   # lane-dense output slab: col 0 = age (sigmoid), col 1 = gender logit
_NB_MAX = 64      # cap on the per-grid-step batch block (M dim of every MXU matmul)


# ---------------------------------------------------------------------------
# Host-side parameter construction / packing
# ---------------------------------------------------------------------------
def init_params(key):
    """Random parameters with the same shapes as SimpleGenderAgeModel (linears
    stored as (din, dout))."""
    chans = [3, 32, 64, 128, 256]
    keys = jax.random.split(key, 64)
    ki = 0
    convs = []
    for i in range(4):
        cin, cout = chans[i], chans[i + 1]
        w = jax.random.normal(keys[ki], (cout, cin, 3, 3), jnp.float32) / np.sqrt(9.0 * cin); ki += 1
        b = 0.01 * jax.random.normal(keys[ki], (cout,), jnp.float32); ki += 1
        gamma = 1.0 + 0.1 * jax.random.normal(keys[ki], (cout,), jnp.float32); ki += 1
        beta = 0.1 * jax.random.normal(keys[ki], (cout,), jnp.float32); ki += 1
        mean = 0.1 * jax.random.normal(keys[ki], (cout,), jnp.float32); ki += 1
        var = jnp.abs(jax.random.normal(keys[ki], (cout,), jnp.float32)) * 0.1 + 1.0; ki += 1
        convs.append(dict(w=w, b=b, gamma=gamma, beta=beta, mean=mean, var=var))

    def head():
        nonlocal ki
        hp = []
        for din, dout in [(256, 128), (128, 64), (64, 1)]:
            w = jax.random.normal(keys[ki], (din, dout), jnp.float32) / np.sqrt(float(din)); ki += 1
            b = 0.01 * jax.random.normal(keys[ki], (dout,), jnp.float32); ki += 1
            hp.append((w, b))
        return hp

    return dict(convs=convs, age=head(), gender=head())


def _dense_conv_operator(w, H, W):
    """Dense operator D of shape (Cin*H*W, Cout*Ho*Wo) such that, for NCHW-flat
    (channel-major) vectors, out_flat = in_flat @ D implements
    Conv2d(kernel=3, stride=2, padding=1) with weights w (Cout, Cin, 3, 3)."""
    Cout, Cin, _, _ = w.shape
    Ho = (H + 2 - 3) // 2 + 1
    Wo = (W + 2 - 3) // 2 + 1
    D = np.zeros((Cin, H, W, Cout, Ho, Wo), np.float32)
    wt = np.transpose(np.asarray(w, np.float32), (1, 0, 2, 3))   # (Cin, Cout, 3, 3)
    for di in range(3):
        for dj in range(3):
            for io in range(Ho):
                r = 2 * io + di - 1
                if not (0 <= r < H):
                    continue
                for jo in range(Wo):
                    c = 2 * jo + dj - 1
                    if 0 <= c < W:
                        D[:, r, c, :, io, jo] += wt[:, :, di, dj]
    return D.reshape(Cin * H * W, Cout * Ho * Wo), Ho, Wo


def pack_params(params, H, W, eps=1e-5):
    """One-time packing: per-layer dense conv operators (bf16, NCHW-flat layout),
    pre-tiled (bias, BN-scale, BN-shift) f32 rows, and both MLP heads fused into
    block-diagonal bf16 matrices with the avg-pool folded into head layer 1."""
    dense, bss = [], []
    h, w = H, W
    for layer in params["convs"]:
        D, Ho, Wo = _dense_conv_operator(np.asarray(layer["w"]), h, w)
        dense.append(jnp.asarray(D, jnp.bfloat16))
        scale = np.asarray(layer["gamma"]) / np.sqrt(np.asarray(layer["var"]) + eps)
        shift = np.asarray(layer["beta"]) - np.asarray(layer["mean"]) * scale
        sp = Ho * Wo
        bss.append(jnp.asarray(
            np.stack([np.repeat(np.asarray(layer["b"]), sp),
                      np.repeat(scale, sp),
                      np.repeat(shift, sp)], axis=0), jnp.float32))   # (3, Cout*Ho*Wo)
        h, w = Ho, Wo

    s4 = h * w   # trailing spatial size after conv4 (1 for 16x16 input)
    (wa1, ba1), (wa2, ba2), (wa3, ba3) = [(np.asarray(a), np.asarray(b)) for a, b in params["age"]]
    (wg1, bg1), (wg2, bg2), (wg3, bg3) = [(np.asarray(a), np.asarray(b)) for a, b in params["gender"]]

    # AdaptiveAvgPool2d(1) + Flatten as a linear pooling matrix, folded into head layer 1.
    pool = np.zeros((256 * s4, 256), np.float32)
    for c in range(256):
        pool[c * s4:(c + 1) * s4, c] = 1.0 / s4

    w1 = pool @ np.concatenate([wa1, wg1], axis=1)          # (256*s4, 256): cols 0:128 age, 128:256 gender
    b1 = np.concatenate([ba1, bg1])[None, :]                # (1, 256)
    w2 = np.zeros((256, 128), np.float32)
    w2[:128, :64] = wa2
    w2[128:, 64:] = wg2                                     # block-diagonal
    b2 = np.concatenate([ba2, bg2])[None, :]                # (1, 128)
    w3 = np.zeros((128, OUT_LANES), np.float32)
    w3[:64, 0] = wa3[:, 0]
    w3[64:, 1] = wg3[:, 0]                                  # col 0 = age, col 1 = gender
    b3 = np.zeros((1, OUT_LANES), np.float32)
    b3[0, 0] = ba3[0]
    b3[0, 1] = bg3[0]

    head = (jnp.asarray(w1, jnp.bfloat16), jnp.asarray(b1, jnp.float32),
            jnp.asarray(w2, jnp.bfloat16), jnp.asarray(b2, jnp.float32),
            jnp.asarray(w3, jnp.bfloat16), jnp.asarray(b3, jnp.float32))
    return dict(dense=dense, bss=bss, head=head)


# ---------------------------------------------------------------------------
# Fused Pallas kernel (one grid step == NB images)
# ---------------------------------------------------------------------------
def _fused_kernel(x_ref,
                  d1_ref, d2_ref, d3_ref, d4_ref,
                  bss1_ref, bss2_ref, bss3_ref, bss4_ref,
                  hw1_ref, hb1_ref, hw2_ref, hb2_ref, hw3_ref, hb3_ref,
                  o_ref):
    f32 = jnp.float32
    bf16 = jnp.bfloat16

    def conv_bn_relu(act, d_ref, bss_ref):
        # Conv2d(3x3, s2, p1) as one dense matmul (bf16 MXU operands, f32 acc),
        # then f32 epilogue: +bias -> ReLU -> folded BatchNorm scale/shift.
        z = jnp.dot(act.astype(bf16), d_ref[...], preferred_element_type=f32)
        h = jnp.maximum(z + bss_ref[0:1, :], 0.0)
        return h * bss_ref[1:2, :] + bss_ref[2:3, :]

    act = x_ref[...]                                     # (NB, 3*H*W) f32, NCHW-flat
    act = conv_bn_relu(act, d1_ref, bss1_ref)            # (NB, 32*64)
    act = conv_bn_relu(act, d2_ref, bss2_ref)            # (NB, 64*16)
    act = conv_bn_relu(act, d3_ref, bss3_ref)            # (NB, 128*4)
    act = conv_bn_relu(act, d4_ref, bss4_ref)            # (NB, 256*s4)

    # AdaptiveAvgPool2d(1) + Flatten is folded (linearly) into hw1.
    # Both heads are fused block-diagonally; Dropout(0.3) is identity in eval mode.
    h1 = jnp.maximum(jnp.dot(act.astype(bf16), hw1_ref[...],
                             preferred_element_type=f32) + hb1_ref[...], 0.0)   # (NB, 256)
    h2 = jnp.maximum(jnp.dot(h1.astype(bf16), hw2_ref[...],
                             preferred_element_type=f32) + hb2_ref[...], 0.0)   # (NB, 128)
    y = jnp.dot(h2.astype(bf16), hw3_ref[...],
                preferred_element_type=f32) + hb3_ref[...]                       # (NB, 128)

    # Numerically stable sigmoid, applied only to the age column (lane 0).
    z = jnp.exp(-jnp.abs(y))
    sig = jnp.where(y >= 0, 1.0 / (1.0 + z), z / (1.0 + z))
    lane = jax.lax.broadcasted_iota(jnp.int32, y.shape, 1)
    o_ref[...] = jnp.where(lane == 0, sig, y)            # lane-dense (NB, 128) store


# ---------------------------------------------------------------------------
# Wrapper
# ---------------------------------------------------------------------------
def _const_spec(shape):
    # Constant index map: the block never changes, so it is fetched once.
    # TODO(synk): if NB / the operator footprint grows, single-buffer these via
    # pipeline_mode=pl.Buffered(1) to halve the VMEM held by weights.
    nd = len(shape)
    return pl.BlockSpec(shape, lambda n, _nd=nd: (0,) * _nd)


def _pick_nb(N):
    """Sublane-aligned (multiple of 8) batch block.  For larger batches this keeps
    the grid length >= 2 so v7x can split the steps across its two TensorCores."""
    return int(min(_NB_MAX, 8 * ((N + 15) // 16)))


@jax.jit
def forward(x_nchw, packed):
    N, C, H, W = x_nchw.shape
    chw = C * H * W
    # NCHW-flat input; the layout permutation is baked into the packed operators,
    # so no host-side transpose pass is needed.
    x_flat = x_nchw.reshape(N, chw)

    nb = _pick_nb(N)
    steps = -(-N // nb)
    n_pad = steps * nb
    if n_pad != N:
        x_flat = jnp.pad(x_flat, ((0, n_pad - N), (0, 0)))

    d1, d2, d3, d4 = packed["dense"]
    bs1, bs2, bs3, bs4 = packed["bss"]
    hw1, hb1, hw2, hb2, hw3, hb3 = packed["head"]
    consts = (d1, d2, d3, d4, bs1, bs2, bs3, bs4, hw1, hb1, hw2, hb2, hw3, hb3)

    in_specs = [pl.BlockSpec((nb, chw), lambda n: (n, 0))]
    in_specs += [_const_spec(a.shape) for a in consts]

    out = pl.pallas_call(
        _fused_kernel,
        out_shape=jax.ShapeDtypeStruct((n_pad, OUT_LANES), jnp.float32),
        grid=(steps,),
        in_specs=in_specs,
        out_specs=pl.BlockSpec((nb, OUT_LANES), lambda n: (n, 0)),
        compiler_params=pltpu.CompilerParams(
            dimension_semantics=("parallel",),           # v7x: batch blocks across both TCs
            vmem_limit_bytes=48 * 1024 * 1024),          # within v7x's 64 MiB physical VMEM
    )(x_flat, *consts)

    age_pred = out[:N, 0:1]
    gender_logits = out[:N, 1:2]
    return age_pred, gender_logits


def reference_forward(x_nchw, packed):
    """Pure-JAX reference using the same packed constants and the same
    bf16-operand / f32-accumulate convention as the kernel."""
    f32, bf16 = jnp.float32, jnp.bfloat16
    N, C, H, W = x_nchw.shape
    act = x_nchw.reshape(N, C * H * W)
    for D, bss in zip(packed["dense"], packed["bss"]):
        z = jnp.dot(act.astype(bf16), D, preferred_element_type=f32)
        act = jnp.maximum(z + bss[0:1], 0.0) * bss[1:2] + bss[2:3]
    hw1, hb1, hw2, hb2, hw3, hb3 = packed["head"]
    h1 = jnp.maximum(jnp.dot(act.astype(bf16), hw1, preferred_element_type=f32) + hb1, 0.0)
    h2 = jnp.maximum(jnp.dot(h1.astype(bf16), hw2, preferred_element_type=f32) + hb2, 0.0)
    y = jnp.dot(h2.astype(bf16), hw3, preferred_element_type=f32) + hb3
    return jax.nn.sigmoid(y[:, 0:1]), y[:, 1:2]


if __name__ == "__main__":
    key = jax.random.PRNGKey(0)
    pkey, xkey = jax.random.split(key)
    params = init_params(pkey)

    H = W = 16
    packed = pack_params(params, H, W)

    x = jax.random.normal(xkey, (2, 3, H, W), jnp.float32)
    age_pred, gender_logits = forward(x, packed)
    jax.block_until_ready((age_pred, gender_logits))

    assert age_pred.shape == (2, 1) and gender_logits.shape == (2, 1)
    assert bool(jnp.all(jnp.isfinite(age_pred))) and bool(jnp.all(jnp.isfinite(gender_logits)))
    assert bool(jnp.all((age_pred >= 0.0) & (age_pred <= 1.0)))          # sigmoid range

    # Cross-check against a pure-JAX path built from the same packed constants.
    ref_age, ref_gender = reference_forward(x, packed)
    assert bool(jnp.allclose(age_pred, ref_age, atol=1.5e-2, rtol=1.5e-2))
    assert bool(jnp.allclose(gender_logits, ref_gender, atol=1.5e-2, rtol=1.5e-2))

    print("KERNEL_OK")
</pallas_src>

<mosaic_0001>
module attributes {stable_mosaic.version = 11 : i64} {
  func.func @_fused_kernel(%arg0: i32, %arg1: memref<8x768xf32, #tpu.memory_space<vmem>>, %arg2: memref<768x2048xbf16, #tpu.memory_space<vmem>>, %arg3: memref<2048x1024xbf16, #tpu.memory_space<vmem>>, %arg4: memref<1024x512xbf16, #tpu.memory_space<vmem>>, %arg5: memref<512x256xbf16, #tpu.memory_space<vmem>>, %arg6: memref<3x2048xf32, #tpu.memory_space<vmem>>, %arg7: memref<3x1024xf32, #tpu.memory_space<vmem>>, %arg8: memref<3x512xf32, #tpu.memory_space<vmem>>, %arg9: memref<3x256xf32, #tpu.memory_space<vmem>>, %arg10: memref<256x256xbf16, #tpu.memory_space<vmem>>, %arg11: memref<1x256xf32, #tpu.memory_space<vmem>>, %arg12: memref<256x128xbf16, #tpu.memory_space<vmem>>, %arg13: memref<1x128xf32, #tpu.memory_space<vmem>>, %arg14: memref<128x128xbf16, #tpu.memory_space<vmem>>, %arg15: memref<1x128xf32, #tpu.memory_space<vmem>>, %arg16: memref<8x128xf32, #tpu.memory_space<vmem>>) attributes {dimension_semantics = [#tpu.dimension_semantics<parallel>], iteration_bounds = array<i64: 1>, scalar_prefetch = 0 : i64, scratch_operands = 0 : i64, tpu.core_type = #tpu.core_type<tc>, window_params = [{transform_indices = @transform_0, window_bounds = array<i64: 8, 768>}, {pipeline_mode = #tpu.pipeline_mode<synchronous>, transform_indices = @transform_1, window_bounds = array<i64: 768, 2048>}, {pipeline_mode = #tpu.pipeline_mode<synchronous>, transform_indices = @transform_2, window_bounds = array<i64: 2048, 1024>}, {pipeline_mode = #tpu.pipeline_mode<synchronous>, transform_indices = @transform_3, window_bounds = array<i64: 1024, 512>}, {pipeline_mode = #tpu.pipeline_mode<synchronous>, transform_indices = @transform_4, window_bounds = array<i64: 512, 256>}, {pipeline_mode = #tpu.pipeline_mode<synchronous>, transform_indices = @transform_5, window_bounds = array<i64: 3, 2048>}, {pipeline_mode = #tpu.pipeline_mode<synchronous>, transform_indices = @transform_6, window_bounds = array<i64: 3, 1024>}, {pipeline_mode = #tpu.pipeline_mode<synchronous>, transform_indices = @transform_7, window_bounds = array<i64: 3, 512>}, {pipeline_mode = #tpu.pipeline_mode<synchronous>, transform_indices = @transform_8, window_bounds = array<i64: 3, 256>}, {pipeline_mode = #tpu.pipeline_mode<synchronous>, transform_indices = @transform_9, window_bounds = array<i64: 256, 256>}, {pipeline_mode = #tpu.pipeline_mode<synchronous>, transform_indices = @transform_10, window_bounds = array<i64: 1, 256>}, {pipeline_mode = #tpu.pipeline_mode<synchronous>, transform_indices = @transform_11, window_bounds = array<i64: 256, 128>}, {pipeline_mode = #tpu.pipeline_mode<synchronous>, transform_indices = @transform_12, window_bounds = array<i64: 1, 128>}, {pipeline_mode = #tpu.pipeline_mode<synchronous>, transform_indices = @transform_13, window_bounds = array<i64: 128, 128>}, {pipeline_mode = #tpu.pipeline_mode<synchronous>, transform_indices = @transform_14, window_bounds = array<i64: 1, 128>}, {transform_indices = @transform_15, window_bounds = array<i64: 8, 128>}]} {
    %c0 = arith.constant 0 : index
    %c0_0 = arith.constant 0 : index
    %0 = vector.load %arg1[%c0, %c0_0] : memref<8x768xf32, #tpu.memory_space<vmem>>, vector<8x768xf32>
    %1 = arith.truncf %0 : vector<8x768xf32> to vector<8x768xbf16>
    %c0_1 = arith.constant 0 : index
    %c0_2 = arith.constant 0 : index
    %2 = vector.load %arg2[%c0_1, %c0_2] : memref<768x2048xbf16, #tpu.memory_space<vmem>>, vector<768x2048xbf16>
    %cst = arith.constant dense<0.000000e+00> : vector<8x2048xf32>
    %3 = tpu.matmul %1, %2, %cst {dimension_numbers = #tpu.dot_dimension_numbers<[1], [0], [0], [1], [0, 0, 1, 1], [], []>} : vector<8x768xbf16>, vector<768x2048xbf16>, vector<8x2048xf32> -> vector<8x2048xf32>
    %c0_3 = arith.constant 0 : index
    %c0_4 = arith.constant 0 : index
    %4 = vector.load %arg6[%c0_3, %c0_4] : memref<3x2048xf32, #tpu.memory_space<vmem>>, vector<1x2048xf32>
    %5 = vector.broadcast %4 : vector<1x2048xf32> to vector<8x2048xf32>
    %6 = arith.addf %3, %5 : vector<8x2048xf32>
    %cst_5 = arith.constant 0.000000e+00 : f32
    %7 = vector.broadcast %cst_5 : f32 to vector<8x2048xf32>
    %8 = arith.maximumf %6, %7 : vector<8x2048xf32>
    %c1 = arith.constant 1 : index
    %c0_6 = arith.constant 0 : index
    %9 = vector.load %arg6[%c1, %c0_6] : memref<3x2048xf32, #tpu.memory_space<vmem>>, vector<1x2048xf32>
    %10 = vector.broadcast %9 : vector<1x2048xf32> to vector<8x2048xf32>
    %11 = arith.mulf %8, %10 : vector<8x2048xf32>
    %c2 = arith.constant 2 : index
    %c0_7 = arith.constant 0 : index
    %12 = vector.load %arg6[%c2, %c0_7] : memref<3x2048xf32, #tpu.memory_space<vmem>>, vector<1x2048xf32>
    %13 = vector.broadcast %12 : vector<1x2048xf32> to vector<8x2048xf32>
    %14 = arith.addf %11, %13 : vector<8x2048xf32>
    %15 = arith.truncf %14 : vector<8x2048xf32> to vector<8x2048xbf16>
    %c0_8 = arith.constant 0 : index
    %c0_9 = arith.constant 0 : index
    %16 = vector.load %arg3[%c0_8, %c0_9] : memref<2048x1024xbf16, #tpu.memory_space<vmem>>, vector<2048x1024xbf16>
    %cst_10 = arith.constant dense<0.000000e+00> : vector<8x1024xf32>
    %17 = tpu.matmul %15, %16, %cst_10 {dimension_numbers = #tpu.dot_dimension_numbers<[1], [0], [0], [1], [0, 0, 1, 1], [], []>} : vector<8x2048xbf16>, vector<2048x1024xbf16>, vector<8x1024xf32> -> vector<8x1024xf32>
    %c0_11 = arith.constant 0 : index
    %c0_12 = arith.constant 0 : index
    %18 = vector.load %arg7[%c0_11, %c0_12] : memref<3x1024xf32, #tpu.memory_space<vmem>>, vector<1x1024xf32>
    %19 = vector.broadcast %18 : vector<1x1024xf32> to vector<8x1024xf32>
    %20 = arith.addf %17, %19 : vector<8x1024xf32>
    %cst_13 = arith.constant 0.000000e+00 : f32
    %21 = vector.broadcast %cst_13 : f32 to vector<8x1024xf32>
    %22 = arith.maximumf %20, %21 : vector<8x1024xf32>
    %c1_14 = arith.constant 1 : index
    %c0_15 = arith.constant 0 : index
    %23 = vector.load %arg7[%c1_14, %c0_15] : memref<3x1024xf32, #tpu.memory_space<vmem>>, vector<1x1024xf32>
    %24 = vector.broadcast %23 : vector<1x1024xf32> to vector<8x1024xf32>
    %25 = arith.mulf %22, %24 : vector<8x1024xf32>
    %c2_16 = arith.constant 2 : index
    %c0_17 = arith.constant 0 : index
    %26 = vector.load %arg7[%c2_16, %c0_17] : memref<3x1024xf32, #tpu.memory_space<vmem>>, vector<1x1024xf32>
    %27 = vector.broadcast %26 : vector<1x1024xf32> to vector<8x1024xf32>
    %28 = arith.addf %25, %27 : vector<8x1024xf32>
    %29 = arith.truncf %28 : vector<8x1024xf32> to vector<8x1024xbf16>
    %c0_18 = arith.constant 0 : index
    %c0_19 = arith.constant 0 : index
    %30 = vector.load %arg4[%c0_18, %c0_19] : memref<1024x512xbf16, #tpu.memory_space<vmem>>, vector<1024x512xbf16>
    %cst_20 = arith.constant dense<0.000000e+00> : vector<8x512xf32>
    %31 = tpu.matmul %29, %30, %cst_20 {dimension_numbers = #tpu.dot_dimension_numbers<[1], [0], [0], [1], [0, 0, 1, 1], [], []>} : vector<8x1024xbf16>, vector<1024x512xbf16>, vector<8x512xf32> -> vector<8x512xf32>
    %c0_21 = arith.constant 0 : index
    %c0_22 = arith.constant 0 : index
    %32 = vector.load %arg8[%c0_21, %c0_22] : memref<3x512xf32, #tpu.memory_space<vmem>>, vector<1x512xf32>
    %33 = vector.broadcast %32 : vector<1x512xf32> to vector<8x512xf32>
    %34 = arith.addf %31, %33 : vector<8x512xf32>
    %cst_23 = arith.constant 0.000000e+00 : f32
    %35 = vector.broadcast %cst_23 : f32 to vector<8x512xf32>
    %36 = arith.maximumf %34, %35 : vector<8x512xf32>
    %c1_24 = arith.constant 1 : index
    %c0_25 = arith.constant 0 : index
    %37 = vector.load %arg8[%c1_24, %c0_25] : memref<3x512xf32, #tpu.memory_space<vmem>>, vector<1x512xf32>
    %38 = vector.broadcast %37 : vector<1x512xf32> to vector<8x512xf32>
    %39 = arith.mulf %36, %38 : vector<8x512xf32>
    %c2_26 = arith.constant 2 : index
    %c0_27 = arith.constant 0 : index
    %40 = vector.load %arg8[%c2_26, %c0_27] : memref<3x512xf32, #tpu.memory_space<vmem>>, vector<1x512xf32>
    %41 = vector.broadcast %40 : vector<1x512xf32> to vector<8x512xf32>
    %42 = arith.addf %39, %41 : vector<8x512xf32>
    %43 = arith.truncf %42 : vector<8x512xf32> to vector<8x512xbf16>
    %c0_28 = arith.constant 0 : index
    %c0_29 = arith.constant 0 : index
    %44 = vector.load %arg5[%c0_28, %c0_29] : memref<512x256xbf16, #tpu.memory_space<vmem>>, vector<512x256xbf16>
    %cst_30 = arith.constant dense<0.000000e+00> : vector<8x256xf32>
    %45 = tpu.matmul %43, %44, %cst_30 {dimension_numbers = #tpu.dot_dimension_numbers<[1], [0], [0], [1], [0, 0, 1, 1], [], []>} : vector<8x512xbf16>, vector<512x256xbf16>, vector<8x256xf32> -> vector<8x256xf32>
    %c0_31 = arith.constant 0 : index
    %c0_32 = arith.constant 0 : index
    %46 = vector.load %arg9[%c0_31, %c0_32] : memref<3x256xf32, #tpu.memory_space<vmem>>, vector<1x256xf32>
    %47 = vector.broadcast %46 : vector<1x256xf32> to vector<8x256xf32>
    %48 = arith.addf %45, %47 : vector<8x256xf32>
    %cst_33 = arith.constant 0.000000e+00 : f32
    %49 = vector.broadcast %cst_33 : f32 to vector<8x256xf32>
    %50 = arith.maximumf %48, %49 : vector<8x256xf32>
    %c1_34 = arith.constant 1 : index
    %c0_35 = arith.constant 0 : index
    %51 = vector.load %arg9[%c1_34, %c0_35] : memref<3x256xf32, #tpu.memory_space<vmem>>, vector<1x256xf32>
    %52 = vector.broadcast %51 : vector<1x256xf32> to vector<8x256xf32>
    %53 = arith.mulf %50, %52 : vector<8x256xf32>
    %c2_36 = arith.constant 2 : index
    %c0_37 = arith.constant 0 : index
    %54 = vector.load %arg9[%c2_36, %c0_37] : memref<3x256xf32, #tpu.memory_space<vmem>>, vector<1x256xf32>
    %55 = vector.broadcast %54 : vector<1x256xf32> to vector<8x256xf32>
    %56 = arith.addf %53, %55 : vector<8x256xf32>
    %57 = arith.truncf %56 : vector<8x256xf32> to vector<8x256xbf16>
    %c0_38 = arith.constant 0 : index
    %c0_39 = arith.constant 0 : index
    %58 = vector.load %arg10[%c0_38, %c0_39] : memref<256x256xbf16, #tpu.memory_space<vmem>>, vector<256x256xbf16>
    %cst_40 = arith.constant dense<0.000000e+00> : vector<8x256xf32>
    %59 = tpu.matmul %57, %58, %cst_40 {dimension_numbers = #tpu.dot_dimension_numbers<[1], [0], [0], [1], [0, 0, 1, 1], [], []>} : vector<8x256xbf16>, vector<256x256xbf16>, vector<8x256xf32> -> vector<8x256xf32>
    %c0_41 = arith.constant 0 : index
    %c0_42 = arith.constant 0 : index
    %60 = vector.load %arg11[%c0_41, %c0_42] : memref<1x256xf32, #tpu.memory_space<vmem>>, vector<1x256xf32>
    %61 = vector.broadcast %60 : vector<1x256xf32> to vector<8x256xf32>
    %62 = arith.addf %59, %61 : vector<8x256xf32>
    %cst_43 = arith.constant 0.000000e+00 : f32
    %63 = vector.broadcast %cst_43 : f32 to vector<8x256xf32>
    %64 = arith.maximumf %62, %63 : vector<8x256xf32>
    %65 = arith.truncf %64 : vector<8x256xf32> to vector<8x256xbf16>
    %c0_44 = arith.constant 0 : index
    %c0_45 = arith.constant 0 : index
    %66 = vector.load %arg12[%c0_44, %c0_45] : memref<256x128xbf16, #tpu.memory_space<vmem>>, vector<256x128xbf16>
    %cst_46 = arith.constant dense<0.000000e+00> : vector<8x128xf32>
    %67 = tpu.matmul %65, %66, %cst_46 {dimension_numbers = #tpu.dot_dimension_numbers<[1], [0], [0], [1], [0, 0, 1, 1], [], []>} : vector<8x256xbf16>, vector<256x128xbf16>, vector<8x128xf32> -> vector<8x128xf32>
    %c0_47 = arith.constant 0 : index
    %c0_48 = arith.constant 0 : index
    %68 = vector.load %arg13[%c0_47, %c0_48] : memref<1x128xf32, #tpu.memory_space<vmem>>, vector<1x128xf32>
    %69 = vector.broadcast %68 : vector<1x128xf32> to vector<8x128xf32>
    %70 = arith.addf %67, %69 : vector<8x128xf32>
    %cst_49 = arith.constant 0.000000e+00 : f32
    %71 = vector.broadcast %cst_49 : f32 to vector<8x128xf32>
    %72 = arith.maximumf %70, %71 : vector<8x128xf32>
    %73 = arith.truncf %72 : vector<8x128xf32> to vector<8x128xbf16>
    %c0_50 = arith.constant 0 : index
    %c0_51 = arith.constant 0 : index
    %74 = vector.load %arg14[%c0_50, %c0_51] : memref<128x128xbf16, #tpu.memory_space<vmem>>, vector<128x128xbf16>
    %cst_52 = arith.constant dense<0.000000e+00> : vector<8x128xf32>
    %75 = tpu.matmul %73, %74, %cst_52 {dimension_numbers = #tpu.dot_dimension_numbers<[1], [0], [0], [1], [0, 0, 1, 1], [], []>} : vector<8x128xbf16>, vector<128x128xbf16>, vector<8x128xf32> -> vector<8x128xf32>
    %c0_53 = arith.constant 0 : index
    %c0_54 = arith.constant 0 : index
    %76 = vector.load %arg15[%c0_53, %c0_54] : memref<1x128xf32, #tpu.memory_space<vmem>>, vector<1x128xf32>
    %77 = vector.broadcast %76 : vector<1x128xf32> to vector<8x128xf32>
    %78 = arith.addf %75, %77 : vector<8x128xf32>
    %79 = math.absf %78 : vector<8x128xf32>
    %cst_55 = arith.constant 0.000000e+00 : f32
    %80 = vector.broadcast %cst_55 : f32 to vector<8x128xf32>
    %81 = arith.subf %80, %79 : vector<8x128xf32>
    %82 = math.exp %81 : vector<8x128xf32>
    %cst_56 = arith.constant 0.000000e+00 : f32
    %83 = vector.broadcast %cst_56 : f32 to vector<8x128xf32>
    %84 = arith.cmpf oge, %78, %83 : vector<8x128xf32>
    %cst_57 = arith.constant 1.000000e+00 : f32
    %85 = vector.broadcast %cst_57 : f32 to vector<8x128xf32>
    %86 = arith.addf %85, %82 : vector<8x128xf32>
    %cst_58 = arith.constant 1.000000e+00 : f32
    %87 = vector.broadcast %cst_58 : f32 to vector<8x128xf32>
    %88 = arith.divf %87, %86 : vector<8x128xf32>
    %cst_59 = arith.constant 1.000000e+00 : f32
    %89 = vector.broadcast %cst_59 : f32 to vector<8x128xf32>
    %90 = arith.addf %89, %82 : vector<8x128xf32>
    %91 = arith.divf %82, %90 : vector<8x128xf32>
    %92 = arith.select %84, %88, %91 : vector<8x128xi1>, vector<8x128xf32>
    %93 = tpu.iota {dimensions = array<i32: 1>} : vector<8x128xi32>
    %c0_i32 = arith.constant 0 : i32
    %94 = vector.broadcast %c0_i32 : i32 to vector<8x128xi32>
    %95 = arith.cmpi eq, %93, %94 : vector<8x128xi32>
    %96 = arith.select %95, %92, %78 : vector<8x128xi1>, vector<8x128xf32>
    %c0_60 = arith.constant 0 : index
    %c0_61 = arith.constant 0 : index
    %97 = vector.load %arg16[%c0_60, %c0_61] : memref<8x128xf32, #tpu.memory_space<vmem>>, vector<8x128xf32>
    tpu.vector_store %arg16[%c0_60, %c0_61], %96 {strides = array<i32>} : memref<8x128xf32, #tpu.memory_space<vmem>>, vector<8x128xf32>,
    return
  }
  func.func @transform_0(%arg0: i32) -> (i32, i32) {
    %c0_i32 = arith.constant 0 : i32
    %c0_i32_0 = arith.constant 0 : i32
    return %arg0, %c0_i32 : i32, i32
  }
  func.func @transform_1(%arg0: i32) -> (i32, i32) {
    %c0_i32 = arith.constant 0 : i32
    %c0_i32_0 = arith.constant 0 : i32
    %c0_i32_1 = arith.constant 0 : i32
    return %c0_i32, %c0_i32_0 : i32, i32
  }
  func.func @transform_2(%arg0: i32) -> (i32, i32) {
    %c0_i32 = arith.constant 0 : i32
    %c0_i32_0 = arith.constant 0 : i32
    %c0_i32_1 = arith.constant 0 : i32
    return %c0_i32, %c0_i32_0 : i32, i32
  }
  func.func @transform_3(%arg0: i32) -> (i32, i32) {
    %c0_i32 = arith.constant 0 : i32
    %c0_i32_0 = arith.constant 0 : i32
    %c0_i32_1 = arith.constant 0 : i32
    return %c0_i32, %c0_i32_0 : i32, i32
  }
  func.func @transform_4(%arg0: i32) -> (i32, i32) {
    %c0_i32 = arith.constant 0 : i32
    %c0_i32_0 = arith.constant 0 : i32
    %c0_i32_1 = arith.constant 0 : i32
    return %c0_i32, %c0_i32_0 : i32, i32
  }
  func.func @transform_5(%arg0: i32) -> (i32, i32) {
    %c0_i32 = arith.constant 0 : i32
    %c0_i32_0 = arith.constant 0 : i32
    %c0_i32_1 = arith.constant 0 : i32
    return %c0_i32, %c0_i32_0 : i32, i32
  }
  func.func @transform_6(%arg0: i32) -> (i32, i32) {
    %c0_i32 = arith.constant 0 : i32
    %c0_i32_0 = arith.constant 0 : i32
    %c0_i32_1 = arith.constant 0 : i32
    return %c0_i32, %c0_i32_0 : i32, i32
  }
  func.func @transform_7(%arg0: i32) -> (i32, i32) {
    %c0_i32 = arith.constant 0 : i32
    %c0_i32_0 = arith.constant 0 : i32
    %c0_i32_1 = arith.constant 0 : i32
    return %c0_i32, %c0_i32_0 : i32, i32
  }
  func.func @transform_8(%arg0: i32) -> (i32, i32) {
    %c0_i32 = arith.constant 0 : i32
    %c0_i32_0 = arith.constant 0 : i32
    %c0_i32_1 = arith.constant 0 : i32
    return %c0_i32, %c0_i32_0 : i32, i32
  }
  func.func @transform_9(%arg0: i32) -> (i32, i32) {
    %c0_i32 = arith.constant 0 : i32
    %c0_i32_0 = arith.constant 0 : i32
    %c0_i32_1 = arith.constant 0 : i32
    return %c0_i32, %c0_i32_0 : i32, i32
  }
  func.func @transform_10(%arg0: i32) -> (i32, i32) {
    %c0_i32 = arith.constant 0 : i32
    %c0_i32_0 = arith.constant 0 : i32
    %c0_i32_1 = arith.constant 0 : i32
    return %c0_i32, %c0_i32_0 : i32, i32
  }
  func.func @transform_11(%arg0: i32) -> (i32, i32) {
    %c0_i32 = arith.constant 0 : i32
    %c0_i32_0 = arith.constant 0 : i32
    %c0_i32_1 = arith.constant 0 : i32
    return %c0_i32, %c0_i32_0 : i32, i32
  }
  func.func @transform_12(%arg0: i32) -> (i32, i32) {
    %c0_i32 = arith.constant 0 : i32
    %c0_i32_0 = arith.constant 0 : i32
    %c0_i32_1 = arith.constant 0 : i32
    return %c0_i32, %c0_i32_0 : i32, i32
  }
  func.func @transform_13(%arg0: i32) -> (i32, i32) {
    %c0_i32 = arith.constant 0 : i32
    %c0_i32_0 = arith.constant 0 : i32
    %c0_i32_1 = arith.constant 0 : i32
    return %c0_i32, %c0_i32_0 : i32, i32
  }
  func.func @transform_14(%arg0: i32) -> (i32, i32) {
    %c0_i32 = arith.constant 0 : i32
    %c0_i32_0 = arith.constant 0 : i32
    %c0_i32_1 = arith.constant 0 : i32
    return %c0_i32, %c0_i32_0 : i32, i32
  }
  func.func @transform_15(%arg0: i32) -> (i32, i32) {
    %c0_i32 = arith.constant 0 : i32
    %c0_i32_0 = arith.constant 0 : i32
    return %arg0, %c0_i32 : i32, i32
  }
}

</mosaic_0001>

<bundles_post_ra>
// kernel: forward.1
= control target key start
LH: loop header
LB: loop body
LE: loop exit
PB: predicated region body
PF: predicated region fallthrough
CT: control target
= control target key end

     0   :  { %20 = vsyncpa [#allocation3], 0  ;;  %s20915_s0 = inlined_call_operand.vmem [shape: f32[8,768], index: 0, kind: input, shape index: {}]   ;;  %s20916_s1 = inlined_call_operand.hbm [shape: bf16[768,2048], index: 1, kind: input, shape index: {}]   ;;  %s20917_s2 = inlined_call_operand.hbm [shape: bf16[2048,1024], index: 2, kind: input, shape index: {}]   ;;  %s20918_s3 = inlined_call_operand.hbm [shape: bf16[1024,512], index: 3, kind: input, shape index: {}]   ;;  %s20919_s4 = inlined_call_operand.hbm [shape: bf16[512,256], index: 4, kind: input, shape index: {}]   ;;  %s20920_s5 = inlined_call_operand.hbm [shape: f32[3,2048], index: 5, kind: input, shape index: {}]   ;;  %s20921_s6 = inlined_call_operand.hbm [shape: f32[3,1024], index: 6, kind: input, shape index: {}]   ;;  %s20922_s7 = inlined_call_operand.hbm [shape: f32[3,512], index: 7, kind: input, shape index: {}]   ;;  %s20923_s8 = inlined_call_operand.hbm [shape: f32[3,256], index: 8, kind: input, shape index: {}]   ;;  %s20924_s9 = inlined_call_operand.hbm [shape: bf16[256,256], index: 9, kind: input, shape index: {}]   ;;  %s20925_s10 = inlined_call_operand.hbm [shape: f32[1,256], index: 10, kind: input, shape index: {}]   ;;  %s20926_s11 = inlined_call_operand.hbm [shape: bf16[256,128], index: 11, kind: input, shape index: {}]   ;;  %s20927_s12 = inlined_call_operand.hbm [shape: f32[1,128], index: 12, kind: input, shape index: {}]   ;;  %s20928_s13 = inlined_call_operand.hbm [shape: bf16[128,128], index: 13, kind: input, shape index: {}]   ;;  %s20929_s14 = inlined_call_operand.hbm [shape: f32[1,128], index: 14, kind: input, shape index: {}]   ;;  %s20930_s15 = inlined_call_operand.vmem [shape: f32[8,128], index: 15, kind: output, shape index: {}]  }
   0x1   :  { %21 = vsyncpa [#allocation5], 0 }
   0x2   :  { %22 = vsyncpa [#allocation8], 0 }
   0x3   :  { %23 = vsyncpa [#allocation11], 0 }
   0x4   :  { %24 = vsyncpa [#allocation14], 0 }
   0x5   :  { %25 = vsyncpa [#allocation17], 0 }
   0x6   :  { %26 = vsyncpa [#allocation20], 0 }
   0x7   :  { %27 = vsyncpa [#allocation23], 0  ;;  %s20161_s18 = smov [#allocation4]   ;;  %s19837_s22 = scalar_lea.hbm %s20917_s2, 131072 }
   0x8   :  { %s47_s19 = sshll.u32 %s20161_s18, 4  ;;  %p19838_p0 = scmp.ne.s32.totalorder %s20917_s2, %s19837_s22  ;;  %s48_s19 = int_to_ptr.vmem [resolvable:$true] %s47_s19 }
   0x9   :  { %p19841_p1 = scmp.lt.u32.totalorder %s19837_s22, %s20917_s2 }
   0xb   :  { %p19843_p2 = pnand %p19841_p1, %p19838_p0 }
   0xd   :  { %19846 = shalt.err (!%p19843_p2)
}
   0xe   :  { %s19847_s27 = scalar_lea.vmem %s48_s19, 131072  ;;  %p19852_p4 = scmp.lt.s32.totalorder %s48_s19, %s48_s19 }
   0xf   :  { %p19848_p3 = scmp.ne.s32.totalorder %s48_s19, %s19847_s27  ;;  %p19853_p5 = scmp.lt.s32.totalorder %s19847_s27, %s19847_s27 }
  0x11   :  { %p19854_p6 = por %p19853_p5, %p19852_p4 }
  0x13   :  { %p19855_p7 = pnand %p19854_p6, %p19848_p3 }
  0x15   :  { %19858 = shalt.err (!%p19855_p7)
}
  0x16   :  { %s20162_s28 = smov 512   ;;  %s20163_s29 = smov 32  }
  0x17   :  { %53 = dma.hbm_to_vmem [thread:$0]  %s20917_s2, 131072, %s48_s19, [#allocation5], %s20162_s28, %s20162_s28, %s20163_s29  }
  0x18   :  { %s20164_s17 = smov [#allocation7]   ;;  %s19859_s22 = scalar_lea.hbm %s20919_s4, 8192 }
  0x19   :  { %s71_s18 = sshll.u32 %s20164_s17, 4  ;;  %p19860_p8 = scmp.ne.s32.totalorder %s20919_s4, %s19859_s22  ;;  %s72_s18 = int_to_ptr.vmem [resolvable:$true] %s71_s18 }
  0x1a   :  { %p19863_p9 = scmp.lt.u32.totalorder %s19859_s22, %s20919_s4 }
  0x1c   :  { %p19865_p10 = pnand %p19863_p9, %p19860_p8 }
  0x1e   :  { %19868 = shalt.err (!%p19865_p10)
}
  0x1f   :  { %s19869_s27 = scalar_lea.vmem %s72_s18, 8192  ;;  %p19874_p12 = scmp.lt.s32.totalorder %s72_s18, %s72_s18 }
  0x20   :  { %p19870_p11 = scmp.ne.s32.totalorder %s72_s18, %s19869_s27  ;;  %p19875_p13 = scmp.lt.s32.totalorder %s19869_s27, %s19869_s27 }
  0x22   :  { %p19876_p0 = por %p19875_p13, %p19874_p12 }
  0x24   :  { %p19877_p1 = pnand %p19876_p0, %p19870_p11 }
  0x26   :  { %19880 = shalt.err (!%p19877_p1)
}
  0x27   :  { %s20165_s2 = smov 128   ;;  %s20166_s19 = smov 8  }
  0x28   :  { %77 = dma.hbm_to_vmem [thread:$0]  %s20919_s4, 8192, %s72_s18, [#allocation8], %s20165_s2, %s20165_s2, %s20166_s19  }
  0x29   :  { %s20167_s30 = smov [#allocation10]   ;;  %s20168_s17 = smov [#allocation13]  }
  0x2a   :  { %s94_s16 = sshll.u32 %s20167_s30, 4  ;;  %s114_s20 = sshll.u32 %s20168_s17, 4  ;;  %s95_s16 = int_to_ptr.vmem [resolvable:$true] %s94_s16  ;;  %s115_s20 = int_to_ptr.vmem [resolvable:$true] %s114_s20 }
  0x2b   :  { %s19881_s23 = scalar_lea.hbm %s20921_s6, 512 }
  0x2c   :  { %p19882_p2 = scmp.ne.s32.totalorder %s20921_s6, %s19881_s23  ;;  %p19885_p3 = scmp.lt.u32.totalorder %s19881_s23, %s20921_s6 }
  0x2e   :  { %p19887_p4 = pnand %p19885_p3, %p19882_p2 }
  0x30   :  { %19890 = shalt.err (!%p19887_p4)
}
  0x31   :  { %s19891_s4 = scalar_lea.vmem %s95_s16, 512  ;;  %p19896_p6 = scmp.lt.s32.totalorder %s95_s16, %s95_s16 }
  0x32   :  { %p19892_p5 = scmp.ne.s32.totalorder %s95_s16, %s19891_s4  ;;  %p19897_p7 = scmp.lt.s32.totalorder %s19891_s4, %s19891_s4 }
  0x34   :  { %p19898_p8 = por %p19897_p7, %p19896_p6 }
  0x36   :  { %p19899_p9 = pnand %p19898_p8, %p19892_p5 }
  0x38   :  { %19902 = shalt.err (!%p19899_p9)
}
  0x39   :  { %97 = dma.hbm_to_vmem [thread:$0]  %s20921_s6, 512, %s95_s16, [#allocation11]  }
  0x3a   :  { %s19903_s17 = scalar_lea.hbm %s20923_s8, 128 }
  0x3b   :  { %p19904_p10 = scmp.ne.s32.totalorder %s20923_s8, %s19903_s17  ;;  %p19907_p11 = scmp.lt.u32.totalorder %s19903_s17, %s20923_s8 }
  0x3d   :  { %p19909_p12 = pnand %p19907_p11, %p19904_p10 }
  0x3f   :  { %19912 = shalt.err (!%p19909_p12)
}
  0x40   :  { %s19913_s25 = scalar_lea.vmem %s115_s20, 128  ;;  %p19918_p0 = scmp.lt.s32.totalorder %s115_s20, %s115_s20 }
  0x41   :  { %p19914_p13 = scmp.ne.s32.totalorder %s115_s20, %s19913_s25  ;;  %p19919_p1 = scmp.lt.s32.totalorder %s19913_s25, %s19913_s25 }
  0x43   :  { %p19920_p2 = por %p19919_p1, %p19918_p0 }
  0x45   :  { %p19921_p3 = pnand %p19920_p2, %p19914_p13 }
  0x47   :  { %19924 = shalt.err (!%p19921_p3)
}
  0x48   :  { %117 = dma.hbm_to_vmem [thread:$0]  %s20923_s8, 128, %s115_s20, [#allocation14]  }
  0x49   :  { %s20169_s26 = smov [#allocation16]   ;;  %s20170_s4 = smov [#allocation19]  }
  0x4a   :  { %s136_s27 = sshll.u32 %s20169_s26, 4  ;;  %s158_s18 = sshll.u32 %s20170_s4, 4  ;;  %s137_s27 = int_to_ptr.vmem [resolvable:$true] %s136_s27  ;;  %s159_s18 = int_to_ptr.vmem [resolvable:$true] %s158_s18 }
  0x4b   :  { %s19925_s30 = scalar_lea.hbm %s20925_s10, 32 }
  0x4c   :  { %p19926_p4 = scmp.ne.s32.totalorder %s20925_s10, %s19925_s30  ;;  %p19929_p5 = scmp.lt.u32.totalorder %s19925_s30, %s20925_s10 }
  0x4e   :  { %p19931_p6 = pnand %p19929_p5, %p19926_p4 }
  0x50   :  { %19934 = shalt.err (!%p19931_p6)
}
  0x51   :  { %s19935_s8 = scalar_lea.vmem %s137_s27, 32  ;;  %p19940_p8 = scmp.lt.s32.totalorder %s137_s27, %s137_s27 }
  0x52   :  { %p19936_p7 = scmp.ne.s32.totalorder %s137_s27, %s19935_s8  ;;  %p19941_p9 = scmp.lt.s32.totalorder %s19935_s8, %s19935_s8 }
  0x54   :  { %p19942_p10 = por %p19941_p9, %p19940_p8 }
  0x56   :  { %p19943_p11 = pnand %p19942_p10, %p19936_p7 }
  0x58   :  { %19946 = shalt.err (!%p19943_p11)
}
  0x59   :  { %139 = dma.hbm_to_vmem [thread:$0]  %s20925_s10, 32, %s137_s27, [#allocation17]  }
  0x5a   :  { %s19947_s16 = scalar_lea.hbm %s20927_s12, 16 }
  0x5b   :  { %p19948_p12 = scmp.ne.s32.totalorder %s20927_s12, %s19947_s16  ;;  %p19951_p13 = scmp.lt.u32.totalorder %s19947_s16, %s20927_s12 }
  0x5d   :  { %p19953_p0 = pnand %p19951_p13, %p19948_p12 }
  0x5f   :  { %19956 = shalt.err (!%p19953_p0)
}
  0x60   :  { %s19957_s30 = scalar_lea.vmem %s159_s18, 16  ;;  %s19961_s17 = scalar_lea.vmem %s159_s18, 32 }
  0x61   :  { %p19958_p1 = scmp.ne.s32.totalorder %s159_s18, %s19957_s30  ;;  %p19962_p2 = scmp.lt.s32.totalorder %s159_s18, %s159_s18 }
  0x62   :  { %p19963_p3 = scmp.lt.s32.totalorder %s19961_s17, %s19957_s30 }
  0x64   :  { %p19964_p4 = por %p19963_p3, %p19962_p2 }
  0x66   :  { %p19965_p5 = pnand %p19964_p4, %p19958_p1 }
  0x68   :  { %19968 = shalt.err (!%p19965_p5)
}
  0x69   :  { %161 = dma.hbm_to_vmem [thread:$0]  %s20927_s12, 16, %s159_s18, [#allocation20]  }
  0x6a   :  { %s20171_s21 = smov [#allocation2]   ;;  %s19969_s20 = scalar_lea.hbm %s20916_s1, 98304 }
  0x6b   :  { %s35_s22 = sshll.u32 %s20171_s21, 4  ;;  %p19970_p6 = scmp.ne.s32.totalorder %s20916_s1, %s19969_s20  ;;  %s36_s22 = int_to_ptr.vmem [resolvable:$true] %s35_s22 }
  0x6c   :  { %p19973_p7 = scmp.lt.u32.totalorder %s19969_s20, %s20916_s1 }
  0x6e   :  { %p19975_p8 = pnand %p19973_p7, %p19970_p6 }
  0x70   :  { %19978 = shalt.err (!%p19975_p8)
}
  0x71   :  { %s19979_s26 = scalar_lea.vmem %s36_s22, 98304  ;;  %p19984_p10 = scmp.lt.s32.totalorder %s36_s22, %s36_s22 }
  0x72   :  { %p19980_p9 = scmp.ne.s32.totalorder %s36_s22, %s19979_s26  ;;  %p19985_p11 = scmp.lt.s32.totalorder %s19979_s26, %s19979_s26 }
  0x74   :  { %p19986_p12 = por %p19985_p11, %p19984_p10 }
  0x76   :  { %p19987_p13 = pnand %p19986_p12, %p19980_p9 }
  0x78   :  { %19990 = shalt.err (!%p19987_p13)
}
  0x79   :  { %s20172_s12 = smov 1024   ;;  %s20173_s18 = smov 64  }
  0x7a   :  { %41 = dma.hbm_to_vmem [thread:$0]  %s20916_s1, 98304, %s36_s22, [#allocation3], %s20172_s12, %s20172_s12, %s20173_s18  }
  0x7b   :  { %s20174_s29 = smov [#allocation6]   ;;  %s19991_s27 = scalar_lea.hbm %s20918_s3, 32768 }
  0x7c   :  { %s59_s30 = sshll.u32 %s20174_s29, 4  ;;  %p19992_p0 = scmp.ne.s32.totalorder %s20918_s3, %s19991_s27  ;;  %s60_s30 = int_to_ptr.vmem [resolvable:$true] %s59_s30 }
  0x7d   :  { %p19995_p1 = scmp.lt.u32.totalorder %s19991_s27, %s20918_s3 }
  0x7f   :  { %p19997_p2 = pnand %p19995_p1, %p19992_p0 }
  0x81   :  { %20000 = shalt.err (!%p19997_p2)
}
  0x82   :  { %s20001_s24 = scalar_lea.vmem %s60_s30, 32768  ;;  %p20006_p4 = scmp.lt.s32.totalorder %s60_s30, %s60_s30 }
  0x83   :  { %p20002_p3 = scmp.ne.s32.totalorder %s60_s30, %s20001_s24  ;;  %p20007_p5 = scmp.lt.s32.totalorder %s20001_s24, %s20001_s24 }
  0x85   :  { %p20008_p6 = por %p20007_p5, %p20006_p4 }
  0x87   :  { %p20009_p7 = pnand %p20008_p6, %p20002_p3 }
  0x89   :  { %20012 = shalt.err (!%p20009_p7)
}
  0x8a   :  { %s20175_s1 = smov 256   ;;  %s20176_s22 = smov 16  }
  0x8b   :  { %65 = dma.hbm_to_vmem [thread:$0]  %s20918_s3, 32768, %s60_s30, [#allocation5], %s20175_s1, %s20175_s1, %s20176_s22  }
  0x8c   :  { %s20177_s16 = smov [#allocation9]   ;;  %s20178_s12 = smov [#allocation12]  }
  0x8d   :  { %s84_s26 = sshll.u32 %s20177_s16, 4  ;;  %s104_s4 = sshll.u32 %s20178_s12, 4  ;;  %s85_s26 = int_to_ptr.vmem [resolvable:$true] %s84_s26  ;;  %s105_s4 = int_to_ptr.vmem [resolvable:$true] %s104_s4 }
  0x8e   :  { %s20013_s17 = scalar_lea.hbm %s20920_s5, 1024 }
  0x8f   :  { %p20014_p8 = scmp.ne.s32.totalorder %s20920_s5, %s20013_s17  ;;  %p20017_p9 = scmp.lt.u32.totalorder %s20013_s17, %s20920_s5 }
  0x91   :  { %p20019_p10 = pnand %p20017_p9, %p20014_p8 }
  0x93   :  { %20022 = shalt.err (!%p20019_p10)
}
  0x94   :  { %s20023_s3 = scalar_lea.vmem %s85_s26, 1024  ;;  %p20028_p12 = scmp.lt.s32.totalorder %s85_s26, %s85_s26 }
  0x95   :  { %p20024_p11 = scmp.ne.s32.totalorder %s85_s26, %s20023_s3  ;;  %p20029_p13 = scmp.lt.s32.totalorder %s20023_s3, %s20023_s3 }
  0x97   :  { %p20030_p0 = por %p20029_p13, %p20028_p12 }
  0x99   :  { %p20031_p1 = pnand %p20030_p0, %p20024_p11 }
  0x9b   :  { %20034 = shalt.err (!%p20031_p1)
}
  0x9c   :  { %87 = dma.hbm_to_vmem [thread:$0]  %s20920_s5, 1024, %s85_s26, [#allocation8]  }
  0x9d   :  { %s20035_s1 = scalar_lea.hbm %s20922_s7, 256 }
  0x9e   :  { %p20036_p2 = scmp.ne.s32.totalorder %s20922_s7, %s20035_s1  ;;  %p20039_p3 = scmp.lt.u32.totalorder %s20035_s1, %s20922_s7 }
  0xa0   :  { %p20041_p4 = pnand %p20039_p3, %p20036_p2 }
  0xa2   :  { %20044 = shalt.err (!%p20041_p4)
}
  0xa3   :  { %s20045_s12 = scalar_lea.vmem %s105_s4, 256  ;;  %p20050_p6 = scmp.lt.s32.totalorder %s105_s4, %s105_s4 }
  0xa4   :  { %p20046_p5 = scmp.ne.s32.totalorder %s105_s4, %s20045_s12  ;;  %p20051_p7 = scmp.lt.s32.totalorder %s20045_s12, %s20045_s12 }
  0xa6   :  { %p20052_p8 = por %p20051_p7, %p20050_p6 }
  0xa8   :  { %p20053_p9 = pnand %p20052_p8, %p20046_p5 }
  0xaa   :  { %20056 = shalt.err (!%p20053_p9)
}
  0xab   :  { %107 = dma.hbm_to_vmem [thread:$0]  %s20922_s7, 256, %s105_s4, [#allocation11]  }
  0xac   :  { %s20179_s28 = smov [#allocation15]   ;;  %s20180_s17 = smov [#allocation18]  }
  0xad   :  { %s123_s29 = sshll.u32 %s20179_s28, 4  ;;  %s145_s10 = sshll.u32 %s20180_s17, 4  ;;  %s124_s29 = int_to_ptr.vmem [resolvable:$true] %s123_s29  ;;  %s20390_s10 = int_to_ptr.vmem [resolvable:$true] %s145_s10 }
  0xae   :  { %s20057_s23 = scalar_lea.hbm %s20924_s9, 4096 }
  0xaf   :  { %p20058_p10 = scmp.ne.s32.totalorder %s20924_s9, %s20057_s23  ;;  %p20061_p11 = scmp.lt.u32.totalorder %s20057_s23, %s20924_s9 }
  0xb1   :  { %p20063_p12 = pnand %p20061_p11, %p20058_p10 }
  0xb3   :  { %20066 = shalt.err (!%p20063_p12)
}
  0xb4   :  { %s20067_s7 = scalar_lea.vmem %s124_s29, 4096  ;;  %p20072_p0 = scmp.lt.s32.totalorder %s124_s29, %s124_s29 }
  0xb5   :  { %p20068_p13 = scmp.ne.s32.totalorder %s124_s29, %s20067_s7  ;;  %p20073_p1 = scmp.lt.s32.totalorder %s20067_s7, %s20067_s7 }
  0xb7   :  { %p20074_p2 = por %p20073_p1, %p20072_p0 }
  0xb9   :  { %p20075_p3 = pnand %p20074_p2, %p20068_p13 }
  0xbb   :  { %20078 = shalt.err (!%p20075_p3)
}
  0xbc   :  { %129 = dma.hbm_to_vmem [thread:$0]  %s20924_s9, 4096, %s124_s29, [#allocation14], %s20165_s2, %s20165_s2, %s20166_s19  }
  0xbd   :  { %s20079_s25 = scalar_lea.hbm %s20926_s11, 2048 }
  0xbe   :  { %p20080_p4 = scmp.ne.s32.totalorder %s20926_s11, %s20079_s25  ;;  %p20083_p5 = scmp.lt.u32.totalorder %s20079_s25, %s20926_s11 }
  0xc0   :  { %p20085_p6 = pnand %p20083_p5, %p20080_p4 }
  0xc2   :  { %20088 = shalt.err (!%p20085_p6)
}
  0xc3   :  { %s20089_s26 = scalar_lea.vmem %s20390_s10, 2048  ;;  %p20094_p8 = scmp.lt.s32.totalorder %s20390_s10, %s20390_s10 }
  0xc4   :  { %p20090_p7 = scmp.ne.s32.totalorder %s20390_s10, %s20089_s26  ;;  %p20095_p9 = scmp.lt.s32.totalorder %s20089_s26, %s20089_s26 }
  0xc6   :  { %p20096_p10 = por %p20095_p9, %p20094_p8 }
  0xc8   :  { %p20097_p11 = pnand %p20096_p10, %p20090_p7 }
  0xca   :  { %20100 = shalt.err (!%p20097_p11)
}
  0xcb   :  { %s20181_s9 = smov 4   ;;  %s20182_s28 = smov [#allocation21]  }
  0xcc   :  { %151 = dma.hbm_to_vmem [thread:$0]  %s20926_s11, 2048, %s20390_s10, [#allocation17], %s20173_s18, %s20173_s18, %s20181_s9  }
  0xcd   :  { %s167_s29 = sshll.u32 %s20182_s28, 4  ;;  %s20183_s17 = smov [#allocation22]   ;;  %s168_s29 = int_to_ptr.vmem [resolvable:$true] %s167_s29 }
  0xce   :  { %s180_s27 = sshll.u32 %s20183_s17, 4  ;;  %s20101_s3 = scalar_lea.hbm %s20928_s13, 1024  ;;  %s181_s27 = int_to_ptr.vmem [resolvable:$true] %s180_s27 }
  0xcf   :  { %p20102_p12 = scmp.ne.s32.totalorder %s20928_s13, %s20101_s3  ;;  %p20105_p13 = scmp.lt.u32.totalorder %s20101_s3, %s20928_s13 }
  0xd1   :  { %p20107_p0 = pnand %p20105_p13, %p20102_p12 }
  0xd3   :  { %20110 = shalt.err (!%p20107_p0)
}
  0xd4   :  { %s20111_s11 = scalar_lea.vmem %s168_s29, 1024  ;;  %p20116_p2 = scmp.lt.s32.totalorder %s168_s29, %s168_s29 }
  0xd5   :  { %p20112_p1 = scmp.ne.s32.totalorder %s168_s29, %s20111_s11  ;;  %p20117_p3 = scmp.lt.s32.totalorder %s20111_s11, %s20111_s11 }
  0xd7   :  { %p20118_p4 = por %p20117_p3, %p20116_p2 }
  0xd9   :  { %p20119_p5 = pnand %p20118_p4, %p20112_p1 }
  0xdb   :  { %20122 = shalt.err (!%p20119_p5)
}
  0xdc   :  { %173 = dma.hbm_to_vmem [thread:$0]  %s20928_s13, 1024, %s168_s29, [#allocation20], %s20173_s18, %s20173_s18, %s20181_s9  }
  0xdd   :  { %s20123_s22 = scalar_lea.hbm %s20929_s14, 16 }
  0xde   :  { %p20124_p6 = scmp.ne.s32.totalorder %s20929_s14, %s20123_s22  ;;  %p20127_p7 = scmp.lt.u32.totalorder %s20123_s22, %s20929_s14 }
  0xe0   :  { %p20129_p8 = pnand %p20127_p7, %p20124_p6 }
  0xe2   :  { %20132 = shalt.err (!%p20129_p8)
}
  0xe3   :  { %s20133_s5 = scalar_lea.vmem %s181_s27, 16  ;;  %s20137_s26 = scalar_lea.vmem %s181_s27, 32 }
  0xe4   :  { %p20134_p9 = scmp.ne.s32.totalorder %s181_s27, %s20133_s5  ;;  %p20138_p10 = scmp.lt.s32.totalorder %s181_s27, %s181_s27 }
  0xe5   :  { %p20139_p11 = scmp.lt.s32.totalorder %s20137_s26, %s20133_s5 }
  0xe7   :  { %p20140_p12 = por %p20139_p11, %p20138_p10 }
  0xe9   :  { %p20141_p13 = pnand %p20140_p12, %p20134_p9 }
  0xeb   :  { %20144 = shalt.err (!%p20141_p13)
}
  0xec   :  { %183 = dma.hbm_to_vmem [thread:$0]  %s20929_s14, 16, %s181_s27, [#allocation23]  }
  0xed   :  { %20145 = dma.done.wait [#allocation3], 98304  }
  0xee   :  { %20146 = vsyncadd [#allocation3], 4294868992 }
  0xef   :  { %20147 = dma.done.wait [#allocation5], 163840  }
  0xf0   :  { %20148 = vsyncadd [#allocation5], 4294803456 }
  0xf1   :  { %20149 = dma.done.wait [#allocation8], 9216  }
  0xf2   :  { %20150 = vsyncadd [#allocation8], 4294958080 }
  0xf3   :  { %20151 = dma.done.wait [#allocation11], 768  }
  0xf4   :  { %20152 = vsyncadd [#allocation11], 4294966528 }
  0xf5   :  { %20153 = dma.done.wait [#allocation14], 4224  }
  0xf6   :  { %20154 = vsyncadd [#allocation14], 4294963072 }
  0xf7   :  { %20155 = dma.done.wait [#allocation17], 2080  }
  0xf8   :  { %20156 = vsyncadd [#allocation17], 4294965216 }
  0xf9   :  { %20157 = dma.done.wait [#allocation20], 1040  }
  0xfa   :  { %20158 = vsyncadd [#allocation20], 4294966256 }
  0xfb   :  { %20159 = dma.done.wait [#allocation23], 16  }
  0xfc   :  { %20160 = vsyncadd [#allocation23], 4294967280  ;;  %v239_v0 = vld [vmem:[#allocation2] sm:$0xff]  ;;  %v240_v2 = vld [vmem:[#allocation2 + $0x8] sm:$0xff]  ;;  %vm20185_vm0 = vmmov 0  }
  0xfd   :  { %v247_v1 = vld [vmem:[#allocation2 + $0x40] sm:$0xff]  ;;  %v248_v4 = vld [vmem:[#allocation2 + $0x48] sm:$0xff] }
  0xfe   :  { %v16793_v3 = vcombine.high %v239_v0, %v247_v1  ;;  %v16792_v5 = vcombine.low %v239_v0, %v247_v1  ;;  %v255_v6 = vld [vmem:[#allocation2 + $0x80] sm:$0xff]  ;;  %v16795_v8 = vcombine.high %v240_v2, %v248_v4  ;;  %v16794_v9 = vcombine.low %v240_v2, %v248_v4  ;;  %v256_v11 = vld [vmem:[#allocation2 + $0x88] sm:$0xff] }
  0xff   :  { %v263_v7 = vld [vmem:[#allocation2 + $0xc0] sm:$0xff]  ;;  %v264_v12 = vld [vmem:[#allocation2 + $0xc8] sm:$0xff] }
 0x100   :  { %v16809_v10 = vcombine.high %v255_v6, %v263_v7  ;;  %v271_v13 = vld [vmem:[#allocation2 + $0x100] sm:$0xff]  ;;  %4932 = vmatprep.subr.bf16.mxu0 %v16793_v3  ;;  %v16811_v14 = vcombine.high %v256_v11, %v264_v12  ;;  %v272_v16 = vld [vmem:[#allocation2 + $0x108] sm:$0xff]  ;;  %5055 = vmatprep.subr.bf16.mxu1 %v16795_v8  ;;  %v16808_v18 = vcombine.low %v255_v6, %v263_v7 }
 0x101   :  { %v279_v15 = vld [vmem:[#allocation2 + $0x140] sm:$0xff]  ;;  %v280_v17 = vld [vmem:[#allocation2 + $0x148] sm:$0xff]  ;;  %4933 = vmatpush1.bf16.msra.mxu0 %v16792_v5  ;;  %5056 = vmatpush1.bf16.msra.mxu1 %v16794_v9  ;;  %v16810_v19 = vcombine.low %v256_v11, %v264_v12 }
 0x102   :  { %4934 = vmatprep.subr.bf16.mxu0 %v16809_v10  ;;  %v16825_v20 = vcombine.high %v271_v13, %v279_v15  ;;  %5057 = vmatprep.subr.bf16.mxu1 %v16811_v14  ;;  %v16827_v21 = vcombine.high %v272_v16, %v280_v17  ;;  %v287_v22 = vld [vmem:[#allocation2 + $0x180] sm:$0xff]  ;;  %v288_v24 = vld [vmem:[#allocation2 + $0x188] sm:$0xff]  ;;  %v16824_v26 = vcombine.low %v271_v13, %v279_v15 }
 0x103   :  { %v295_v23 = vld [vmem:[#allocation2 + $0x1c0] sm:$0xff]  ;;  %v296_v25 = vld [vmem:[#allocation2 + $0x1c8] sm:$0xff]  ;;  %v16826_v27 = vcombine.low %v272_v16, %v280_v17 }
 0x104   :  { %v16841_v28 = vcombine.high %v287_v22, %v295_v23  ;;  %v16843_v29 = vcombine.high %v288_v24, %v296_v25  ;;  %v303_v30 = vld [vmem:[#allocation2 + $0x200] sm:$0xff]  ;;  %v304_v32 = vld [vmem:[#allocation2 + $0x208] sm:$0xff]  ;;  %v16840_v34 = vcombine.low %v287_v22, %v295_v23  ;;  %v16842_v35 = vcombine.low %v288_v24, %v296_v25 }
 0x105   :  { %4935 = vmatpush1.bf16.msra.mxu0 %v16808_v18  ;;  %5058 = vmatpush1.bf16.msra.mxu1 %v16810_v19  ;;  %v311_v31 = vld [vmem:[#allocation2 + $0x240] sm:$0xff]  ;;  %v312_v33 = vld [vmem:[#allocation2 + $0x248] sm:$0xff] }
 0x106   :  { %4936 = vmatprep.subr.bf16.mxu0 %v16825_v20  ;;  %5059 = vmatprep.subr.bf16.mxu1 %v16827_v21  ;;  %v16857_v36 = vcombine.high %v303_v30, %v311_v31  ;;  %v16859_v37 = vcombine.high %v304_v32, %v312_v33  ;;  %v319_v38 = vld [vmem:[#allocation2 + $0x280] sm:$0xff]  ;;  %v320_v40 = vld [vmem:[#allocation2 + $0x288] sm:$0xff]  ;;  %v16856_v42 = vcombine.low %v303_v30, %v311_v31 }
 0x107   :  { %v327_v39 = vld [vmem:[#allocation2 + $0x2c0] sm:$0xff]  ;;  %v328_v41 = vld [vmem:[#allocation2 + $0x2c8] sm:$0xff]  ;;  %v16858_v43 = vcombine.low %v304_v32, %v312_v33 }
 0x108   :  { %v16873_v44 = vcombine.high %v319_v38, %v327_v39  ;;  %v16875_v45 = vcombine.high %v320_v40, %v328_v41  ;;  %v335_v46 = vld [vmem:[#allocation2 + $0x300] sm:$0xff]  ;;  %v336_v48 = vld [vmem:[#allocation2 + $0x308] sm:$0xff]  ;;  %v16872_v50 = vcombine.low %v319_v38, %v327_v39  ;;  %v16874_v51 = vcombine.low %v320_v40, %v328_v41 }
 0x109   :  { %4937 = vmatpush1.bf16.msra.mxu0 %v16824_v26  ;;  %5060 = vmatpush1.bf16.msra.mxu1 %v16826_v27  ;;  %v343_v47 = vld [vmem:[#allocation2 + $0x340] sm:$0xff]  ;;  %v344_v49 = vld [vmem:[#allocation2 + $0x348] sm:$0xff] }
 0x10a   :  { %4938 = vmatprep.subr.bf16.mxu0 %v16841_v28  ;;  %5061 = vmatprep.subr.bf16.mxu1 %v16843_v29  ;;  %v16889_v52 = vcombine.high %v335_v46, %v343_v47  ;;  %v228_v53 = vld [vmem:[%s20915_s0 + $0x8] sm:$0xff]  ;;  %v16891_v54 = vcombine.high %v336_v48, %v344_v49  ;;  %v351_v55 = vld [vmem:[#allocation2 + $0x380] sm:$0xff]  ;;  %v16888_v60 = vcombine.low %v335_v46, %v343_v47 }
 0x10b   :  { %v359_v56 = vld [vmem:[#allocation2 + $0x3c0] sm:$0xff]  ;;  %v20455_v57 = vpack.c.bf16 %v228_v53, %v228_v53  ;;  %v352_v58 = vld [vmem:[#allocation2 + $0x388] sm:$0xff]  ;;  %v16890_v61 = vcombine.low %v336_v48, %v344_v49 }
 0x10c   :  { %v360_v59 = vld [vmem:[#allocation2 + $0x3c8] sm:$0xff]  ;;  %v16905_v62 = vcombine.high %v351_v55, %v359_v56  ;;  %v367_v0 = vld [vmem:[#allocation2 + $0x400] sm:$0xff]  ;;  %v16904_v4 = vcombine.low %v351_v55, %v359_v56 }
 0x10d   :  { %4939 = vmatpush1.bf16.msra.mxu0 %v16840_v34  ;;  %5062 = vmatpush1.bf16.msra.mxu1 %v16842_v35  ;;  %v16907_v63 = vcombine.high %v352_v58, %v360_v59  ;;  %v375_v1 = vld [vmem:[#allocation2 + $0x440] sm:$0xff]  ;;  %v368_v2 = vld [vmem:[#allocation2 + $0x408] sm:$0xff]  ;;  %v16906_v5 = vcombine.low %v352_v58, %v360_v59 }
 0x10e   :  { %4940 = vmatprep.subr.bf16.mxu0 %v16857_v36  ;;  %5063 = vmatprep.subr.bf16.mxu1 %v16859_v37  ;;  %v376_v3 = vld [vmem:[#allocation2 + $0x448] sm:$0xff]  ;;  %v16921_v6 = vcombine.high %v367_v0, %v375_v1  ;;  %v383_v8 = vld [vmem:[#allocation2 + $0x480] sm:$0xff]  ;;  %v16920_v12 = vcombine.low %v367_v0, %v375_v1 }
 0x10f   :  { %4964 = vmatprep.mubr.bf16.mxu0 %v20455_v57  ;;  %5087 = vmatprep.mubr.bf16.mxu1 %v20455_v57  ;;  %v16923_v7 = vcombine.high %v368_v2, %v376_v3  ;;  %v391_v9 = vld [vmem:[#allocation2 + $0x4c0] sm:$0xff]  ;;  %v384_v10 = vld [vmem:[#allocation2 + $0x488] sm:$0xff]  ;;  %v16922_v13 = vcombine.low %v368_v2, %v376_v3 }
 0x110   :  { %v392_v11 = vld [vmem:[#allocation2 + $0x4c8] sm:$0xff]  ;;  %v16937_v14 = vcombine.high %v383_v8, %v391_v9  ;;  %v399_v16 = vld [vmem:[#allocation2 + $0x500] sm:$0xff]  ;;  %v16936_v20 = vcombine.low %v383_v8, %v391_v9 }
 0x111   :  { %4941 = vmatpush1.bf16.msra.mxu0 %v16856_v42  ;;  %5064 = vmatpush1.bf16.msra.mxu1 %v16858_v43  ;;  %v16939_v15 = vcombine.high %v384_v10, %v392_v11  ;;  %v407_v17 = vld [vmem:[#allocation2 + $0x540] sm:$0xff]  ;;  %v400_v18 = vld [vmem:[#allocation2 + $0x508] sm:$0xff]  ;;  %v16938_v21 = vcombine.low %v384_v10, %v392_v11 }
 0x112   :  { %4942 = vmatprep.subr.bf16.mxu0 %v16873_v44  ;;  %5065 = vmatprep.subr.bf16.mxu1 %v16875_v45  ;;  %v408_v19 = vld [vmem:[#allocation2 + $0x548] sm:$0xff]  ;;  %v16953_v22 = vcombine.high %v399_v16, %v407_v17  ;;  %v415_v24 = vld [vmem:[#allocation2 + $0x580] sm:$0xff]  ;;  %v16952_v28 = vcombine.low %v399_v16, %v407_v17 }
 0x113   :  { %v16955_v23 = vcombine.high %v400_v18, %v408_v19  ;;  %v423_v25 = vld [vmem:[#allocation2 + $0x5c0] sm:$0xff]  ;;  %v416_v26 = vld [vmem:[#allocation2 + $0x588] sm:$0xff]  ;;  %v16954_v29 = vcombine.low %v400_v18, %v408_v19 }
 0x114   :  { %v424_v27 = vld [vmem:[#allocation2 + $0x5c8] sm:$0xff]  ;;  %v16969_v30 = vcombine.high %v415_v24, %v423_v25  ;;  %v431_v32 = vld [vmem:[#allocation2 + $0x600] sm:$0xff]  ;;  %v16968_v36 = vcombine.low %v415_v24, %v423_v25 }
 0x115   :  { %4943 = vmatpush1.bf16.msra.mxu0 %v16872_v50  ;;  %5066 = vmatpush1.bf16.msra.mxu1 %v16874_v51  ;;  %v16971_v31 = vcombine.high %v416_v26, %v424_v27  ;;  %v439_v33 = vld [vmem:[#allocation2 + $0x640] sm:$0xff]  ;;  %v432_v34 = vld [vmem:[#allocation2 + $0x608] sm:$0xff]  ;;  %v16970_v37 = vcombine.low %v416_v26, %v424_v27 }
 0x116   :  { %4944 = vmatprep.subr.bf16.mxu0 %v16889_v52  ;;  %5067 = vmatprep.subr.bf16.mxu1 %v16891_v54  ;;  %v440_v35 = vld [vmem:[#allocation2 + $0x648] sm:$0xff]  ;;  %v16985_v38 = vcombine.high %v431_v32, %v439_v33  ;;  %v447_v40 = vld [vmem:[#allocation2 + $0x680] sm:$0xff]  ;;  %v16984_v44 = vcombine.low %v431_v32, %v439_v33 }
 0x117   :  { %v16987_v39 = vcombine.high %v432_v34, %v440_v35  ;;  %v455_v41 = vld [vmem:[#allocation2 + $0x6c0] sm:$0xff]  ;;  %v448_v42 = vld [vmem:[#allocation2 + $0x688] sm:$0xff]  ;;  %v16986_v45 = vcombine.low %v432_v34, %v440_v35 }
 0x118   :  { %v456_v43 = vld [vmem:[#allocation2 + $0x6c8] sm:$0xff]  ;;  %v17001_v46 = vcombine.high %v447_v40, %v455_v41  ;;  %v463_v48 = vld [vmem:[#allocation2 + $0x700] sm:$0xff]  ;;  %v17000_v52 = vcombine.low %v447_v40, %v455_v41 }
 0x119   :  { %4945 = vmatpush1.bf16.msra.mxu0 %v16888_v60  ;;  %5068 = vmatpush1.bf16.msra.mxu1 %v16890_v61  ;;  %v17003_v47 = vcombine.high %v448_v42, %v456_v43  ;;  %v471_v49 = vld [vmem:[#allocation2 + $0x740] sm:$0xff]  ;;  %v464_v50 = vld [vmem:[#allocation2 + $0x708] sm:$0xff]  ;;  %v17002_v53 = vcombine.low %v448_v42, %v456_v43 }
 0x11a   :  { %4946 = vmatprep.subr.bf16.mxu0 %v16905_v62  ;;  %5069 = vmatprep.subr.bf16.mxu1 %v16907_v63  ;;  %v472_v51 = vld [vmem:[#allocation2 + $0x748] sm:$0xff]  ;;  %v17017_v54 = vcombine.high %v463_v48, %v471_v49  ;;  %v479_v56 = vld [vmem:[#allocation2 + $0x780] sm:$0xff]  ;;  %v17016_v61 = vcombine.low %v463_v48, %v471_v49 }
 0x11b   :  { %v17019_v55 = vcombine.high %v464_v50, %v472_v51  ;;  %v487_v58 = vld [vmem:[#allocation2 + $0x7c0] sm:$0xff]  ;;  %v480_v59 = vld [vmem:[#allocation2 + $0x788] sm:$0xff]  ;;  %v17018_v62 = vcombine.low %v464_v50, %v472_v51 }
 0x11c   :  { %v488_v60 = vld [vmem:[#allocation2 + $0x7c8] sm:$0xff]  ;;  %v17033_v63 = vcombine.high %v479_v56, %v487_v58  ;;  %v495_v1 = vld [vmem:[#allocation2 + $0x800] sm:$0xff] }
 0x11d   :  { %4947 = vmatpush1.bf16.msra.mxu0 %v16904_v4  ;;  %5070 = vmatpush1.bf16.msra.mxu1 %v16906_v5  ;;  %v17035_v0 = vcombine.high %v480_v59, %v488_v60  ;;  %v503_v2 = vld [vmem:[#allocation2 + $0x840] sm:$0xff]  ;;  %v496_v3 = vld [vmem:[#allocation2 + $0x808] sm:$0xff]  ;;  %v17032_v5 = vcombine.low %v479_v56, %v487_v58 }
 0x11e   :  { %4948 = vmatprep.subr.bf16.mxu0 %v16921_v6  ;;  %5071 = vmatprep.subr.bf16.mxu1 %v16923_v7  ;;  %v504_v4 = vld [vmem:[#allocation2 + $0x848] sm:$0xff]  ;;  %v227_v6 = vld [vmem:[%s20915_s0] sm:$0xff]  ;;  %v17034_v7 = vcombine.low %v480_v59, %v488_v60  ;;  %v17049_v8 = vcombine.high %v495_v1, %v503_v2  ;;  %v17048_v16 = vcombine.low %v495_v1, %v503_v2 }
 0x11f   :  { %v17051_v9 = vcombine.high %v496_v3, %v504_v4  ;;  %v511_v10 = vld [vmem:[#allocation2 + $0x880] sm:$0xff]  ;;  %v17050_v17 = vcombine.low %v496_v3, %v504_v4  ;;  %v536_v24 = vld [vmem:[#allocation2 + $0x948] sm:$0xff] }
 0x120   :  { %v519_v11 = vld [vmem:[#allocation2 + $0x8c0] sm:$0xff]  ;;  %v552_v32 = vld [vmem:[#allocation2 + $0x9c8] sm:$0xff] }
 0x121   :  { %4949 = vmatpush1.bf16.msra.mxu0 %v16920_v12  ;;  %5072 = vmatpush1.bf16.msra.mxu1 %v16922_v13  ;;  %v20462_v12 = vpack.c.bf16 %v227_v6, %v227_v6  ;;  %v512_v13 = vld [vmem:[#allocation2 + $0x888] sm:$0xff]  ;;  %v17065_v18 = vcombine.high %v511_v10, %v519_v11  ;;  %v17064_v25 = vcombine.low %v511_v10, %v519_v11  ;;  %v631_v6 = vld [vmem:[#allocation2 + $0xc40] sm:$0xff] }
 0x122   :  { %4950 = vmatprep.subr.bf16.mxu0 %v16937_v14  ;;  %5073 = vmatprep.subr.bf16.mxu1 %v16939_v15  ;;  %v520_v14 = vld [vmem:[#allocation2 + $0x8c8] sm:$0xff]  ;;  %v230_v15 = vld [vmem:[%s20915_s0 + $0x18] sm:$0xff] }
 0x123   :  { %v17067_v19 = vcombine.high %v512_v13, %v520_v14  ;;  %v17066_v26 = vcombine.low %v512_v13, %v520_v14  ;;  %v568_v40 = vld [vmem:[#allocation2 + $0xa48] sm:$0xff]  ;;  %v639_v14 = vld [vmem:[#allocation2 + $0xc80] sm:$0xff] }
 0x124   :  { %v584_v48 = vld [vmem:[#allocation2 + $0xac8] sm:$0xff] }
 0x125   :  { %4951 = vmatpush1.bf16.msra.mxu0 %v16936_v20  ;;  %5074 = vmatpush1.bf16.msra.mxu1 %v16938_v21  ;;  %v527_v20 = vld [vmem:[#allocation2 + $0x900] sm:$0xff]  ;;  %v600_v56 = vld [vmem:[#allocation2 + $0xb48] sm:$0xff] }
 0x126   :  { %4952 = vmatprep.subr.bf16.mxu0 %v16953_v22  ;;  %5075 = vmatprep.subr.bf16.mxu1 %v16955_v23  ;;  %v535_v21 = vld [vmem:[#allocation2 + $0x940] sm:$0xff]  ;;  %v528_v22 = vld [vmem:[#allocation2 + $0x908] sm:$0xff]  ;;  %v20467_v23 = vpack.c.bf16 %v230_v15, %v230_v15 }
 0x127   :  { %v17081_v27 = vcombine.high %v527_v20, %v535_v21  ;;  %v17080_v33 = vcombine.low %v527_v20, %v535_v21  ;;  %v17082_v34 = vcombine.low %v528_v22, %v536_v24  ;;  %v616_v1 = vld [vmem:[#allocation2 + $0xbc8] sm:$0xff]  ;;  %v647_v15 = vld [vmem:[#allocation2 + $0xcc0] sm:$0xff] }
 0x128   :  { %v17193_v21 = vcombine.high %v639_v14, %v647_v15 }
 0x129   :  { %4953 = vmatpush1.bf16.msra.mxu0 %v16952_v28  ;;  %5076 = vmatpush1.bf16.msra.mxu1 %v16954_v29  ;;  %v543_v28 = vld [vmem:[#allocation2 + $0x980] sm:$0xff] }
 0x12a   :  { %4954 = vmatprep.subr.bf16.mxu0 %v16969_v30  ;;  %5077 = vmatprep.subr.bf16.mxu1 %v16971_v31  ;;  %v551_v29 = vld [vmem:[#allocation2 + $0x9c0] sm:$0xff]  ;;  %v544_v30 = vld [vmem:[#allocation2 + $0x988] sm:$0xff]  ;;  %v17083_v31 = vcombine.high %v528_v22, %v536_v24 }
 0x12b   :  { %v17097_v35 = vcombine.high %v543_v28, %v551_v29  ;;  %v17096_v41 = vcombine.low %v543_v28, %v551_v29  ;;  %v17098_v42 = vcombine.low %v544_v30, %v552_v32  ;;  %v655_v22 = vld [vmem:[#allocation2 + $0xd00] sm:$0xff]  ;;  %v17192_v28 = vcombine.low %v639_v14, %v647_v15  ;;  %v229_v14 = vld [vmem:[%s20915_s0 + $0x10] sm:$0xff] }
 0x12c   :  { %v663_v24 = vld [vmem:[#allocation2 + $0xd40] sm:$0xff] }
 0x12d   :  { %4955 = vmatpush1.bf16.msra.mxu0 %v16968_v36  ;;  %5078 = vmatpush1.bf16.msra.mxu1 %v16970_v37  ;;  %v559_v36 = vld [vmem:[#allocation2 + $0xa00] sm:$0xff] }
 0x12e   :  { %4956 = vmatprep.subr.bf16.mxu0 %v16985_v38  ;;  %5079 = vmatprep.subr.bf16.mxu1 %v16987_v39  ;;  %v567_v37 = vld [vmem:[#allocation2 + $0xa40] sm:$0xff]  ;;  %v560_v38 = vld [vmem:[#allocation2 + $0xa08] sm:$0xff]  ;;  %v17099_v39 = vcombine.high %v544_v30, %v552_v32  ;;  %v17209_v30 = vcombine.high %v655_v22, %v663_v24 }
 0x12f   :  { %v17113_v43 = vcombine.high %v559_v36, %v567_v37  ;;  %v17112_v49 = vcombine.low %v559_v36, %v567_v37  ;;  %v17114_v50 = vcombine.low %v560_v38, %v568_v40  ;;  %v679_v32 = vld [vmem:[#allocation2 + $0xdc0] sm:$0xff]  ;;  %v17208_v36 = vcombine.low %v655_v22, %v663_v24  ;;  %v232_v24 = vld [vmem:[%s20915_s0 + $0x28] sm:$0xff] }
 0x131   :  { %4957 = vmatpush1.bf16.msra.mxu0 %v16984_v44  ;;  %5080 = vmatpush1.bf16.msra.mxu1 %v16986_v45  ;;  %v575_v44 = vld [vmem:[#allocation2 + $0xa80] sm:$0xff] }
 0x132   :  { %4958 = vmatprep.subr.bf16.mxu0 %v17001_v46  ;;  %5081 = vmatprep.subr.bf16.mxu1 %v17003_v47  ;;  %v583_v45 = vld [vmem:[#allocation2 + $0xac0] sm:$0xff]  ;;  %v576_v46 = vld [vmem:[#allocation2 + $0xa88] sm:$0xff]  ;;  %v17115_v47 = vcombine.high %v560_v38, %v568_v40 }
 0x133   :  { %v17129_v51 = vcombine.high %v575_v44, %v583_v45  ;;  %v17128_v58 = vcombine.low %v575_v44, %v583_v45  ;;  %v17130_v59 = vcombine.low %v576_v46, %v584_v48  ;;  %v695_v40 = vld [vmem:[#allocation2 + $0xe40] sm:$0xff] }
 0x135   :  { %4959 = vmatpush1.bf16.msra.mxu0 %v17000_v52  ;;  %5082 = vmatpush1.bf16.msra.mxu1 %v17002_v53  ;;  %v591_v52 = vld [vmem:[#allocation2 + $0xb00] sm:$0xff] }
 0x136   :  { %4960 = vmatprep.subr.bf16.mxu0 %v17017_v54  ;;  %5083 = vmatprep.subr.bf16.mxu1 %v17019_v55  ;;  %v599_v53 = vld [vmem:[#allocation2 + $0xb40] sm:$0xff]  ;;  %v592_v54 = vld [vmem:[#allocation2 + $0xb08] sm:$0xff]  ;;  %v17131_v55 = vcombine.high %v576_v46, %v584_v48 }
 0x137   :  { %v17145_v60 = vcombine.high %v591_v52, %v599_v53  ;;  %v17144_v2 = vcombine.low %v591_v52, %v599_v53  ;;  %v17146_v3 = vcombine.low %v592_v54, %v600_v56  ;;  %v711_v48 = vld [vmem:[#allocation2 + $0xec0] sm:$0xff] }
 0x139   :  { %4961 = vmatpush1.bf16.msra.mxu0 %v17016_v61  ;;  %5084 = vmatpush1.bf16.msra.mxu1 %v17018_v62  ;;  %v607_v61 = vld [vmem:[#allocation2 + $0xb80] sm:$0xff] }
 0x13a   :  { %4962 = vmatprep.subr.bf16.mxu0 %v17033_v63  ;;  %5085 = vmatprep.subr.bf16.mxu1 %v17035_v0  ;;  %v615_v62 = vld [vmem:[#allocation2 + $0xbc0] sm:$0xff]  ;;  %v608_v63 = vld [vmem:[#allocation2 + $0xb88] sm:$0xff]  ;;  %v17147_v0 = vcombine.high %v592_v54, %v600_v56 }
 0x13b   :  { %v17161_v4 = vcombine.high %v607_v61, %v615_v62  ;;  %v17160_v10 = vcombine.low %v607_v61, %v615_v62  ;;  %v17162_v11 = vcombine.low %v608_v63, %v616_v1  ;;  %v727_v56 = vld [vmem:[#allocation2 + $0xf40] sm:$0xff] }
 0x13d   :  { %4963 = vmatpush1.bf16.msra.mxu0 %v17032_v5  ;;  %5086 = vmatpush1.bf16.msra.mxu1 %v17034_v7  ;;  %v623_v5 = vld [vmem:[#allocation2 + $0xc00] sm:$0xff]  ;;  %v624_v7 = vld [vmem:[#allocation2 + $0xc08] sm:$0xff] }
 0x13e   :  { %4973 = vmatprep.subr.bf16.mxu0 %v17049_v8  ;;  %5096 = vmatprep.subr.bf16.mxu1 %v17051_v9  ;;  %v17163_v8 = vcombine.high %v608_v63, %v616_v1  ;;  %v632_v9 = vld [vmem:[#allocation2 + $0xc48] sm:$0xff]  ;;  %v17177_v13 = vcombine.high %v623_v5, %v631_v6  ;;  %v743_v1 = vld [vmem:[#allocation2 + $0xfc0] sm:$0xff] }
 0x13f   :  { %v17178_v20 = vcombine.low %v624_v7, %v632_v9 }
 0x140   :  { %4965 = vmatmul.mubr.bf16.vlgmr.msra.gmra.mrb[0].mxu0 %v20462_v12  ;;  %5088 = vmatmul.mubr.bf16.vlgmr.msra.gmra.mrb[0].mxu1 %v20462_v12 }
 0x141   :  { %4974 = vmatpush1.bf16.msra.mxu0 %v17048_v16  ;;  %5097 = vmatpush1.bf16.msra.mxu1 %v17050_v17  ;;  %v640_v16 = vld [vmem:[#allocation2 + $0xc88] sm:$0xff]  ;;  %v17179_v17 = vcombine.high %v624_v7, %v632_v9  ;;  %v759_v9 = vld [vmem:[#allocation2 + $0x1040] sm:$0xff] }
 0x142   :  { %4975 = vmatprep.subr.bf16.mxu0 %v17065_v18  ;;  %5098 = vmatprep.subr.bf16.mxu1 %v17067_v19  ;;  %v648_v18 = vld [vmem:[#allocation2 + $0xcc8] sm:$0xff]  ;;  %v17176_v19 = vcombine.low %v623_v5, %v631_v6  ;;  %v751_v6 = vld [vmem:[#allocation2 + $0x1000] sm:$0xff] }
 0x143   :  { %5005 = vmatprep.mubr.bf16.mxu0 %v20467_v23  ;;  %5128 = vmatprep.mubr.bf16.mxu1 %v20467_v23  ;;  %v17194_v29 = vcombine.low %v640_v16, %v648_v18 }
 0x145   :  { %4976 = vmatpush1.bf16.msra.mxu0 %v17064_v25  ;;  %5099 = vmatpush1.bf16.msra.mxu1 %v17066_v26  ;;  %v656_v25 = vld [vmem:[#allocation2 + $0xd08] sm:$0xff]  ;;  %v17195_v26 = vcombine.high %v640_v16, %v648_v18  ;;  %v767_v16 = vld [vmem:[#allocation2 + $0x1080] sm:$0xff]  ;;  %v17305_v18 = vcombine.high %v751_v6, %v759_v9 }
 0x146   :  { %4977 = vmatprep.subr.bf16.mxu0 %v17081_v27  ;;  %5100 = vmatprep.subr.bf16.mxu1 %v17083_v31  ;;  %v664_v27 = vld [vmem:[#allocation2 + $0xd48] sm:$0xff]  ;;  %v671_v31 = vld [vmem:[#allocation2 + $0xd80] sm:$0xff] }
 0x147   :  { %v17210_v37 = vcombine.low %v656_v25, %v664_v27  ;;  %v17225_v38 = vcombine.high %v671_v31, %v679_v32  ;;  %v17224_v44 = vcombine.low %v671_v31, %v679_v32  ;;  %v784_v31 = vld [vmem:[#allocation2 + $0x1108] sm:$0xff] }
 0x149   :  { %4978 = vmatpush1.bf16.msra.mxu0 %v17080_v33  ;;  %5101 = vmatpush1.bf16.msra.mxu1 %v17082_v34  ;;  %v672_v33 = vld [vmem:[#allocation2 + $0xd88] sm:$0xff]  ;;  %v17211_v34 = vcombine.high %v656_v25, %v664_v27  ;;  %v20479_v25 = vpack.c.bf16 %v229_v14, %v229_v14 }
 0x14a   :  { %4979 = vmatprep.subr.bf16.mxu0 %v17097_v35  ;;  %5102 = vmatprep.subr.bf16.mxu1 %v17099_v39  ;;  %v680_v35 = vld [vmem:[#allocation2 + $0xdc8] sm:$0xff]  ;;  %v687_v39 = vld [vmem:[#allocation2 + $0xe00] sm:$0xff] }
 0x14b   :  { %v17226_v45 = vcombine.low %v672_v33, %v680_v35  ;;  %v17241_v46 = vcombine.high %v687_v39, %v695_v40  ;;  %v17240_v52 = vcombine.low %v687_v39, %v695_v40  ;;  %v807_v39 = vld [vmem:[#allocation2 + $0x11c0] sm:$0xff]  ;;  %v800_v40 = vld [vmem:[#allocation2 + $0x1188] sm:$0xff] }
 0x14d   :  { %4980 = vmatpush1.bf16.msra.mxu0 %v17096_v41  ;;  %5103 = vmatpush1.bf16.msra.mxu1 %v17098_v42  ;;  %v688_v41 = vld [vmem:[#allocation2 + $0xe08] sm:$0xff]  ;;  %v17227_v42 = vcombine.high %v672_v33, %v680_v35 }
 0x14e   :  { %4981 = vmatprep.subr.bf16.mxu0 %v17113_v43  ;;  %5104 = vmatprep.subr.bf16.mxu1 %v17115_v47  ;;  %v696_v43 = vld [vmem:[#allocation2 + $0xe48] sm:$0xff]  ;;  %v703_v47 = vld [vmem:[#allocation2 + $0xe80] sm:$0xff] }
 0x14f   :  { %v17242_v53 = vcombine.low %v688_v41, %v696_v43  ;;  %v17257_v54 = vcombine.high %v703_v47, %v711_v48  ;;  %v17256_v61 = vcombine.low %v703_v47, %v711_v48  ;;  %v792_v33 = vld [vmem:[#allocation2 + $0x1148] sm:$0xff]  ;;  %v823_v47 = vld [vmem:[#allocation2 + $0x1240] sm:$0xff] }
 0x150   :  { %v816_v48 = vld [vmem:[#allocation2 + $0x1208] sm:$0xff] }
 0x151   :  { %4982 = vmatpush1.bf16.msra.mxu0 %v17112_v49  ;;  %5105 = vmatpush1.bf16.msra.mxu1 %v17114_v50  ;;  %v704_v49 = vld [vmem:[#allocation2 + $0xe88] sm:$0xff]  ;;  %v17243_v50 = vcombine.high %v688_v41, %v696_v43  ;;  %v17339_v41 = vcombine.high %v784_v31, %v792_v33 }
 0x152   :  { %4983 = vmatprep.subr.bf16.mxu0 %v17129_v51  ;;  %5106 = vmatprep.subr.bf16.mxu1 %v17131_v55  ;;  %v712_v51 = vld [vmem:[#allocation2 + $0xec8] sm:$0xff]  ;;  %v719_v55 = vld [vmem:[#allocation2 + $0xf00] sm:$0xff] }
 0x153   :  { %v17258_v62 = vcombine.low %v704_v49, %v712_v51  ;;  %v17273_v63 = vcombine.high %v719_v55, %v727_v56  ;;  %v17272_v5 = vcombine.low %v719_v55, %v727_v56  ;;  %v839_v55 = vld [vmem:[#allocation2 + $0x12c0] sm:$0xff]  ;;  %v832_v56 = vld [vmem:[#allocation2 + $0x1288] sm:$0xff] }
 0x155   :  { %4984 = vmatpush1.bf16.msra.mxu0 %v17128_v58  ;;  %5107 = vmatpush1.bf16.msra.mxu1 %v17130_v59  ;;  %v720_v58 = vld [vmem:[#allocation2 + $0xf08] sm:$0xff]  ;;  %v17259_v59 = vcombine.high %v704_v49, %v712_v51 }
 0x156   :  { %4985 = vmatprep.subr.bf16.mxu0 %v17145_v60  ;;  %5108 = vmatprep.subr.bf16.mxu1 %v17147_v0  ;;  %v728_v60 = vld [vmem:[#allocation2 + $0xf48] sm:$0xff]  ;;  %v735_v0 = vld [vmem:[#allocation2 + $0xf80] sm:$0xff] }
 0x157   :  { %v17274_v7 = vcombine.low %v720_v58, %v728_v60  ;;  %v17288_v15 = vcombine.low %v735_v0, %v743_v1 }
 0x159   :  { %4986 = vmatpush1.bf16.msra.mxu0 %v17144_v2  ;;  %5109 = vmatpush1.bf16.msra.mxu1 %v17146_v3  ;;  %v736_v2 = vld [vmem:[#allocation2 + $0xf88] sm:$0xff]  ;;  %v17275_v3 = vcombine.high %v720_v58, %v728_v60 }
 0x15a   :  { %4987 = vmatprep.subr.bf16.mxu0 %v17161_v4  ;;  %5110 = vmatprep.subr.bf16.mxu1 %v17163_v8  ;;  %v744_v4 = vld [vmem:[#allocation2 + $0xfc8] sm:$0xff]  ;;  %v17289_v8 = vcombine.high %v735_v0, %v743_v1  ;;  %v855_v0 = vld [vmem:[#allocation2 + $0x1340] sm:$0xff] }
 0x15b   :  { %v848_v1 = vld [vmem:[#allocation2 + $0x1308] sm:$0xff] }
 0x15d   :  { %4988 = vmatpush1.bf16.msra.mxu0 %v17160_v10  ;;  %5111 = vmatpush1.bf16.msra.mxu1 %v17162_v11  ;;  %v752_v10 = vld [vmem:[#allocation2 + $0x1008] sm:$0xff] }
 0x15e   :  { %4989 = vmatprep.subr.bf16.mxu0 %v17177_v13  ;;  %5112 = vmatprep.subr.bf16.mxu1 %v17179_v17  ;;  %v760_v11 = vld [vmem:[#allocation2 + $0x1048] sm:$0xff]  ;;  %v17291_v13 = vcombine.high %v736_v2, %v744_v4  ;;  %v17290_v17 = vcombine.low %v736_v2, %v744_v4 }
 0x15f   :  { %v17307_v22 = vcombine.high %v752_v10, %v760_v11  ;;  %v17306_v27 = vcombine.low %v752_v10, %v760_v11  ;;  %v872_v11 = vld [vmem:[#allocation2 + $0x13c8] sm:$0xff] }
 0x161   :  { %4990 = vmatpush1.bf16.msra.mxu0 %v17176_v19  ;;  %5113 = vmatpush1.bf16.msra.mxu1 %v17178_v20  ;;  %v775_v19 = vld [vmem:[#allocation2 + $0x10c0] sm:$0xff]  ;;  %v768_v20 = vld [vmem:[#allocation2 + $0x1088] sm:$0xff] }
 0x162   :  { %4991 = vmatprep.subr.bf16.mxu0 %v17193_v21  ;;  %5114 = vmatprep.subr.bf16.mxu1 %v17195_v26  ;;  %v776_v21 = vld [vmem:[#allocation2 + $0x10c8] sm:$0xff]  ;;  %v17304_v26 = vcombine.low %v751_v6, %v759_v9  ;;  %v17320_v35 = vcombine.low %v767_v16, %v775_v19 }
 0x163   :  { %v17323_v32 = vcombine.high %v768_v20, %v776_v21  ;;  %v864_v9 = vld [vmem:[#allocation2 + $0x1388] sm:$0xff] }
 0x165   :  { %4992 = vmatpush1.bf16.msra.mxu0 %v17192_v28  ;;  %5115 = vmatpush1.bf16.msra.mxu1 %v17194_v29  ;;  %v17321_v28 = vcombine.high %v767_v16, %v775_v19  ;;  %v783_v29 = vld [vmem:[#allocation2 + $0x1100] sm:$0xff]  ;;  %v17419_v19 = vcombine.high %v864_v9, %v872_v11 }
 0x166   :  { %4993 = vmatprep.subr.bf16.mxu0 %v17209_v30  ;;  %5116 = vmatprep.subr.bf16.mxu1 %v17211_v34  ;;  %v791_v30 = vld [vmem:[#allocation2 + $0x1140] sm:$0xff]  ;;  %v20481_v34 = vpack.c.bf16 %v232_v24, %v232_v24 }
 0x167   :  { %v17336_v43 = vcombine.low %v783_v29, %v791_v30  ;;  %v879_v16 = vld [vmem:[#allocation2 + $0x1400] sm:$0xff] }
 0x169   :  { %4994 = vmatpush1.bf16.msra.mxu0 %v17208_v36  ;;  %5117 = vmatpush1.bf16.msra.mxu1 %v17210_v37  ;;  %v17322_v36 = vcombine.low %v768_v20, %v776_v21  ;;  %v17337_v37 = vcombine.high %v783_v29, %v791_v30  ;;  %v888_v20 = vld [vmem:[#allocation2 + $0x1448] sm:$0xff] }
 0x16a   :  { %4995 = vmatprep.subr.bf16.mxu0 %v17225_v38  ;;  %5118 = vmatprep.subr.bf16.mxu1 %v17227_v42  ;;  %v799_v38 = vld [vmem:[#allocation2 + $0x1180] sm:$0xff]  ;;  %v808_v42 = vld [vmem:[#allocation2 + $0x11c8] sm:$0xff] }
 0x16b   :  { %v17355_v49 = vcombine.high %v800_v40, %v808_v42  ;;  %v17352_v51 = vcombine.low %v799_v38, %v807_v39  ;;  %v904_v30 = vld [vmem:[#allocation2 + $0x14c8] sm:$0xff] }
 0x16d   :  { %4996 = vmatpush1.bf16.msra.mxu0 %v17224_v44  ;;  %5119 = vmatpush1.bf16.msra.mxu1 %v17226_v45  ;;  %v17338_v44 = vcombine.low %v784_v31, %v792_v33  ;;  %v17353_v45 = vcombine.high %v799_v38, %v807_v39  ;;  %v920_v39 = vld [vmem:[#allocation2 + $0x1548] sm:$0xff] }
 0x16e   :  { %4997 = vmatprep.subr.bf16.mxu0 %v17241_v46  ;;  %5120 = vmatprep.subr.bf16.mxu1 %v17243_v50  ;;  %v815_v46 = vld [vmem:[#allocation2 + $0x1200] sm:$0xff]  ;;  %v824_v50 = vld [vmem:[#allocation2 + $0x1248] sm:$0xff] }
 0x16f   :  { %v17371_v58 = vcombine.high %v816_v48, %v824_v50  ;;  %v17368_v60 = vcombine.low %v815_v46, %v823_v47 }
 0x171   :  { %4998 = vmatpush1.bf16.msra.mxu0 %v17240_v52  ;;  %5121 = vmatpush1.bf16.msra.mxu1 %v17242_v53  ;;  %v17354_v52 = vcombine.low %v800_v40, %v808_v42  ;;  %v17369_v53 = vcombine.high %v815_v46, %v823_v47  ;;  %v936_v47 = vld [vmem:[#allocation2 + $0x15c8] sm:$0xff] }
 0x172   :  { %4999 = vmatprep.subr.bf16.mxu0 %v17257_v54  ;;  %5122 = vmatprep.subr.bf16.mxu1 %v17259_v59  ;;  %v831_v54 = vld [vmem:[#allocation2 + $0x1280] sm:$0xff]  ;;  %v840_v59 = vld [vmem:[#allocation2 + $0x12c8] sm:$0xff] }
 0x173   :  { %v17387_v2 = vcombine.high %v832_v56, %v840_v59  ;;  %v17384_v4 = vcombine.low %v831_v54, %v839_v55 }
 0x175   :  { %5000 = vmatpush1.bf16.msra.mxu0 %v17256_v61  ;;  %5123 = vmatpush1.bf16.msra.mxu1 %v17258_v62  ;;  %v17370_v61 = vcombine.low %v816_v48, %v824_v50  ;;  %v17385_v62 = vcombine.high %v831_v54, %v839_v55  ;;  %v952_v55 = vld [vmem:[#allocation2 + $0x1648] sm:$0xff] }
 0x176   :  { %5001 = vmatprep.subr.bf16.mxu0 %v17273_v63  ;;  %5124 = vmatprep.subr.bf16.mxu1 %v17275_v3  ;;  %v847_v63 = vld [vmem:[#allocation2 + $0x1300] sm:$0xff]  ;;  %v856_v3 = vld [vmem:[#allocation2 + $0x1348] sm:$0xff] }
 0x177   :  { %v17401_v6 = vcombine.high %v847_v63, %v855_v0  ;;  %v17403_v10 = vcombine.high %v848_v1, %v856_v3  ;;  %v17402_v14 = vcombine.low %v848_v1, %v856_v3 }
 0x179   :  { %5002 = vmatpush1.bf16.msra.mxu0 %v17272_v5  ;;  %5125 = vmatpush1.bf16.msra.mxu1 %v17274_v7  ;;  %v17386_v5 = vcombine.low %v832_v56, %v840_v59  ;;  %v863_v7 = vld [vmem:[#allocation2 + $0x1380] sm:$0xff] }
 0x17a   :  { %5003 = vmatprep.subr.bf16.mxu0 %v17289_v8  ;;  %5126 = vmatprep.subr.bf16.mxu1 %v17291_v13  ;;  %v871_v8 = vld [vmem:[#allocation2 + $0x13c0] sm:$0xff]  ;;  %v17400_v13 = vcombine.low %v847_v63, %v855_v0  ;;  %v968_v0 = vld [vmem:[#allocation2 + $0x16c8] sm:$0xff] }
 0x17b   :  { %v17416_v21 = vcombine.low %v863_v7, %v871_v8 }
 0x17d   :  { %5004 = vmatpush1.bf16.msra.mxu0 %v17288_v15  ;;  %5127 = vmatpush1.bf16.msra.mxu1 %v17290_v17  ;;  %v17417_v15 = vcombine.high %v863_v7, %v871_v8  ;;  %v887_v17 = vld [vmem:[#allocation2 + $0x1440] sm:$0xff]  ;;  %v984_v8 = vld [vmem:[#allocation2 + $0x1748] sm:$0xff] }
 0x17e   :  { %5014 = vmatprep.subr.bf16.mxu0 %v17305_v18  ;;  %5137 = vmatprep.subr.bf16.mxu1 %v17307_v22  ;;  %v880_v18 = vld [vmem:[#allocation2 + $0x1408] sm:$0xff]  ;;  %v17418_v22 = vcombine.low %v864_v9, %v872_v11  ;;  %v17433_v24 = vcombine.high %v879_v16, %v887_v17  ;;  %v17432_v31 = vcombine.low %v879_v16, %v887_v17 }
 0x17f   :  { %v17435_v29 = vcombine.high %v880_v18, %v888_v20  ;;  %v1000_v17 = vld [vmem:[#allocation2 + $0x17c8] sm:$0xff] }
 0x180   :  { %5006 = vmatmul.mubr.bf16.vlgmr.msra.gmra.mrb[0].mxu0 %v20479_v25  ;;  %5129 = vmatmul.mubr.bf16.vlgmr.msra.gmra.mrb[0].mxu1 %v20479_v25 }
 0x181   :  { %5015 = vmatpush1.bf16.msra.mxu0 %v17304_v26  ;;  %5138 = vmatpush1.bf16.msra.mxu1 %v17306_v27  ;;  %v895_v26 = vld [vmem:[#allocation2 + $0x1480] sm:$0xff] }
 0x182   :  { %5016 = vmatprep.subr.bf16.mxu0 %v17321_v28  ;;  %5139 = vmatprep.subr.bf16.mxu1 %v17323_v32  ;;  %v903_v27 = vld [vmem:[#allocation2 + $0x14c0] sm:$0xff]  ;;  %v896_v28 = vld [vmem:[#allocation2 + $0x1488] sm:$0xff]  ;;  %v17434_v32 = vcombine.low %v880_v18, %v888_v20 }
 0x183   :  { %5046 = vmatprep.mubr.bf16.mxu0 %v20481_v34  ;;  %5169 = vmatprep.mubr.bf16.mxu1 %v20481_v34  ;;  %v17449_v33 = vcombine.high %v895_v26, %v903_v27  ;;  %v17451_v38 = vcombine.high %v896_v28, %v904_v30  ;;  %v17448_v40 = vcombine.low %v895_v26, %v903_v27  ;;  %v231_v27 = vld [vmem:[%s20915_s0 + $0x20] sm:$0xff] }
 0x185   :  { %5017 = vmatpush1.bf16.msra.mxu0 %v17320_v35  ;;  %5140 = vmatpush1.bf16.msra.mxu1 %v17322_v36  ;;  %v911_v35 = vld [vmem:[#allocation2 + $0x1500] sm:$0xff] }
 0x186   :  { %5018 = vmatprep.subr.bf16.mxu0 %v17337_v37  ;;  %5141 = vmatprep.subr.bf16.mxu1 %v17339_v41  ;;  %v919_v36 = vld [vmem:[#allocation2 + $0x1540] sm:$0xff]  ;;  %v912_v37 = vld [vmem:[#allocation2 + $0x1508] sm:$0xff]  ;;  %v17450_v41 = vcombine.low %v896_v28, %v904_v30  ;;  %v250_v28 = vld [vmem:[#allocation2 + $0x58] sm:$0xff] }
 0x187   :  { %v17465_v42 = vcombine.high %v911_v35, %v919_v36  ;;  %v17467_v46 = vcombine.high %v912_v37, %v920_v39  ;;  %v17464_v48 = vcombine.low %v911_v35, %v919_v36  ;;  %v258_v35 = vld [vmem:[#allocation2 + $0x98] sm:$0xff] }
 0x189   :  { %5019 = vmatpush1.bf16.msra.mxu0 %v17336_v43  ;;  %5142 = vmatpush1.bf16.msra.mxu1 %v17338_v44  ;;  %v927_v43 = vld [vmem:[#allocation2 + $0x1580] sm:$0xff] }
 0x18a   :  { %5020 = vmatprep.subr.bf16.mxu0 %v17353_v45  ;;  %5143 = vmatprep.subr.bf16.mxu1 %v17355_v49  ;;  %v935_v44 = vld [vmem:[#allocation2 + $0x15c0] sm:$0xff]  ;;  %v928_v45 = vld [vmem:[#allocation2 + $0x1588] sm:$0xff]  ;;  %v17466_v49 = vcombine.low %v912_v37, %v920_v39  ;;  %v266_v37 = vld [vmem:[#allocation2 + $0xd8] sm:$0xff] }
 0x18b   :  { %v17481_v50 = vcombine.high %v927_v43, %v935_v44  ;;  %v17483_v54 = vcombine.high %v928_v45, %v936_v47  ;;  %v17480_v56 = vcombine.low %v927_v43, %v935_v44  ;;  %v281_v43 = vld [vmem:[#allocation2 + $0x150] sm:$0xff]  ;;  %v274_v44 = vld [vmem:[#allocation2 + $0x118] sm:$0xff] }
 0x18d   :  { %5021 = vmatpush1.bf16.msra.mxu0 %v17352_v51  ;;  %5144 = vmatpush1.bf16.msra.mxu1 %v17354_v52  ;;  %v943_v51 = vld [vmem:[#allocation2 + $0x1600] sm:$0xff] }
 0x18e   :  { %5022 = vmatprep.subr.bf16.mxu0 %v17369_v53  ;;  %5145 = vmatprep.subr.bf16.mxu1 %v17371_v58  ;;  %v951_v52 = vld [vmem:[#allocation2 + $0x1640] sm:$0xff]  ;;  %v944_v53 = vld [vmem:[#allocation2 + $0x1608] sm:$0xff]  ;;  %v17482_v58 = vcombine.low %v928_v45, %v936_v47  ;;  %v16815_v45 = vcombine.high %v258_v35, %v266_v37 }
 0x18f   :  { %v17497_v59 = vcombine.high %v943_v51, %v951_v52  ;;  %v17499_v63 = vcombine.high %v944_v53, %v952_v55  ;;  %v17496_v1 = vcombine.low %v943_v51, %v951_v52  ;;  %v297_v51 = vld [vmem:[#allocation2 + $0x1d0] sm:$0xff]  ;;  %v290_v52 = vld [vmem:[#allocation2 + $0x198] sm:$0xff] }
 0x191   :  { %5023 = vmatpush1.bf16.msra.mxu0 %v17368_v60  ;;  %5146 = vmatpush1.bf16.msra.mxu1 %v17370_v61  ;;  %v959_v60 = vld [vmem:[#allocation2 + $0x1680] sm:$0xff] }
 0x192   :  { %5024 = vmatprep.subr.bf16.mxu0 %v17385_v62  ;;  %5147 = vmatprep.subr.bf16.mxu1 %v17387_v2  ;;  %v967_v61 = vld [vmem:[#allocation2 + $0x16c0] sm:$0xff]  ;;  %v960_v62 = vld [vmem:[#allocation2 + $0x1688] sm:$0xff]  ;;  %v17498_v2 = vcombine.low %v944_v53, %v952_v55 }
 0x193   :  { %v17513_v3 = vcombine.high %v959_v60, %v967_v61  ;;  %v17515_v7 = vcombine.high %v960_v62, %v968_v0  ;;  %v17512_v9 = vcombine.low %v959_v60, %v967_v61  ;;  %v313_v60 = vld [vmem:[#allocation2 + $0x250] sm:$0xff]  ;;  %v306_v61 = vld [vmem:[#allocation2 + $0x218] sm:$0xff] }
 0x195   :  { %5025 = vmatpush1.bf16.msra.mxu0 %v17384_v4  ;;  %5148 = vmatpush1.bf16.msra.mxu1 %v17386_v5  ;;  %v975_v4 = vld [vmem:[#allocation2 + $0x1700] sm:$0xff] }
 0x196   :  { %5026 = vmatprep.subr.bf16.mxu0 %v17401_v6  ;;  %5149 = vmatprep.subr.bf16.mxu1 %v17403_v10  ;;  %v983_v5 = vld [vmem:[#allocation2 + $0x1740] sm:$0xff]  ;;  %v976_v6 = vld [vmem:[#allocation2 + $0x1708] sm:$0xff]  ;;  %v17514_v10 = vcombine.low %v960_v62, %v968_v0 }
 0x197   :  { %v17529_v11 = vcombine.high %v975_v4, %v983_v5  ;;  %v17531_v16 = vcombine.high %v976_v6, %v984_v8  ;;  %v17528_v18 = vcombine.low %v975_v4, %v983_v5  ;;  %v329_v4 = vld [vmem:[#allocation2 + $0x2d0] sm:$0xff]  ;;  %v322_v5 = vld [vmem:[#allocation2 + $0x298] sm:$0xff] }
 0x199   :  { %5027 = vmatpush1.bf16.msra.mxu0 %v17400_v13  ;;  %5150 = vmatpush1.bf16.msra.mxu1 %v17402_v14  ;;  %v991_v13 = vld [vmem:[#allocation2 + $0x1780] sm:$0xff] }
 0x19a   :  { %5028 = vmatprep.subr.bf16.mxu0 %v17417_v15  ;;  %5151 = vmatprep.subr.bf16.mxu1 %v17419_v19  ;;  %v999_v14 = vld [vmem:[#allocation2 + $0x17c0] sm:$0xff]  ;;  %v992_v15 = vld [vmem:[#allocation2 + $0x1788] sm:$0xff]  ;;  %v17530_v19 = vcombine.low %v976_v6, %v984_v8 }
 0x19b   :  { %v17545_v20 = vcombine.high %v991_v13, %v999_v14  ;;  %v17547_v26 = vcombine.high %v992_v15, %v1000_v17  ;;  %v17546_v30 = vcombine.low %v992_v15, %v1000_v17 }
 0x19d   :  { %5029 = vmatpush1.bf16.msra.mxu0 %v17416_v21  ;;  %5152 = vmatpush1.bf16.msra.mxu1 %v17418_v22  ;;  %v241_v21 = vld [vmem:[#allocation2 + $0x10] sm:$0xff] }
 0x19e   :  { %5030 = vmatprep.subr.bf16.mxu0 %v17433_v24  ;;  %5153 = vmatprep.subr.bf16.mxu1 %v17435_v29  ;;  %v249_v22 = vld [vmem:[#allocation2 + $0x50] sm:$0xff]  ;;  %v242_v24 = vld [vmem:[#allocation2 + $0x18] sm:$0xff]  ;;  %v17544_v29 = vcombine.low %v991_v13, %v999_v14 }
 0x19f   :  { %v16799_v36 = vcombine.high %v242_v24, %v250_v28  ;;  %v16796_v39 = vcombine.low %v241_v21, %v249_v22  ;;  %v345_v13 = vld [vmem:[#allocation2 + $0x350] sm:$0xff]  ;;  %v338_v14 = vld [vmem:[#allocation2 + $0x318] sm:$0xff] }
 0x1a1   :  { %5031 = vmatpush1.bf16.msra.mxu0 %v17432_v31  ;;  %5154 = vmatpush1.bf16.msra.mxu1 %v17434_v32  ;;  %v16797_v31 = vcombine.high %v241_v21, %v249_v22  ;;  %v257_v32 = vld [vmem:[#allocation2 + $0x90] sm:$0xff]  ;;  %v354_v22 = vld [vmem:[#allocation2 + $0x398] sm:$0xff] }
 0x1a2   :  { %5032 = vmatprep.subr.bf16.mxu0 %v17449_v33  ;;  %5155 = vmatprep.subr.bf16.mxu1 %v17451_v38  ;;  %v265_v33 = vld [vmem:[#allocation2 + $0xd0] sm:$0xff]  ;;  %v20490_v38 = vpack.c.bf16 %v231_v27, %v231_v27 }
 0x1a3   :  { %v16812_v47 = vcombine.low %v257_v32, %v265_v33  ;;  %v361_v21 = vld [vmem:[#allocation2 + $0x3d0] sm:$0xff] }
 0x1a5   :  { %5033 = vmatpush1.bf16.msra.mxu0 %v17448_v40  ;;  %5156 = vmatpush1.bf16.msra.mxu1 %v17450_v41  ;;  %v16798_v40 = vcombine.low %v242_v24, %v250_v28  ;;  %v16813_v41 = vcombine.high %v257_v32, %v265_v33  ;;  %v370_v32 = vld [vmem:[#allocation2 + $0x418] sm:$0xff] }
 0x1a6   :  { %5034 = vmatprep.subr.bf16.mxu0 %v17465_v42  ;;  %5157 = vmatprep.subr.bf16.mxu1 %v17467_v46  ;;  %v273_v42 = vld [vmem:[#allocation2 + $0x110] sm:$0xff]  ;;  %v282_v46 = vld [vmem:[#allocation2 + $0x158] sm:$0xff] }
 0x1a7   :  { %v16831_v53 = vcombine.high %v274_v44, %v282_v46  ;;  %v16828_v55 = vcombine.low %v273_v42, %v281_v43 }
 0x1a9   :  { %5035 = vmatpush1.bf16.msra.mxu0 %v17464_v48  ;;  %5158 = vmatpush1.bf16.msra.mxu1 %v17466_v49  ;;  %v16814_v48 = vcombine.low %v258_v35, %v266_v37  ;;  %v16829_v49 = vcombine.high %v273_v42, %v281_v43  ;;  %v378_v35 = vld [vmem:[#allocation2 + $0x458] sm:$0xff] }
 0x1aa   :  { %5036 = vmatprep.subr.bf16.mxu0 %v17481_v50  ;;  %5159 = vmatprep.subr.bf16.mxu1 %v17483_v54  ;;  %v289_v50 = vld [vmem:[#allocation2 + $0x190] sm:$0xff]  ;;  %v298_v54 = vld [vmem:[#allocation2 + $0x1d8] sm:$0xff]  ;;  %v16927_v43 = vcombine.high %v370_v32, %v378_v35 }
 0x1ab   :  { %v16847_v62 = vcombine.high %v290_v52, %v298_v54  ;;  %v16844_v0 = vcombine.low %v289_v50, %v297_v51  ;;  %v386_v42 = vld [vmem:[#allocation2 + $0x498] sm:$0xff] }
 0x1ad   :  { %5037 = vmatpush1.bf16.msra.mxu0 %v17480_v56  ;;  %5160 = vmatpush1.bf16.msra.mxu1 %v17482_v58  ;;  %v16830_v56 = vcombine.low %v274_v44, %v282_v46  ;;  %v16845_v58 = vcombine.high %v289_v50, %v297_v51  ;;  %v394_v44 = vld [vmem:[#allocation2 + $0x4d8] sm:$0xff]  ;;  %v16926_v46 = vcombine.low %v370_v32, %v378_v35 }
 0x1ae   :  { %5038 = vmatprep.subr.bf16.mxu0 %v17497_v59  ;;  %5161 = vmatprep.subr.bf16.mxu1 %v17499_v63  ;;  %v305_v59 = vld [vmem:[#allocation2 + $0x210] sm:$0xff]  ;;  %v314_v63 = vld [vmem:[#allocation2 + $0x258] sm:$0xff]  ;;  %v16943_v51 = vcombine.high %v386_v42, %v394_v44 }
 0x1af   :  { %v16863_v6 = vcombine.high %v306_v61, %v314_v63  ;;  %v16860_v8 = vcombine.low %v305_v59, %v313_v60  ;;  %v402_v50 = vld [vmem:[#allocation2 + $0x518] sm:$0xff] }
 0x1b0   :  { %v490_v32 = vld [vmem:[#allocation2 + $0x7d8] sm:$0xff] }
 0x1b1   :  { %5039 = vmatpush1.bf16.msra.mxu0 %v17496_v1  ;;  %5162 = vmatpush1.bf16.msra.mxu1 %v17498_v2  ;;  %v16846_v1 = vcombine.low %v290_v52, %v298_v54  ;;  %v16861_v2 = vcombine.high %v305_v59, %v313_v60  ;;  %v410_v52 = vld [vmem:[#allocation2 + $0x558] sm:$0xff]  ;;  %v16942_v54 = vcombine.low %v386_v42, %v394_v44 }
 0x1b2   :  { %5040 = vmatprep.subr.bf16.mxu0 %v17513_v3  ;;  %5163 = vmatprep.subr.bf16.mxu1 %v17515_v7  ;;  %v321_v3 = vld [vmem:[#allocation2 + $0x290] sm:$0xff]  ;;  %v330_v7 = vld [vmem:[#allocation2 + $0x2d8] sm:$0xff]  ;;  %v16959_v60 = vcombine.high %v402_v50, %v410_v52 }
 0x1b3   :  { %v16879_v15 = vcombine.high %v322_v5, %v330_v7  ;;  %v16876_v17 = vcombine.low %v321_v3, %v329_v4  ;;  %v418_v59 = vld [vmem:[#allocation2 + $0x598] sm:$0xff] }
 0x1b4   :  { %v506_v42 = vld [vmem:[#allocation2 + $0x858] sm:$0xff] }
 0x1b5   :  { %5041 = vmatpush1.bf16.msra.mxu0 %v17512_v9  ;;  %5164 = vmatpush1.bf16.msra.mxu1 %v17514_v10  ;;  %v16862_v9 = vcombine.low %v306_v61, %v314_v63  ;;  %v16877_v10 = vcombine.high %v321_v3, %v329_v4  ;;  %v426_v61 = vld [vmem:[#allocation2 + $0x5d8] sm:$0xff]  ;;  %v16958_v63 = vcombine.low %v402_v50, %v410_v52 }
 0x1b6   :  { %5042 = vmatprep.subr.bf16.mxu0 %v17529_v11  ;;  %5165 = vmatprep.subr.bf16.mxu1 %v17531_v16  ;;  %v337_v11 = vld [vmem:[#allocation2 + $0x310] sm:$0xff]  ;;  %v346_v16 = vld [vmem:[#allocation2 + $0x358] sm:$0xff]  ;;  %v16975_v4 = vcombine.high %v418_v59, %v426_v61 }
 0x1b7   :  { %v16895_v24 = vcombine.high %v338_v14, %v346_v16  ;;  %v16892_v27 = vcombine.low %v337_v11, %v345_v13  ;;  %v16894_v28 = vcombine.low %v338_v14, %v346_v16  ;;  %v434_v3 = vld [vmem:[#allocation2 + $0x618] sm:$0xff] }
 0x1b8   :  { %v458_v14 = vld [vmem:[#allocation2 + $0x6d8] sm:$0xff] }
 0x1b9   :  { %5043 = vmatpush1.bf16.msra.mxu0 %v17528_v18  ;;  %5166 = vmatpush1.bf16.msra.mxu1 %v17530_v19  ;;  %v16878_v18 = vcombine.low %v322_v5, %v330_v7  ;;  %v16893_v19 = vcombine.high %v337_v11, %v345_v13  ;;  %v442_v5 = vld [vmem:[#allocation2 + $0x658] sm:$0xff]  ;;  %v16974_v7 = vcombine.low %v418_v59, %v426_v61 }
 0x1ba   :  { %5044 = vmatprep.subr.bf16.mxu0 %v17545_v20  ;;  %5167 = vmatprep.subr.bf16.mxu1 %v17547_v26  ;;  %v353_v20 = vld [vmem:[#allocation2 + $0x390] sm:$0xff]  ;;  %v362_v26 = vld [vmem:[#allocation2 + $0x3d8] sm:$0xff]  ;;  %v16991_v13 = vcombine.high %v434_v3, %v442_v5  ;;  %v16990_v16 = vcombine.low %v434_v3, %v442_v5 }
 0x1bb   :  { %v16911_v33 = vcombine.high %v354_v22, %v362_v26  ;;  %v16910_v37 = vcombine.low %v354_v22, %v362_v26  ;;  %v450_v11 = vld [vmem:[#allocation2 + $0x698] sm:$0xff] }
 0x1bc   :  { %v474_v22 = vld [vmem:[#allocation2 + $0x758] sm:$0xff]  ;;  %v17006_v26 = vcombine.low %v450_v11, %v458_v14 }
 0x1bd   :  { %5045 = vmatpush1.bf16.msra.mxu0 %v17544_v29  ;;  %5168 = vmatpush1.bf16.msra.mxu1 %v17546_v30  ;;  %v16909_v29 = vcombine.high %v353_v20, %v361_v21  ;;  %v369_v30 = vld [vmem:[#allocation2 + $0x410] sm:$0xff]  ;;  %v522_v50 = vld [vmem:[#allocation2 + $0x8d8] sm:$0xff] }
 0x1be   :  { %5178 = vmatprep.subr.bf16.mxu0 %v16797_v31  ;;  %5301 = vmatprep.subr.bf16.mxu1 %v16799_v36  ;;  %v377_v31 = vld [vmem:[#allocation2 + $0x450] sm:$0xff]  ;;  %v16908_v36 = vcombine.low %v353_v20, %v361_v21  ;;  %v466_v20 = vld [vmem:[#allocation2 + $0x718] sm:$0xff]  ;;  %v17007_v21 = vcombine.high %v450_v11, %v458_v14 }
 0x1bf   :  { %v17022_v35 = vcombine.low %v466_v20, %v474_v22  ;;  %v538_v59 = vld [vmem:[#allocation2 + $0x958] sm:$0xff] }
 0x1c0   :  { %5047 = vmatmul.mubr.bf16.vlgmr.msra.gmra.mrb[0].mxu0 %v20490_v38  ;;  %5170 = vmatmul.mubr.bf16.vlgmr.msra.gmra.mrb[0].mxu1 %v20490_v38  ;;  %v554_v3 = vld [vmem:[#allocation2 + $0x9d8] sm:$0xff] }
 0x1c1   :  { %5179 = vmatpush1.bf16.msra.mxu0 %v16796_v39  ;;  %5302 = vmatpush1.bf16.msra.mxu1 %v16798_v40  ;;  %v16925_v39 = vcombine.high %v369_v30, %v377_v31  ;;  %v385_v40 = vld [vmem:[#allocation2 + $0x490] sm:$0xff]  ;;  %v570_v11 = vld [vmem:[#allocation2 + $0xa58] sm:$0xff] }
 0x1c2   :  { %5180 = vmatprep.subr.bf16.mxu0 %v16813_v41  ;;  %5303 = vmatprep.subr.bf16.mxu1 %v16815_v45  ;;  %v393_v41 = vld [vmem:[#allocation2 + $0x4d0] sm:$0xff]  ;;  %v16924_v45 = vcombine.low %v369_v30, %v377_v31  ;;  %v482_v30 = vld [vmem:[#allocation2 + $0x798] sm:$0xff]  ;;  %v17023_v31 = vcombine.high %v466_v20, %v474_v22 }
 0x1c3   :  { %5210 = vmatprep.mubr.bf16.mxu0 %v20455_v57  ;;  %5333 = vmatprep.mubr.bf16.mxu1 %v20455_v57  ;;  %v17038_v44 = vcombine.low %v482_v30, %v490_v32  ;;  %v586_v20 = vld [vmem:[#allocation2 + $0xad8] sm:$0xff] }
 0x1c5   :  { %5181 = vmatpush1.bf16.msra.mxu0 %v16812_v47  ;;  %5304 = vmatpush1.bf16.msra.mxu1 %v16814_v48  ;;  %v16941_v47 = vcombine.high %v385_v40, %v393_v41  ;;  %v401_v48 = vld [vmem:[#allocation2 + $0x510] sm:$0xff] }
 0x1c6   :  { %5182 = vmatprep.subr.bf16.mxu0 %v16829_v49  ;;  %5305 = vmatprep.subr.bf16.mxu1 %v16831_v53  ;;  %v409_v49 = vld [vmem:[#allocation2 + $0x550] sm:$0xff]  ;;  %v16940_v53 = vcombine.low %v385_v40, %v393_v41  ;;  %v498_v40 = vld [vmem:[#allocation2 + $0x818] sm:$0xff]  ;;  %v17039_v41 = vcombine.high %v482_v30, %v490_v32 }
 0x1c7   :  { %v17054_v52 = vcombine.low %v498_v40, %v506_v42  ;;  %v602_v30 = vld [vmem:[#allocation2 + $0xb58] sm:$0xff] }
 0x1c9   :  { %5183 = vmatpush1.bf16.msra.mxu0 %v16828_v55  ;;  %5306 = vmatpush1.bf16.msra.mxu1 %v16830_v56  ;;  %v16957_v55 = vcombine.high %v401_v48, %v409_v49  ;;  %v417_v56 = vld [vmem:[#allocation2 + $0x590] sm:$0xff] }
 0x1ca   :  { %5184 = vmatprep.subr.bf16.mxu0 %v16845_v58  ;;  %5307 = vmatprep.subr.bf16.mxu1 %v16847_v62  ;;  %v425_v58 = vld [vmem:[#allocation2 + $0x5d0] sm:$0xff]  ;;  %v16956_v62 = vcombine.low %v401_v48, %v409_v49  ;;  %v514_v48 = vld [vmem:[#allocation2 + $0x898] sm:$0xff]  ;;  %v17055_v49 = vcombine.high %v498_v40, %v506_v42 }
 0x1cb   :  { %v17070_v61 = vcombine.low %v514_v48, %v522_v50  ;;  %v618_v40 = vld [vmem:[#allocation2 + $0xbd8] sm:$0xff] }
 0x1cd   :  { %5185 = vmatpush1.bf16.msra.mxu0 %v16844_v0  ;;  %5308 = vmatpush1.bf16.msra.mxu1 %v16846_v1  ;;  %v16973_v0 = vcombine.high %v417_v56, %v425_v58  ;;  %v433_v1 = vld [vmem:[#allocation2 + $0x610] sm:$0xff] }
 0x1ce   :  { %5186 = vmatprep.subr.bf16.mxu0 %v16861_v2  ;;  %5309 = vmatprep.subr.bf16.mxu1 %v16863_v6  ;;  %v441_v2 = vld [vmem:[#allocation2 + $0x650] sm:$0xff]  ;;  %v16972_v6 = vcombine.low %v417_v56, %v425_v58  ;;  %v530_v56 = vld [vmem:[#allocation2 + $0x918] sm:$0xff]  ;;  %v17071_v58 = vcombine.high %v514_v48, %v522_v50 }
 0x1cf   :  { %v17086_v5 = vcombine.low %v530_v56, %v538_v59  ;;  %v634_v48 = vld [vmem:[#allocation2 + $0xc58] sm:$0xff] }
 0x1d1   :  { %5187 = vmatpush1.bf16.msra.mxu0 %v16860_v8  ;;  %5310 = vmatpush1.bf16.msra.mxu1 %v16862_v9  ;;  %v16989_v8 = vcombine.high %v433_v1, %v441_v2  ;;  %v449_v9 = vld [vmem:[#allocation2 + $0x690] sm:$0xff] }
 0x1d2   :  { %5188 = vmatprep.subr.bf16.mxu0 %v16877_v10  ;;  %5311 = vmatprep.subr.bf16.mxu1 %v16879_v15  ;;  %v457_v10 = vld [vmem:[#allocation2 + $0x6d0] sm:$0xff]  ;;  %v16988_v15 = vcombine.low %v433_v1, %v441_v2  ;;  %v546_v1 = vld [vmem:[#allocation2 + $0x998] sm:$0xff]  ;;  %v17087_v2 = vcombine.high %v530_v56, %v538_v59 }
 0x1d3   :  { %v17102_v14 = vcombine.low %v546_v1, %v554_v3  ;;  %v650_v56 = vld [vmem:[#allocation2 + $0xcd8] sm:$0xff] }
 0x1d5   :  { %5189 = vmatpush1.bf16.msra.mxu0 %v16876_v17  ;;  %5312 = vmatpush1.bf16.msra.mxu1 %v16878_v18  ;;  %v17005_v17 = vcombine.high %v449_v9, %v457_v10  ;;  %v465_v18 = vld [vmem:[#allocation2 + $0x710] sm:$0xff] }
 0x1d6   :  { %5190 = vmatprep.subr.bf16.mxu0 %v16893_v19  ;;  %5313 = vmatprep.subr.bf16.mxu1 %v16895_v24  ;;  %v473_v19 = vld [vmem:[#allocation2 + $0x750] sm:$0xff]  ;;  %v17004_v24 = vcombine.low %v449_v9, %v457_v10  ;;  %v562_v10 = vld [vmem:[#allocation2 + $0xa18] sm:$0xff] }
 0x1d7   :  { %v569_v9 = vld [vmem:[#allocation2 + $0xa50] sm:$0xff]  ;;  %v17118_v22 = vcombine.low %v562_v10, %v570_v11 }
 0x1d9   :  { %5191 = vmatpush1.bf16.msra.mxu0 %v16892_v27  ;;  %5314 = vmatpush1.bf16.msra.mxu1 %v16894_v28  ;;  %v17021_v27 = vcombine.high %v465_v18, %v473_v19  ;;  %v481_v28 = vld [vmem:[#allocation2 + $0x790] sm:$0xff] }
 0x1da   :  { %5192 = vmatprep.subr.bf16.mxu0 %v16909_v29  ;;  %5315 = vmatprep.subr.bf16.mxu1 %v16911_v33  ;;  %v489_v29 = vld [vmem:[#allocation2 + $0x7d0] sm:$0xff]  ;;  %v17020_v33 = vcombine.low %v465_v18, %v473_v19  ;;  %v578_v19 = vld [vmem:[#allocation2 + $0xa98] sm:$0xff] }
 0x1db   :  { %v585_v18 = vld [vmem:[#allocation2 + $0xad0] sm:$0xff]  ;;  %v17134_v32 = vcombine.low %v578_v19, %v586_v20 }
 0x1dd   :  { %5193 = vmatpush1.bf16.msra.mxu0 %v16908_v36  ;;  %5316 = vmatpush1.bf16.msra.mxu1 %v16910_v37  ;;  %v17037_v36 = vcombine.high %v481_v28, %v489_v29  ;;  %v497_v37 = vld [vmem:[#allocation2 + $0x810] sm:$0xff] }
 0x1de   :  { %5194 = vmatprep.subr.bf16.mxu0 %v16925_v39  ;;  %5317 = vmatprep.subr.bf16.mxu1 %v16927_v43  ;;  %v505_v39 = vld [vmem:[#allocation2 + $0x850] sm:$0xff]  ;;  %v17036_v43 = vcombine.low %v481_v28, %v489_v29  ;;  %v594_v29 = vld [vmem:[#allocation2 + $0xb18] sm:$0xff] }
 0x1df   :  { %v601_v28 = vld [vmem:[#allocation2 + $0xb50] sm:$0xff]  ;;  %v17150_v42 = vcombine.low %v594_v29, %v602_v30 }
 0x1e1   :  { %5195 = vmatpush1.bf16.msra.mxu0 %v16924_v45  ;;  %5318 = vmatpush1.bf16.msra.mxu1 %v16926_v46  ;;  %v17053_v45 = vcombine.high %v497_v37, %v505_v39  ;;  %v513_v46 = vld [vmem:[#allocation2 + $0x890] sm:$0xff] }
 0x1e2   :  { %5196 = vmatprep.subr.bf16.mxu0 %v16941_v47  ;;  %5319 = vmatprep.subr.bf16.mxu1 %v16943_v51  ;;  %v521_v47 = vld [vmem:[#allocation2 + $0x8d0] sm:$0xff]  ;;  %v17052_v51 = vcombine.low %v497_v37, %v505_v39  ;;  %v610_v39 = vld [vmem:[#allocation2 + $0xb98] sm:$0xff] }
 0x1e3   :  { %v617_v37 = vld [vmem:[#allocation2 + $0xbd0] sm:$0xff]  ;;  %v17166_v50 = vcombine.low %v610_v39, %v618_v40 }
 0x1e5   :  { %5197 = vmatpush1.bf16.msra.mxu0 %v16940_v53  ;;  %5320 = vmatpush1.bf16.msra.mxu1 %v16942_v54  ;;  %v17069_v53 = vcombine.high %v513_v46, %v521_v47  ;;  %v529_v54 = vld [vmem:[#allocation2 + $0x910] sm:$0xff] }
 0x1e6   :  { %5198 = vmatprep.subr.bf16.mxu0 %v16957_v55  ;;  %5321 = vmatprep.subr.bf16.mxu1 %v16959_v60  ;;  %v537_v55 = vld [vmem:[#allocation2 + $0x950] sm:$0xff]  ;;  %v17068_v60 = vcombine.low %v513_v46, %v521_v47  ;;  %v626_v47 = vld [vmem:[#allocation2 + $0xc18] sm:$0xff] }
 0x1e7   :  { %v633_v46 = vld [vmem:[#allocation2 + $0xc50] sm:$0xff]  ;;  %v17182_v59 = vcombine.low %v626_v47, %v634_v48 }
 0x1e9   :  { %5199 = vmatpush1.bf16.msra.mxu0 %v16956_v62  ;;  %5322 = vmatpush1.bf16.msra.mxu1 %v16958_v63  ;;  %v17085_v62 = vcombine.high %v529_v54, %v537_v55  ;;  %v545_v63 = vld [vmem:[#allocation2 + $0x990] sm:$0xff] }
 0x1ea   :  { %5200 = vmatprep.subr.bf16.mxu0 %v16973_v0  ;;  %5323 = vmatprep.subr.bf16.mxu1 %v16975_v4  ;;  %v553_v0 = vld [vmem:[#allocation2 + $0x9d0] sm:$0xff]  ;;  %v17084_v4 = vcombine.low %v529_v54, %v537_v55  ;;  %v642_v55 = vld [vmem:[#allocation2 + $0xc98] sm:$0xff] }
 0x1eb   :  { %v649_v54 = vld [vmem:[#allocation2 + $0xcd0] sm:$0xff] }
 0x1ed   :  { %5201 = vmatpush1.bf16.msra.mxu0 %v16972_v6  ;;  %5324 = vmatpush1.bf16.msra.mxu1 %v16974_v7  ;;  %v17101_v6 = vcombine.high %v545_v63, %v553_v0  ;;  %v561_v7 = vld [vmem:[#allocation2 + $0xa10] sm:$0xff] }
 0x1ee   :  { %5202 = vmatprep.subr.bf16.mxu0 %v16989_v8  ;;  %5325 = vmatprep.subr.bf16.mxu1 %v16991_v13  ;;  %v17103_v8 = vcombine.high %v546_v1, %v554_v3  ;;  %v17100_v13 = vcombine.low %v545_v63, %v553_v0  ;;  %v665_v63 = vld [vmem:[#allocation2 + $0xd50] sm:$0xff]  ;;  %v658_v0 = vld [vmem:[#allocation2 + $0xd18] sm:$0xff]  ;;  %v17198_v3 = vcombine.low %v642_v55, %v650_v56 }
 0x1ef   :  { %v666_v1 = vld [vmem:[#allocation2 + $0xd58] sm:$0xff] }
 0x1f1   :  { %5203 = vmatpush1.bf16.msra.mxu0 %v16988_v15  ;;  %5326 = vmatpush1.bf16.msra.mxu1 %v16990_v16  ;;  %v17117_v15 = vcombine.high %v561_v7, %v569_v9  ;;  %v17119_v16 = vcombine.high %v562_v10, %v570_v11  ;;  %v17214_v11 = vcombine.low %v658_v0, %v666_v1 }
 0x1f2   :  { %5204 = vmatprep.subr.bf16.mxu0 %v17005_v17  ;;  %5327 = vmatprep.subr.bf16.mxu1 %v17007_v21  ;;  %v577_v17 = vld [vmem:[#allocation2 + $0xa90] sm:$0xff]  ;;  %v17116_v21 = vcombine.low %v561_v7, %v569_v9  ;;  %v682_v9 = vld [vmem:[#allocation2 + $0xdd8] sm:$0xff] }
 0x1f3   :  { %v681_v7 = vld [vmem:[#allocation2 + $0xdd0] sm:$0xff] }
 0x1f5   :  { %5205 = vmatpush1.bf16.msra.mxu0 %v17004_v24  ;;  %5328 = vmatpush1.bf16.msra.mxu1 %v17006_v26  ;;  %v17133_v24 = vcombine.high %v577_v17, %v585_v18  ;;  %v17135_v26 = vcombine.high %v578_v19, %v586_v20 }
 0x1f6   :  { %5206 = vmatprep.subr.bf16.mxu0 %v17021_v27  ;;  %5329 = vmatprep.subr.bf16.mxu1 %v17023_v31  ;;  %v593_v27 = vld [vmem:[#allocation2 + $0xb10] sm:$0xff]  ;;  %v17132_v31 = vcombine.low %v577_v17, %v585_v18  ;;  %v690_v17 = vld [vmem:[#allocation2 + $0xe18] sm:$0xff] }
 0x1f7   :  { %v698_v18 = vld [vmem:[#allocation2 + $0xe58] sm:$0xff] }
 0x1f9   :  { %5207 = vmatpush1.bf16.msra.mxu0 %v17020_v33  ;;  %5330 = vmatpush1.bf16.msra.mxu1 %v17022_v35  ;;  %v17149_v33 = vcombine.high %v593_v27, %v601_v28  ;;  %v17151_v35 = vcombine.high %v594_v29, %v602_v30  ;;  %v17246_v30 = vcombine.low %v690_v17, %v698_v18 }
 0x1fa   :  { %5208 = vmatprep.subr.bf16.mxu0 %v17037_v36  ;;  %5331 = vmatprep.subr.bf16.mxu1 %v17039_v41  ;;  %v609_v36 = vld [vmem:[#allocation2 + $0xb90] sm:$0xff]  ;;  %v17148_v41 = vcombine.low %v593_v27, %v601_v28  ;;  %v706_v27 = vld [vmem:[#allocation2 + $0xe98] sm:$0xff] }
 0x1fb   :  { %v714_v28 = vld [vmem:[#allocation2 + $0xed8] sm:$0xff] }
 0x1fd   :  { %5209 = vmatpush1.bf16.msra.mxu0 %v17036_v43  ;;  %5332 = vmatpush1.bf16.msra.mxu1 %v17038_v44  ;;  %v17165_v43 = vcombine.high %v609_v36, %v617_v37  ;;  %v17167_v44 = vcombine.high %v610_v39, %v618_v40  ;;  %v17262_v40 = vcombine.low %v706_v27, %v714_v28 }
 0x1fe   :  { %5219 = vmatprep.subr.bf16.mxu0 %v17053_v45  ;;  %5342 = vmatprep.subr.bf16.mxu1 %v17055_v49  ;;  %v625_v45 = vld [vmem:[#allocation2 + $0xc10] sm:$0xff]  ;;  %v17164_v49 = vcombine.low %v609_v36, %v617_v37  ;;  %v722_v36 = vld [vmem:[#allocation2 + $0xf18] sm:$0xff] }
 0x1ff   :  { %v730_v37 = vld [vmem:[#allocation2 + $0xf58] sm:$0xff] }
 0x200   :  { %5211 = vmatmul.mubr.bf16.vlgmr.msra.gmra.mrb[4].mxu0 %v20462_v12  ;;  %5334 = vmatmul.mubr.bf16.vlgmr.msra.gmra.mrb[4].mxu1 %v20462_v12 }
 0x201   :  { %5220 = vmatpush1.bf16.msra.mxu0 %v17052_v51  ;;  %5343 = vmatpush1.bf16.msra.mxu1 %v17054_v52  ;;  %v17181_v51 = vcombine.high %v625_v45, %v633_v46  ;;  %v17183_v52 = vcombine.high %v626_v47, %v634_v48  ;;  %v17278_v48 = vcombine.low %v722_v36, %v730_v37 }
 0x202   :  { %5221 = vmatprep.subr.bf16.mxu0 %v17069_v53  ;;  %5344 = vmatprep.subr.bf16.mxu1 %v17071_v58  ;;  %v641_v53 = vld [vmem:[#allocation2 + $0xc90] sm:$0xff]  ;;  %v17180_v58 = vcombine.low %v625_v45, %v633_v46  ;;  %v738_v45 = vld [vmem:[#allocation2 + $0xf98] sm:$0xff] }
 0x203   :  { %5251 = vmatprep.mubr.bf16.mxu0 %v20467_v23  ;;  %5374 = vmatprep.mubr.bf16.mxu1 %v20467_v23  ;;  %v746_v46 = vld [vmem:[#allocation2 + $0xfd8] sm:$0xff] }
 0x205   :  { %5222 = vmatpush1.bf16.msra.mxu0 %v17068_v60  ;;  %5345 = vmatpush1.bf16.msra.mxu1 %v17070_v61  ;;  %v17197_v60 = vcombine.high %v641_v53, %v649_v54  ;;  %v17199_v61 = vcombine.high %v642_v55, %v650_v56  ;;  %v17294_v56 = vcombine.low %v738_v45, %v746_v46 }
 0x206   :  { %5223 = vmatprep.subr.bf16.mxu0 %v17085_v62  ;;  %5346 = vmatprep.subr.bf16.mxu1 %v17087_v2  ;;  %v657_v62 = vld [vmem:[#allocation2 + $0xd10] sm:$0xff]  ;;  %v17196_v2 = vcombine.low %v641_v53, %v649_v54  ;;  %v754_v53 = vld [vmem:[#allocation2 + $0x1018] sm:$0xff] }
 0x207   :  { %v17212_v10 = vcombine.low %v657_v62, %v665_v63  ;;  %v762_v54 = vld [vmem:[#allocation2 + $0x1058] sm:$0xff] }
 0x209   :  { %5224 = vmatpush1.bf16.msra.mxu0 %v17084_v4  ;;  %5347 = vmatpush1.bf16.msra.mxu1 %v17086_v5  ;;  %v17213_v4 = vcombine.high %v657_v62, %v665_v63  ;;  %v17215_v5 = vcombine.high %v658_v0, %v666_v1  ;;  %v770_v62 = vld [vmem:[#allocation2 + $0x1098] sm:$0xff]  ;;  %v17310_v1 = vcombine.low %v754_v53, %v762_v54 }
 0x20a   :  { %5225 = vmatprep.subr.bf16.mxu0 %v17101_v6  ;;  %5348 = vmatprep.subr.bf16.mxu1 %v17103_v8  ;;  %v673_v6 = vld [vmem:[#allocation2 + $0xd90] sm:$0xff]  ;;  %v674_v8 = vld [vmem:[#allocation2 + $0xd98] sm:$0xff] }
 0x20b   :  { %v17228_v19 = vcombine.low %v673_v6, %v681_v7  ;;  %v17230_v20 = vcombine.low %v674_v8, %v682_v9  ;;  %v778_v63 = vld [vmem:[#allocation2 + $0x10d8] sm:$0xff] }
 0x20d   :  { %5226 = vmatpush1.bf16.msra.mxu0 %v17100_v13  ;;  %5349 = vmatpush1.bf16.msra.mxu1 %v17102_v14  ;;  %v17229_v13 = vcombine.high %v673_v6, %v681_v7  ;;  %v17231_v14 = vcombine.high %v674_v8, %v682_v9  ;;  %v786_v6 = vld [vmem:[#allocation2 + $0x1118] sm:$0xff]  ;;  %v17326_v9 = vcombine.low %v770_v62, %v778_v63 }
 0x20e   :  { %5227 = vmatprep.subr.bf16.mxu0 %v17117_v15  ;;  %5350 = vmatprep.subr.bf16.mxu1 %v17119_v16  ;;  %v689_v15 = vld [vmem:[#allocation2 + $0xe10] sm:$0xff]  ;;  %v794_v7 = vld [vmem:[#allocation2 + $0x1158] sm:$0xff] }
 0x20f   :  { %v697_v16 = vld [vmem:[#allocation2 + $0xe50] sm:$0xff] }
 0x210   :  { %v17244_v29 = vcombine.low %v689_v15, %v697_v16 }
 0x211   :  { %5228 = vmatpush1.bf16.msra.mxu0 %v17116_v21  ;;  %5351 = vmatpush1.bf16.msra.mxu1 %v17118_v22  ;;  %v17245_v21 = vcombine.high %v689_v15, %v697_v16  ;;  %v17247_v22 = vcombine.high %v690_v17, %v698_v18  ;;  %v802_v15 = vld [vmem:[#allocation2 + $0x1198] sm:$0xff]  ;;  %v17342_v18 = vcombine.low %v786_v6, %v794_v7 }
 0x212   :  { %5229 = vmatprep.subr.bf16.mxu0 %v17133_v24  ;;  %5352 = vmatprep.subr.bf16.mxu1 %v17135_v26  ;;  %v705_v24 = vld [vmem:[#allocation2 + $0xe90] sm:$0xff]  ;;  %v810_v16 = vld [vmem:[#allocation2 + $0x11d8] sm:$0xff] }
 0x213   :  { %v713_v26 = vld [vmem:[#allocation2 + $0xed0] sm:$0xff] }
 0x214   :  { %v17260_v39 = vcombine.low %v705_v24, %v713_v26 }
 0x215   :  { %5230 = vmatpush1.bf16.msra.mxu0 %v17132_v31  ;;  %5353 = vmatpush1.bf16.msra.mxu1 %v17134_v32  ;;  %v17261_v31 = vcombine.high %v705_v24, %v713_v26  ;;  %v17263_v32 = vcombine.high %v706_v27, %v714_v28  ;;  %v818_v24 = vld [vmem:[#allocation2 + $0x1218] sm:$0xff]  ;;  %v17358_v28 = vcombine.low %v802_v15, %v810_v16 }
 0x216   :  { %5231 = vmatprep.subr.bf16.mxu0 %v17149_v33  ;;  %5354 = vmatprep.subr.bf16.mxu1 %v17151_v35  ;;  %v721_v33 = vld [vmem:[#allocation2 + $0xf10] sm:$0xff]  ;;  %v826_v26 = vld [vmem:[#allocation2 + $0x1258] sm:$0xff] }
 0x217   :  { %v729_v35 = vld [vmem:[#allocation2 + $0xf50] sm:$0xff] }
 0x218   :  { %v17276_v47 = vcombine.low %v721_v33, %v729_v35 }
 0x219   :  { %5232 = vmatpush1.bf16.msra.mxu0 %v17148_v41  ;;  %5355 = vmatpush1.bf16.msra.mxu1 %v17150_v42  ;;  %v17277_v41 = vcombine.high %v721_v33, %v729_v35  ;;  %v17279_v42 = vcombine.high %v722_v36, %v730_v37  ;;  %v834_v33 = vld [vmem:[#allocation2 + $0x1298] sm:$0xff]  ;;  %v17374_v37 = vcombine.low %v818_v24, %v826_v26 }
 0x21a   :  { %5233 = vmatprep.subr.bf16.mxu0 %v17165_v43  ;;  %5356 = vmatprep.subr.bf16.mxu1 %v17167_v44  ;;  %v737_v43 = vld [vmem:[#allocation2 + $0xf90] sm:$0xff]  ;;  %v842_v35 = vld [vmem:[#allocation2 + $0x12d8] sm:$0xff] }
 0x21b   :  { %v745_v44 = vld [vmem:[#allocation2 + $0xfd0] sm:$0xff] }
 0x21c   :  { %v17292_v55 = vcombine.low %v737_v43, %v745_v44 }
 0x21d   :  { %5234 = vmatpush1.bf16.msra.mxu0 %v17164_v49  ;;  %5357 = vmatpush1.bf16.msra.mxu1 %v17166_v50  ;;  %v17293_v49 = vcombine.high %v737_v43, %v745_v44  ;;  %v17295_v50 = vcombine.high %v738_v45, %v746_v46  ;;  %v850_v43 = vld [vmem:[#allocation2 + $0x1318] sm:$0xff]  ;;  %v17390_v46 = vcombine.low %v834_v33, %v842_v35 }
 0x21e   :  { %5235 = vmatprep.subr.bf16.mxu0 %v17181_v51  ;;  %5358 = vmatprep.subr.bf16.mxu1 %v17183_v52  ;;  %v753_v51 = vld [vmem:[#allocation2 + $0x1010] sm:$0xff]  ;;  %v858_v44 = vld [vmem:[#allocation2 + $0x1358] sm:$0xff] }
 0x21f   :  { %v761_v52 = vld [vmem:[#allocation2 + $0x1050] sm:$0xff] }
 0x220   :  { %v17308_v0 = vcombine.low %v753_v51, %v761_v52 }
 0x221   :  { %5236 = vmatpush1.bf16.msra.mxu0 %v17180_v58  ;;  %5359 = vmatpush1.bf16.msra.mxu1 %v17182_v59  ;;  %v17309_v58 = vcombine.high %v753_v51, %v761_v52  ;;  %v17311_v59 = vcombine.high %v754_v53, %v762_v54  ;;  %v866_v51 = vld [vmem:[#allocation2 + $0x1398] sm:$0xff]  ;;  %v17406_v54 = vcombine.low %v850_v43, %v858_v44 }
 0x222   :  { %5237 = vmatprep.subr.bf16.mxu0 %v17197_v60  ;;  %5360 = vmatprep.subr.bf16.mxu1 %v17199_v61  ;;  %v769_v60 = vld [vmem:[#allocation2 + $0x1090] sm:$0xff]  ;;  %v874_v52 = vld [vmem:[#allocation2 + $0x13d8] sm:$0xff] }
 0x223   :  { %v777_v61 = vld [vmem:[#allocation2 + $0x10d0] sm:$0xff] }
 0x224   :  { %v17324_v8 = vcombine.low %v769_v60, %v777_v61 }
 0x225   :  { %5238 = vmatpush1.bf16.msra.mxu0 %v17196_v2  ;;  %5361 = vmatpush1.bf16.msra.mxu1 %v17198_v3  ;;  %v17325_v2 = vcombine.high %v769_v60, %v777_v61  ;;  %v17327_v3 = vcombine.high %v770_v62, %v778_v63  ;;  %v882_v60 = vld [vmem:[#allocation2 + $0x1418] sm:$0xff]  ;;  %v17422_v63 = vcombine.low %v866_v51, %v874_v52 }
 0x226   :  { %5239 = vmatprep.subr.bf16.mxu0 %v17213_v4  ;;  %5362 = vmatprep.subr.bf16.mxu1 %v17215_v5  ;;  %v785_v4 = vld [vmem:[#allocation2 + $0x1110] sm:$0xff]  ;;  %v890_v61 = vld [vmem:[#allocation2 + $0x1458] sm:$0xff] }
 0x227   :  { %v793_v5 = vld [vmem:[#allocation2 + $0x1150] sm:$0xff] }
 0x228   :  { %v17340_v17 = vcombine.low %v785_v4, %v793_v5 }
 0x229   :  { %5240 = vmatpush1.bf16.msra.mxu0 %v17212_v10  ;;  %5363 = vmatpush1.bf16.msra.mxu1 %v17214_v11  ;;  %v17341_v10 = vcombine.high %v785_v4, %v793_v5  ;;  %v17343_v11 = vcombine.high %v786_v6, %v794_v7  ;;  %v898_v4 = vld [vmem:[#allocation2 + $0x1498] sm:$0xff]  ;;  %v17438_v7 = vcombine.low %v882_v60, %v890_v61 }
 0x22a   :  { %5241 = vmatprep.subr.bf16.mxu0 %v17229_v13  ;;  %5364 = vmatprep.subr.bf16.mxu1 %v17231_v14  ;;  %v801_v13 = vld [vmem:[#allocation2 + $0x1190] sm:$0xff]  ;;  %v906_v5 = vld [vmem:[#allocation2 + $0x14d8] sm:$0xff] }
 0x22b   :  { %v809_v14 = vld [vmem:[#allocation2 + $0x11d0] sm:$0xff] }
 0x22c   :  { %v17356_v27 = vcombine.low %v801_v13, %v809_v14 }
 0x22d   :  { %5242 = vmatpush1.bf16.msra.mxu0 %v17228_v19  ;;  %5365 = vmatpush1.bf16.msra.mxu1 %v17230_v20  ;;  %v17357_v19 = vcombine.high %v801_v13, %v809_v14  ;;  %v17359_v20 = vcombine.high %v802_v15, %v810_v16  ;;  %v914_v13 = vld [vmem:[#allocation2 + $0x1518] sm:$0xff]  ;;  %v17454_v16 = vcombine.low %v898_v4, %v906_v5 }
 0x22e   :  { %5243 = vmatprep.subr.bf16.mxu0 %v17245_v21  ;;  %5366 = vmatprep.subr.bf16.mxu1 %v17247_v22  ;;  %v817_v21 = vld [vmem:[#allocation2 + $0x1210] sm:$0xff]  ;;  %v922_v14 = vld [vmem:[#allocation2 + $0x1558] sm:$0xff] }
 0x22f   :  { %v825_v22 = vld [vmem:[#allocation2 + $0x1250] sm:$0xff] }
 0x230   :  { %v17372_v36 = vcombine.low %v817_v21, %v825_v22 }
 0x231   :  { %5244 = vmatpush1.bf16.msra.mxu0 %v17244_v29  ;;  %5367 = vmatpush1.bf16.msra.mxu1 %v17246_v30  ;;  %v17373_v29 = vcombine.high %v817_v21, %v825_v22  ;;  %v17375_v30 = vcombine.high %v818_v24, %v826_v26  ;;  %v930_v21 = vld [vmem:[#allocation2 + $0x1598] sm:$0xff]  ;;  %v17470_v26 = vcombine.low %v914_v13, %v922_v14 }
 0x232   :  { %5245 = vmatprep.subr.bf16.mxu0 %v17261_v31  ;;  %5368 = vmatprep.subr.bf16.mxu1 %v17263_v32  ;;  %v833_v31 = vld [vmem:[#allocation2 + $0x1290] sm:$0xff]  ;;  %v938_v22 = vld [vmem:[#allocation2 + $0x15d8] sm:$0xff] }
 0x233   :  { %v841_v32 = vld [vmem:[#allocation2 + $0x12d0] sm:$0xff] }
 0x234   :  { %v17388_v45 = vcombine.low %v833_v31, %v841_v32 }
 0x235   :  { %5246 = vmatpush1.bf16.msra.mxu0 %v17260_v39  ;;  %5369 = vmatpush1.bf16.msra.mxu1 %v17262_v40  ;;  %v17389_v39 = vcombine.high %v833_v31, %v841_v32  ;;  %v17391_v40 = vcombine.high %v834_v33, %v842_v35  ;;  %v946_v31 = vld [vmem:[#allocation2 + $0x1618] sm:$0xff]  ;;  %v17486_v35 = vcombine.low %v930_v21, %v938_v22 }
 0x236   :  { %5247 = vmatprep.subr.bf16.mxu0 %v17277_v41  ;;  %5370 = vmatprep.subr.bf16.mxu1 %v17279_v42  ;;  %v849_v41 = vld [vmem:[#allocation2 + $0x1310] sm:$0xff]  ;;  %v954_v32 = vld [vmem:[#allocation2 + $0x1658] sm:$0xff] }
 0x237   :  { %v857_v42 = vld [vmem:[#allocation2 + $0x1350] sm:$0xff] }
 0x238   :  { %v17404_v53 = vcombine.low %v849_v41, %v857_v42 }
 0x239   :  { %5248 = vmatpush1.bf16.msra.mxu0 %v17276_v47  ;;  %5371 = vmatpush1.bf16.msra.mxu1 %v17278_v48  ;;  %v17405_v47 = vcombine.high %v849_v41, %v857_v42  ;;  %v17407_v48 = vcombine.high %v850_v43, %v858_v44  ;;  %v962_v41 = vld [vmem:[#allocation2 + $0x1698] sm:$0xff]  ;;  %v17502_v44 = vcombine.low %v946_v31, %v954_v32 }
 0x23a   :  { %5249 = vmatprep.subr.bf16.mxu0 %v17293_v49  ;;  %5372 = vmatprep.subr.bf16.mxu1 %v17295_v50  ;;  %v865_v49 = vld [vmem:[#allocation2 + $0x1390] sm:$0xff]  ;;  %v970_v42 = vld [vmem:[#allocation2 + $0x16d8] sm:$0xff] }
 0x23b   :  { %v873_v50 = vld [vmem:[#allocation2 + $0x13d0] sm:$0xff] }
 0x23c   :  { %v17420_v62 = vcombine.low %v865_v49, %v873_v50 }
 0x23d   :  { %5250 = vmatpush1.bf16.msra.mxu0 %v17292_v55  ;;  %5373 = vmatpush1.bf16.msra.mxu1 %v17294_v56  ;;  %v17421_v55 = vcombine.high %v865_v49, %v873_v50  ;;  %v17423_v56 = vcombine.high %v866_v51, %v874_v52  ;;  %v978_v49 = vld [vmem:[#allocation2 + $0x1718] sm:$0xff]  ;;  %v17518_v52 = vcombine.low %v962_v41, %v970_v42 }
 0x23e   :  { %5260 = vmatprep.subr.bf16.mxu0 %v17309_v58  ;;  %5383 = vmatprep.subr.bf16.mxu1 %v17311_v59  ;;  %v881_v58 = vld [vmem:[#allocation2 + $0x1410] sm:$0xff]  ;;  %v986_v50 = vld [vmem:[#allocation2 + $0x1758] sm:$0xff] }
 0x23f   :  { %v889_v59 = vld [vmem:[#allocation2 + $0x1450] sm:$0xff] }
 0x240   :  { %5252 = vmatmul.mubr.bf16.vlgmr.msra.gmra.mrb[4].mxu0 %v20479_v25  ;;  %5375 = vmatmul.mubr.bf16.vlgmr.msra.gmra.mrb[4].mxu1 %v20479_v25  ;;  %v17436_v6 = vcombine.low %v881_v58, %v889_v59 }
 0x241   :  { %5261 = vmatpush1.bf16.msra.mxu0 %v17308_v0  ;;  %5384 = vmatpush1.bf16.msra.mxu1 %v17310_v1  ;;  %v17437_v0 = vcombine.high %v881_v58, %v889_v59  ;;  %v17439_v1 = vcombine.high %v882_v60, %v890_v61  ;;  %v994_v58 = vld [vmem:[#allocation2 + $0x1798] sm:$0xff]  ;;  %v17534_v61 = vcombine.low %v978_v49, %v986_v50 }
 0x242   :  { %5262 = vmatprep.subr.bf16.mxu0 %v17325_v2  ;;  %5385 = vmatprep.subr.bf16.mxu1 %v17327_v3  ;;  %v897_v2 = vld [vmem:[#allocation2 + $0x1490] sm:$0xff]  ;;  %v1002_v59 = vld [vmem:[#allocation2 + $0x17d8] sm:$0xff] }
 0x243   :  { %5292 = vmatprep.mubr.bf16.mxu0 %v20481_v34  ;;  %5415 = vmatprep.mubr.bf16.mxu1 %v20481_v34  ;;  %v905_v3 = vld [vmem:[#allocation2 + $0x14d0] sm:$0xff] }
 0x244   :  { %v17452_v15 = vcombine.low %v897_v2, %v905_v3 }
 0x245   :  { %5263 = vmatpush1.bf16.msra.mxu0 %v17324_v8  ;;  %5386 = vmatpush1.bf16.msra.mxu1 %v17326_v9  ;;  %v17453_v8 = vcombine.high %v897_v2, %v905_v3  ;;  %v17455_v9 = vcombine.high %v898_v4, %v906_v5  ;;  %v244_v2 = vld [vmem:[#allocation2 + $0x28] sm:$0xff]  ;;  %v17550_v5 = vcombine.low %v994_v58, %v1002_v59 }
 0x246   :  { %5264 = vmatprep.subr.bf16.mxu0 %v17341_v10  ;;  %5387 = vmatprep.subr.bf16.mxu1 %v17343_v11  ;;  %v913_v10 = vld [vmem:[#allocation2 + $0x1510] sm:$0xff]  ;;  %v252_v3 = vld [vmem:[#allocation2 + $0x68] sm:$0xff] }
 0x247   :  { %v921_v11 = vld [vmem:[#allocation2 + $0x1550] sm:$0xff] }
 0x248   :  { %v17468_v24 = vcombine.low %v913_v10, %v921_v11 }
 0x249   :  { %5265 = vmatpush1.bf16.msra.mxu0 %v17340_v17  ;;  %5388 = vmatpush1.bf16.msra.mxu1 %v17342_v18  ;;  %v17469_v17 = vcombine.high %v913_v10, %v921_v11  ;;  %v17471_v18 = vcombine.high %v914_v13, %v922_v14  ;;  %v260_v10 = vld [vmem:[#allocation2 + $0xa8] sm:$0xff]  ;;  %v16802_v14 = vcombine.low %v244_v2, %v252_v3 }
 0x24a   :  { %5266 = vmatprep.subr.bf16.mxu0 %v17357_v19  ;;  %5389 = vmatprep.subr.bf16.mxu1 %v17359_v20  ;;  %v929_v19 = vld [vmem:[#allocation2 + $0x1590] sm:$0xff]  ;;  %v268_v11 = vld [vmem:[#allocation2 + $0xe8] sm:$0xff] }
 0x24b   :  { %v937_v20 = vld [vmem:[#allocation2 + $0x15d0] sm:$0xff] }
 0x24c   :  { %v17484_v33 = vcombine.low %v929_v19, %v937_v20 }
 0x24d   :  { %5267 = vmatpush1.bf16.msra.mxu0 %v17356_v27  ;;  %5390 = vmatpush1.bf16.msra.mxu1 %v17358_v28  ;;  %v17485_v27 = vcombine.high %v929_v19, %v937_v20  ;;  %v17487_v28 = vcombine.high %v930_v21, %v938_v22  ;;  %v276_v19 = vld [vmem:[#allocation2 + $0x128] sm:$0xff]  ;;  %v16818_v22 = vcombine.low %v260_v10, %v268_v11 }
 0x24e   :  { %5268 = vmatprep.subr.bf16.mxu0 %v17373_v29  ;;  %5391 = vmatprep.subr.bf16.mxu1 %v17375_v30  ;;  %v945_v29 = vld [vmem:[#allocation2 + $0x1610] sm:$0xff]  ;;  %v284_v20 = vld [vmem:[#allocation2 + $0x168] sm:$0xff] }
 0x24f   :  { %v953_v30 = vld [vmem:[#allocation2 + $0x1650] sm:$0xff] }
 0x250   :  { %v17500_v43 = vcombine.low %v945_v29, %v953_v30 }
 0x251   :  { %5269 = vmatpush1.bf16.msra.mxu0 %v17372_v36  ;;  %5392 = vmatpush1.bf16.msra.mxu1 %v17374_v37  ;;  %v17501_v36 = vcombine.high %v945_v29, %v953_v30  ;;  %v17503_v37 = vcombine.high %v946_v31, %v954_v32  ;;  %v292_v29 = vld [vmem:[#allocation2 + $0x1a8] sm:$0xff]  ;;  %v16834_v32 = vcombine.low %v276_v19, %v284_v20 }
 0x252   :  { %5270 = vmatprep.subr.bf16.mxu0 %v17389_v39  ;;  %5393 = vmatprep.subr.bf16.mxu1 %v17391_v40  ;;  %v961_v39 = vld [vmem:[#allocation2 + $0x1690] sm:$0xff]  ;;  %v300_v30 = vld [vmem:[#allocation2 + $0x1e8] sm:$0xff] }
 0x253   :  { %v969_v40 = vld [vmem:[#allocation2 + $0x16d0] sm:$0xff] }
 0x254   :  { %v17516_v51 = vcombine.low %v961_v39, %v969_v40 }
 0x255   :  { %5271 = vmatpush1.bf16.msra.mxu0 %v17388_v45  ;;  %5394 = vmatpush1.bf16.msra.mxu1 %v17390_v46  ;;  %v17517_v45 = vcombine.high %v961_v39, %v969_v40  ;;  %v17519_v46 = vcombine.high %v962_v41, %v970_v42  ;;  %v308_v39 = vld [vmem:[#allocation2 + $0x228] sm:$0xff]  ;;  %v16850_v42 = vcombine.low %v292_v29, %v300_v30 }
 0x256   :  { %5272 = vmatprep.subr.bf16.mxu0 %v17405_v47  ;;  %5395 = vmatprep.subr.bf16.mxu1 %v17407_v48  ;;  %v977_v47 = vld [vmem:[#allocation2 + $0x1710] sm:$0xff]  ;;  %v316_v40 = vld [vmem:[#allocation2 + $0x268] sm:$0xff] }
 0x257   :  { %v985_v48 = vld [vmem:[#allocation2 + $0x1750] sm:$0xff] }
 0x258   :  { %v17532_v60 = vcombine.low %v977_v47, %v985_v48 }
 0x259   :  { %5273 = vmatpush1.bf16.msra.mxu0 %v17404_v53  ;;  %5396 = vmatpush1.bf16.msra.mxu1 %v17406_v54  ;;  %v17533_v53 = vcombine.high %v977_v47, %v985_v48  ;;  %v17535_v54 = vcombine.high %v978_v49, %v986_v50  ;;  %v324_v47 = vld [vmem:[#allocation2 + $0x2a8] sm:$0xff]  ;;  %v16866_v50 = vcombine.low %v308_v39, %v316_v40 }
 0x25a   :  { %5274 = vmatprep.subr.bf16.mxu0 %v17421_v55  ;;  %5397 = vmatprep.subr.bf16.mxu1 %v17423_v56  ;;  %v993_v55 = vld [vmem:[#allocation2 + $0x1790] sm:$0xff]  ;;  %v332_v48 = vld [vmem:[#allocation2 + $0x2e8] sm:$0xff] }
 0x25b   :  { %v1001_v56 = vld [vmem:[#allocation2 + $0x17d0] sm:$0xff] }
 0x25c   :  { %v17548_v4 = vcombine.low %v993_v55, %v1001_v56 }
 0x25d   :  { %5275 = vmatpush1.bf16.msra.mxu0 %v17420_v62  ;;  %5398 = vmatpush1.bf16.msra.mxu1 %v17422_v63  ;;  %v17549_v62 = vcombine.high %v993_v55, %v1001_v56  ;;  %v17551_v63 = vcombine.high %v994_v58, %v1002_v59  ;;  %v340_v55 = vld [vmem:[#allocation2 + $0x328] sm:$0xff]  ;;  %v16882_v59 = vcombine.low %v324_v47, %v332_v48 }
 0x25e   :  { %5276 = vmatprep.subr.bf16.mxu0 %v17437_v0  ;;  %5399 = vmatprep.subr.bf16.mxu1 %v17439_v1  ;;  %v243_v0 = vld [vmem:[#allocation2 + $0x20] sm:$0xff]  ;;  %v348_v56 = vld [vmem:[#allocation2 + $0x368] sm:$0xff] }
 0x25f   :  { %v251_v1 = vld [vmem:[#allocation2 + $0x60] sm:$0xff] }
 0x260   :  { %v16800_v13 = vcombine.low %v243_v0, %v251_v1 }
 0x261   :  { %5277 = vmatpush1.bf16.msra.mxu0 %v17436_v6  ;;  %5400 = vmatpush1.bf16.msra.mxu1 %v17438_v7  ;;  %v16801_v6 = vcombine.high %v243_v0, %v251_v1  ;;  %v16803_v7 = vcombine.high %v244_v2, %v252_v3  ;;  %v363_v0 = vld [vmem:[#allocation2 + $0x3e0] sm:$0xff]  ;;  %v356_v3 = vld [vmem:[#allocation2 + $0x3a8] sm:$0xff] }
 0x262   :  { %5278 = vmatprep.subr.bf16.mxu0 %v17453_v8  ;;  %5401 = vmatprep.subr.bf16.mxu1 %v17455_v9  ;;  %v259_v8 = vld [vmem:[#allocation2 + $0xa0] sm:$0xff] }
 0x263   :  { %v267_v9 = vld [vmem:[#allocation2 + $0xe0] sm:$0xff] }
 0x264   :  { %v16816_v21 = vcombine.low %v259_v8, %v267_v9 }
 0x265   :  { %5279 = vmatpush1.bf16.msra.mxu0 %v17452_v15  ;;  %5402 = vmatpush1.bf16.msra.mxu1 %v17454_v16  ;;  %v16817_v15 = vcombine.high %v259_v8, %v267_v9  ;;  %v16819_v16 = vcombine.high %v260_v10, %v268_v11  ;;  %v16898_v10 = vcombine.low %v340_v55, %v348_v56 }
 0x266   :  { %5280 = vmatprep.subr.bf16.mxu0 %v17469_v17  ;;  %5403 = vmatprep.subr.bf16.mxu1 %v17471_v18  ;;  %v275_v17 = vld [vmem:[#allocation2 + $0x120] sm:$0xff] }
 0x267   :  { %v283_v18 = vld [vmem:[#allocation2 + $0x160] sm:$0xff] }
 0x268   :  { %v16832_v31 = vcombine.low %v275_v17, %v283_v18 }
 0x269   :  { %5281 = vmatpush1.bf16.msra.mxu0 %v17468_v24  ;;  %5404 = vmatpush1.bf16.msra.mxu1 %v17470_v26  ;;  %v16833_v24 = vcombine.high %v275_v17, %v283_v18  ;;  %v16835_v26 = vcombine.high %v276_v19, %v284_v20  ;;  %v372_v17 = vld [vmem:[#allocation2 + $0x428] sm:$0xff] }
 0x26a   :  { %5282 = vmatprep.subr.bf16.mxu0 %v17485_v27  ;;  %5405 = vmatprep.subr.bf16.mxu1 %v17487_v28  ;;  %v291_v27 = vld [vmem:[#allocation2 + $0x1a0] sm:$0xff]  ;;  %v380_v18 = vld [vmem:[#allocation2 + $0x468] sm:$0xff] }
 0x26b   :  { %v299_v28 = vld [vmem:[#allocation2 + $0x1e0] sm:$0xff] }
 0x26c   :  { %v16848_v41 = vcombine.low %v291_v27, %v299_v28 }
 0x26d   :  { %5283 = vmatpush1.bf16.msra.mxu0 %v17484_v33  ;;  %5406 = vmatpush1.bf16.msra.mxu1 %v17486_v35  ;;  %v16849_v33 = vcombine.high %v291_v27, %v299_v28  ;;  %v16851_v35 = vcombine.high %v292_v29, %v300_v30  ;;  %v388_v27 = vld [vmem:[#allocation2 + $0x4a8] sm:$0xff]  ;;  %v16930_v30 = vcombine.low %v372_v17, %v380_v18 }
 0x26e   :  { %5284 = vmatprep.subr.bf16.mxu0 %v17501_v36  ;;  %5407 = vmatprep.subr.bf16.mxu1 %v17503_v37  ;;  %v307_v36 = vld [vmem:[#allocation2 + $0x220] sm:$0xff]  ;;  %v396_v28 = vld [vmem:[#allocation2 + $0x4e8] sm:$0xff] }
 0x26f   :  { %v315_v37 = vld [vmem:[#allocation2 + $0x260] sm:$0xff] }
 0x270   :  { %v16864_v49 = vcombine.low %v307_v36, %v315_v37 }
 0x271   :  { %5285 = vmatpush1.bf16.msra.mxu0 %v17500_v43  ;;  %5408 = vmatpush1.bf16.msra.mxu1 %v17502_v44  ;;  %v16865_v43 = vcombine.high %v307_v36, %v315_v37  ;;  %v16867_v44 = vcombine.high %v308_v39, %v316_v40  ;;  %v404_v36 = vld [vmem:[#allocation2 + $0x528] sm:$0xff]  ;;  %v16946_v40 = vcombine.low %v388_v27, %v396_v28 }
 0x272   :  { %5286 = vmatprep.subr.bf16.mxu0 %v17517_v45  ;;  %5409 = vmatprep.subr.bf16.mxu1 %v17519_v46  ;;  %v323_v45 = vld [vmem:[#allocation2 + $0x2a0] sm:$0xff]  ;;  %v412_v37 = vld [vmem:[#allocation2 + $0x568] sm:$0xff] }
 0x273   :  { %v331_v46 = vld [vmem:[#allocation2 + $0x2e0] sm:$0xff] }
 0x274   :  { %v16880_v58 = vcombine.low %v323_v45, %v331_v46 }
 0x275   :  { %5287 = vmatpush1.bf16.msra.mxu0 %v17516_v51  ;;  %5410 = vmatpush1.bf16.msra.mxu1 %v17518_v52  ;;  %v16881_v51 = vcombine.high %v323_v45, %v331_v46  ;;  %v16883_v52 = vcombine.high %v324_v47, %v332_v48  ;;  %v420_v45 = vld [vmem:[#allocation2 + $0x5a8] sm:$0xff]  ;;  %v16962_v48 = vcombine.low %v404_v36, %v412_v37 }
 0x276   :  { %5288 = vmatprep.subr.bf16.mxu0 %v17533_v53  ;;  %5411 = vmatprep.subr.bf16.mxu1 %v17535_v54  ;;  %v339_v53 = vld [vmem:[#allocation2 + $0x320] sm:$0xff]  ;;  %v428_v46 = vld [vmem:[#allocation2 + $0x5e8] sm:$0xff] }
 0x277   :  { %v347_v54 = vld [vmem:[#allocation2 + $0x360] sm:$0xff] }
 0x279   :  { %5289 = vmatpush1.bf16.msra.mxu0 %v17532_v60  ;;  %5412 = vmatpush1.bf16.msra.mxu1 %v17534_v61  ;;  %v16897_v60 = vcombine.high %v339_v53, %v347_v54 }
 0x27a   :  { %5290 = vmatprep.subr.bf16.mxu0 %v17549_v62  ;;  %5413 = vmatprep.subr.bf16.mxu1 %v17551_v63  ;;  %v16899_v62 = vcombine.high %v340_v55, %v348_v56  ;;  %v355_v63 = vld [vmem:[#allocation2 + $0x3a0] sm:$0xff]  ;;  %v16978_v56 = vcombine.low %v420_v45, %v428_v46 }
 0x27b   :  { %v16913_v11 = vcombine.high %v355_v63, %v363_v0  ;;  %v16912_v19 = vcombine.low %v355_v63, %v363_v0  ;;  %v452_v63 = vld [vmem:[#allocation2 + $0x6a8] sm:$0xff] }
 0x27c   :  { %v460_v0 = vld [vmem:[#allocation2 + $0x6e8] sm:$0xff] }
 0x27d   :  { %5291 = vmatpush1.bf16.msra.mxu0 %v17548_v4  ;;  %5414 = vmatpush1.bf16.msra.mxu1 %v17550_v5  ;;  %v364_v4 = vld [vmem:[#allocation2 + $0x3e8] sm:$0xff] }
 0x27e   :  { %5424 = vmatprep.subr.bf16.mxu0 %v16801_v6  ;;  %5547 = vmatprep.subr.bf16.mxu1 %v16803_v7  ;;  %v16896_v7 = vcombine.low %v339_v53, %v347_v54  ;;  %v16914_v20 = vcombine.low %v356_v3, %v364_v4  ;;  %v436_v53 = vld [vmem:[#allocation2 + $0x628] sm:$0xff] }
 0x27f   :  { %v444_v54 = vld [vmem:[#allocation2 + $0x668] sm:$0xff] }
 0x280   :  { %5293 = vmatmul.mubr.bf16.vlgmr.msra.gmra.mrb[4].mxu0 %v20490_v38  ;;  %5416 = vmatmul.mubr.bf16.vlgmr.msra.gmra.mrb[4].mxu1 %v20490_v38 }
 0x281   :  { %5425 = vmatpush1.bf16.msra.mxu0 %v16800_v13  ;;  %5548 = vmatpush1.bf16.msra.mxu1 %v16802_v14  ;;  %v16915_v14 = vcombine.high %v356_v3, %v364_v4  ;;  %v16994_v4 = vcombine.low %v436_v53, %v444_v54 }
 0x282   :  { %5426 = vmatprep.subr.bf16.mxu0 %v16817_v15  ;;  %5549 = vmatprep.subr.bf16.mxu1 %v16819_v16  ;;  %v371_v15 = vld [vmem:[#allocation2 + $0x420] sm:$0xff] }
 0x283   :  { %5456 = vmatprep.mubr.bf16.mxu0 %v20455_v57  ;;  %5579 = vmatprep.mubr.bf16.mxu1 %v20455_v57  ;;  %v379_v16 = vld [vmem:[#allocation2 + $0x460] sm:$0xff] }
 0x284   :  { %v16928_v29 = vcombine.low %v371_v15, %v379_v16 }
 0x285   :  { %5427 = vmatpush1.bf16.msra.mxu0 %v16816_v21  ;;  %5550 = vmatpush1.bf16.msra.mxu1 %v16818_v22  ;;  %v16929_v21 = vcombine.high %v371_v15, %v379_v16  ;;  %v16931_v22 = vcombine.high %v372_v17, %v380_v18  ;;  %v483_v17 = vld [vmem:[#allocation2 + $0x7a0] sm:$0xff] }
 0x286   :  { %5428 = vmatprep.subr.bf16.mxu0 %v16833_v24  ;;  %5551 = vmatprep.subr.bf16.mxu1 %v16835_v26  ;;  %v387_v24 = vld [vmem:[#allocation2 + $0x4a0] sm:$0xff] }
 0x287   :  { %v395_v26 = vld [vmem:[#allocation2 + $0x4e0] sm:$0xff] }
 0x288   :  { %v16944_v39 = vcombine.low %v387_v24, %v395_v26  ;;  %v491_v18 = vld [vmem:[#allocation2 + $0x7e0] sm:$0xff] }
 0x289   :  { %5429 = vmatpush1.bf16.msra.mxu0 %v16832_v31  ;;  %5552 = vmatpush1.bf16.msra.mxu1 %v16834_v32  ;;  %v16945_v31 = vcombine.high %v387_v24, %v395_v26  ;;  %v16947_v32 = vcombine.high %v388_v27, %v396_v28  ;;  %v17041_v24 = vcombine.high %v483_v17, %v491_v18  ;;  %v499_v27 = vld [vmem:[#allocation2 + $0x820] sm:$0xff] }
 0x28a   :  { %5430 = vmatprep.subr.bf16.mxu0 %v16849_v33  ;;  %5553 = vmatprep.subr.bf16.mxu1 %v16851_v35  ;;  %v403_v33 = vld [vmem:[#allocation2 + $0x520] sm:$0xff] }
 0x28b   :  { %v411_v35 = vld [vmem:[#allocation2 + $0x560] sm:$0xff] }
 0x28c   :  { %v16960_v47 = vcombine.low %v403_v33, %v411_v35  ;;  %v507_v28 = vld [vmem:[#allocation2 + $0x860] sm:$0xff] }
 0x28d   :  { %5431 = vmatpush1.bf16.msra.mxu0 %v16848_v41  ;;  %5554 = vmatpush1.bf16.msra.mxu1 %v16850_v42  ;;  %v16961_v41 = vcombine.high %v403_v33, %v411_v35  ;;  %v16963_v42 = vcombine.high %v404_v36, %v412_v37  ;;  %v17057_v33 = vcombine.high %v499_v27, %v507_v28  ;;  %v515_v36 = vld [vmem:[#allocation2 + $0x8a0] sm:$0xff] }
 0x28e   :  { %5432 = vmatprep.subr.bf16.mxu0 %v16865_v43  ;;  %5555 = vmatprep.subr.bf16.mxu1 %v16867_v44  ;;  %v419_v43 = vld [vmem:[#allocation2 + $0x5a0] sm:$0xff] }
 0x28f   :  { %v427_v44 = vld [vmem:[#allocation2 + $0x5e0] sm:$0xff] }
 0x290   :  { %v16976_v55 = vcombine.low %v419_v43, %v427_v44  ;;  %v523_v37 = vld [vmem:[#allocation2 + $0x8e0] sm:$0xff] }
 0x291   :  { %5433 = vmatpush1.bf16.msra.mxu0 %v16864_v49  ;;  %5556 = vmatpush1.bf16.msra.mxu1 %v16866_v50  ;;  %v16977_v49 = vcombine.high %v419_v43, %v427_v44  ;;  %v16979_v50 = vcombine.high %v420_v45, %v428_v46  ;;  %v17073_v43 = vcombine.high %v515_v36, %v523_v37  ;;  %v531_v45 = vld [vmem:[#allocation2 + $0x920] sm:$0xff] }
 0x292   :  { %5434 = vmatprep.subr.bf16.mxu0 %v16881_v51  ;;  %5557 = vmatprep.subr.bf16.mxu1 %v16883_v52  ;;  %v435_v51 = vld [vmem:[#allocation2 + $0x620] sm:$0xff] }
 0x293   :  { %v20508_v61 = vpop.f32.mrb[0].mxu0  ;;  %v20510_v1 = vpop.f32.mrb[0].mxu1  ;;  %v443_v52 = vld [vmem:[#allocation2 + $0x660] sm:$0xff] }
 0x294   :  { %v20512_v2 = vpop.f32.mrb[1].mxu0  ;;  %v20514_v5 = vpop.f32.mrb[1].mxu1  ;;  %v16992_v3 = vcombine.low %v435_v51, %v443_v52  ;;  %v539_v46 = vld [vmem:[#allocation2 + $0x960] sm:$0xff] }
 0x295   :  { %v5052_v6 = vpop.f32.mrb[2].mxu0  ;;  %5435 = vmatpush1.bf16.msra.mxu0 %v16880_v58  ;;  %v5175_v8 = vpop.f32.mrb[2].mxu1  ;;  %5558 = vmatpush1.bf16.msra.mxu1 %v16882_v59  ;;  %v16993_v58 = vcombine.high %v435_v51, %v443_v52  ;;  %v16995_v59 = vcombine.high %v436_v53, %v444_v54  ;;  %v17089_v51 = vcombine.high %v531_v45, %v539_v46  ;;  %v547_v53 = vld [vmem:[#allocation2 + $0x9a0] sm:$0xff] }
 0x296   :  { %v5053_v9 = vpop.f32.mrb[3].mxu0  ;;  %5436 = vmatprep.subr.bf16.mxu0 %v16897_v60  ;;  %v5176_v13 = vpop.f32.mrb[3].mxu1  ;;  %5559 = vmatprep.subr.bf16.mxu1 %v16899_v62  ;;  %v451_v60 = vld [vmem:[#allocation2 + $0x6a0] sm:$0xff] }
 0x297   :  { %v459_v62 = vld [vmem:[#allocation2 + $0x6e0] sm:$0xff] }
 0x298   :  { %v17009_v6 = vcombine.high %v451_v60, %v459_v62  ;;  %v467_v8 = vld [vmem:[#allocation2 + $0x720] sm:$0xff]  ;;  %v17008_v13 = vcombine.low %v451_v60, %v459_v62 }
 0x299   :  { %5437 = vmatpush1.bf16.msra.mxu0 %v16896_v7  ;;  %5560 = vmatpush1.bf16.msra.mxu1 %v16898_v10  ;;  %v17011_v7 = vcombine.high %v452_v63, %v460_v0  ;;  %v475_v9 = vld [vmem:[#allocation2 + $0x760] sm:$0xff]  ;;  %v468_v10 = vld [vmem:[#allocation2 + $0x728] sm:$0xff] }
 0x29a   :  { %5438 = vmatprep.subr.bf16.mxu0 %v16913_v11  ;;  %5561 = vmatprep.subr.bf16.mxu1 %v16915_v14  ;;  %v476_v11 = vld [vmem:[#allocation2 + $0x768] sm:$0xff]  ;;  %v17010_v14 = vcombine.low %v452_v63, %v460_v0  ;;  %v17025_v15 = vcombine.high %v467_v8, %v475_v9  ;;  %v555_v54 = vld [vmem:[#allocation2 + $0x9e0] sm:$0xff] }
 0x29b   :  { %v17027_v16 = vcombine.high %v468_v10, %v476_v11  ;;  %v17105_v60 = vcombine.high %v547_v53, %v555_v54  ;;  %v563_v63 = vld [vmem:[#allocation2 + $0xa20] sm:$0xff] }
 0x29c   :  { %v571_v0 = vld [vmem:[#allocation2 + $0xa60] sm:$0xff] }
 0x29d   :  { %5439 = vmatpush1.bf16.msra.mxu0 %v16912_v19  ;;  %5562 = vmatpush1.bf16.msra.mxu1 %v16914_v20  ;;  %v484_v19 = vld [vmem:[#allocation2 + $0x7a8] sm:$0xff] }
 0x29e   :  { %5440 = vmatprep.subr.bf16.mxu0 %v16929_v21  ;;  %5563 = vmatprep.subr.bf16.mxu1 %v16931_v22  ;;  %v492_v20 = vld [vmem:[#allocation2 + $0x7e8] sm:$0xff]  ;;  %v17024_v21 = vcombine.low %v467_v8, %v475_v9  ;;  %v17026_v22 = vcombine.low %v468_v10, %v476_v11  ;;  %v17121_v8 = vcombine.high %v563_v63, %v571_v0  ;;  %v579_v10 = vld [vmem:[#allocation2 + $0xaa0] sm:$0xff] }
 0x29f   :  { %v17043_v26 = vcombine.high %v484_v19, %v492_v20  ;;  %v587_v11 = vld [vmem:[#allocation2 + $0xae0] sm:$0xff] }
 0x2a1   :  { %5441 = vmatpush1.bf16.msra.mxu0 %v16928_v29  ;;  %5564 = vmatpush1.bf16.msra.mxu1 %v16930_v30  ;;  %v500_v29 = vld [vmem:[#allocation2 + $0x828] sm:$0xff] }
 0x2a2   :  { %5442 = vmatprep.subr.bf16.mxu0 %v16945_v31  ;;  %5565 = vmatprep.subr.bf16.mxu1 %v16947_v32  ;;  %v508_v30 = vld [vmem:[#allocation2 + $0x868] sm:$0xff]  ;;  %v17040_v31 = vcombine.low %v483_v17, %v491_v18  ;;  %v17042_v32 = vcombine.low %v484_v19, %v492_v20  ;;  %v17137_v17 = vcombine.high %v579_v10, %v587_v11  ;;  %v595_v19 = vld [vmem:[#allocation2 + $0xb20] sm:$0xff] }
 0x2a3   :  { %v17059_v35 = vcombine.high %v500_v29, %v508_v30  ;;  %v603_v20 = vld [vmem:[#allocation2 + $0xb60] sm:$0xff] }
 0x2a5   :  { %5443 = vmatpush1.bf16.msra.mxu0 %v16944_v39  ;;  %5566 = vmatpush1.bf16.msra.mxu1 %v16946_v40  ;;  %v516_v39 = vld [vmem:[#allocation2 + $0x8a8] sm:$0xff] }
 0x2a6   :  { %5444 = vmatprep.subr.bf16.mxu0 %v16961_v41  ;;  %5567 = vmatprep.subr.bf16.mxu1 %v16963_v42  ;;  %v524_v40 = vld [vmem:[#allocation2 + $0x8e8] sm:$0xff]  ;;  %v17056_v41 = vcombine.low %v499_v27, %v507_v28  ;;  %v17058_v42 = vcombine.low %v500_v29, %v508_v30  ;;  %v17153_v27 = vcombine.high %v595_v19, %v603_v20  ;;  %v611_v29 = vld [vmem:[#allocation2 + $0xba0] sm:$0xff] }
 0x2a7   :  { %v17075_v44 = vcombine.high %v516_v39, %v524_v40  ;;  %v619_v30 = vld [vmem:[#allocation2 + $0xbe0] sm:$0xff] }
 0x2a9   :  { %5445 = vmatpush1.bf16.msra.mxu0 %v16960_v47  ;;  %5568 = vmatpush1.bf16.msra.mxu1 %v16962_v48  ;;  %v532_v47 = vld [vmem:[#allocation2 + $0x928] sm:$0xff] }
 0x2aa   :  { %5446 = vmatprep.subr.bf16.mxu0 %v16977_v49  ;;  %5569 = vmatprep.subr.bf16.mxu1 %v16979_v50  ;;  %v540_v48 = vld [vmem:[#allocation2 + $0x968] sm:$0xff]  ;;  %v17072_v49 = vcombine.low %v515_v36, %v523_v37  ;;  %v17074_v50 = vcombine.low %v516_v39, %v524_v40  ;;  %v17169_v36 = vcombine.high %v611_v29, %v619_v30  ;;  %v627_v39 = vld [vmem:[#allocation2 + $0xc20] sm:$0xff] }
 0x2ab   :  { %v17091_v52 = vcombine.high %v532_v47, %v540_v48  ;;  %v635_v40 = vld [vmem:[#allocation2 + $0xc60] sm:$0xff] }
 0x2ad   :  { %5447 = vmatpush1.bf16.msra.mxu0 %v16976_v55  ;;  %5570 = vmatpush1.bf16.msra.mxu1 %v16978_v56  ;;  %v548_v55 = vld [vmem:[#allocation2 + $0x9a8] sm:$0xff] }
 0x2ae   :  { %5448 = vmatprep.subr.bf16.mxu0 %v16993_v58  ;;  %5571 = vmatprep.subr.bf16.mxu1 %v16995_v59  ;;  %v556_v56 = vld [vmem:[#allocation2 + $0x9e8] sm:$0xff]  ;;  %v17088_v58 = vcombine.low %v531_v45, %v539_v46  ;;  %v17090_v59 = vcombine.low %v532_v47, %v540_v48  ;;  %v17185_v45 = vcombine.high %v627_v39, %v635_v40  ;;  %v643_v47 = vld [vmem:[#allocation2 + $0xca0] sm:$0xff] }
 0x2af   :  { %v17107_v62 = vcombine.high %v548_v55, %v556_v56  ;;  %v651_v48 = vld [vmem:[#allocation2 + $0xce0] sm:$0xff] }
 0x2b1   :  { %5449 = vmatpush1.bf16.msra.mxu0 %v16992_v3  ;;  %5572 = vmatpush1.bf16.msra.mxu1 %v16994_v4  ;;  %v564_v3 = vld [vmem:[#allocation2 + $0xa28] sm:$0xff] }
 0x2b2   :  { %5450 = vmatprep.subr.bf16.mxu0 %v17009_v6  ;;  %5573 = vmatprep.subr.bf16.mxu1 %v17011_v7  ;;  %v572_v4 = vld [vmem:[#allocation2 + $0xa68] sm:$0xff]  ;;  %v17104_v6 = vcombine.low %v547_v53, %v555_v54  ;;  %v17106_v7 = vcombine.low %v548_v55, %v556_v56  ;;  %v17201_v53 = vcombine.high %v643_v47, %v651_v48  ;;  %v659_v55 = vld [vmem:[#allocation2 + $0xd20] sm:$0xff] }
 0x2b3   :  { %v17123_v9 = vcombine.high %v564_v3, %v572_v4  ;;  %v667_v56 = vld [vmem:[#allocation2 + $0xd60] sm:$0xff] }
 0x2b5   :  { %5451 = vmatpush1.bf16.msra.mxu0 %v17008_v13  ;;  %5574 = vmatpush1.bf16.msra.mxu1 %v17010_v14  ;;  %v580_v13 = vld [vmem:[#allocation2 + $0xaa8] sm:$0xff] }
 0x2b6   :  { %5452 = vmatprep.subr.bf16.mxu0 %v17025_v15  ;;  %5575 = vmatprep.subr.bf16.mxu1 %v17027_v16  ;;  %v588_v14 = vld [vmem:[#allocation2 + $0xae8] sm:$0xff]  ;;  %v17120_v15 = vcombine.low %v563_v63, %v571_v0  ;;  %v17122_v16 = vcombine.low %v564_v3, %v572_v4  ;;  %v17217_v63 = vcombine.high %v659_v55, %v667_v56  ;;  %v675_v3 = vld [vmem:[#allocation2 + $0xda0] sm:$0xff] }
 0x2b7   :  { %v17139_v18 = vcombine.high %v580_v13, %v588_v14  ;;  %v683_v4 = vld [vmem:[#allocation2 + $0xde0] sm:$0xff] }
 0x2b9   :  { %5453 = vmatpush1.bf16.msra.mxu0 %v17024_v21  ;;  %5576 = vmatpush1.bf16.msra.mxu1 %v17026_v22  ;;  %v596_v21 = vld [vmem:[#allocation2 + $0xb28] sm:$0xff] }
 0x2ba   :  { %5454 = vmatprep.subr.bf16.mxu0 %v17041_v24  ;;  %5577 = vmatprep.subr.bf16.mxu1 %v17043_v26  ;;  %v604_v22 = vld [vmem:[#allocation2 + $0xb68] sm:$0xff]  ;;  %v17136_v24 = vcombine.low %v579_v10, %v587_v11  ;;  %v17138_v26 = vcombine.low %v580_v13, %v588_v14  ;;  %v17233_v10 = vcombine.high %v675_v3, %v683_v4  ;;  %v691_v13 = vld [vmem:[#allocation2 + $0xe20] sm:$0xff] }
 0x2bb   :  { %v17155_v28 = vcombine.high %v596_v21, %v604_v22  ;;  %v699_v14 = vld [vmem:[#allocation2 + $0xe60] sm:$0xff] }
 0x2bd   :  { %5455 = vmatpush1.bf16.msra.mxu0 %v17040_v31  ;;  %5578 = vmatpush1.bf16.msra.mxu1 %v17042_v32  ;;  %v612_v31 = vld [vmem:[#allocation2 + $0xba8] sm:$0xff] }
 0x2be   :  { %5465 = vmatprep.subr.bf16.mxu0 %v17057_v33  ;;  %5588 = vmatprep.subr.bf16.mxu1 %v17059_v35  ;;  %v620_v32 = vld [vmem:[#allocation2 + $0xbe8] sm:$0xff]  ;;  %v17152_v33 = vcombine.low %v595_v19, %v603_v20  ;;  %v17154_v35 = vcombine.low %v596_v21, %v604_v22  ;;  %v17249_v19 = vcombine.high %v691_v13, %v699_v14  ;;  %v707_v21 = vld [vmem:[#allocation2 + $0xea0] sm:$0xff] }
 0x2bf   :  { %v17171_v37 = vcombine.high %v612_v31, %v620_v32  ;;  %v715_v22 = vld [vmem:[#allocation2 + $0xee0] sm:$0xff] }
 0x2c0   :  { %5457 = vmatmul.mubr.bf16.vlgmr.msra.gmra.mrb[8].mxu0 %v20462_v12  ;;  %5580 = vmatmul.mubr.bf16.vlgmr.msra.gmra.mrb[8].mxu1 %v20462_v12 }
 0x2c1   :  { %5466 = vmatpush1.bf16.msra.mxu0 %v17056_v41  ;;  %5589 = vmatpush1.bf16.msra.mxu1 %v17058_v42  ;;  %v628_v41 = vld [vmem:[#allocation2 + $0xc28] sm:$0xff] }
 0x2c2   :  { %5467 = vmatprep.subr.bf16.mxu0 %v17073_v43  ;;  %5590 = vmatprep.subr.bf16.mxu1 %v17075_v44  ;;  %v636_v42 = vld [vmem:[#allocation2 + $0xc68] sm:$0xff]  ;;  %v17168_v43 = vcombine.low %v611_v29, %v619_v30  ;;  %v17170_v44 = vcombine.low %v612_v31, %v620_v32  ;;  %v17265_v29 = vcombine.high %v707_v21, %v715_v22  ;;  %v723_v31 = vld [vmem:[#allocation2 + $0xf20] sm:$0xff] }
 0x2c3   :  { %5497 = vmatprep.mubr.bf16.mxu0 %v20467_v23  ;;  %5620 = vmatprep.mubr.bf16.mxu1 %v20467_v23  ;;  %v17187_v46 = vcombine.high %v628_v41, %v636_v42  ;;  %v731_v32 = vld [vmem:[#allocation2 + $0xf60] sm:$0xff] }
 0x2c5   :  { %5468 = vmatpush1.bf16.msra.mxu0 %v17072_v49  ;;  %5591 = vmatpush1.bf16.msra.mxu1 %v17074_v50  ;;  %v644_v49 = vld [vmem:[#allocation2 + $0xca8] sm:$0xff] }
 0x2c6   :  { %5469 = vmatprep.subr.bf16.mxu0 %v17089_v51  ;;  %5592 = vmatprep.subr.bf16.mxu1 %v17091_v52  ;;  %v652_v50 = vld [vmem:[#allocation2 + $0xce8] sm:$0xff]  ;;  %v17184_v51 = vcombine.low %v627_v39, %v635_v40  ;;  %v17186_v52 = vcombine.low %v628_v41, %v636_v42  ;;  %v17281_v39 = vcombine.high %v723_v31, %v731_v32  ;;  %v739_v41 = vld [vmem:[#allocation2 + $0xfa0] sm:$0xff] }
 0x2c7   :  { %v17203_v54 = vcombine.high %v644_v49, %v652_v50  ;;  %v747_v42 = vld [vmem:[#allocation2 + $0xfe0] sm:$0xff] }
 0x2c9   :  { %5470 = vmatpush1.bf16.msra.mxu0 %v17088_v58  ;;  %5593 = vmatpush1.bf16.msra.mxu1 %v17090_v59  ;;  %v660_v58 = vld [vmem:[#allocation2 + $0xd28] sm:$0xff] }
 0x2ca   :  { %5471 = vmatprep.subr.bf16.mxu0 %v17105_v60  ;;  %5594 = vmatprep.subr.bf16.mxu1 %v17107_v62  ;;  %v668_v59 = vld [vmem:[#allocation2 + $0xd68] sm:$0xff]  ;;  %v17200_v60 = vcombine.low %v643_v47, %v651_v48  ;;  %v17202_v62 = vcombine.low %v644_v49, %v652_v50  ;;  %v17297_v47 = vcombine.high %v739_v41, %v747_v42  ;;  %v755_v49 = vld [vmem:[#allocation2 + $0x1020] sm:$0xff] }
 0x2cb   :  { %v17219_v0 = vcombine.high %v660_v58, %v668_v59  ;;  %v763_v50 = vld [vmem:[#allocation2 + $0x1060] sm:$0xff] }
 0x2cd   :  { %5472 = vmatpush1.bf16.msra.mxu0 %v17104_v6  ;;  %5595 = vmatpush1.bf16.msra.mxu1 %v17106_v7  ;;  %v676_v6 = vld [vmem:[#allocation2 + $0xda8] sm:$0xff] }
 0x2ce   :  { %5473 = vmatprep.subr.bf16.mxu0 %v17121_v8  ;;  %5596 = vmatprep.subr.bf16.mxu1 %v17123_v9  ;;  %v684_v7 = vld [vmem:[#allocation2 + $0xde8] sm:$0xff]  ;;  %v17216_v8 = vcombine.low %v659_v55, %v667_v56  ;;  %v17218_v9 = vcombine.low %v660_v58, %v668_v59  ;;  %v17313_v55 = vcombine.high %v755_v49, %v763_v50  ;;  %v771_v58 = vld [vmem:[#allocation2 + $0x10a0] sm:$0xff] }
 0x2cf   :  { %v17235_v11 = vcombine.high %v676_v6, %v684_v7  ;;  %v779_v59 = vld [vmem:[#allocation2 + $0x10e0] sm:$0xff] }
 0x2d1   :  { %5474 = vmatpush1.bf16.msra.mxu0 %v17120_v15  ;;  %5597 = vmatpush1.bf16.msra.mxu1 %v17122_v16  ;;  %v692_v15 = vld [vmem:[#allocation2 + $0xe28] sm:$0xff] }
 0x2d2   :  { %5475 = vmatprep.subr.bf16.mxu0 %v17137_v17  ;;  %5598 = vmatprep.subr.bf16.mxu1 %v17139_v18  ;;  %v700_v16 = vld [vmem:[#allocation2 + $0xe68] sm:$0xff]  ;;  %v17232_v17 = vcombine.low %v675_v3, %v683_v4  ;;  %v17234_v18 = vcombine.low %v676_v6, %v684_v7  ;;  %v17329_v3 = vcombine.high %v771_v58, %v779_v59  ;;  %v787_v6 = vld [vmem:[#allocation2 + $0x1120] sm:$0xff] }
 0x2d3   :  { %v17251_v20 = vcombine.high %v692_v15, %v700_v16  ;;  %v795_v7 = vld [vmem:[#allocation2 + $0x1160] sm:$0xff] }
 0x2d5   :  { %5476 = vmatpush1.bf16.msra.mxu0 %v17136_v24  ;;  %5599 = vmatpush1.bf16.msra.mxu1 %v17138_v26  ;;  %v708_v24 = vld [vmem:[#allocation2 + $0xea8] sm:$0xff] }
 0x2d6   :  { %5477 = vmatprep.subr.bf16.mxu0 %v17153_v27  ;;  %5600 = vmatprep.subr.bf16.mxu1 %v17155_v28  ;;  %v716_v26 = vld [vmem:[#allocation2 + $0xee8] sm:$0xff]  ;;  %v17248_v27 = vcombine.low %v691_v13, %v699_v14  ;;  %v17250_v28 = vcombine.low %v692_v15, %v700_v16  ;;  %v17345_v13 = vcombine.high %v787_v6, %v795_v7  ;;  %v803_v15 = vld [vmem:[#allocation2 + $0x11a0] sm:$0xff] }
 0x2d7   :  { %v17267_v30 = vcombine.high %v708_v24, %v716_v26  ;;  %v811_v16 = vld [vmem:[#allocation2 + $0x11e0] sm:$0xff] }
 0x2d9   :  { %5478 = vmatpush1.bf16.msra.mxu0 %v17152_v33  ;;  %5601 = vmatpush1.bf16.msra.mxu1 %v17154_v35  ;;  %v724_v33 = vld [vmem:[#allocation2 + $0xf28] sm:$0xff] }
 0x2da   :  { %5479 = vmatprep.subr.bf16.mxu0 %v17169_v36  ;;  %5602 = vmatprep.subr.bf16.mxu1 %v17171_v37  ;;  %v732_v35 = vld [vmem:[#allocation2 + $0xf68] sm:$0xff]  ;;  %v17264_v36 = vcombine.low %v707_v21, %v715_v22  ;;  %v17266_v37 = vcombine.low %v708_v24, %v716_v26  ;;  %v17361_v21 = vcombine.high %v803_v15, %v811_v16  ;;  %v819_v24 = vld [vmem:[#allocation2 + $0x1220] sm:$0xff] }
 0x2db   :  { %v17283_v40 = vcombine.high %v724_v33, %v732_v35  ;;  %v827_v26 = vld [vmem:[#allocation2 + $0x1260] sm:$0xff] }
 0x2dd   :  { %5480 = vmatpush1.bf16.msra.mxu0 %v17168_v43  ;;  %5603 = vmatpush1.bf16.msra.mxu1 %v17170_v44  ;;  %v740_v43 = vld [vmem:[#allocation2 + $0xfa8] sm:$0xff] }
 0x2de   :  { %5481 = vmatprep.subr.bf16.mxu0 %v17185_v45  ;;  %5604 = vmatprep.subr.bf16.mxu1 %v17187_v46  ;;  %v748_v44 = vld [vmem:[#allocation2 + $0xfe8] sm:$0xff]  ;;  %v17280_v45 = vcombine.low %v723_v31, %v731_v32  ;;  %v17282_v46 = vcombine.low %v724_v33, %v732_v35  ;;  %v17377_v31 = vcombine.high %v819_v24, %v827_v26  ;;  %v835_v33 = vld [vmem:[#allocation2 + $0x12a0] sm:$0xff] }
 0x2df   :  { %v17299_v48 = vcombine.high %v740_v43, %v748_v44  ;;  %v843_v35 = vld [vmem:[#allocation2 + $0x12e0] sm:$0xff] }
 0x2e1   :  { %5482 = vmatpush1.bf16.msra.mxu0 %v17184_v51  ;;  %5605 = vmatpush1.bf16.msra.mxu1 %v17186_v52  ;;  %v756_v51 = vld [vmem:[#allocation2 + $0x1028] sm:$0xff] }
 0x2e2   :  { %5483 = vmatprep.subr.bf16.mxu0 %v17201_v53  ;;  %5606 = vmatprep.subr.bf16.mxu1 %v17203_v54  ;;  %v764_v52 = vld [vmem:[#allocation2 + $0x1068] sm:$0xff]  ;;  %v17296_v53 = vcombine.low %v739_v41, %v747_v42  ;;  %v17298_v54 = vcombine.low %v740_v43, %v748_v44  ;;  %v17393_v41 = vcombine.high %v835_v33, %v843_v35  ;;  %v851_v43 = vld [vmem:[#allocation2 + $0x1320] sm:$0xff] }
 0x2e3   :  { %v17315_v56 = vcombine.high %v756_v51, %v764_v52  ;;  %v859_v44 = vld [vmem:[#allocation2 + $0x1360] sm:$0xff] }
 0x2e5   :  { %5484 = vmatpush1.bf16.msra.mxu0 %v17200_v60  ;;  %5607 = vmatpush1.bf16.msra.mxu1 %v17202_v62  ;;  %v772_v60 = vld [vmem:[#allocation2 + $0x10a8] sm:$0xff] }
 0x2e6   :  { %5485 = vmatprep.subr.bf16.mxu0 %v17217_v63  ;;  %5608 = vmatprep.subr.bf16.mxu1 %v17219_v0  ;;  %v780_v62 = vld [vmem:[#allocation2 + $0x10e8] sm:$0xff]  ;;  %v17312_v63 = vcombine.low %v755_v49, %v763_v50  ;;  %v17314_v0 = vcombine.low %v756_v51, %v764_v52  ;;  %v17409_v49 = vcombine.high %v851_v43, %v859_v44  ;;  %v867_v51 = vld [vmem:[#allocation2 + $0x13a0] sm:$0xff] }
 0x2e7   :  { %v17331_v4 = vcombine.high %v772_v60, %v780_v62  ;;  %v875_v52 = vld [vmem:[#allocation2 + $0x13e0] sm:$0xff] }
 0x2e9   :  { %5486 = vmatpush1.bf16.msra.mxu0 %v17216_v8  ;;  %5609 = vmatpush1.bf16.msra.mxu1 %v17218_v9  ;;  %v788_v8 = vld [vmem:[#allocation2 + $0x1128] sm:$0xff] }
 0x2ea   :  { %5487 = vmatprep.subr.bf16.mxu0 %v17233_v10  ;;  %5610 = vmatprep.subr.bf16.mxu1 %v17235_v11  ;;  %v796_v9 = vld [vmem:[#allocation2 + $0x1168] sm:$0xff]  ;;  %v17328_v10 = vcombine.low %v771_v58, %v779_v59  ;;  %v17330_v11 = vcombine.low %v772_v60, %v780_v62  ;;  %v17425_v58 = vcombine.high %v867_v51, %v875_v52  ;;  %v883_v60 = vld [vmem:[#allocation2 + $0x1420] sm:$0xff] }
 0x2eb   :  { %v17347_v14 = vcombine.high %v788_v8, %v796_v9  ;;  %v891_v62 = vld [vmem:[#allocation2 + $0x1460] sm:$0xff] }
 0x2ed   :  { %5488 = vmatpush1.bf16.msra.mxu0 %v17232_v17  ;;  %5611 = vmatpush1.bf16.msra.mxu1 %v17234_v18  ;;  %v804_v17 = vld [vmem:[#allocation2 + $0x11a8] sm:$0xff] }
 0x2ee   :  { %5489 = vmatprep.subr.bf16.mxu0 %v17249_v19  ;;  %5612 = vmatprep.subr.bf16.mxu1 %v17251_v20  ;;  %v812_v18 = vld [vmem:[#allocation2 + $0x11e8] sm:$0xff]  ;;  %v17344_v19 = vcombine.low %v787_v6, %v795_v7  ;;  %v17346_v20 = vcombine.low %v788_v8, %v796_v9  ;;  %v17441_v6 = vcombine.high %v883_v60, %v891_v62  ;;  %v899_v8 = vld [vmem:[#allocation2 + $0x14a0] sm:$0xff] }
 0x2ef   :  { %v17363_v22 = vcombine.high %v804_v17, %v812_v18  ;;  %v907_v9 = vld [vmem:[#allocation2 + $0x14e0] sm:$0xff] }
 0x2f1   :  { %5490 = vmatpush1.bf16.msra.mxu0 %v17248_v27  ;;  %5613 = vmatpush1.bf16.msra.mxu1 %v17250_v28  ;;  %v820_v27 = vld [vmem:[#allocation2 + $0x1228] sm:$0xff] }
 0x2f2   :  { %5491 = vmatprep.subr.bf16.mxu0 %v17265_v29  ;;  %5614 = vmatprep.subr.bf16.mxu1 %v17267_v30  ;;  %v828_v28 = vld [vmem:[#allocation2 + $0x1268] sm:$0xff]  ;;  %v17360_v29 = vcombine.low %v803_v15, %v811_v16  ;;  %v17362_v30 = vcombine.low %v804_v17, %v812_v18  ;;  %v17457_v15 = vcombine.high %v899_v8, %v907_v9  ;;  %v915_v17 = vld [vmem:[#allocation2 + $0x1520] sm:$0xff] }
 0x2f3   :  { %v17379_v32 = vcombine.high %v820_v27, %v828_v28  ;;  %v923_v18 = vld [vmem:[#allocation2 + $0x1560] sm:$0xff] }
 0x2f5   :  { %5492 = vmatpush1.bf16.msra.mxu0 %v17264_v36  ;;  %5615 = vmatpush1.bf16.msra.mxu1 %v17266_v37  ;;  %v836_v36 = vld [vmem:[#allocation2 + $0x12a8] sm:$0xff] }
 0x2f6   :  { %5493 = vmatprep.subr.bf16.mxu0 %v17281_v39  ;;  %5616 = vmatprep.subr.bf16.mxu1 %v17283_v40  ;;  %v844_v37 = vld [vmem:[#allocation2 + $0x12e8] sm:$0xff]  ;;  %v17376_v39 = vcombine.low %v819_v24, %v827_v26  ;;  %v17378_v40 = vcombine.low %v820_v27, %v828_v28  ;;  %v17473_v24 = vcombine.high %v915_v17, %v923_v18  ;;  %v931_v27 = vld [vmem:[#allocation2 + $0x15a0] sm:$0xff] }
 0x2f7   :  { %v17395_v42 = vcombine.high %v836_v36, %v844_v37  ;;  %v939_v28 = vld [vmem:[#allocation2 + $0x15e0] sm:$0xff] }
 0x2f9   :  { %5494 = vmatpush1.bf16.msra.mxu0 %v17280_v45  ;;  %5617 = vmatpush1.bf16.msra.mxu1 %v17282_v46  ;;  %v852_v45 = vld [vmem:[#allocation2 + $0x1328] sm:$0xff] }
 0x2fa   :  { %5495 = vmatprep.subr.bf16.mxu0 %v17297_v47  ;;  %5618 = vmatprep.subr.bf16.mxu1 %v17299_v48  ;;  %v860_v46 = vld [vmem:[#allocation2 + $0x1368] sm:$0xff]  ;;  %v17392_v47 = vcombine.low %v835_v33, %v843_v35  ;;  %v17394_v48 = vcombine.low %v836_v36, %v844_v37  ;;  %v17489_v33 = vcombine.high %v931_v27, %v939_v28  ;;  %v947_v36 = vld [vmem:[#allocation2 + $0x1620] sm:$0xff] }
 0x2fb   :  { %v17411_v50 = vcombine.high %v852_v45, %v860_v46  ;;  %v955_v37 = vld [vmem:[#allocation2 + $0x1660] sm:$0xff] }
 0x2fd   :  { %5496 = vmatpush1.bf16.msra.mxu0 %v17296_v53  ;;  %5619 = vmatpush1.bf16.msra.mxu1 %v17298_v54  ;;  %v868_v53 = vld [vmem:[#allocation2 + $0x13a8] sm:$0xff] }
 0x2fe   :  { %5506 = vmatprep.subr.bf16.mxu0 %v17313_v55  ;;  %5629 = vmatprep.subr.bf16.mxu1 %v17315_v56  ;;  %v876_v54 = vld [vmem:[#allocation2 + $0x13e8] sm:$0xff]  ;;  %v17408_v55 = vcombine.low %v851_v43, %v859_v44  ;;  %v17410_v56 = vcombine.low %v852_v45, %v860_v46  ;;  %v17505_v43 = vcombine.high %v947_v36, %v955_v37  ;;  %v963_v45 = vld [vmem:[#allocation2 + $0x16a0] sm:$0xff] }
 0x2ff   :  { %v17427_v59 = vcombine.high %v868_v53, %v876_v54  ;;  %v971_v46 = vld [vmem:[#allocation2 + $0x16e0] sm:$0xff] }
 0x300   :  { %5498 = vmatmul.mubr.bf16.vlgmr.msra.gmra.mrb[8].mxu0 %v20479_v25  ;;  %5621 = vmatmul.mubr.bf16.vlgmr.msra.gmra.mrb[8].mxu1 %v20479_v25 }
 0x301   :  { %5507 = vmatpush1.bf16.msra.mxu0 %v17312_v63  ;;  %5630 = vmatpush1.bf16.msra.mxu1 %v17314_v0  ;;  %v884_v63 = vld [vmem:[#allocation2 + $0x1428] sm:$0xff] }
 0x302   :  { %5508 = vmatprep.subr.bf16.mxu0 %v17329_v3  ;;  %5631 = vmatprep.subr.bf16.mxu1 %v17331_v4  ;;  %v892_v0 = vld [vmem:[#allocation2 + $0x1468] sm:$0xff]  ;;  %v17424_v3 = vcombine.low %v867_v51, %v875_v52  ;;  %v17426_v4 = vcombine.low %v868_v53, %v876_v54  ;;  %v17521_v51 = vcombine.high %v963_v45, %v971_v46  ;;  %v979_v53 = vld [vmem:[#allocation2 + $0x1720] sm:$0xff] }
 0x303   :  { %5538 = vmatprep.mubr.bf16.mxu0 %v20481_v34  ;;  %5661 = vmatprep.mubr.bf16.mxu1 %v20481_v34  ;;  %v17443_v7 = vcombine.high %v884_v63, %v892_v0  ;;  %v987_v54 = vld [vmem:[#allocation2 + $0x1760] sm:$0xff] }
 0x305   :  { %5509 = vmatpush1.bf16.msra.mxu0 %v17328_v10  ;;  %5632 = vmatpush1.bf16.msra.mxu1 %v17330_v11  ;;  %v900_v10 = vld [vmem:[#allocation2 + $0x14a8] sm:$0xff] }
 0x306   :  { %5510 = vmatprep.subr.bf16.mxu0 %v17345_v13  ;;  %5633 = vmatprep.subr.bf16.mxu1 %v17347_v14  ;;  %v908_v11 = vld [vmem:[#allocation2 + $0x14e8] sm:$0xff]  ;;  %v17440_v13 = vcombine.low %v883_v60, %v891_v62  ;;  %v17442_v14 = vcombine.low %v884_v63, %v892_v0  ;;  %v17537_v60 = vcombine.high %v979_v53, %v987_v54  ;;  %v995_v63 = vld [vmem:[#allocation2 + $0x17a0] sm:$0xff] }
 0x307   :  { %v17459_v16 = vcombine.high %v900_v10, %v908_v11  ;;  %v1003_v0 = vld [vmem:[#allocation2 + $0x17e0] sm:$0xff] }
 0x309   :  { %5511 = vmatpush1.bf16.msra.mxu0 %v17344_v19  ;;  %5634 = vmatpush1.bf16.msra.mxu1 %v17346_v20  ;;  %v916_v19 = vld [vmem:[#allocation2 + $0x1528] sm:$0xff] }
 0x30a   :  { %5512 = vmatprep.subr.bf16.mxu0 %v17361_v21  ;;  %5635 = vmatprep.subr.bf16.mxu1 %v17363_v22  ;;  %v924_v20 = vld [vmem:[#allocation2 + $0x1568] sm:$0xff]  ;;  %v17456_v21 = vcombine.low %v899_v8, %v907_v9  ;;  %v17458_v22 = vcombine.low %v900_v10, %v908_v11  ;;  %v17553_v8 = vcombine.high %v995_v63, %v1003_v0  ;;  %v245_v10 = vld [vmem:[#allocation2 + $0x30] sm:$0xff] }
 0x30b   :  { %v17475_v26 = vcombine.high %v916_v19, %v924_v20  ;;  %v253_v11 = vld [vmem:[#allocation2 + $0x70] sm:$0xff] }
 0x30d   :  { %5513 = vmatpush1.bf16.msra.mxu0 %v17360_v29  ;;  %5636 = vmatpush1.bf16.msra.mxu1 %v17362_v30  ;;  %v932_v29 = vld [vmem:[#allocation2 + $0x15a8] sm:$0xff] }
 0x30e   :  { %5514 = vmatprep.subr.bf16.mxu0 %v17377_v31  ;;  %5637 = vmatprep.subr.bf16.mxu1 %v17379_v32  ;;  %v940_v30 = vld [vmem:[#allocation2 + $0x15e8] sm:$0xff]  ;;  %v17472_v31 = vcombine.low %v915_v17, %v923_v18  ;;  %v17474_v32 = vcombine.low %v916_v19, %v924_v20  ;;  %v16805_v17 = vcombine.high %v245_v10, %v253_v11  ;;  %v261_v19 = vld [vmem:[#allocation2 + $0xb0] sm:$0xff] }
 0x30f   :  { %v17491_v35 = vcombine.high %v932_v29, %v940_v30  ;;  %v269_v20 = vld [vmem:[#allocation2 + $0xf0] sm:$0xff] }
 0x311   :  { %5515 = vmatpush1.bf16.msra.mxu0 %v17376_v39  ;;  %5638 = vmatpush1.bf16.msra.mxu1 %v17378_v40  ;;  %v948_v39 = vld [vmem:[#allocation2 + $0x1628] sm:$0xff] }
 0x312   :  { %5516 = vmatprep.subr.bf16.mxu0 %v17393_v41  ;;  %5639 = vmatprep.subr.bf16.mxu1 %v17395_v42  ;;  %v956_v40 = vld [vmem:[#allocation2 + $0x1668] sm:$0xff]  ;;  %v17488_v41 = vcombine.low %v931_v27, %v939_v28  ;;  %v17490_v42 = vcombine.low %v932_v29, %v940_v30  ;;  %v16821_v27 = vcombine.high %v261_v19, %v269_v20  ;;  %v277_v29 = vld [vmem:[#allocation2 + $0x130] sm:$0xff] }
 0x313   :  { %v17507_v44 = vcombine.high %v948_v39, %v956_v40  ;;  %v285_v30 = vld [vmem:[#allocation2 + $0x170] sm:$0xff] }
 0x315   :  { %5517 = vmatpush1.bf16.msra.mxu0 %v17392_v47  ;;  %5640 = vmatpush1.bf16.msra.mxu1 %v17394_v48  ;;  %v964_v47 = vld [vmem:[#allocation2 + $0x16a8] sm:$0xff] }
 0x316   :  { %5518 = vmatprep.subr.bf16.mxu0 %v17409_v49  ;;  %5641 = vmatprep.subr.bf16.mxu1 %v17411_v50  ;;  %v972_v48 = vld [vmem:[#allocation2 + $0x16e8] sm:$0xff]  ;;  %v17504_v49 = vcombine.low %v947_v36, %v955_v37  ;;  %v17506_v50 = vcombine.low %v948_v39, %v956_v40  ;;  %v16837_v36 = vcombine.high %v277_v29, %v285_v30  ;;  %v293_v39 = vld [vmem:[#allocation2 + $0x1b0] sm:$0xff] }
 0x317   :  { %v17523_v52 = vcombine.high %v964_v47, %v972_v48  ;;  %v301_v40 = vld [vmem:[#allocation2 + $0x1f0] sm:$0xff] }
 0x319   :  { %5519 = vmatpush1.bf16.msra.mxu0 %v17408_v55  ;;  %5642 = vmatpush1.bf16.msra.mxu1 %v17410_v56  ;;  %v980_v55 = vld [vmem:[#allocation2 + $0x1728] sm:$0xff] }
 0x31a   :  { %5520 = vmatprep.subr.bf16.mxu0 %v17425_v58  ;;  %5643 = vmatprep.subr.bf16.mxu1 %v17427_v59  ;;  %v988_v56 = vld [vmem:[#allocation2 + $0x1768] sm:$0xff]  ;;  %v17520_v58 = vcombine.low %v963_v45, %v971_v46  ;;  %v17522_v59 = vcombine.low %v964_v47, %v972_v48  ;;  %v16853_v45 = vcombine.high %v293_v39, %v301_v40  ;;  %v309_v47 = vld [vmem:[#allocation2 + $0x230] sm:$0xff] }
 0x31b   :  { %v17539_v62 = vcombine.high %v980_v55, %v988_v56  ;;  %v317_v48 = vld [vmem:[#allocation2 + $0x270] sm:$0xff] }
 0x31d   :  { %5521 = vmatpush1.bf16.msra.mxu0 %v17424_v3  ;;  %5644 = vmatpush1.bf16.msra.mxu1 %v17426_v4  ;;  %v996_v3 = vld [vmem:[#allocation2 + $0x17a8] sm:$0xff] }
 0x31e   :  { %5522 = vmatprep.subr.bf16.mxu0 %v17441_v6  ;;  %5645 = vmatprep.subr.bf16.mxu1 %v17443_v7  ;;  %v1004_v4 = vld [vmem:[#allocation2 + $0x17e8] sm:$0xff]  ;;  %v17536_v6 = vcombine.low %v979_v53, %v987_v54  ;;  %v17538_v7 = vcombine.low %v980_v55, %v988_v56  ;;  %v16869_v53 = vcombine.high %v309_v47, %v317_v48  ;;  %v325_v54 = vld [vmem:[#allocation2 + $0x2b0] sm:$0xff]  ;;  %v326_v56 = vld [vmem:[#allocation2 + $0x2b8] sm:$0xff] }
 0x31f   :  { %v17555_v9 = vcombine.high %v996_v3, %v1004_v4  ;;  %v333_v55 = vld [vmem:[#allocation2 + $0x2f0] sm:$0xff] }
 0x321   :  { %5523 = vmatpush1.bf16.msra.mxu0 %v17440_v13  ;;  %5646 = vmatpush1.bf16.msra.mxu1 %v17442_v14  ;;  %v246_v13 = vld [vmem:[#allocation2 + $0x38] sm:$0xff] }
 0x322   :  { %5524 = vmatprep.subr.bf16.mxu0 %v17457_v15  ;;  %5647 = vmatprep.subr.bf16.mxu1 %v17459_v16  ;;  %v254_v14 = vld [vmem:[#allocation2 + $0x78] sm:$0xff]  ;;  %v17552_v15 = vcombine.low %v995_v63, %v1003_v0  ;;  %v17554_v16 = vcombine.low %v996_v3, %v1004_v4  ;;  %v341_v0 = vld [vmem:[#allocation2 + $0x330] sm:$0xff] }
 0x323   :  { %v16807_v18 = vcombine.high %v246_v13, %v254_v14  ;;  %v349_v3 = vld [vmem:[#allocation2 + $0x370] sm:$0xff]  ;;  %v342_v4 = vld [vmem:[#allocation2 + $0x338] sm:$0xff] }
 0x325   :  { %5525 = vmatpush1.bf16.msra.mxu0 %v17456_v21  ;;  %5648 = vmatpush1.bf16.msra.mxu1 %v17458_v22  ;;  %v262_v21 = vld [vmem:[#allocation2 + $0xb8] sm:$0xff] }
 0x326   :  { %5526 = vmatprep.subr.bf16.mxu0 %v17473_v24  ;;  %5649 = vmatprep.subr.bf16.mxu1 %v17475_v26  ;;  %v270_v22 = vld [vmem:[#allocation2 + $0xf8] sm:$0xff]  ;;  %v16804_v24 = vcombine.low %v245_v10, %v253_v11  ;;  %v16806_v26 = vcombine.low %v246_v13, %v254_v14  ;;  %v357_v13 = vld [vmem:[#allocation2 + $0x3b0] sm:$0xff] }
 0x327   :  { %v16823_v28 = vcombine.high %v262_v21, %v270_v22  ;;  %v365_v14 = vld [vmem:[#allocation2 + $0x3f0] sm:$0xff] }
 0x329   :  { %5527 = vmatpush1.bf16.msra.mxu0 %v17472_v31  ;;  %5650 = vmatpush1.bf16.msra.mxu1 %v17474_v32  ;;  %v278_v31 = vld [vmem:[#allocation2 + $0x138] sm:$0xff] }
 0x32a   :  { %5528 = vmatprep.subr.bf16.mxu0 %v17489_v33  ;;  %5651 = vmatprep.subr.bf16.mxu1 %v17491_v35  ;;  %v286_v32 = vld [vmem:[#allocation2 + $0x178] sm:$0xff]  ;;  %v16820_v33 = vcombine.low %v261_v19, %v269_v20  ;;  %v16822_v35 = vcombine.low %v262_v21, %v270_v22  ;;  %v16900_v21 = vcombine.low %v341_v0, %v349_v3 }
 0x32b   :  { %v16839_v37 = vcombine.high %v278_v31, %v286_v32 }
 0x32d   :  { %5529 = vmatpush1.bf16.msra.mxu0 %v17488_v41  ;;  %5652 = vmatpush1.bf16.msra.mxu1 %v17490_v42  ;;  %v294_v41 = vld [vmem:[#allocation2 + $0x1b8] sm:$0xff] }
 0x32e   :  { %5530 = vmatprep.subr.bf16.mxu0 %v17505_v43  ;;  %5653 = vmatprep.subr.bf16.mxu1 %v17507_v44  ;;  %v302_v42 = vld [vmem:[#allocation2 + $0x1f8] sm:$0xff]  ;;  %v16836_v43 = vcombine.low %v277_v29, %v285_v30  ;;  %v16838_v44 = vcombine.low %v278_v31, %v286_v32  ;;  %v373_v30 = vld [vmem:[#allocation2 + $0x430] sm:$0xff] }
 0x32f   :  { %v16855_v46 = vcombine.high %v294_v41, %v302_v42  ;;  %v381_v31 = vld [vmem:[#allocation2 + $0x470] sm:$0xff]  ;;  %v374_v32 = vld [vmem:[#allocation2 + $0x438] sm:$0xff] }
 0x331   :  { %5531 = vmatpush1.bf16.msra.mxu0 %v17504_v49  ;;  %5654 = vmatpush1.bf16.msra.mxu1 %v17506_v50  ;;  %v310_v49 = vld [vmem:[#allocation2 + $0x238] sm:$0xff] }
 0x332   :  { %5532 = vmatprep.subr.bf16.mxu0 %v17521_v51  ;;  %5655 = vmatprep.subr.bf16.mxu1 %v17523_v52  ;;  %v318_v50 = vld [vmem:[#allocation2 + $0x278] sm:$0xff]  ;;  %v16852_v51 = vcombine.low %v293_v39, %v301_v40  ;;  %v16854_v52 = vcombine.low %v294_v41, %v302_v42  ;;  %v389_v40 = vld [vmem:[#allocation2 + $0x4b0] sm:$0xff] }
 0x333   :  { %v397_v41 = vld [vmem:[#allocation2 + $0x4f0] sm:$0xff]  ;;  %v390_v42 = vld [vmem:[#allocation2 + $0x4b8] sm:$0xff] }
 0x335   :  { %5533 = vmatpush1.bf16.msra.mxu0 %v17520_v58  ;;  %5656 = vmatpush1.bf16.msra.mxu1 %v17522_v59  ;;  %v334_v58 = vld [vmem:[#allocation2 + $0x2f8] sm:$0xff]  ;;  %v16868_v59 = vcombine.low %v309_v47, %v317_v48  ;;  %v405_v48 = vld [vmem:[#allocation2 + $0x530] sm:$0xff] }
 0x336   :  { %5534 = vmatprep.subr.bf16.mxu0 %v17537_v60  ;;  %5657 = vmatprep.subr.bf16.mxu1 %v17539_v62  ;;  %v16870_v60 = vcombine.low %v310_v49, %v318_v50  ;;  %v16885_v62 = vcombine.high %v325_v54, %v333_v55  ;;  %v16887_v63 = vcombine.high %v326_v56, %v334_v58 }
 0x339   :  { %5535 = vmatpush1.bf16.msra.mxu0 %v17536_v6  ;;  %5658 = vmatpush1.bf16.msra.mxu1 %v17538_v7  ;;  %v350_v6 = vld [vmem:[#allocation2 + $0x378] sm:$0xff]  ;;  %v16884_v7 = vcombine.low %v325_v54, %v333_v55  ;;  %v421_v55 = vld [vmem:[#allocation2 + $0x5b0] sm:$0xff] }
 0x33a   :  { %5536 = vmatprep.subr.bf16.mxu0 %v17553_v8  ;;  %5659 = vmatprep.subr.bf16.mxu1 %v17555_v9  ;;  %v16886_v8 = vcombine.low %v326_v56, %v334_v58  ;;  %v16901_v9 = vcombine.high %v341_v0, %v349_v3  ;;  %v16903_v11 = vcombine.high %v342_v4, %v350_v6  ;;  %v429_v56 = vld [vmem:[#allocation2 + $0x5f0] sm:$0xff]  ;;  %v422_v58 = vld [vmem:[#allocation2 + $0x5b8] sm:$0xff] }
 0x33b   :  { %v437_v3 = vld [vmem:[#allocation2 + $0x630] sm:$0xff] }
 0x33d   :  { %5537 = vmatpush1.bf16.msra.mxu0 %v17552_v15  ;;  %5660 = vmatpush1.bf16.msra.mxu1 %v17554_v16 }
 0x33e   :  { %5670 = vmatprep.subr.bf16.mxu0 %v16805_v17  ;;  %5793 = vmatprep.subr.bf16.mxu1 %v16807_v18  ;;  %v358_v17 = vld [vmem:[#allocation2 + $0x3b8] sm:$0xff] }
 0x33f   :  { %v366_v18 = vld [vmem:[#allocation2 + $0x3f8] sm:$0xff] }
 0x340   :  { %5539 = vmatmul.mubr.bf16.vlgmr.msra.gmra.mrb[8].mxu0 %v20490_v38  ;;  %5662 = vmatmul.mubr.bf16.vlgmr.msra.gmra.mrb[8].mxu1 %v20490_v38  ;;  %v16919_v29 = vcombine.high %v358_v17, %v366_v18 }
 0x341   :  { %5671 = vmatpush1.bf16.msra.mxu0 %v16804_v24  ;;  %5794 = vmatpush1.bf16.msra.mxu1 %v16806_v26  ;;  %v16902_v26 = vcombine.low %v342_v4, %v350_v6  ;;  %v445_v4 = vld [vmem:[#allocation2 + $0x670] sm:$0xff]  ;;  %v438_v6 = vld [vmem:[#allocation2 + $0x638] sm:$0xff] }
 0x342   :  { %5672 = vmatprep.subr.bf16.mxu0 %v16821_v27  ;;  %5795 = vmatprep.subr.bf16.mxu1 %v16823_v28  ;;  %v16917_v27 = vcombine.high %v357_v13, %v365_v14 }
 0x343   :  { %5702 = vmatprep.mubr.bf16.mxu0 %v20455_v57  ;;  %5825 = vmatprep.mubr.bf16.mxu1 %v20455_v57  ;;  %v16871_v57 = vcombine.high %v310_v49, %v318_v50  ;;  %v413_v49 = vld [vmem:[#allocation2 + $0x570] sm:$0xff]  ;;  %v406_v50 = vld [vmem:[#allocation2 + $0x538] sm:$0xff] }
 0x345   :  { %5673 = vmatpush1.bf16.msra.mxu0 %v16820_v33  ;;  %5796 = vmatpush1.bf16.msra.mxu1 %v16822_v35  ;;  %v382_v33 = vld [vmem:[#allocation2 + $0x478] sm:$0xff]  ;;  %v16916_v35 = vcombine.low %v357_v13, %v365_v14  ;;  %v453_v14 = vld [vmem:[#allocation2 + $0x6b0] sm:$0xff] }
 0x346   :  { %5674 = vmatprep.subr.bf16.mxu0 %v16837_v36  ;;  %5797 = vmatprep.subr.bf16.mxu1 %v16839_v37  ;;  %v16918_v36 = vcombine.low %v358_v17, %v366_v18  ;;  %v16933_v37 = vcombine.high %v373_v30, %v381_v31  ;;  %v16935_v39 = vcombine.high %v374_v32, %v382_v33  ;;  %v461_v17 = vld [vmem:[#allocation2 + $0x6f0] sm:$0xff]  ;;  %v454_v18 = vld [vmem:[#allocation2 + $0x6b8] sm:$0xff] }
 0x349   :  { %5675 = vmatpush1.bf16.msra.mxu0 %v16836_v43  ;;  %5798 = vmatpush1.bf16.msra.mxu1 %v16838_v44  ;;  %v398_v43 = vld [vmem:[#allocation2 + $0x4f8] sm:$0xff]  ;;  %v16932_v44 = vcombine.low %v373_v30, %v381_v31  ;;  %v17012_v31 = vcombine.low %v453_v14, %v461_v17 }
 0x34a   :  { %5676 = vmatprep.subr.bf16.mxu0 %v16853_v45  ;;  %5799 = vmatprep.subr.bf16.mxu1 %v16855_v46  ;;  %v16934_v45 = vcombine.low %v374_v32, %v382_v33  ;;  %v16949_v46 = vcombine.high %v389_v40, %v397_v41  ;;  %v16951_v47 = vcombine.high %v390_v42, %v398_v43  ;;  %v478_v30 = vld [vmem:[#allocation2 + $0x778] sm:$0xff] }
 0x34d   :  { %5677 = vmatpush1.bf16.msra.mxu0 %v16852_v51  ;;  %5800 = vmatpush1.bf16.msra.mxu1 %v16854_v52  ;;  %v414_v51 = vld [vmem:[#allocation2 + $0x578] sm:$0xff]  ;;  %v16948_v52 = vcombine.low %v389_v40, %v397_v41 }
 0x34e   :  { %5678 = vmatprep.subr.bf16.mxu0 %v16869_v53  ;;  %5801 = vmatprep.subr.bf16.mxu1 %v16871_v57  ;;  %v16950_v53 = vcombine.low %v390_v42, %v398_v43  ;;  %v16965_v57 = vcombine.high %v405_v48, %v413_v49  ;;  %v16967_v54 = vcombine.high %v406_v50, %v414_v51  ;;  %v494_v40 = vld [vmem:[#allocation2 + $0x7f8] sm:$0xff] }
 0x351   :  { %5679 = vmatpush1.bf16.msra.mxu0 %v16868_v59  ;;  %5802 = vmatpush1.bf16.msra.mxu1 %v16870_v60  ;;  %v430_v59 = vld [vmem:[#allocation2 + $0x5f8] sm:$0xff]  ;;  %v16964_v60 = vcombine.low %v405_v48, %v413_v49 }
 0x352   :  { %5680 = vmatprep.subr.bf16.mxu0 %v16885_v62  ;;  %5803 = vmatprep.subr.bf16.mxu1 %v16887_v63  ;;  %v16966_v62 = vcombine.low %v406_v50, %v414_v51  ;;  %v16981_v63 = vcombine.high %v421_v55, %v429_v56  ;;  %v16983_v0 = vcombine.high %v422_v58, %v430_v59  ;;  %v510_v48 = vld [vmem:[#allocation2 + $0x878] sm:$0xff] }
 0x353   :  { %v20528_v10 = vpop.f32.mrb[4].mxu0  ;;  %v20530_v15 = vpop.f32.mrb[4].mxu1 }
 0x354   :  { %v20532_v16 = vpop.f32.mrb[5].mxu0  ;;  %v20534_v19 = vpop.f32.mrb[5].mxu1 }
 0x355   :  { %v5298_v20 = vpop.f32.mrb[6].mxu0  ;;  %5681 = vmatpush1.bf16.msra.mxu0 %v16884_v7  ;;  %v5421_v22 = vpop.f32.mrb[6].mxu1  ;;  %5804 = vmatpush1.bf16.msra.mxu1 %v16886_v8  ;;  %v446_v7 = vld [vmem:[#allocation2 + $0x678] sm:$0xff]  ;;  %v16980_v8 = vcombine.low %v421_v55, %v429_v56 }
 0x356   :  { %v5299_v24 = vpop.f32.mrb[7].mxu0  ;;  %5682 = vmatprep.subr.bf16.mxu0 %v16901_v9  ;;  %v5422_v28 = vpop.f32.mrb[7].mxu1  ;;  %5805 = vmatprep.subr.bf16.mxu1 %v16903_v11  ;;  %v16982_v9 = vcombine.low %v422_v58, %v430_v59  ;;  %v16997_v11 = vcombine.high %v437_v3, %v445_v4  ;;  %v16999_v13 = vcombine.high %v438_v6, %v446_v7  ;;  %v462_v20 = vld [vmem:[#allocation2 + $0x6f8] sm:$0xff] }
 0x357   :  { %v16998_v22 = vcombine.low %v438_v6, %v446_v7  ;;  %v17013_v24 = vcombine.high %v453_v14, %v461_v17  ;;  %v477_v28 = vld [vmem:[#allocation2 + $0x770] sm:$0xff]  ;;  %v17014_v32 = vcombine.low %v454_v18, %v462_v20  ;;  %v526_v55 = vld [vmem:[#allocation2 + $0x8f8] sm:$0xff] }
 0x358   :  { %v558_v14 = vld [vmem:[#allocation2 + $0x9f8] sm:$0xff] }
 0x359   :  { %5683 = vmatpush1.bf16.msra.mxu0 %v16900_v21  ;;  %5806 = vmatpush1.bf16.msra.mxu1 %v16902_v26  ;;  %v16996_v21 = vcombine.low %v437_v3, %v445_v4  ;;  %v17015_v26 = vcombine.high %v454_v18, %v462_v20  ;;  %v542_v3 = vld [vmem:[#allocation2 + $0x978] sm:$0xff] }
 0x35a   :  { %5684 = vmatprep.subr.bf16.mxu0 %v16917_v27  ;;  %5807 = vmatprep.subr.bf16.mxu1 %v16919_v29  ;;  %v469_v27 = vld [vmem:[#allocation2 + $0x730] sm:$0xff]  ;;  %v470_v29 = vld [vmem:[#allocation2 + $0x738] sm:$0xff] }
 0x35b   :  { %v17029_v33 = vcombine.high %v469_v27, %v477_v28  ;;  %v17028_v41 = vcombine.low %v469_v27, %v477_v28  ;;  %v17030_v42 = vcombine.low %v470_v29, %v478_v30 }
 0x35d   :  { %5685 = vmatpush1.bf16.msra.mxu0 %v16916_v35  ;;  %5808 = vmatpush1.bf16.msra.mxu1 %v16918_v36  ;;  %v17031_v35 = vcombine.high %v470_v29, %v478_v30  ;;  %v485_v36 = vld [vmem:[#allocation2 + $0x7b0] sm:$0xff] }
 0x35e   :  { %5686 = vmatprep.subr.bf16.mxu0 %v16933_v37  ;;  %5809 = vmatprep.subr.bf16.mxu1 %v16935_v39  ;;  %v493_v37 = vld [vmem:[#allocation2 + $0x7f0] sm:$0xff]  ;;  %v486_v39 = vld [vmem:[#allocation2 + $0x7b8] sm:$0xff] }
 0x35f   :  { %v17045_v43 = vcombine.high %v485_v36, %v493_v37  ;;  %v17044_v49 = vcombine.low %v485_v36, %v493_v37  ;;  %v17046_v50 = vcombine.low %v486_v39, %v494_v40  ;;  %v581_v30 = vld [vmem:[#allocation2 + $0xab0] sm:$0xff] }
 0x361   :  { %5687 = vmatpush1.bf16.msra.mxu0 %v16932_v44  ;;  %5810 = vmatpush1.bf16.msra.mxu1 %v16934_v45  ;;  %v17047_v44 = vcombine.high %v486_v39, %v494_v40  ;;  %v501_v45 = vld [vmem:[#allocation2 + $0x830] sm:$0xff] }
 0x362   :  { %5688 = vmatprep.subr.bf16.mxu0 %v16949_v46  ;;  %5811 = vmatprep.subr.bf16.mxu1 %v16951_v47  ;;  %v509_v46 = vld [vmem:[#allocation2 + $0x870] sm:$0xff]  ;;  %v502_v47 = vld [vmem:[#allocation2 + $0x838] sm:$0xff] }
 0x363   :  { %v17061_v51 = vcombine.high %v501_v45, %v509_v46  ;;  %v17060_v56 = vcombine.low %v501_v45, %v509_v46  ;;  %v17062_v58 = vcombine.low %v502_v47, %v510_v48  ;;  %v597_v40 = vld [vmem:[#allocation2 + $0xb30] sm:$0xff] }
 0x365   :  { %5689 = vmatpush1.bf16.msra.mxu0 %v16948_v52  ;;  %5812 = vmatpush1.bf16.msra.mxu1 %v16950_v53  ;;  %v17063_v52 = vcombine.high %v502_v47, %v510_v48  ;;  %v517_v53 = vld [vmem:[#allocation2 + $0x8b0] sm:$0xff] }
 0x366   :  { %5690 = vmatprep.subr.bf16.mxu0 %v16965_v57  ;;  %5813 = vmatprep.subr.bf16.mxu1 %v16967_v54  ;;  %v525_v57 = vld [vmem:[#allocation2 + $0x8f0] sm:$0xff]  ;;  %v518_v54 = vld [vmem:[#allocation2 + $0x8b8] sm:$0xff] }
 0x367   :  { %v17077_v59 = vcombine.high %v517_v53, %v525_v57  ;;  %v17076_v4 = vcombine.low %v517_v53, %v525_v57  ;;  %v17078_v6 = vcombine.low %v518_v54, %v526_v55  ;;  %v613_v48 = vld [vmem:[#allocation2 + $0xbb0] sm:$0xff] }
 0x369   :  { %5691 = vmatpush1.bf16.msra.mxu0 %v16964_v60  ;;  %5814 = vmatpush1.bf16.msra.mxu1 %v16966_v62  ;;  %v17079_v60 = vcombine.high %v518_v54, %v526_v55  ;;  %v533_v62 = vld [vmem:[#allocation2 + $0x930] sm:$0xff] }
 0x36a   :  { %5692 = vmatprep.subr.bf16.mxu0 %v16981_v63  ;;  %5815 = vmatprep.subr.bf16.mxu1 %v16983_v0  ;;  %v541_v63 = vld [vmem:[#allocation2 + $0x970] sm:$0xff]  ;;  %v534_v0 = vld [vmem:[#allocation2 + $0x938] sm:$0xff] }
 0x36b   :  { %v17093_v7 = vcombine.high %v533_v62, %v541_v63  ;;  %v17092_v17 = vcombine.low %v533_v62, %v541_v63  ;;  %v629_v55 = vld [vmem:[#allocation2 + $0xc30] sm:$0xff] }
 0x36d   :  { %5693 = vmatpush1.bf16.msra.mxu0 %v16980_v8  ;;  %5816 = vmatpush1.bf16.msra.mxu1 %v16982_v9  ;;  %v17095_v8 = vcombine.high %v534_v0, %v542_v3  ;;  %v549_v9 = vld [vmem:[#allocation2 + $0x9b0] sm:$0xff] }
 0x36e   :  { %5694 = vmatprep.subr.bf16.mxu0 %v16997_v11  ;;  %5817 = vmatprep.subr.bf16.mxu1 %v16999_v13  ;;  %v557_v11 = vld [vmem:[#allocation2 + $0x9f0] sm:$0xff]  ;;  %v550_v13 = vld [vmem:[#allocation2 + $0x9b8] sm:$0xff] }
 0x36f   :  { %v17109_v18 = vcombine.high %v549_v9, %v557_v11  ;;  %v17111_v20 = vcombine.high %v550_v13, %v558_v14  ;;  %v17108_v27 = vcombine.low %v549_v9, %v557_v11  ;;  %v17110_v28 = vcombine.low %v550_v13, %v558_v14  ;;  %v661_v14 = vld [vmem:[#allocation2 + $0xd30] sm:$0xff] }
 0x371   :  { %5695 = vmatpush1.bf16.msra.mxu0 %v16996_v21  ;;  %5818 = vmatpush1.bf16.msra.mxu1 %v16998_v22  ;;  %v565_v21 = vld [vmem:[#allocation2 + $0xa30] sm:$0xff] }
 0x372   :  { %5696 = vmatprep.subr.bf16.mxu0 %v17013_v24  ;;  %5819 = vmatprep.subr.bf16.mxu1 %v17015_v26  ;;  %v573_v22 = vld [vmem:[#allocation2 + $0xa70] sm:$0xff]  ;;  %v566_v24 = vld [vmem:[#allocation2 + $0xa38] sm:$0xff] }
 0x373   :  { %v574_v26 = vld [vmem:[#allocation2 + $0xa78] sm:$0xff]  ;;  %v17125_v29 = vcombine.high %v565_v21, %v573_v22 }
 0x374   :  { %v17126_v36 = vcombine.low %v566_v24, %v574_v26 }
 0x375   :  { %5697 = vmatpush1.bf16.msra.mxu0 %v17012_v31  ;;  %5820 = vmatpush1.bf16.msra.mxu1 %v17014_v32  ;;  %v589_v31 = vld [vmem:[#allocation2 + $0xaf0] sm:$0xff]  ;;  %v582_v32 = vld [vmem:[#allocation2 + $0xab8] sm:$0xff] }
 0x376   :  { %5698 = vmatprep.subr.bf16.mxu0 %v17029_v33  ;;  %5821 = vmatprep.subr.bf16.mxu1 %v17031_v35  ;;  %v590_v33 = vld [vmem:[#allocation2 + $0xaf8] sm:$0xff]  ;;  %v17124_v35 = vcombine.low %v565_v21, %v573_v22  ;;  %v17141_v37 = vcombine.high %v581_v30, %v589_v31 }
 0x377   :  { %v17143_v39 = vcombine.high %v582_v32, %v590_v33  ;;  %v17142_v45 = vcombine.low %v582_v32, %v590_v33  ;;  %v693_v33 = vld [vmem:[#allocation2 + $0xe30] sm:$0xff] }
 0x379   :  { %5699 = vmatpush1.bf16.msra.mxu0 %v17028_v41  ;;  %5822 = vmatpush1.bf16.msra.mxu1 %v17030_v42  ;;  %v605_v41 = vld [vmem:[#allocation2 + $0xb70] sm:$0xff]  ;;  %v598_v42 = vld [vmem:[#allocation2 + $0xb38] sm:$0xff] }
 0x37a   :  { %5700 = vmatprep.subr.bf16.mxu0 %v17045_v43  ;;  %5823 = vmatprep.subr.bf16.mxu1 %v17047_v44  ;;  %v606_v43 = vld [vmem:[#allocation2 + $0xb78] sm:$0xff]  ;;  %v17140_v44 = vcombine.low %v581_v30, %v589_v31  ;;  %v17157_v46 = vcombine.high %v597_v40, %v605_v41 }
 0x37b   :  { %v17159_v47 = vcombine.high %v598_v42, %v606_v43  ;;  %v17158_v53 = vcombine.low %v598_v42, %v606_v43  ;;  %v709_v43 = vld [vmem:[#allocation2 + $0xeb0] sm:$0xff] }
 0x37d   :  { %5701 = vmatpush1.bf16.msra.mxu0 %v17044_v49  ;;  %5824 = vmatpush1.bf16.msra.mxu1 %v17046_v50  ;;  %v621_v49 = vld [vmem:[#allocation2 + $0xbf0] sm:$0xff]  ;;  %v614_v50 = vld [vmem:[#allocation2 + $0xbb8] sm:$0xff] }
 0x37e   :  { %5711 = vmatprep.subr.bf16.mxu0 %v17061_v51  ;;  %5834 = vmatprep.subr.bf16.mxu1 %v17063_v52  ;;  %v622_v51 = vld [vmem:[#allocation2 + $0xbf8] sm:$0xff]  ;;  %v17156_v52 = vcombine.low %v597_v40, %v605_v41  ;;  %v17173_v57 = vcombine.high %v613_v48, %v621_v49 }
 0x37f   :  { %v17175_v54 = vcombine.high %v614_v50, %v622_v51  ;;  %v17174_v62 = vcombine.low %v614_v50, %v622_v51  ;;  %v725_v51 = vld [vmem:[#allocation2 + $0xf30] sm:$0xff] }
 0x380   :  { %5703 = vmatmul.mubr.bf16.vlgmr.msra.gmra.mrb[12].mxu0 %v20462_v12  ;;  %5826 = vmatmul.mubr.bf16.vlgmr.msra.gmra.mrb[12].mxu1 %v20462_v12  ;;  %v17094_v12 = vcombine.low %v534_v0, %v542_v3  ;;  %v645_v3 = vld [vmem:[#allocation2 + $0xcb0] sm:$0xff] }
 0x381   :  { %5712 = vmatpush1.bf16.msra.mxu0 %v17060_v56  ;;  %5835 = vmatpush1.bf16.msra.mxu1 %v17062_v58  ;;  %v637_v56 = vld [vmem:[#allocation2 + $0xc70] sm:$0xff]  ;;  %v630_v58 = vld [vmem:[#allocation2 + $0xc38] sm:$0xff] }
 0x382   :  { %5713 = vmatprep.subr.bf16.mxu0 %v17077_v59  ;;  %5836 = vmatprep.subr.bf16.mxu1 %v17079_v60  ;;  %v638_v59 = vld [vmem:[#allocation2 + $0xc78] sm:$0xff]  ;;  %v17172_v60 = vcombine.low %v613_v48, %v621_v49  ;;  %v17189_v63 = vcombine.high %v629_v55, %v637_v56 }
 0x383   :  { %5743 = vmatprep.mubr.bf16.mxu0 %v20467_v23  ;;  %5866 = vmatprep.mubr.bf16.mxu1 %v20467_v23  ;;  %v17127_v23 = vcombine.high %v566_v24, %v574_v26  ;;  %v17191_v0 = vcombine.high %v630_v58, %v638_v59  ;;  %v17190_v9 = vcombine.low %v630_v58, %v638_v59  ;;  %v677_v26 = vld [vmem:[#allocation2 + $0xdb0] sm:$0xff] }
 0x384   :  { %v741_v59 = vld [vmem:[#allocation2 + $0xfb0] sm:$0xff] }
 0x385   :  { %5714 = vmatpush1.bf16.msra.mxu0 %v17076_v4  ;;  %5837 = vmatpush1.bf16.msra.mxu1 %v17078_v6  ;;  %v653_v4 = vld [vmem:[#allocation2 + $0xcf0] sm:$0xff]  ;;  %v646_v6 = vld [vmem:[#allocation2 + $0xcb8] sm:$0xff] }
 0x386   :  { %5715 = vmatprep.subr.bf16.mxu0 %v17093_v7  ;;  %5838 = vmatprep.subr.bf16.mxu1 %v17095_v8  ;;  %v654_v7 = vld [vmem:[#allocation2 + $0xcf8] sm:$0xff]  ;;  %v17188_v8 = vcombine.low %v629_v55, %v637_v56  ;;  %v17205_v11 = vcombine.high %v645_v3, %v653_v4 }
 0x387   :  { %v17207_v13 = vcombine.high %v646_v6, %v654_v7  ;;  %v17206_v21 = vcombine.low %v646_v6, %v654_v7  ;;  %v757_v7 = vld [vmem:[#allocation2 + $0x1030] sm:$0xff] }
 0x389   :  { %5716 = vmatpush1.bf16.msra.mxu0 %v17092_v17  ;;  %5839 = vmatpush1.bf16.msra.mxu1 %v17094_v12  ;;  %v669_v17 = vld [vmem:[#allocation2 + $0xd70] sm:$0xff]  ;;  %v662_v12 = vld [vmem:[#allocation2 + $0xd38] sm:$0xff] }
 0x38a   :  { %5717 = vmatprep.subr.bf16.mxu0 %v17109_v18  ;;  %5840 = vmatprep.subr.bf16.mxu1 %v17111_v20  ;;  %v670_v18 = vld [vmem:[#allocation2 + $0xd78] sm:$0xff]  ;;  %v17204_v20 = vcombine.low %v645_v3, %v653_v4  ;;  %v17221_v22 = vcombine.high %v661_v14, %v669_v17 }
 0x38b   :  { %v17223_v24 = vcombine.high %v662_v12, %v670_v18  ;;  %v17222_v30 = vcombine.low %v662_v12, %v670_v18  ;;  %v773_v18 = vld [vmem:[#allocation2 + $0x10b0] sm:$0xff] }
 0x38d   :  { %5718 = vmatpush1.bf16.msra.mxu0 %v17108_v27  ;;  %5841 = vmatpush1.bf16.msra.mxu1 %v17110_v28  ;;  %v685_v27 = vld [vmem:[#allocation2 + $0xdf0] sm:$0xff]  ;;  %v678_v28 = vld [vmem:[#allocation2 + $0xdb8] sm:$0xff] }
 0x38e   :  { %5719 = vmatprep.subr.bf16.mxu0 %v17125_v29  ;;  %5842 = vmatprep.subr.bf16.mxu1 %v17127_v23  ;;  %v686_v29 = vld [vmem:[#allocation2 + $0xdf8] sm:$0xff]  ;;  %v17220_v23 = vcombine.low %v661_v14, %v669_v17  ;;  %v17237_v31 = vcombine.high %v677_v26, %v685_v27 }
 0x38f   :  { %v17239_v32 = vcombine.high %v678_v28, %v686_v29  ;;  %v17238_v40 = vcombine.low %v678_v28, %v686_v29  ;;  %v789_v29 = vld [vmem:[#allocation2 + $0x1130] sm:$0xff] }
 0x391   :  { %5720 = vmatpush1.bf16.msra.mxu0 %v17124_v35  ;;  %5843 = vmatpush1.bf16.msra.mxu1 %v17126_v36  ;;  %v701_v35 = vld [vmem:[#allocation2 + $0xe70] sm:$0xff]  ;;  %v694_v36 = vld [vmem:[#allocation2 + $0xe38] sm:$0xff] }
 0x392   :  { %5721 = vmatprep.subr.bf16.mxu0 %v17141_v37  ;;  %5844 = vmatprep.subr.bf16.mxu1 %v17143_v39  ;;  %v702_v37 = vld [vmem:[#allocation2 + $0xe78] sm:$0xff]  ;;  %v17236_v39 = vcombine.low %v677_v26, %v685_v27  ;;  %v17253_v41 = vcombine.high %v693_v33, %v701_v35 }
 0x393   :  { %v17255_v42 = vcombine.high %v694_v36, %v702_v37  ;;  %v17254_v48 = vcombine.low %v694_v36, %v702_v37  ;;  %v805_v37 = vld [vmem:[#allocation2 + $0x11b0] sm:$0xff] }
 0x395   :  { %5722 = vmatpush1.bf16.msra.mxu0 %v17140_v44  ;;  %5845 = vmatpush1.bf16.msra.mxu1 %v17142_v45  ;;  %v717_v44 = vld [vmem:[#allocation2 + $0xef0] sm:$0xff]  ;;  %v710_v45 = vld [vmem:[#allocation2 + $0xeb8] sm:$0xff] }
 0x396   :  { %5723 = vmatprep.subr.bf16.mxu0 %v17157_v46  ;;  %5846 = vmatprep.subr.bf16.mxu1 %v17159_v47  ;;  %v718_v46 = vld [vmem:[#allocation2 + $0xef8] sm:$0xff]  ;;  %v17252_v47 = vcombine.low %v693_v33, %v701_v35  ;;  %v17269_v49 = vcombine.high %v709_v43, %v717_v44 }
 0x397   :  { %v17271_v50 = vcombine.high %v710_v45, %v718_v46  ;;  %v17270_v55 = vcombine.low %v710_v45, %v718_v46  ;;  %v821_v45 = vld [vmem:[#allocation2 + $0x1230] sm:$0xff] }
 0x398   :  { %v829_v46 = vld [vmem:[#allocation2 + $0x1270] sm:$0xff] }
 0x399   :  { %5724 = vmatpush1.bf16.msra.mxu0 %v17156_v52  ;;  %5847 = vmatpush1.bf16.msra.mxu1 %v17158_v53  ;;  %v733_v52 = vld [vmem:[#allocation2 + $0xf70] sm:$0xff]  ;;  %v726_v53 = vld [vmem:[#allocation2 + $0xf38] sm:$0xff] }
 0x39a   :  { %5725 = vmatprep.subr.bf16.mxu0 %v17173_v57  ;;  %5848 = vmatprep.subr.bf16.mxu1 %v17175_v54  ;;  %v734_v57 = vld [vmem:[#allocation2 + $0xf78] sm:$0xff]  ;;  %v17268_v54 = vcombine.low %v709_v43, %v717_v44  ;;  %v17285_v56 = vcombine.high %v725_v51, %v733_v52 }
 0x39b   :  { %v17287_v58 = vcombine.high %v726_v53, %v734_v57  ;;  %v17286_v3 = vcombine.low %v726_v53, %v734_v57  ;;  %v845_v53 = vld [vmem:[#allocation2 + $0x12f0] sm:$0xff]  ;;  %v838_v57 = vld [vmem:[#allocation2 + $0x12b8] sm:$0xff] }
 0x39d   :  { %5726 = vmatpush1.bf16.msra.mxu0 %v17172_v60  ;;  %5849 = vmatpush1.bf16.msra.mxu1 %v17174_v62  ;;  %v749_v60 = vld [vmem:[#allocation2 + $0xff0] sm:$0xff]  ;;  %v742_v62 = vld [vmem:[#allocation2 + $0xfb8] sm:$0xff] }
 0x39e   :  { %5727 = vmatprep.subr.bf16.mxu0 %v17189_v63  ;;  %5850 = vmatprep.subr.bf16.mxu1 %v17191_v0  ;;  %v750_v63 = vld [vmem:[#allocation2 + $0xff8] sm:$0xff]  ;;  %v17284_v0 = vcombine.low %v725_v51, %v733_v52  ;;  %v17301_v4 = vcombine.high %v741_v59, %v749_v60  ;;  %v17381_v51 = vcombine.high %v821_v45, %v829_v46  ;;  %v837_v52 = vld [vmem:[#allocation2 + $0x12b0] sm:$0xff] }
 0x39f   :  { %v17303_v6 = vcombine.high %v742_v62, %v750_v63  ;;  %v17302_v14 = vcombine.low %v742_v62, %v750_v63  ;;  %v861_v62 = vld [vmem:[#allocation2 + $0x1370] sm:$0xff]  ;;  %v854_v63 = vld [vmem:[#allocation2 + $0x1338] sm:$0xff] }
 0x3a1   :  { %5728 = vmatpush1.bf16.msra.mxu0 %v17188_v8  ;;  %5851 = vmatpush1.bf16.msra.mxu1 %v17190_v9  ;;  %v765_v8 = vld [vmem:[#allocation2 + $0x1070] sm:$0xff]  ;;  %v758_v9 = vld [vmem:[#allocation2 + $0x1038] sm:$0xff] }
 0x3a2   :  { %5729 = vmatprep.subr.bf16.mxu0 %v17205_v11  ;;  %5852 = vmatprep.subr.bf16.mxu1 %v17207_v13  ;;  %v766_v11 = vld [vmem:[#allocation2 + $0x1078] sm:$0xff]  ;;  %v17300_v13 = vcombine.low %v741_v59, %v749_v60  ;;  %v17317_v17 = vcombine.high %v757_v7, %v765_v8  ;;  %v853_v60 = vld [vmem:[#allocation2 + $0x1330] sm:$0xff] }
 0x3a3   :  { %v17319_v12 = vcombine.high %v758_v9, %v766_v11  ;;  %v17318_v26 = vcombine.low %v758_v9, %v766_v11  ;;  %v877_v9 = vld [vmem:[#allocation2 + $0x13f0] sm:$0xff]  ;;  %v870_v11 = vld [vmem:[#allocation2 + $0x13b8] sm:$0xff] }
 0x3a5   :  { %5730 = vmatpush1.bf16.msra.mxu0 %v17204_v20  ;;  %5853 = vmatpush1.bf16.msra.mxu1 %v17206_v21  ;;  %v781_v20 = vld [vmem:[#allocation2 + $0x10f0] sm:$0xff]  ;;  %v774_v21 = vld [vmem:[#allocation2 + $0x10b8] sm:$0xff] }
 0x3a6   :  { %5731 = vmatprep.subr.bf16.mxu0 %v17221_v22  ;;  %5854 = vmatprep.subr.bf16.mxu1 %v17223_v24  ;;  %v782_v22 = vld [vmem:[#allocation2 + $0x10f8] sm:$0xff]  ;;  %v17316_v24 = vcombine.low %v757_v7, %v765_v8  ;;  %v17333_v27 = vcombine.high %v773_v18, %v781_v20  ;;  %v869_v8 = vld [vmem:[#allocation2 + $0x13b0] sm:$0xff] }
 0x3a7   :  { %v17335_v28 = vcombine.high %v774_v21, %v782_v22  ;;  %v17334_v33 = vcombine.low %v774_v21, %v782_v22  ;;  %v893_v21 = vld [vmem:[#allocation2 + $0x1470] sm:$0xff]  ;;  %v886_v22 = vld [vmem:[#allocation2 + $0x1438] sm:$0xff] }
 0x3a9   :  { %5732 = vmatpush1.bf16.msra.mxu0 %v17220_v23  ;;  %5855 = vmatpush1.bf16.msra.mxu1 %v17222_v30  ;;  %v797_v23 = vld [vmem:[#allocation2 + $0x1170] sm:$0xff]  ;;  %v790_v30 = vld [vmem:[#allocation2 + $0x1138] sm:$0xff] }
 0x3aa   :  { %5733 = vmatprep.subr.bf16.mxu0 %v17237_v31  ;;  %5856 = vmatprep.subr.bf16.mxu1 %v17239_v32  ;;  %v798_v31 = vld [vmem:[#allocation2 + $0x1178] sm:$0xff]  ;;  %v17332_v32 = vcombine.low %v773_v18, %v781_v20  ;;  %v17349_v35 = vcombine.high %v789_v29, %v797_v23  ;;  %v885_v20 = vld [vmem:[#allocation2 + $0x1430] sm:$0xff] }
 0x3ab   :  { %v17351_v36 = vcombine.high %v790_v30, %v798_v31 }
 0x3ad   :  { %5734 = vmatpush1.bf16.msra.mxu0 %v17236_v39  ;;  %5857 = vmatpush1.bf16.msra.mxu1 %v17238_v40  ;;  %v813_v39 = vld [vmem:[#allocation2 + $0x11f0] sm:$0xff]  ;;  %v806_v40 = vld [vmem:[#allocation2 + $0x11b8] sm:$0xff] }
 0x3ae   :  { %5735 = vmatprep.subr.bf16.mxu0 %v17253_v41  ;;  %5858 = vmatprep.subr.bf16.mxu1 %v17255_v42  ;;  %v814_v41 = vld [vmem:[#allocation2 + $0x11f8] sm:$0xff]  ;;  %v17348_v42 = vcombine.low %v789_v29, %v797_v23  ;;  %v17365_v43 = vcombine.high %v805_v37, %v813_v39  ;;  %v901_v23 = vld [vmem:[#allocation2 + $0x14b0] sm:$0xff] }
 0x3af   :  { %v17367_v44 = vcombine.high %v806_v40, %v814_v41 }
 0x3b1   :  { %5736 = vmatpush1.bf16.msra.mxu0 %v17252_v47  ;;  %5859 = vmatpush1.bf16.msra.mxu1 %v17254_v48  ;;  %v822_v47 = vld [vmem:[#allocation2 + $0x1238] sm:$0xff] }
 0x3b2   :  { %5737 = vmatprep.subr.bf16.mxu0 %v17269_v49  ;;  %5860 = vmatprep.subr.bf16.mxu1 %v17271_v50  ;;  %v830_v48 = vld [vmem:[#allocation2 + $0x1278] sm:$0xff]  ;;  %v17364_v49 = vcombine.low %v805_v37, %v813_v39  ;;  %v17366_v50 = vcombine.low %v806_v40, %v814_v41  ;;  %v917_v39 = vld [vmem:[#allocation2 + $0x1530] sm:$0xff]  ;;  %v1012_v41 = vlaneseq }
 0x3b3   :  { %v925_v40 = vld [vmem:[#allocation2 + $0x1570] sm:$0xff] }
 0x3b5   :  { %5738 = vmatpush1.bf16.msra.mxu0 %v17268_v54  ;;  %5861 = vmatpush1.bf16.msra.mxu1 %v17270_v55  ;;  %v846_v54 = vld [vmem:[#allocation2 + $0x12f8] sm:$0xff]  ;;  %v17380_v55 = vcombine.low %v821_v45, %v829_v46  ;;  %v17477_v45 = vcombine.high %v917_v39, %v925_v40 }
 0x3b6   :  { %5739 = vmatprep.subr.bf16.mxu0 %v17285_v56  ;;  %5862 = vmatprep.subr.bf16.mxu1 %v17287_v58  ;;  %v17382_v56 = vcombine.low %v822_v47, %v830_v48  ;;  %v17397_v58 = vcombine.high %v837_v52, %v845_v53  ;;  %v17399_v59 = vcombine.high %v838_v57, %v846_v54 }
 0x3b9   :  { %5740 = vmatpush1.bf16.msra.mxu0 %v17284_v0  ;;  %5863 = vmatpush1.bf16.msra.mxu1 %v17286_v3  ;;  %v862_v0 = vld [vmem:[#allocation2 + $0x1378] sm:$0xff]  ;;  %v17396_v3 = vcombine.low %v837_v52, %v845_v53 }
 0x3ba   :  { %5741 = vmatprep.subr.bf16.mxu0 %v17301_v4  ;;  %5864 = vmatprep.subr.bf16.mxu1 %v17303_v6  ;;  %v17398_v4 = vcombine.low %v838_v57, %v846_v54  ;;  %v17413_v6 = vcombine.high %v853_v60, %v861_v62  ;;  %v17415_v7 = vcombine.high %v854_v63, %v862_v0  ;;  %v949_v54 = vld [vmem:[#allocation2 + $0x1630] sm:$0xff] }
 0x3bd   :  { %5742 = vmatpush1.bf16.msra.mxu0 %v17300_v13  ;;  %5865 = vmatpush1.bf16.msra.mxu1 %v17302_v14  ;;  %v878_v13 = vld [vmem:[#allocation2 + $0x13f8] sm:$0xff]  ;;  %v17412_v14 = vcombine.low %v853_v60, %v861_v62 }
 0x3be   :  { %5752 = vmatprep.subr.bf16.mxu0 %v17317_v17  ;;  %5875 = vmatprep.subr.bf16.mxu1 %v17319_v12  ;;  %v17414_v17 = vcombine.low %v854_v63, %v862_v0  ;;  %v17429_v12 = vcombine.high %v869_v8, %v877_v9  ;;  %v17431_v18 = vcombine.high %v870_v11, %v878_v13  ;;  %v20550_v60 = vld [vmem:[#allocation9] ss:$4 sm:$0xff] }
 0x3c0   :  { %5744 = vmatmul.mubr.bf16.vlgmr.msra.gmra.mrb[12].mxu0 %v20479_v25  ;;  %5867 = vmatmul.mubr.bf16.vlgmr.msra.gmra.mrb[12].mxu1 %v20479_v25  ;;  %v17350_v25 = vcombine.low %v790_v30, %v798_v31  ;;  %v909_v30 = vld [vmem:[#allocation2 + $0x14f0] sm:$0xff]  ;;  %v902_v31 = vld [vmem:[#allocation2 + $0x14b8] sm:$0xff] }
 0x3c1   :  { %5753 = vmatpush1.bf16.msra.mxu0 %v17316_v24  ;;  %5876 = vmatpush1.bf16.msra.mxu1 %v17318_v26  ;;  %v894_v24 = vld [vmem:[#allocation2 + $0x1478] sm:$0xff]  ;;  %v17428_v26 = vcombine.low %v869_v8, %v877_v9 }
 0x3c2   :  { %5754 = vmatprep.subr.bf16.mxu0 %v17333_v27  ;;  %5877 = vmatprep.subr.bf16.mxu1 %v17335_v28  ;;  %v17430_v27 = vcombine.low %v870_v11, %v878_v13  ;;  %v17445_v28 = vcombine.high %v885_v20, %v893_v21  ;;  %v17447_v29 = vcombine.high %v886_v22, %v894_v24  ;;  %v966_v8 = vld [vmem:[#allocation2 + $0x16b8] sm:$0xff] }
 0x3c3   :  { %5784 = vmatprep.mubr.bf16.mxu0 %v20481_v34  ;;  %5907 = vmatprep.mubr.bf16.mxu1 %v20481_v34  ;;  %v17383_v34 = vcombine.high %v822_v47, %v830_v48  ;;  %v933_v47 = vld [vmem:[#allocation2 + $0x15b0] sm:$0xff]  ;;  %v974_v9 = vld [vmem:[#allocation2 + $0x16f8] sm:$0xff] }
 0x3c4   :  { %v941_v48 = vld [vmem:[#allocation2 + $0x15f0] sm:$0xff] }
 0x3c5   :  { %5755 = vmatpush1.bf16.msra.mxu0 %v17332_v32  ;;  %5878 = vmatpush1.bf16.msra.mxu1 %v17334_v33  ;;  %v910_v32 = vld [vmem:[#allocation2 + $0x14f8] sm:$0xff]  ;;  %v17444_v33 = vcombine.low %v885_v20, %v893_v21  ;;  %v17493_v53 = vcombine.high %v933_v47, %v941_v48  ;;  %v17492_v62 = vcombine.low %v933_v47, %v941_v48 }
 0x3c6   :  { %5756 = vmatprep.subr.bf16.mxu0 %v17349_v35  ;;  %5879 = vmatprep.subr.bf16.mxu1 %v17351_v36  ;;  %v17446_v35 = vcombine.low %v886_v22, %v894_v24  ;;  %v17461_v36 = vcombine.high %v901_v23, %v909_v30  ;;  %v17463_v37 = vcombine.high %v902_v31, %v910_v32  ;;  %v982_v21 = vld [vmem:[#allocation2 + $0x1738] sm:$0xff] }
 0x3c7   :  { %v990_v22 = vld [vmem:[#allocation2 + $0x1778] sm:$0xff] }
 0x3c8   :  { %v20555_v24 = vld [vmem:[#allocation9 + $0x1] ss:$4 sm:$0xff] }
 0x3c9   :  { %5757 = vmatpush1.bf16.msra.mxu0 %v17348_v42  ;;  %5880 = vmatpush1.bf16.msra.mxu1 %v17350_v25  ;;  %v918_v42 = vld [vmem:[#allocation2 + $0x1538] sm:$0xff] }
 0x3ca   :  { %5758 = vmatprep.subr.bf16.mxu0 %v17365_v43  ;;  %5881 = vmatprep.subr.bf16.mxu1 %v17367_v44  ;;  %v926_v25 = vld [vmem:[#allocation2 + $0x1578] sm:$0xff]  ;;  %v17460_v43 = vcombine.low %v901_v23, %v909_v30  ;;  %v17462_v44 = vcombine.low %v902_v31, %v910_v32  ;;  %v997_v23 = vld [vmem:[#allocation2 + $0x17b0] sm:$0xff] }
 0x3cb   :  { %v17479_v46 = vcombine.high %v918_v42, %v926_v25  ;;  %v17478_v52 = vcombine.low %v918_v42, %v926_v25  ;;  %v1005_v30 = vld [vmem:[#allocation2 + $0x17f0] sm:$0xff]  ;;  %v6152_v42 = vld [vmem:[#allocation4] sm:$0xff] }
 0x3cc   :  { %v6156_v25 = vld [vmem:[#allocation4 + $0x20] sm:$0xff]  ;;  %v17556_v47 = vcombine.low %v997_v23, %v1005_v30 }
 0x3cd   :  { %5759 = vmatpush1.bf16.msra.mxu0 %v17364_v49  ;;  %5882 = vmatpush1.bf16.msra.mxu1 %v17366_v50  ;;  %v20545_v49 = vshrl.u32 %v1012_v41, 7  ;;  %v934_v50 = vld [vmem:[#allocation2 + $0x15b8] sm:$0xff] }
 0x3ce   :  { %5760 = vmatprep.subr.bf16.mxu0 %v17381_v51  ;;  %5883 = vmatprep.subr.bf16.mxu1 %v17383_v34  ;;  %v942_v51 = vld [vmem:[#allocation2 + $0x15f8] sm:$0xff]  ;;  %v17476_v34 = vcombine.low %v917_v39, %v925_v40  ;;  %v17557_v39 = vcombine.high %v997_v23, %v1005_v30 }
 0x3cf   :  { %v17495_v57 = vcombine.high %v934_v50, %v942_v51  ;;  %v17494_v63 = vcombine.low %v934_v50, %v942_v51  ;;  %v17561_v50 = vcombine.high %v6152_v42, %v6156_v25 }
 0x3d1   :  { %5761 = vmatpush1.bf16.msra.mxu0 %v17380_v55  ;;  %5884 = vmatpush1.bf16.msra.mxu1 %v17382_v56  ;;  %v957_v55 = vld [vmem:[#allocation2 + $0x1670] sm:$0xff]  ;;  %v20548_v56 = vsub.s32 1, %v20545_v49 }
 0x3d2   :  { %5762 = vmatprep.subr.bf16.mxu0 %v17397_v58  ;;  %5885 = vmatprep.subr.bf16.mxu1 %v17399_v59  ;;  %v950_v58 = vld [vmem:[#allocation2 + $0x1638] sm:$0xff]  ;;  %v17509_v0 = vcombine.high %v949_v54, %v957_v55  ;;  %v17508_v11 = vcombine.low %v949_v54, %v957_v55  ;;  %v6161_v54 = vld [vmem:[#allocation4 + $0x48] sm:$0xff] }
 0x3d3   :  { %v958_v59 = vld [vmem:[#allocation2 + $0x1678] sm:$0xff]  ;;  %v5945_v32 = vrot.slane %v20555_v24, %v20548_v56  ;;  %v6165_v55 = vld [vmem:[#allocation4 + $0x68] sm:$0xff] }
 0x3d4   :  { %v17510_v13 = vcombine.low %v950_v58, %v958_v59 }
 0x3d5   :  { %5763 = vmatpush1.bf16.msra.mxu0 %v17396_v3  ;;  %5886 = vmatpush1.bf16.msra.mxu1 %v17398_v4  ;;  %v17511_v3 = vcombine.high %v950_v58, %v958_v59  ;;  %v965_v4 = vld [vmem:[#allocation2 + $0x16b0] sm:$0xff] }
 0x3d6   :  { %5764 = vmatprep.subr.bf16.mxu0 %v17413_v6  ;;  %5887 = vmatprep.subr.bf16.mxu1 %v17415_v7  ;;  %v973_v6 = vld [vmem:[#allocation2 + $0x16f0] sm:$0xff]  ;;  %v1019_v7 = vrot.slane %v20550_v60, %v20548_v56 }
 0x3d8   :  { %v19014_v20 = vadd.f32 %v20512_v2, %v1019_v7  ;;  %v1006_v2 = vld [vmem:[#allocation2 + $0x17f8] sm:$0xff] }
 0x3d9   :  { %5765 = vmatpush1.bf16.msra.mxu0 %v17412_v14  ;;  %5888 = vmatpush1.bf16.msra.mxu1 %v17414_v17  ;;  %v17525_v14 = vcombine.high %v965_v4, %v973_v6  ;;  %v17527_v17 = vcombine.high %v966_v8, %v974_v9 }
 0x3da   :  { %5766 = vmatprep.subr.bf16.mxu0 %v17429_v12  ;;  %5889 = vmatprep.subr.bf16.mxu1 %v17431_v18  ;;  %v981_v12 = vld [vmem:[#allocation2 + $0x1730] sm:$0xff]  ;;  %v5917_v31 = vmax.f32 %v19014_v20, 0.0 }
 0x3db   :  { %v989_v18 = vld [vmem:[#allocation2 + $0x1770] sm:$0xff] }
 0x3dd   :  { %5767 = vmatpush1.bf16.msra.mxu0 %v17428_v26  ;;  %5890 = vmatpush1.bf16.msra.mxu1 %v17430_v27  ;;  %v17524_v26 = vcombine.low %v965_v4, %v973_v6  ;;  %v17526_v27 = vcombine.low %v966_v8, %v974_v9  ;;  %v6169_v4 = vld [vmem:[#allocation4 + $0x88] sm:$0xff]  ;;  %v17570_v8 = vcombine.low %v6161_v54, %v6165_v55 }
 0x3de   :  { %5768 = vmatprep.subr.bf16.mxu0 %v17445_v28  ;;  %5891 = vmatprep.subr.bf16.mxu1 %v17447_v29  ;;  %v17541_v28 = vcombine.high %v981_v12, %v989_v18  ;;  %v17543_v29 = vcombine.high %v982_v21, %v990_v22  ;;  %v6173_v6 = vld [vmem:[#allocation4 + $0xa8] sm:$0xff] }
 0x3e1   :  { %5769 = vmatpush1.bf16.msra.mxu0 %v17444_v33  ;;  %5892 = vmatpush1.bf16.msra.mxu1 %v17446_v35  ;;  %v998_v33 = vld [vmem:[#allocation2 + $0x17b8] sm:$0xff] }
 0x3e2   :  { %5770 = vmatprep.subr.bf16.mxu0 %v17461_v36  ;;  %5893 = vmatprep.subr.bf16.mxu1 %v17463_v37  ;;  %v20559_v35 = vld [vmem:[#allocation9 + $0x2] ss:$4 sm:$0xff]  ;;  %v17540_v36 = vcombine.low %v981_v12, %v989_v18  ;;  %v17542_v37 = vcombine.low %v982_v21, %v990_v22  ;;  %v17559_v40 = vcombine.high %v998_v33, %v1006_v2 }
 0x3e3   :  { %v17558_v48 = vcombine.low %v998_v33, %v1006_v2  ;;  %v6181_v12 = vld [vmem:[#allocation4 + $0xe8] sm:$0xff]  ;;  %v6184_v22 = vld [vmem:[#allocation4 + $0x100] sm:$0xff] }
 0x3e4   :  { %v6196_v33 = vld [vmem:[#allocation4 + $0x160] sm:$0xff]  ;;  %v6193_v2 = vld [vmem:[#allocation4 + $0x148] sm:$0xff] }
 0x3e5   :  { %5771 = vmatpush1.bf16.msra.mxu0 %v17460_v43  ;;  %5894 = vmatpush1.bf16.msra.mxu1 %v17462_v44  ;;  %v6019_v43 = vmul.f32 %v5945_v32, %v5917_v31  ;;  %v6047_v44 = vrot.slane %v20559_v35, %v20548_v56  ;;  %v6192_v32 = vld [vmem:[#allocation4 + $0x140] sm:$0xff] }
 0x3e6   :  { %5772 = vmatprep.subr.bf16.mxu0 %v17477_v45  ;;  %5895 = vmatprep.subr.bf16.mxu1 %v17479_v46  ;;  %v6153_v45 = vld [vmem:[#allocation4 + $0x8] sm:$0xff] }
 0x3e7   :  { %v6157_v46 = vld [vmem:[#allocation4 + $0x28] sm:$0xff] }
 0x3e8   :  { %v17563_v51 = vcombine.high %v6153_v45, %v6157_v46  ;;  %v17562_v58 = vcombine.low %v6153_v45, %v6157_v46  ;;  %v6205_v45 = vld [vmem:[#allocation4 + $0x1a8] sm:$0xff]  ;;  %v17600_v46 = vcombine.low %v6192_v32, %v6196_v33 }
 0x3e9   :  { %5773 = vmatpush1.bf16.msra.mxu0 %v17476_v34  ;;  %5896 = vmatpush1.bf16.msra.mxu1 %v17478_v52  ;;  %v6121_v34 = vadd.f32 %v6047_v44, %v6019_v43  ;;  %v6160_v52 = vld [vmem:[#allocation4 + $0x40] sm:$0xff]  ;;  %v6201_v44 = vld [vmem:[#allocation4 + $0x188] sm:$0xff] }
 0x3ea   :  { %5774 = vmatprep.subr.bf16.mxu0 %v17493_v53  ;;  %5897 = vmatprep.subr.bf16.mxu1 %v17495_v57  ;;  %v6164_v53 = vld [vmem:[#allocation4 + $0x60] sm:$0xff]  ;;  %v17560_v57 = vcombine.low %v6152_v42, %v6156_v25 }
 0x3eb   :  { %v17569_v59 = vcombine.high %v6160_v52, %v6164_v53  ;;  %v17568_v7 = vcombine.low %v6160_v52, %v6164_v53  ;;  %v6200_v25 = vld [vmem:[#allocation4 + $0x180] sm:$0xff] }
 0x3ec   :  { %v6204_v43 = vld [vmem:[#allocation4 + $0x1a0] sm:$0xff] }
 0x3ed   :  { %5775 = vmatpush1.bf16.msra.mxu0 %v17492_v62  ;;  %5898 = vmatpush1.bf16.msra.mxu1 %v17494_v63  ;;  %v6168_v62 = vld [vmem:[#allocation4 + $0x80] sm:$0xff] }
 0x3ee   :  { %5776 = vmatprep.subr.bf16.mxu0 %v17509_v0  ;;  %5899 = vmatprep.subr.bf16.mxu1 %v17511_v3  ;;  %v6172_v63 = vld [vmem:[#allocation4 + $0xa0] sm:$0xff]  ;;  %v20563_v0 = vpack.c.bf16 %v6121_v34, %v6121_v34  ;;  %v17571_v3 = vcombine.high %v6161_v54, %v6165_v55  ;;  %v6209_v54 = vld [vmem:[#allocation4 + $0x1c8] sm:$0xff] }
 0x3ef   :  { %v17577_v9 = vcombine.high %v6168_v62, %v6172_v63  ;;  %v17576_v18 = vcombine.low %v6168_v62, %v6172_v63  ;;  %v6208_v34 = vld [vmem:[#allocation4 + $0x1c0] sm:$0xff]  ;;  %v6213_v55 = vld [vmem:[#allocation4 + $0x1e8] sm:$0xff]  ;;  %v17608_v62 = vcombine.low %v6200_v25, %v6204_v43 }
 0x3f0   :  { %v6212_v52 = vld [vmem:[#allocation4 + $0x1e0] sm:$0xff] }
 0x3f1   :  { %5777 = vmatpush1.bf16.msra.mxu0 %v17508_v11  ;;  %5900 = vmatpush1.bf16.msra.mxu1 %v17510_v13  ;;  %v17579_v11 = vcombine.high %v6169_v4, %v6173_v6  ;;  %v6176_v13 = vld [vmem:[#allocation4 + $0xc0] sm:$0xff] }
 0x3f2   :  { %5778 = vmatprep.subr.bf16.mxu0 %v17525_v14  ;;  %5901 = vmatprep.subr.bf16.mxu1 %v17527_v17  ;;  %v6180_v14 = vld [vmem:[#allocation4 + $0xe0] sm:$0xff]  ;;  %v6177_v17 = vld [vmem:[#allocation4 + $0xc8] sm:$0xff] }
 0x3f3   :  { %v17585_v20 = vcombine.high %v6176_v13, %v6180_v14  ;;  %v17587_v21 = vcombine.high %v6177_v17, %v6181_v12  ;;  %v17586_v23 = vcombine.low %v6177_v17, %v6181_v12  ;;  %v17616_v17 = vcombine.low %v6208_v34, %v6212_v52 }
 0x3f4   :  { %v17618_v12 = vcombine.low %v6209_v54, %v6213_v55 }
 0x3f5   :  { %5779 = vmatpush1.bf16.msra.mxu0 %v17524_v26  ;;  %5902 = vmatpush1.bf16.msra.mxu1 %v17526_v27  ;;  %v6188_v26 = vld [vmem:[#allocation4 + $0x120] sm:$0xff]  ;;  %v6185_v27 = vld [vmem:[#allocation4 + $0x108] sm:$0xff] }
 0x3f6   :  { %5780 = vmatprep.subr.bf16.mxu0 %v17541_v28  ;;  %5903 = vmatprep.subr.bf16.mxu1 %v17543_v29  ;;  %v6189_v28 = vld [vmem:[#allocation4 + $0x128] sm:$0xff]  ;;  %v17584_v29 = vcombine.low %v6176_v13, %v6180_v14  ;;  %v17593_v30 = vcombine.high %v6184_v22, %v6188_v26 }
 0x3f7   :  { %v17595_v31 = vcombine.high %v6185_v27, %v6189_v28  ;;  %v6217_v13 = vld [vmem:[#allocation4 + $0x208] sm:$0xff] }
 0x3f8   :  { %v6221_v14 = vld [vmem:[#allocation4 + $0x228] sm:$0xff] }
 0x3f9   :  { %5781 = vmatpush1.bf16.msra.mxu0 %v17540_v36  ;;  %5904 = vmatpush1.bf16.msra.mxu1 %v17542_v37  ;;  %v6197_v36 = vld [vmem:[#allocation4 + $0x168] sm:$0xff]  ;;  %v17592_v37 = vcombine.low %v6184_v22, %v6188_v26 }
 0x3fa   :  { %5782 = vmatprep.subr.bf16.mxu0 %v17557_v39  ;;  %5905 = vmatprep.subr.bf16.mxu1 %v17559_v40  ;;  %v17594_v39 = vcombine.low %v6185_v27, %v6189_v28  ;;  %v17601_v40 = vcombine.high %v6192_v32, %v6196_v33  ;;  %v17603_v42 = vcombine.high %v6193_v2, %v6197_v36  ;;  %v6225_v22 = vld [vmem:[#allocation4 + $0x248] sm:$0xff] }
 0x3fb   :  { %v6229_v26 = vld [vmem:[#allocation4 + $0x268] sm:$0xff]  ;;  %v17626_v28 = vcombine.low %v6217_v13, %v6221_v14 }
 0x3fc   :  { %v6233_v32 = vld [vmem:[#allocation4 + $0x288] sm:$0xff] }
 0x3fd   :  { %5783 = vmatpush1.bf16.msra.mxu0 %v17556_v47  ;;  %5906 = vmatpush1.bf16.msra.mxu1 %v17558_v48  ;;  %v17602_v47 = vcombine.low %v6193_v2, %v6197_v36  ;;  %v17609_v48 = vcombine.high %v6200_v25, %v6204_v43  ;;  %v6237_v33 = vld [vmem:[#allocation4 + $0x2a8] sm:$0xff]  ;;  %v17634_v36 = vcombine.low %v6225_v22, %v6229_v26 }
 0x3fe   :  { %12338 = vmatprep.subr.bf16.mxu0 %v17561_v50  ;;  %12666 = vmatprep.subr.bf16.mxu1 %v17563_v51  ;;  %v17611_v51 = vcombine.high %v6201_v44, %v6205_v45  ;;  %v6241_v25 = vld [vmem:[#allocation4 + $0x2c8] sm:$0xff] }
 0x3ff   :  { %v6245_v43 = vld [vmem:[#allocation4 + $0x2e8] sm:$0xff] }
 0x400   :  { %5785 = vmatmul.mubr.bf16.vlgmr.msra.gmra.mrb[12].mxu0 %v20490_v38  ;;  %5908 = vmatmul.mubr.bf16.vlgmr.msra.gmra.mrb[12].mxu1 %v20490_v38  ;;  %v17578_v38 = vcombine.low %v6169_v4, %v6173_v6  ;;  %v17610_v4 = vcombine.low %v6201_v44, %v6205_v45  ;;  %v17617_v6 = vcombine.high %v6208_v34, %v6212_v52  ;;  %v20578_v45 = vsub.s32 0, %v20545_v49  ;;  %v6252_v34 = vld [vmem:[#allocation4 + $0x320] sm:$0xff] }
 0x401   :  { %12339 = vmatpush1.bf16.msra.mxu0 %v17560_v57  ;;  %12370 = vmatprep.mubr.bf16.mxu0 %v20563_v0  ;;  %v20581_v52 = vsub.s32 3, %v20545_v49 }
 0x402   :  { %12667 = vmatpush1.bf16.msra.mxu1 %v17562_v58  ;;  %12698 = vmatprep.mubr.bf16.mxu1 %v20563_v0 }
 0x403   :  { %12340 = vmatprep.subr.bf16.mxu0 %v17569_v59  ;;  %12668 = vmatprep.subr.bf16.mxu1 %v17571_v3 }
 0x405   :  { %12341 = vmatpush1.bf16.msra.mxu0 %v17568_v7 }
 0x406   :  { %12669 = vmatpush1.bf16.msra.mxu1 %v17570_v8  ;;  %12342 = vmatprep.subr.bf16.mxu0 %v17577_v9  ;;  %v17619_v8 = vcombine.high %v6209_v54, %v6213_v55  ;;  %v6216_v9 = vld [vmem:[#allocation4 + $0x200] sm:$0xff]  ;;  %v6249_v54 = vld [vmem:[#allocation4 + $0x308] sm:$0xff] }
 0x407   :  { %12670 = vmatprep.subr.bf16.mxu1 %v17579_v11  ;;  %v6220_v11 = vld [vmem:[#allocation4 + $0x220] sm:$0xff]  ;;  %v6253_v55 = vld [vmem:[#allocation4 + $0x328] sm:$0xff] }
 0x408   :  { %v17624_v27 = vcombine.low %v6216_v9, %v6220_v11 }
 0x409   :  { %12343 = vmatpush1.bf16.msra.mxu0 %v17576_v18  ;;  %v17625_v18 = vcombine.high %v6216_v9, %v6220_v11  ;;  %v6257_v9 = vld [vmem:[#allocation4 + $0x348] sm:$0xff] }
 0x40a   :  { %12671 = vmatpush1.bf16.msra.mxu1 %v17578_v38  ;;  %12344 = vmatprep.subr.bf16.mxu0 %v17585_v20  ;;  %v17627_v38 = vcombine.high %v6217_v13, %v6221_v14  ;;  %v6224_v20 = vld [vmem:[#allocation4 + $0x240] sm:$0xff]  ;;  %v6261_v11 = vld [vmem:[#allocation4 + $0x368] sm:$0xff] }
 0x40b   :  { %12672 = vmatprep.subr.bf16.mxu1 %v17587_v21  ;;  %v6228_v21 = vld [vmem:[#allocation4 + $0x260] sm:$0xff] }
 0x40c   :  { %v17632_v2 = vcombine.low %v6224_v20, %v6228_v21 }
 0x40d   :  { %12345 = vmatpush1.bf16.msra.mxu0 %v17584_v29  ;;  %v17633_v29 = vcombine.high %v6224_v20, %v6228_v21  ;;  %v6268_v20 = vld [vmem:[#allocation4 + $0x3a0] sm:$0xff] }
 0x40e   :  { %12673 = vmatpush1.bf16.msra.mxu1 %v17586_v23  ;;  %12346 = vmatprep.subr.bf16.mxu0 %v17593_v30  ;;  %v17635_v23 = vcombine.high %v6225_v22, %v6229_v26  ;;  %v6232_v30 = vld [vmem:[#allocation4 + $0x280] sm:$0xff]  ;;  %v6265_v22 = vld [vmem:[#allocation4 + $0x388] sm:$0xff] }
 0x40f   :  { %12674 = vmatprep.subr.bf16.mxu1 %v17595_v31  ;;  %v6236_v31 = vld [vmem:[#allocation4 + $0x2a0] sm:$0xff]  ;;  %v6269_v26 = vld [vmem:[#allocation4 + $0x3a8] sm:$0xff] }
 0x410   :  { %v17640_v44 = vcombine.low %v6232_v30, %v6236_v31 }
 0x411   :  { %12347 = vmatpush1.bf16.msra.mxu0 %v17592_v37  ;;  %v17641_v37 = vcombine.high %v6232_v30, %v6236_v31  ;;  %v17675_v30 = vcombine.high %v6265_v22, %v6269_v26  ;;  %v6272_v31 = vld [vmem:[#allocation4 + $0x3c0] sm:$0xff] }
 0x412   :  { %12675 = vmatpush1.bf16.msra.mxu1 %v17594_v39  ;;  %12348 = vmatprep.subr.bf16.mxu0 %v17601_v40  ;;  %v17643_v39 = vcombine.high %v6233_v32, %v6237_v33  ;;  %v6240_v40 = vld [vmem:[#allocation4 + $0x2c0] sm:$0xff] }
 0x413   :  { %v20569_v50 = vpop.f32.mrb[8].mxu0  ;;  %12676 = vmatprep.subr.bf16.mxu1 %v17603_v42  ;;  %v20571_v53 = vpop.f32.mrb[8].mxu1  ;;  %v6244_v42 = vld [vmem:[#allocation4 + $0x2e0] sm:$0xff] }
 0x414   :  { %v20573_v57 = vpop.f32.mrb[9].mxu0  ;;  %v20575_v58 = vpop.f32.mrb[9].mxu1 }
 0x415   :  { %v5544_v59 = vpop.f32.mrb[10].mxu0  ;;  %12349 = vmatpush1.bf16.msra.mxu0 %v17600_v46  ;;  %v5667_v63 = vpop.f32.mrb[10].mxu1  ;;  %v17642_v46 = vcombine.low %v6233_v32, %v6237_v33  ;;  %v6276_v32 = vld [vmem:[#allocation4 + $0x3e0] sm:$0xff] }
 0x416   :  { %12677 = vmatpush1.bf16.msra.mxu1 %v17602_v47  ;;  %v5545_v3 = vpop.f32.mrb[11].mxu0  ;;  %12350 = vmatprep.subr.bf16.mxu0 %v17609_v48  ;;  %v5668_v7 = vpop.f32.mrb[11].mxu1  ;;  %v17649_v47 = vcombine.high %v6240_v40, %v6244_v42  ;;  %v17651_v48 = vcombine.high %v6241_v25, %v6245_v43  ;;  %v17648_v59 = vcombine.low %v6240_v40, %v6244_v42 }
 0x417   :  { %12678 = vmatprep.subr.bf16.mxu1 %v17611_v51  ;;  %v6248_v51 = vld [vmem:[#allocation4 + $0x300] sm:$0xff]  ;;  %v17650_v63 = vcombine.low %v6241_v25, %v6245_v43  ;;  %v17674_v42 = vcombine.low %v6265_v22, %v6269_v26  ;;  %v17681_v25 = vcombine.high %v6272_v31, %v6276_v32 }
 0x418   :  { %v17657_v3 = vcombine.high %v6248_v51, %v6252_v34  ;;  %v6260_v7 = vld [vmem:[#allocation4 + $0x360] sm:$0xff]  ;;  %v17656_v13 = vcombine.low %v6248_v51, %v6252_v34  ;;  %v6281_v51 = vld [vmem:[#allocation4 + $0x408] sm:$0xff] }
 0x419   :  { %12351 = vmatpush1.bf16.msra.mxu0 %v17608_v62  ;;  %v1015_v62 = vrot.slane %v20550_v60, %v20578_v45  ;;  %v6285_v34 = vld [vmem:[#allocation4 + $0x428] sm:$0xff] }
 0x41a   :  { %12679 = vmatpush1.bf16.msra.mxu1 %v17610_v4  ;;  %12352 = vmatprep.subr.bf16.mxu0 %v17617_v6  ;;  %v17659_v4 = vcombine.high %v6249_v54, %v6253_v55  ;;  %v6256_v6 = vld [vmem:[#allocation4 + $0x340] sm:$0xff] }
 0x41b   :  { %12680 = vmatprep.subr.bf16.mxu1 %v17619_v8  ;;  %v1027_v8 = vrot.slane %v20550_v60, %v20581_v52  ;;  %v19013_v14 = vadd.f32 %v20508_v61, %v1015_v62  ;;  %v17666_v61 = vcombine.low %v6257_v9, %v6261_v11 }
 0x41d   :  { %12353 = vmatpush1.bf16.msra.mxu0 %v17616_v17  ;;  %v17658_v17 = vcombine.low %v6249_v54, %v6253_v55  ;;  %v19016_v21 = vadd.f32 %v20514_v5, %v1027_v8  ;;  %v5953_v5 = vrot.slane %v20555_v24, %v20581_v52  ;;  %v17680_v54 = vcombine.low %v6272_v31, %v6276_v32  ;;  %v6289_v8 = vld [vmem:[#allocation4 + $0x448] sm:$0xff] }
 0x41e   :  { %12681 = vmatpush1.bf16.msra.mxu1 %v17618_v12  ;;  %12354 = vmatprep.subr.bf16.mxu0 %v17625_v18  ;;  %v17665_v12 = vcombine.high %v6256_v6, %v6260_v7  ;;  %v17667_v18 = vcombine.high %v6257_v9, %v6261_v11  ;;  %v6293_v9 = vld [vmem:[#allocation4 + $0x468] sm:$0xff] }
 0x41f   :  { %12682 = vmatprep.subr.bf16.mxu1 %v17627_v38  ;;  %v6264_v38 = vld [vmem:[#allocation4 + $0x380] sm:$0xff]  ;;  %v5919_v33 = vmax.f32 %v19016_v21, 0.0  ;;  %v6301_v21 = vld [vmem:[#allocation4 + $0x4a8] sm:$0xff]  ;;  %v17698_v26 = vcombine.low %v6289_v8, %v6293_v9 }
 0x421   :  { %12355 = vmatpush1.bf16.msra.mxu0 %v17624_v27  ;;  %v17664_v27 = vcombine.low %v6256_v6, %v6260_v7  ;;  %v6292_v6 = vld [vmem:[#allocation4 + $0x460] sm:$0xff] }
 0x422   :  { %12683 = vmatpush1.bf16.msra.mxu1 %v17626_v28  ;;  %12356 = vmatprep.subr.bf16.mxu0 %v17633_v29  ;;  %v5916_v28 = vmax.f32 %v19013_v14, 0.0  ;;  %v5941_v29 = vrot.slane %v20555_v24, %v20578_v45 }
 0x423   :  { %12684 = vmatprep.subr.bf16.mxu1 %v17635_v23  ;;  %v17673_v23 = vcombine.high %v6264_v38, %v6268_v20 }
 0x424   :  { %v6018_v40 = vmul.f32 %v5941_v29, %v5916_v28  ;;  %v6304_v29 = vld [vmem:[#allocation4 + $0x4c0] sm:$0xff] }
 0x425   :  { %12357 = vmatpush1.bf16.msra.mxu0 %v17632_v2  ;;  %v6273_v2 = vld [vmem:[#allocation4 + $0x3c8] sm:$0xff] }
 0x426   :  { %12685 = vmatpush1.bf16.msra.mxu1 %v17634_v36  ;;  %12358 = vmatprep.subr.bf16.mxu0 %v17641_v37  ;;  %v6277_v36 = vld [vmem:[#allocation4 + $0x3e8] sm:$0xff]  ;;  %v6043_v37 = vrot.slane %v20559_v35, %v20578_v45 }
 0x427   :  { %12686 = vmatprep.subr.bf16.mxu1 %v17643_v39  ;;  %v17672_v39 = vcombine.low %v6264_v38, %v6268_v20  ;;  %v17683_v43 = vcombine.high %v6273_v2, %v6277_v36  ;;  %v17699_v38 = vcombine.high %v6289_v8, %v6293_v9  ;;  %v6297_v20 = vld [vmem:[#allocation4 + $0x488] sm:$0xff]  ;;  %v6336_v9 = vld [vmem:[#allocation4 + $0x5c0] sm:$0xff] }
 0x428   :  { %v6120_v55 = vadd.f32 %v6043_v37, %v6018_v40  ;;  %v17707_v28 = vcombine.high %v6297_v20, %v6301_v21  ;;  %v17706_v32 = vcombine.low %v6297_v20, %v6301_v21  ;;  %v6313_v37 = vld [vmem:[#allocation4 + $0x508] sm:$0xff] }
 0x429   :  { %12359 = vmatpush1.bf16.msra.mxu0 %v17640_v44  ;;  %v6280_v44 = vld [vmem:[#allocation4 + $0x400] sm:$0xff] }
 0x42a   :  { %12687 = vmatpush1.bf16.msra.mxu1 %v17642_v46  ;;  %12360 = vmatprep.subr.bf16.mxu0 %v17649_v47  ;;  %v6284_v46 = vld [vmem:[#allocation4 + $0x420] sm:$0xff]  ;;  %v6021_v47 = vmul.f32 %v5953_v5, %v5919_v33  ;;  %v20597_v11 = vpack.c.bf16 %v6120_v55, %v6120_v55 }
 0x42b   :  { %12688 = vmatprep.subr.bf16.mxu1 %v17651_v48  ;;  %v6055_v48 = vrot.slane %v20559_v35, %v20581_v52  ;;  %v17689_v62 = vcombine.high %v6280_v44, %v6284_v46  ;;  %v17688_v7 = vcombine.low %v6280_v44, %v6284_v46  ;;  %v6320_v44 = vld [vmem:[#allocation4 + $0x540] sm:$0xff] }
 0x42c   :  { %v6324_v46 = vld [vmem:[#allocation4 + $0x560] sm:$0xff] }
 0x42d   :  { %12361 = vmatpush1.bf16.msra.mxu0 %v17648_v59  ;;  %v17682_v59 = vcombine.low %v6273_v2, %v6277_v36  ;;  %v6312_v2 = vld [vmem:[#allocation4 + $0x500] sm:$0xff] }
 0x42e   :  { %12689 = vmatpush1.bf16.msra.mxu1 %v17650_v63  ;;  %12362 = vmatprep.subr.bf16.mxu0 %v17657_v3  ;;  %v17691_v63 = vcombine.high %v6281_v51, %v6285_v34  ;;  %v6123_v3 = vadd.f32 %v6055_v48, %v6021_v47  ;;  %v6316_v36 = vld [vmem:[#allocation4 + $0x520] sm:$0xff]  ;;  %v6321_v47 = vld [vmem:[#allocation4 + $0x548] sm:$0xff] }
 0x42f   :  { %12690 = vmatprep.subr.bf16.mxu1 %v17659_v4  ;;  %v6288_v4 = vld [vmem:[#allocation4 + $0x440] sm:$0xff]  ;;  %v6325_v48 = vld [vmem:[#allocation4 + $0x568] sm:$0xff] }
 0x430   :  { %v17697_v14 = vcombine.high %v6288_v4, %v6292_v6  ;;  %v17696_v22 = vcombine.low %v6288_v4, %v6292_v6  ;;  %v17731_v55 = vcombine.high %v6321_v47, %v6325_v48  ;;  %v17728_v4 = vcombine.low %v6320_v44, %v6324_v46 }
 0x431   :  { %12363 = vmatpush1.bf16.msra.mxu0 %v17656_v13  ;;  %v17690_v13 = vcombine.low %v6281_v51, %v6285_v34  ;;  %v17720_v51 = vcombine.low %v6312_v2, %v6316_v36  ;;  %v17730_v6 = vcombine.low %v6321_v47, %v6325_v48 }
 0x432   :  { %12691 = vmatpush1.bf16.msra.mxu1 %v17658_v17  ;;  %12364 = vmatprep.subr.bf16.mxu0 %v17665_v12  ;;  %v6296_v17 = vld [vmem:[#allocation4 + $0x480] sm:$0xff] }
 0x433   :  { %12692 = vmatprep.subr.bf16.mxu1 %v17667_v18  ;;  %v6300_v12 = vld [vmem:[#allocation4 + $0x4a0] sm:$0xff]  ;;  %v20599_v18 = vpack.c.bf16 %v6123_v3, %v6123_v3  ;;  %v6333_v3 = vld [vmem:[#allocation4 + $0x5a8] sm:$0xff] }
 0x434   :  { %v17704_v31 = vcombine.low %v6296_v17, %v6300_v12 }
 0x435   :  { %12365 = vmatpush1.bf16.msra.mxu0 %v17664_v27  ;;  %v17705_v27 = vcombine.high %v6296_v17, %v6300_v12  ;;  %v6341_v17 = vld [vmem:[#allocation4 + $0x5e8] sm:$0xff] }
 0x436   :  { %12693 = vmatpush1.bf16.msra.mxu1 %v17666_v61  ;;  %12366 = vmatprep.subr.bf16.mxu0 %v17673_v23  ;;  %v6308_v61 = vld [vmem:[#allocation4 + $0x4e0] sm:$0xff]  ;;  %v6305_v23 = vld [vmem:[#allocation4 + $0x4c8] sm:$0xff] }
 0x437   :  { %12694 = vmatprep.subr.bf16.mxu1 %v17675_v30  ;;  %v6309_v30 = vld [vmem:[#allocation4 + $0x4e8] sm:$0xff]  ;;  %v17713_v33 = vcombine.high %v6304_v29, %v6308_v61  ;;  %v17712_v40 = vcombine.low %v6304_v29, %v6308_v61 }
 0x438   :  { %v17715_v5 = vcombine.high %v6305_v23, %v6309_v30 }
 0x439   :  { %12367 = vmatpush1.bf16.msra.mxu0 %v17672_v39  ;;  %v6317_v39 = vld [vmem:[#allocation4 + $0x528] sm:$0xff] }
 0x43a   :  { %12695 = vmatpush1.bf16.msra.mxu1 %v17674_v42  ;;  %12368 = vmatprep.subr.bf16.mxu0 %v17681_v25  ;;  %v17714_v42 = vcombine.low %v6305_v23, %v6309_v30  ;;  %v17721_v25 = vcombine.high %v6312_v2, %v6316_v36  ;;  %v17722_v34 = vcombine.low %v6313_v37, %v6317_v39 }
 0x43b   :  { %12696 = vmatprep.subr.bf16.mxu1 %v17683_v43  ;;  %v17723_v43 = vcombine.high %v6313_v37, %v6317_v39 }
 0x43d   :  { %12369 = vmatpush1.bf16.msra.mxu0 %v17680_v54  ;;  %v17729_v54 = vcombine.high %v6320_v44, %v6324_v46 }
 0x43e   :  { %12697 = vmatpush1.bf16.msra.mxu1 %v17682_v59  ;;  %12379 = vmatprep.subr.bf16.mxu0 %v17689_v62  ;;  %v6328_v59 = vld [vmem:[#allocation4 + $0x580] sm:$0xff] }
 0x43f   :  { %12707 = vmatprep.subr.bf16.mxu1 %v17691_v63  ;;  %v6332_v62 = vld [vmem:[#allocation4 + $0x5a0] sm:$0xff]  ;;  %v6329_v63 = vld [vmem:[#allocation4 + $0x588] sm:$0xff] }
 0x440   :  { %12371 = vmatmul.mubr.bf16.vlgmr.msra.gmra.mrb[16].mxu0 %v20597_v11  ;;  %v17739_v8 = vcombine.high %v6329_v63, %v6333_v3  ;;  %v17736_v12 = vcombine.low %v6328_v59, %v6332_v62 }
 0x441   :  { %12699 = vmatmul.mubr.bf16.vlgmr.msra.gmra.mrb[16].mxu1 %v20597_v11  ;;  %12380 = vmatpush1.bf16.msra.mxu0 %v17688_v7  ;;  %v17737_v7 = vcombine.high %v6328_v59, %v6332_v62  ;;  %v20606_v62 = vsub.s32 2, %v20545_v49 }
 0x442   :  { %12411 = vmatprep.mubr.bf16.mxu0 %v20599_v18  ;;  %12708 = vmatpush1.bf16.msra.mxu1 %v17690_v13  ;;  %v6340_v13 = vld [vmem:[#allocation4 + $0x5e0] sm:$0xff] }
 0x443   :  { %12739 = vmatprep.mubr.bf16.mxu1 %v20599_v18  ;;  %12381 = vmatprep.subr.bf16.mxu0 %v17697_v14  ;;  %v6337_v14 = vld [vmem:[#allocation4 + $0x5c8] sm:$0xff]  ;;  %v17745_v20 = vcombine.high %v6336_v9, %v6340_v13  ;;  %v17744_v29 = vcombine.low %v6336_v9, %v6340_v13 }
 0x444   :  { %12709 = vmatprep.subr.bf16.mxu1 %v17699_v38  ;;  %v17738_v38 = vcombine.low %v6329_v63, %v6333_v3  ;;  %v17747_v21 = vcombine.high %v6337_v14, %v6341_v17  ;;  %v17746_v61 = vcombine.low %v6337_v14, %v6341_v17  ;;  %v6377_v9 = vld [vmem:[#allocation4 + $0x708] sm:$0xff]  ;;  %v1023_v17 = vrot.slane %v20550_v60, %v20606_v62 }
 0x445   :  { %12382 = vmatpush1.bf16.msra.mxu0 %v17696_v22  ;;  %v6344_v22 = vld [vmem:[#allocation4 + $0x600] sm:$0xff]  ;;  %v6381_v13 = vld [vmem:[#allocation4 + $0x728] sm:$0xff] }
 0x446   :  { %12710 = vmatpush1.bf16.msra.mxu1 %v17698_v26  ;;  %12383 = vmatprep.subr.bf16.mxu0 %v17705_v27  ;;  %v6348_v26 = vld [vmem:[#allocation4 + $0x620] sm:$0xff]  ;;  %v6345_v27 = vld [vmem:[#allocation4 + $0x608] sm:$0xff] }
 0x447   :  { %12711 = vmatprep.subr.bf16.mxu1 %v17707_v28  ;;  %v6349_v28 = vld [vmem:[#allocation4 + $0x628] sm:$0xff]  ;;  %v17753_v23 = vcombine.high %v6344_v22, %v6348_v26  ;;  %v17752_v2 = vcombine.low %v6344_v22, %v6348_v26  ;;  %v6388_v22 = vld [vmem:[#allocation4 + $0x760] sm:$0xff] }
 0x448   :  { %v17755_v30 = vcombine.high %v6345_v27, %v6349_v28  ;;  %v17754_v36 = vcombine.low %v6345_v27, %v6349_v28  ;;  %v6385_v27 = vld [vmem:[#allocation4 + $0x748] sm:$0xff] }
 0x449   :  { %12384 = vmatpush1.bf16.msra.mxu0 %v17704_v31  ;;  %v6352_v31 = vld [vmem:[#allocation4 + $0x640] sm:$0xff]  ;;  %v6389_v28 = vld [vmem:[#allocation4 + $0x768] sm:$0xff] }
 0x44a   :  { %12712 = vmatpush1.bf16.msra.mxu1 %v17706_v32  ;;  %12385 = vmatprep.subr.bf16.mxu0 %v17713_v33  ;;  %v6356_v32 = vld [vmem:[#allocation4 + $0x660] sm:$0xff]  ;;  %v6353_v33 = vld [vmem:[#allocation4 + $0x648] sm:$0xff] }
 0x44b   :  { %12713 = vmatprep.subr.bf16.mxu1 %v17715_v5  ;;  %v6357_v5 = vld [vmem:[#allocation4 + $0x668] sm:$0xff]  ;;  %v17761_v37 = vcombine.high %v6352_v31, %v6356_v32  ;;  %v17760_v44 = vcombine.low %v6352_v31, %v6356_v32  ;;  %v17795_v31 = vcombine.high %v6385_v27, %v6389_v28  ;;  %v6392_v32 = vld [vmem:[#allocation4 + $0x780] sm:$0xff] }
 0x44c   :  { %v17763_v39 = vcombine.high %v6353_v33, %v6357_v5  ;;  %v17762_v46 = vcombine.low %v6353_v33, %v6357_v5  ;;  %v6396_v33 = vld [vmem:[#allocation4 + $0x7a0] sm:$0xff] }
 0x44d   :  { %12386 = vmatpush1.bf16.msra.mxu0 %v17712_v40  ;;  %v6360_v40 = vld [vmem:[#allocation4 + $0x680] sm:$0xff] }
 0x44e   :  { %12714 = vmatpush1.bf16.msra.mxu1 %v17714_v42  ;;  %12387 = vmatprep.subr.bf16.mxu0 %v17721_v25  ;;  %v6364_v42 = vld [vmem:[#allocation4 + $0x6a0] sm:$0xff]  ;;  %v6361_v25 = vld [vmem:[#allocation4 + $0x688] sm:$0xff] }
 0x44f   :  { %12715 = vmatprep.subr.bf16.mxu1 %v17723_v43  ;;  %v6365_v43 = vld [vmem:[#allocation4 + $0x6a8] sm:$0xff]  ;;  %v17769_v47 = vcombine.high %v6360_v40, %v6364_v42  ;;  %v17768_v59 = vcombine.low %v6360_v40, %v6364_v42  ;;  %v17801_v40 = vcombine.high %v6392_v32, %v6396_v33 }
 0x450   :  { %v17771_v48 = vcombine.high %v6361_v25, %v6365_v43  ;;  %v17770_v63 = vcombine.low %v6361_v25, %v6365_v43  ;;  %v6400_v25 = vld [vmem:[#allocation4 + $0x7c0] sm:$0xff] }
 0x451   :  { %12388 = vmatpush1.bf16.msra.mxu0 %v17720_v51  ;;  %v6368_v51 = vld [vmem:[#allocation4 + $0x6c0] sm:$0xff] }
 0x452   :  { %12716 = vmatpush1.bf16.msra.mxu1 %v17722_v34  ;;  %12389 = vmatprep.subr.bf16.mxu0 %v17729_v54  ;;  %v6372_v34 = vld [vmem:[#allocation4 + $0x6e0] sm:$0xff]  ;;  %v6369_v54 = vld [vmem:[#allocation4 + $0x6c8] sm:$0xff] }
 0x453   :  { %12717 = vmatprep.subr.bf16.mxu1 %v17731_v55  ;;  %v6373_v55 = vld [vmem:[#allocation4 + $0x6e8] sm:$0xff]  ;;  %v17777_v3 = vcombine.high %v6368_v51, %v6372_v34  ;;  %v17776_v14 = vcombine.low %v6368_v51, %v6372_v34  ;;  %v6404_v43 = vld [vmem:[#allocation4 + $0x7e0] sm:$0xff]  ;;  %v17800_v51 = vcombine.low %v6392_v32, %v6396_v33 }
 0x454   :  { %v6425_v32 = vld [vmem:[#allocation4 + $0x888] sm:$0xff] }
 0x455   :  { %12390 = vmatpush1.bf16.msra.mxu0 %v17728_v4  ;;  %v17779_v4 = vcombine.high %v6369_v54, %v6373_v55  ;;  %v6429_v33 = vld [vmem:[#allocation4 + $0x8a8] sm:$0xff] }
 0x456   :  { %12718 = vmatpush1.bf16.msra.mxu1 %v17730_v6  ;;  %12391 = vmatprep.subr.bf16.mxu0 %v17737_v7  ;;  %v6376_v6 = vld [vmem:[#allocation4 + $0x700] sm:$0xff] }
 0x457   :  { %12719 = vmatprep.subr.bf16.mxu1 %v17739_v8  ;;  %v6380_v7 = vld [vmem:[#allocation4 + $0x720] sm:$0xff]  ;;  %v20609_v8 = vsub.s32 5, %v20545_v49 }
 0x459   :  { %12392 = vmatpush1.bf16.msra.mxu0 %v17736_v12  ;;  %v17778_v12 = vcombine.low %v6369_v54, %v6373_v55  ;;  %v1035_v26 = vrot.slane %v20550_v60, %v20609_v8  ;;  %v17809_v55 = vcombine.high %v6400_v25, %v6404_v43 }
 0x45a   :  { %12720 = vmatpush1.bf16.msra.mxu1 %v17738_v38  ;;  %12393 = vmatprep.subr.bf16.mxu0 %v17745_v20  ;;  %v17785_v38 = vcombine.high %v6376_v6, %v6380_v7  ;;  %v17787_v20 = vcombine.high %v6377_v9, %v6381_v13 }
 0x45b   :  { %12721 = vmatprep.subr.bf16.mxu1 %v17747_v21  ;;  %v6384_v21 = vld [vmem:[#allocation4 + $0x740] sm:$0xff]  ;;  %v19018_v5 = vadd.f32 %v20532_v16, %v1035_v26  ;;  %v5961_v16 = vrot.slane %v20555_v24, %v20609_v8  ;;  %v6417_v26 = vld [vmem:[#allocation4 + $0x848] sm:$0xff] }
 0x45c   :  { %v17792_v60 = vcombine.low %v6384_v21, %v6388_v22 }
 0x45d   :  { %12394 = vmatpush1.bf16.msra.mxu0 %v17744_v29  ;;  %v17784_v29 = vcombine.low %v6376_v6, %v6380_v7  ;;  %v6409_v6 = vld [vmem:[#allocation4 + $0x808] sm:$0xff] }
 0x45e   :  { %12722 = vmatpush1.bf16.msra.mxu1 %v17746_v61  ;;  %12395 = vmatprep.subr.bf16.mxu0 %v17753_v23  ;;  %v19015_v61 = vadd.f32 %v20510_v1, %v1023_v17  ;;  %v17786_v23 = vcombine.low %v6377_v9, %v6381_v13  ;;  %v17794_v1 = vcombine.low %v6385_v27, %v6389_v28  ;;  %v6413_v7 = vld [vmem:[#allocation4 + $0x828] sm:$0xff] }
 0x45f   :  { %12723 = vmatprep.subr.bf16.mxu1 %v17755_v30  ;;  %v17793_v30 = vcombine.high %v6384_v21, %v6388_v22  ;;  %v17808_v9 = vcombine.low %v6400_v25, %v6404_v43  ;;  %v6420_v21 = vld [vmem:[#allocation4 + $0x860] sm:$0xff]  ;;  %v6421_v27 = vld [vmem:[#allocation4 + $0x868] sm:$0xff]  ;;  %v17834_v25 = vcombine.low %v6425_v32, %v6429_v33 }
 0x461   :  { %12396 = vmatpush1.bf16.msra.mxu0 %v17752_v2  ;;  %v6393_v2 = vld [vmem:[#allocation4 + $0x788] sm:$0xff] }
 0x462   :  { %12724 = vmatpush1.bf16.msra.mxu1 %v17754_v36  ;;  %12397 = vmatprep.subr.bf16.mxu0 %v17761_v37  ;;  %v6397_v36 = vld [vmem:[#allocation4 + $0x7a8] sm:$0xff]  ;;  %v5918_v37 = vmax.f32 %v19015_v61, 0.0  ;;  %v6424_v61 = vld [vmem:[#allocation4 + $0x880] sm:$0xff] }
 0x463   :  { %12725 = vmatprep.subr.bf16.mxu1 %v17763_v39  ;;  %v5949_v39 = vrot.slane %v20555_v24, %v20606_v62  ;;  %v17803_v42 = vcombine.high %v6393_v2, %v6397_v36  ;;  %v17802_v54 = vcombine.low %v6393_v2, %v6397_v36  ;;  %v6063_v24 = vrot.slane %v20559_v35, %v20609_v8 }
 0x464   :  { %v17826_v2 = vcombine.low %v6417_v26, %v6421_v27 }
 0x465   :  { %12398 = vmatpush1.bf16.msra.mxu0 %v17760_v44  ;;  %v5921_v44 = vmax.f32 %v19018_v5, 0.0  ;;  %v6020_v34 = vmul.f32 %v5949_v39, %v5918_v37  ;;  %v6432_v37 = vld [vmem:[#allocation4 + $0x8c0] sm:$0xff] }
 0x466   :  { %12726 = vmatpush1.bf16.msra.mxu1 %v17762_v46  ;;  %12399 = vmatprep.subr.bf16.mxu0 %v17769_v47  ;;  %v6401_v46 = vld [vmem:[#allocation4 + $0x7c8] sm:$0xff]  ;;  %v6436_v39 = vld [vmem:[#allocation4 + $0x8e0] sm:$0xff] }
 0x467   :  { %12727 = vmatprep.subr.bf16.mxu1 %v17771_v48  ;;  %v6405_v47 = vld [vmem:[#allocation4 + $0x7e8] sm:$0xff]  ;;  %v6051_v48 = vrot.slane %v20559_v35, %v20606_v62  ;;  %v17818_v35 = vcombine.low %v6409_v6, %v6413_v7  ;;  %v17841_v43 = vcombine.high %v6432_v37, %v6436_v39 }
 0x469   :  { %12400 = vmatpush1.bf16.msra.mxu0 %v17768_v59  ;;  %v17811_v59 = vcombine.high %v6401_v46, %v6405_v47  ;;  %v6122_v13 = vadd.f32 %v6051_v48, %v6020_v34  ;;  %v6445_v48 = vld [vmem:[#allocation4 + $0x928] sm:$0xff] }
 0x46a   :  { %12728 = vmatpush1.bf16.msra.mxu1 %v17770_v63  ;;  %12401 = vmatprep.subr.bf16.mxu0 %v17777_v3  ;;  %v6408_v63 = vld [vmem:[#allocation4 + $0x800] sm:$0xff] }
 0x46b   :  { %12729 = vmatprep.subr.bf16.mxu1 %v17779_v4  ;;  %v6412_v3 = vld [vmem:[#allocation4 + $0x820] sm:$0xff]  ;;  %v6023_v4 = vmul.f32 %v5961_v16, %v5921_v44  ;;  %v20625_v28 = vpack.c.bf16 %v6122_v13, %v6122_v13 }
 0x46c   :  { %v17817_v17 = vcombine.high %v6408_v63, %v6412_v3  ;;  %v17816_v22 = vcombine.low %v6408_v63, %v6412_v3  ;;  %v6440_v16 = vld [vmem:[#allocation4 + $0x900] sm:$0xff]  ;;  %v6449_v3 = vld [vmem:[#allocation4 + $0x948] sm:$0xff] }
 0x46d   :  { %12402 = vmatpush1.bf16.msra.mxu0 %v17776_v14  ;;  %v17810_v14 = vcombine.low %v6401_v46, %v6405_v47  ;;  %v6444_v46 = vld [vmem:[#allocation4 + $0x920] sm:$0xff]  ;;  %v6441_v47 = vld [vmem:[#allocation4 + $0x908] sm:$0xff] }
 0x46e   :  { %12730 = vmatpush1.bf16.msra.mxu1 %v17778_v12  ;;  %12403 = vmatprep.subr.bf16.mxu0 %v17785_v38  ;;  %v17819_v12 = vcombine.high %v6409_v6, %v6413_v7  ;;  %v6125_v38 = vadd.f32 %v6063_v24, %v6023_v4  ;;  %v6452_v63 = vld [vmem:[#allocation4 + $0x960] sm:$0xff]  ;;  %v6453_v4 = vld [vmem:[#allocation4 + $0x968] sm:$0xff]  ;;  %v17848_v24 = vcombine.low %v6440_v16, %v6444_v46 }
 0x46f   :  { %12731 = vmatprep.subr.bf16.mxu1 %v17787_v20  ;;  %v6416_v20 = vld [vmem:[#allocation4 + $0x840] sm:$0xff]  ;;  %v17850_v6 = vcombine.low %v6441_v47, %v6445_v48 }
 0x470   :  { %v17824_v5 = vcombine.low %v6416_v20, %v6420_v21  ;;  %v6456_v13 = vld [vmem:[#allocation4 + $0x980] sm:$0xff] }
 0x471   :  { %12404 = vmatpush1.bf16.msra.mxu0 %v17784_v29  ;;  %v17825_v29 = vcombine.high %v6416_v20, %v6420_v21  ;;  %v17858_v20 = vcombine.low %v6449_v3, %v6453_v4 }
 0x472   :  { %12732 = vmatpush1.bf16.msra.mxu1 %v17786_v23  ;;  %12405 = vmatprep.subr.bf16.mxu0 %v17793_v30  ;;  %v6428_v23 = vld [vmem:[#allocation4 + $0x8a0] sm:$0xff]  ;;  %v20627_v30 = vpack.c.bf16 %v6125_v38, %v6125_v38 }
 0x473   :  { %12733 = vmatprep.subr.bf16.mxu1 %v17795_v31  ;;  %v17827_v31 = vcombine.high %v6417_v26, %v6421_v27  ;;  %v17833_v36 = vcombine.high %v6424_v61, %v6428_v23  ;;  %v6464_v26 = vld [vmem:[#allocation4 + $0x9c0] sm:$0xff] }
 0x474   :  { %v6468_v27 = vld [vmem:[#allocation4 + $0x9e0] sm:$0xff] }
 0x475   :  { %12406 = vmatpush1.bf16.msra.mxu0 %v17792_v60  ;;  %v17835_v60 = vcombine.high %v6425_v32, %v6429_v33  ;;  %v6472_v33 = vld [vmem:[#allocation4 + $0xa00] sm:$0xff] }
 0x476   :  { %12734 = vmatpush1.bf16.msra.mxu1 %v17794_v1  ;;  %12407 = vmatprep.subr.bf16.mxu0 %v17801_v40  ;;  %v6433_v1 = vld [vmem:[#allocation4 + $0x8c8] sm:$0xff] }
 0x477   :  { %12735 = vmatprep.subr.bf16.mxu1 %v17803_v42  ;;  %v6437_v40 = vld [vmem:[#allocation4 + $0x8e8] sm:$0xff]  ;;  %v17832_v42 = vcombine.low %v6424_v61, %v6428_v23 }
 0x478   :  { %v17843_v44 = vcombine.high %v6433_v1, %v6437_v40  ;;  %v17842_v34 = vcombine.low %v6433_v1, %v6437_v40  ;;  %v6480_v40 = vld [vmem:[#allocation4 + $0xa40] sm:$0xff] }
 0x479   :  { %12408 = vmatpush1.bf16.msra.mxu0 %v17800_v51  ;;  %v17840_v51 = vcombine.low %v6432_v37, %v6436_v39 }
 0x47a   :  { %12736 = vmatpush1.bf16.msra.mxu1 %v17802_v54  ;;  %12409 = vmatprep.subr.bf16.mxu0 %v17809_v55  ;;  %v17849_v54 = vcombine.high %v6440_v16, %v6444_v46  ;;  %v17851_v55 = vcombine.high %v6441_v47, %v6445_v48  ;;  %v6488_v48 = vld [vmem:[#allocation4 + $0xa80] sm:$0xff] }
 0x47b   :  { %12737 = vmatprep.subr.bf16.mxu1 %v17811_v59  ;;  %v6448_v59 = vld [vmem:[#allocation4 + $0x940] sm:$0xff] }
 0x47c   :  { %v17857_v7 = vcombine.high %v6448_v59, %v6452_v63  ;;  %v17856_v38 = vcombine.low %v6448_v59, %v6452_v63 }
 0x47d   :  { %12410 = vmatpush1.bf16.msra.mxu0 %v17808_v9  ;;  %v17859_v9 = vcombine.high %v6449_v3, %v6453_v4  ;;  %v6496_v4 = vld [vmem:[#allocation4 + $0xac0] sm:$0xff] }
 0x47e   :  { %12738 = vmatpush1.bf16.msra.mxu1 %v17810_v14  ;;  %12420 = vmatprep.subr.bf16.mxu0 %v17817_v17  ;;  %v6460_v14 = vld [vmem:[#allocation4 + $0x9a0] sm:$0xff]  ;;  %v6457_v17 = vld [vmem:[#allocation4 + $0x988] sm:$0xff] }
 0x47f   :  { %12748 = vmatprep.subr.bf16.mxu1 %v17819_v12  ;;  %v6461_v12 = vld [vmem:[#allocation4 + $0x9a8] sm:$0xff]  ;;  %v17865_v21 = vcombine.high %v6456_v13, %v6460_v14  ;;  %v17864_v61 = vcombine.low %v6456_v13, %v6460_v14  ;;  %v20634_v13 = vsub.s32 4, %v20545_v49 }
 0x480   :  { %12412 = vmatmul.mubr.bf16.vlgmr.msra.gmra.mrb[16].mxu0 %v20625_v28  ;;  %v17866_v23 = vcombine.low %v6457_v17, %v6461_v12 }
 0x481   :  { %12740 = vmatmul.mubr.bf16.vlgmr.msra.gmra.mrb[16].mxu1 %v20625_v28  ;;  %12421 = vmatpush1.bf16.msra.mxu0 %v17816_v22  ;;  %v17867_v22 = vcombine.high %v6457_v17, %v6461_v12 }
 0x482   :  { %12452 = vmatprep.mubr.bf16.mxu0 %v20627_v30  ;;  %12749 = vmatpush1.bf16.msra.mxu1 %v17818_v35  ;;  %v6465_v35 = vld [vmem:[#allocation4 + $0x9c8] sm:$0xff] }
 0x483   :  { %12780 = vmatprep.mubr.bf16.mxu1 %v20627_v30  ;;  %12422 = vmatprep.subr.bf16.mxu0 %v17825_v29  ;;  %v6469_v29 = vld [vmem:[#allocation4 + $0x9e8] sm:$0xff] }
 0x484   :  { %12750 = vmatprep.subr.bf16.mxu1 %v17827_v31  ;;  %v17873_v31 = vcombine.high %v6464_v26, %v6468_v27  ;;  %v17875_v32 = vcombine.high %v6465_v35, %v6469_v29  ;;  %v17874_v37 = vcombine.low %v6465_v35, %v6469_v29  ;;  %v20639_v35 = vld [vmem:[#allocation9] ss:$4 sm:$0xff] }
 0x485   :  { %12423 = vmatpush1.bf16.msra.mxu0 %v17824_v5  ;;  %v6476_v5 = vld [vmem:[#allocation4 + $0xa20] sm:$0xff]  ;;  %v1031_v29 = vrot.slane %v20639_v35, %v20634_v13 }
 0x486   :  { %12751 = vmatpush1.bf16.msra.mxu1 %v17826_v2  ;;  %12424 = vmatprep.subr.bf16.mxu0 %v17833_v36  ;;  %v6473_v2 = vld [vmem:[#allocation4 + $0xa08] sm:$0xff]  ;;  %v17881_v39 = vcombine.high %v6472_v33, %v6476_v5 }
 0x487   :  { %12752 = vmatprep.subr.bf16.mxu1 %v17835_v60  ;;  %v6477_v36 = vld [vmem:[#allocation4 + $0xa28] sm:$0xff]  ;;  %v17872_v60 = vcombine.low %v6464_v26, %v6468_v27 }
 0x488   :  { %v17883_v1 = vcombine.high %v6473_v2, %v6477_v36  ;;  %v17882_v16 = vcombine.low %v6473_v2, %v6477_v36  ;;  %v6509_v26 = vld [vmem:[#allocation4 + $0xb28] sm:$0xff] }
 0x489   :  { %12425 = vmatpush1.bf16.msra.mxu0 %v17832_v42  ;;  %v6484_v42 = vld [vmem:[#allocation4 + $0xa60] sm:$0xff]  ;;  %v6513_v2 = vld [vmem:[#allocation4 + $0xb48] sm:$0xff] }
 0x48a   :  { %12753 = vmatpush1.bf16.msra.mxu1 %v17834_v25  ;;  %12426 = vmatprep.subr.bf16.mxu0 %v17841_v43  ;;  %v6481_v25 = vld [vmem:[#allocation4 + $0xa48] sm:$0xff]  ;;  %v17889_v46 = vcombine.high %v6480_v40, %v6484_v42 }
 0x48b   :  { %12754 = vmatprep.subr.bf16.mxu1 %v17843_v44  ;;  %v6485_v43 = vld [vmem:[#allocation4 + $0xa68] sm:$0xff]  ;;  %v17880_v44 = vcombine.low %v6472_v33, %v6476_v5  ;;  %v6516_v33 = vld [vmem:[#allocation4 + $0xb60] sm:$0xff] }
 0x48c   :  { %v17891_v47 = vcombine.high %v6481_v25, %v6485_v43  ;;  %v17890_v59 = vcombine.low %v6481_v25, %v6485_v43  ;;  %v6517_v36 = vld [vmem:[#allocation4 + $0xb68] sm:$0xff]  ;;  %v6524_v25 = vld [vmem:[#allocation4 + $0xba0] sm:$0xff] }
 0x48d   :  { %12427 = vmatpush1.bf16.msra.mxu0 %v17840_v51  ;;  %v6492_v51 = vld [vmem:[#allocation4 + $0xaa0] sm:$0xff] }
 0x48e   :  { %12755 = vmatpush1.bf16.msra.mxu1 %v17842_v34  ;;  %12428 = vmatprep.subr.bf16.mxu0 %v17849_v54  ;;  %v6489_v34 = vld [vmem:[#allocation4 + $0xa88] sm:$0xff]  ;;  %v17897_v63 = vcombine.high %v6488_v48, %v6492_v51 }
 0x48f   :  { %12756 = vmatprep.subr.bf16.mxu1 %v17851_v55  ;;  %v6493_v54 = vld [vmem:[#allocation4 + $0xaa8] sm:$0xff]  ;;  %v17888_v55 = vcombine.low %v6480_v40, %v6484_v42  ;;  %v17923_v40 = vcombine.high %v6513_v2, %v6517_v36  ;;  %v6520_v42 = vld [vmem:[#allocation4 + $0xb80] sm:$0xff] }
 0x490   :  { %v17899_v3 = vcombine.high %v6489_v34, %v6493_v54  ;;  %v17898_v14 = vcombine.low %v6489_v34, %v6493_v54  ;;  %v17929_v34 = vcombine.high %v6520_v42, %v6524_v25 }
 0x491   :  { %12429 = vmatpush1.bf16.msra.mxu0 %v17848_v24  ;;  %v6500_v24 = vld [vmem:[#allocation4 + $0xae0] sm:$0xff] }
 0x492   :  { %12757 = vmatpush1.bf16.msra.mxu1 %v17850_v6  ;;  %12430 = vmatprep.subr.bf16.mxu0 %v17857_v7  ;;  %v6497_v6 = vld [vmem:[#allocation4 + $0xac8] sm:$0xff]  ;;  %v17905_v17 = vcombine.high %v6496_v4, %v6500_v24  ;;  %v17904_v27 = vcombine.low %v6496_v4, %v6500_v24 }
 0x493   :  { %12758 = vmatprep.subr.bf16.mxu1 %v17859_v9  ;;  %v6501_v7 = vld [vmem:[#allocation4 + $0xae8] sm:$0xff]  ;;  %v17896_v9 = vcombine.low %v6488_v48, %v6492_v51  ;;  %v17922_v51 = vcombine.low %v6513_v2, %v6517_v36  ;;  %v6544_v2 = vld [vmem:[#allocation4 + $0xc40] sm:$0xff] }
 0x494   :  { %v17907_v12 = vcombine.high %v6497_v6, %v6501_v7  ;;  %v20647_v48 = vld [vmem:[#allocation9 + $0x1] ss:$4 sm:$0xff]  ;;  %v20653_v24 = vld [vmem:[#allocation9 + $0x2] ss:$4 sm:$0xff] }
 0x495   :  { %12431 = vmatpush1.bf16.msra.mxu0 %v17856_v38  ;;  %v6504_v38 = vld [vmem:[#allocation4 + $0xb00] sm:$0xff]  ;;  %v6533_v4 = vld [vmem:[#allocation4 + $0xbe8] sm:$0xff] }
 0x496   :  { %12759 = vmatpush1.bf16.msra.mxu1 %v17858_v20  ;;  %12432 = vmatprep.subr.bf16.mxu0 %v17865_v21  ;;  %v6508_v20 = vld [vmem:[#allocation4 + $0xb20] sm:$0xff]  ;;  %v20637_v21 = vsub.s32 7, %v20545_v49 }
 0x497   :  { %12760 = vmatprep.subr.bf16.mxu1 %v17867_v22  ;;  %v6505_v22 = vld [vmem:[#allocation4 + $0xb08] sm:$0xff]  ;;  %v6548_v36 = vld [vmem:[#allocation4 + $0xc60] sm:$0xff] }
 0x498   :  { %v1043_v5 = vrot.slane %v20639_v35, %v20637_v21 }
 0x499   :  { %12433 = vmatpush1.bf16.msra.mxu0 %v17864_v61  ;;  %v17906_v61 = vcombine.low %v6497_v6, %v6501_v7  ;;  %v6059_v6 = vrot.slane %v20653_v24, %v20634_v13  ;;  %v17928_v7 = vcombine.low %v6520_v42, %v6524_v25  ;;  %v17953_v42 = vcombine.high %v6544_v2, %v6548_v36  ;;  %v6552_v25 = vld [vmem:[#allocation4 + $0xc80] sm:$0xff] }
 0x49a   :  { %12761 = vmatpush1.bf16.msra.mxu1 %v17866_v23  ;;  %12434 = vmatprep.subr.bf16.mxu0 %v17873_v31  ;;  %v17913_v23 = vcombine.high %v6504_v38, %v6508_v20  ;;  %v17915_v31 = vcombine.high %v6505_v22, %v6509_v26  ;;  %v19020_v43 = vadd.f32 %v20534_v19, %v1043_v5 }
 0x49b   :  { %12762 = vmatprep.subr.bf16.mxu1 %v17875_v32  ;;  %v6512_v32 = vld [vmem:[#allocation4 + $0xb40] sm:$0xff]  ;;  %v5969_v19 = vrot.slane %v20647_v48, %v20637_v21 }
 0x49d   :  { %12435 = vmatpush1.bf16.msra.mxu0 %v17872_v60  ;;  %v17912_v60 = vcombine.low %v6504_v38, %v6508_v20  ;;  %v6536_v38 = vld [vmem:[#allocation4 + $0xc00] sm:$0xff] }
 0x49e   :  { %12763 = vmatpush1.bf16.msra.mxu1 %v17874_v37  ;;  %12436 = vmatprep.subr.bf16.mxu0 %v17881_v39  ;;  %v19017_v37 = vadd.f32 %v20528_v10, %v1031_v29  ;;  %v17914_v39 = vcombine.low %v6505_v22, %v6509_v26  ;;  %v5957_v10 = vrot.slane %v20647_v48, %v20634_v13  ;;  %v6540_v20 = vld [vmem:[#allocation4 + $0xc20] sm:$0xff]  ;;  %v6541_v29 = vld [vmem:[#allocation4 + $0xc28] sm:$0xff] }
 0x49f   :  { %12764 = vmatprep.subr.bf16.mxu1 %v17883_v1  ;;  %v17921_v1 = vcombine.high %v6512_v32, %v6516_v33  ;;  %v6071_v26 = vrot.slane %v20653_v24, %v20637_v21 }
 0x4a1   :  { %12437 = vmatpush1.bf16.msra.mxu0 %v17880_v44  ;;  %v6521_v44 = vld [vmem:[#allocation4 + $0xb88] sm:$0xff] }
 0x4a2   :  { %12765 = vmatpush1.bf16.msra.mxu1 %v17882_v16  ;;  %12438 = vmatprep.subr.bf16.mxu0 %v17889_v46  ;;  %v6525_v16 = vld [vmem:[#allocation4 + $0xba8] sm:$0xff]  ;;  %v17920_v46 = vcombine.low %v6512_v32, %v6516_v33  ;;  %v17945_v32 = vcombine.high %v6536_v38, %v6540_v20 }
 0x4a3   :  { %12766 = vmatprep.subr.bf16.mxu1 %v17891_v47  ;;  %v5920_v47 = vmax.f32 %v19017_v37, 0.0  ;;  %v17931_v54 = vcombine.high %v6521_v44, %v6525_v16  ;;  %v6545_v37 = vld [vmem:[#allocation4 + $0xc48] sm:$0xff] }
 0x4a5   :  { %12439 = vmatpush1.bf16.msra.mxu0 %v17888_v55  ;;  %v6528_v55 = vld [vmem:[#allocation4 + $0xbc0] sm:$0xff] }
 0x4a6   :  { %12767 = vmatpush1.bf16.msra.mxu1 %v17890_v59  ;;  %12440 = vmatprep.subr.bf16.mxu0 %v17897_v63  ;;  %v6532_v59 = vld [vmem:[#allocation4 + $0xbe0] sm:$0xff]  ;;  %v5923_v63 = vmax.f32 %v19020_v43, 0.0 }
 0x4a7   :  { %12768 = vmatprep.subr.bf16.mxu1 %v17899_v3  ;;  %v6529_v3 = vld [vmem:[#allocation4 + $0xbc8] sm:$0xff]  ;;  %v6556_v43 = vld [vmem:[#allocation4 + $0xca0] sm:$0xff] }
 0x4a8   :  { %v6025_v22 = vmul.f32 %v5969_v19, %v5923_v63  ;;  %v6561_v63 = vld [vmem:[#allocation4 + $0xcc8] sm:$0xff] }
 0x4a9   :  { %12441 = vmatpush1.bf16.msra.mxu0 %v17896_v9  ;;  %v6022_v9 = vmul.f32 %v5957_v10, %v5920_v47  ;;  %v6557_v47 = vld [vmem:[#allocation4 + $0xca8] sm:$0xff]  ;;  %v17952_v10 = vcombine.low %v6544_v2, %v6548_v36  ;;  %v6584_v2 = vld [vmem:[#allocation4 + $0xd80] sm:$0xff] }
 0x4aa   :  { %12769 = vmatpush1.bf16.msra.mxu1 %v17898_v14  ;;  %12442 = vmatprep.subr.bf16.mxu0 %v17905_v17  ;;  %v17930_v14 = vcombine.low %v6521_v44, %v6525_v16  ;;  %v17937_v17 = vcombine.high %v6528_v55, %v6532_v59  ;;  %v6127_v5 = vadd.f32 %v6071_v26, %v6025_v22  ;;  %v6565_v19 = vld [vmem:[#allocation4 + $0xce8] sm:$0xff]  ;;  %v6588_v36 = vld [vmem:[#allocation4 + $0xda0] sm:$0xff] }
 0x4ab   :  { %12770 = vmatprep.subr.bf16.mxu1 %v17907_v12  ;;  %v17939_v12 = vcombine.high %v6529_v3, %v6533_v4 }
 0x4ac   :  { %v20661_v44 = vpack.c.bf16 %v6127_v5, %v6127_v5 }
 0x4ad   :  { %12443 = vmatpush1.bf16.msra.mxu0 %v17904_v27  ;;  %v6537_v27 = vld [vmem:[#allocation4 + $0xc08] sm:$0xff] }
 0x4ae   :  { %12771 = vmatpush1.bf16.msra.mxu1 %v17906_v61  ;;  %12444 = vmatprep.subr.bf16.mxu0 %v17913_v23  ;;  %v17936_v61 = vcombine.low %v6528_v55, %v6532_v59  ;;  %v6124_v23 = vadd.f32 %v6059_v6, %v6022_v9  ;;  %v17947_v33 = vcombine.high %v6537_v27, %v6541_v29  ;;  %v6560_v55 = vld [vmem:[#allocation4 + $0xcc0] sm:$0xff] }
 0x4af   :  { %12772 = vmatprep.subr.bf16.mxu1 %v17915_v31  ;;  %v17938_v31 = vcombine.low %v6529_v3, %v6533_v4  ;;  %v6564_v59 = vld [vmem:[#allocation4 + $0xce0] sm:$0xff]  ;;  %v17960_v3 = vcombine.low %v6552_v25, %v6556_v43 }
 0x4b0   :  { %v17969_v6 = vcombine.high %v6560_v55, %v6564_v59  ;;  %v6568_v9 = vld [vmem:[#allocation4 + $0xd00] sm:$0xff] }
 0x4b1   :  { %12445 = vmatpush1.bf16.msra.mxu0 %v17912_v60  ;;  %v17944_v60 = vcombine.low %v6536_v38, %v6540_v20  ;;  %v17968_v38 = vcombine.low %v6560_v55, %v6564_v59  ;;  %v17970_v20 = vcombine.low %v6561_v63, %v6565_v19  ;;  %v17992_v59 = vcombine.low %v6584_v2, %v6588_v36 }
 0x4b2   :  { %12773 = vmatpush1.bf16.msra.mxu1 %v17914_v39  ;;  %12446 = vmatprep.subr.bf16.mxu0 %v17921_v1  ;;  %v6549_v39 = vld [vmem:[#allocation4 + $0xc68] sm:$0xff]  ;;  %v20659_v1 = vpack.c.bf16 %v6124_v23, %v6124_v23 }
 0x4b3   :  { %12774 = vmatprep.subr.bf16.mxu1 %v17923_v40  ;;  %v17946_v40 = vcombine.low %v6537_v27, %v6541_v29  ;;  %v17955_v16 = vcombine.high %v6545_v37, %v6549_v39  ;;  %v6576_v27 = vld [vmem:[#allocation4 + $0xd40] sm:$0xff]  ;;  %v6581_v23 = vld [vmem:[#allocation4 + $0xd68] sm:$0xff] }
 0x4b4   :  { %v6580_v29 = vld [vmem:[#allocation4 + $0xd60] sm:$0xff] }
 0x4b5   :  { %12447 = vmatpush1.bf16.msra.mxu0 %v17920_v46  ;;  %v6553_v46 = vld [vmem:[#allocation4 + $0xc88] sm:$0xff] }
 0x4b6   :  { %12775 = vmatpush1.bf16.msra.mxu1 %v17922_v51  ;;  %12448 = vmatprep.subr.bf16.mxu0 %v17929_v34  ;;  %v17954_v51 = vcombine.low %v6545_v37, %v6549_v39  ;;  %v17961_v34 = vcombine.high %v6552_v25, %v6556_v43  ;;  %v17962_v4 = vcombine.low %v6553_v46, %v6557_v47  ;;  %v6589_v37 = vld [vmem:[#allocation4 + $0xda8] sm:$0xff] }
 0x4b7   :  { %12776 = vmatprep.subr.bf16.mxu1 %v17931_v54  ;;  %v17963_v54 = vcombine.high %v6553_v46, %v6557_v47  ;;  %v17984_v39 = vcombine.low %v6576_v27, %v6580_v29  ;;  %v6596_v46 = vld [vmem:[#allocation4 + $0xde0] sm:$0xff] }
 0x4b9   :  { %12449 = vmatpush1.bf16.msra.mxu0 %v17928_v7  ;;  %v17971_v7 = vcombine.high %v6561_v63, %v6565_v19 }
 0x4ba   :  { %12777 = vmatpush1.bf16.msra.mxu1 %v17930_v14  ;;  %12450 = vmatprep.subr.bf16.mxu0 %v17937_v17  ;;  %v6572_v14 = vld [vmem:[#allocation4 + $0xd20] sm:$0xff]  ;;  %v6569_v17 = vld [vmem:[#allocation4 + $0xd08] sm:$0xff] }
 0x4bb   :  { %12778 = vmatprep.subr.bf16.mxu1 %v17939_v12  ;;  %v6573_v12 = vld [vmem:[#allocation4 + $0xd28] sm:$0xff]  ;;  %v17977_v22 = vcombine.high %v6568_v9, %v6572_v14 }
 0x4bc   :  { %v17979_v26 = vcombine.high %v6569_v17, %v6573_v12 }
 0x4bd   :  { %12451 = vmatpush1.bf16.msra.mxu0 %v17936_v61  ;;  %v6577_v61 = vld [vmem:[#allocation4 + $0xd48] sm:$0xff] }
 0x4be   :  { %12779 = vmatpush1.bf16.msra.mxu1 %v17938_v31  ;;  %12461 = vmatprep.subr.bf16.mxu0 %v17945_v32  ;;  %v17976_v31 = vcombine.low %v6568_v9, %v6572_v14  ;;  %v17978_v32 = vcombine.low %v6569_v17, %v6573_v12  ;;  %v17987_v5 = vcombine.high %v6577_v61, %v6581_v23  ;;  %v6600_v9 = vld [vmem:[#allocation4 + $0xe00] sm:$0xff]  ;;  %v6601_v17 = vld [vmem:[#allocation4 + $0xe08] sm:$0xff] }
 0x4bf   :  { %12789 = vmatprep.subr.bf16.mxu1 %v17947_v33  ;;  %v17985_v33 = vcombine.high %v6576_v27, %v6580_v29  ;;  %v6604_v14 = vld [vmem:[#allocation4 + $0xe20] sm:$0xff]  ;;  %v6605_v12 = vld [vmem:[#allocation4 + $0xe28] sm:$0xff] }
 0x4c0   :  { %12453 = vmatmul.mubr.bf16.vlgmr.msra.gmra.mrb[16].mxu0 %v20659_v1  ;;  %v6608_v27 = vld [vmem:[#allocation4 + $0xe40] sm:$0xff] }
 0x4c1   :  { %12781 = vmatmul.mubr.bf16.vlgmr.msra.gmra.mrb[16].mxu1 %v20659_v1  ;;  %12462 = vmatpush1.bf16.msra.mxu0 %v17944_v60  ;;  %v6585_v60 = vld [vmem:[#allocation4 + $0xd88] sm:$0xff]  ;;  %v6612_v29 = vld [vmem:[#allocation4 + $0xe60] sm:$0xff] }
 0x4c2   :  { %12493 = vmatprep.mubr.bf16.mxu0 %v20661_v44  ;;  %12790 = vmatpush1.bf16.msra.mxu1 %v17946_v40  ;;  %v17986_v40 = vcombine.low %v6577_v61, %v6581_v23  ;;  %v17995_v43 = vcombine.high %v6585_v60, %v6589_v37  ;;  %v6609_v61 = vld [vmem:[#allocation4 + $0xe48] sm:$0xff] }
 0x4c3   :  { %12821 = vmatprep.mubr.bf16.mxu1 %v20661_v44  ;;  %12463 = vmatprep.subr.bf16.mxu0 %v17953_v42  ;;  %v17993_v42 = vcombine.high %v6584_v2, %v6588_v36  ;;  %v6613_v23 = vld [vmem:[#allocation4 + $0xe68] sm:$0xff]  ;;  %v6616_v2 = vld [vmem:[#allocation4 + $0xe80] sm:$0xff] }
 0x4c4   :  { %12791 = vmatprep.subr.bf16.mxu1 %v17955_v16  ;;  %v6592_v16 = vld [vmem:[#allocation4 + $0xdc0] sm:$0xff] }
 0x4c5   :  { %12464 = vmatpush1.bf16.msra.mxu0 %v17952_v10  ;;  %v6620_v36 = vld [vmem:[#allocation4 + $0xea0] sm:$0xff] }
 0x4c6   :  { %12792 = vmatpush1.bf16.msra.mxu1 %v17954_v51  ;;  %12465 = vmatprep.subr.bf16.mxu0 %v17961_v34  ;;  %v6593_v51 = vld [vmem:[#allocation4 + $0xdc8] sm:$0xff] }
 0x4c7   :  { %12793 = vmatprep.subr.bf16.mxu1 %v17963_v54  ;;  %v6597_v34 = vld [vmem:[#allocation4 + $0xde8] sm:$0xff] }
 0x4c9   :  { %12466 = vmatpush1.bf16.msra.mxu0 %v17960_v3  ;;  %v17994_v3 = vcombine.low %v6585_v60, %v6589_v37  ;;  %v6617_v60 = vld [vmem:[#allocation4 + $0xe88] sm:$0xff] }
 0x4ca   :  { %12794 = vmatpush1.bf16.msra.mxu1 %v17962_v4  ;;  %12467 = vmatprep.subr.bf16.mxu0 %v17969_v6  ;;  %v18001_v4 = vcombine.high %v6592_v16, %v6596_v46  ;;  %v6621_v37 = vld [vmem:[#allocation4 + $0xea8] sm:$0xff] }
 0x4cb   :  { %12795 = vmatprep.subr.bf16.mxu1 %v17971_v7  ;;  %v18003_v7 = vcombine.high %v6593_v51, %v6597_v34 }
 0x4cd   :  { %12468 = vmatpush1.bf16.msra.mxu0 %v17968_v38  ;;  %v18000_v38 = vcombine.low %v6592_v16, %v6596_v46  ;;  %v6624_v16 = vld [vmem:[#allocation4 + $0xec0] sm:$0xff] }
 0x4ce   :  { %12796 = vmatpush1.bf16.msra.mxu1 %v17970_v20  ;;  %12469 = vmatprep.subr.bf16.mxu0 %v17977_v22  ;;  %v18002_v20 = vcombine.low %v6593_v51, %v6597_v34  ;;  %v18009_v22 = vcombine.high %v6600_v9, %v6604_v14  ;;  %v6628_v46 = vld [vmem:[#allocation4 + $0xee0] sm:$0xff]  ;;  %v6625_v51 = vld [vmem:[#allocation4 + $0xec8] sm:$0xff] }
 0x4cf   :  { %12797 = vmatprep.subr.bf16.mxu1 %v17979_v26  ;;  %v18011_v26 = vcombine.high %v6601_v17, %v6605_v12  ;;  %v6629_v34 = vld [vmem:[#allocation4 + $0xee8] sm:$0xff] }
 0x4d1   :  { %12470 = vmatpush1.bf16.msra.mxu0 %v17976_v31  ;;  %v18008_v31 = vcombine.low %v6600_v9, %v6604_v14  ;;  %v6637_v9 = vld [vmem:[#allocation4 + $0xf28] sm:$0xff] }
 0x4d2   :  { %12798 = vmatpush1.bf16.msra.mxu1 %v17978_v32  ;;  %12471 = vmatprep.subr.bf16.mxu0 %v17985_v33  ;;  %v18010_v32 = vcombine.low %v6601_v17, %v6605_v12  ;;  %v18017_v33 = vcombine.high %v6608_v27, %v6612_v29  ;;  %v20678_v14 = vld [vmem:[#allocation9 + $0x20] ss:$4 sm:$0xff]  ;;  %v18032_v17 = vcombine.low %v6624_v16, %v6628_v46 }
 0x4d3   :  { %v20667_v25 = vpop.f32.mrb[12].mxu0  ;;  %12799 = vmatprep.subr.bf16.mxu1 %v17987_v5  ;;  %v20669_v47 = vpop.f32.mrb[12].mxu1  ;;  %v18019_v5 = vcombine.high %v6609_v61, %v6613_v23 }
 0x4d4   :  { %v20671_v10 = vpop.f32.mrb[13].mxu0  ;;  %v20673_v54 = vpop.f32.mrb[13].mxu1 }
 0x4d5   :  { %v5790_v55 = vpop.f32.mrb[14].mxu0  ;;  %12472 = vmatpush1.bf16.msra.mxu0 %v17984_v39  ;;  %v5913_v63 = vpop.f32.mrb[14].mxu1  ;;  %v18016_v39 = vcombine.low %v6608_v27, %v6612_v29  ;;  %v1051_v27 = vrot.slane %v20678_v14, %v20548_v56  ;;  %v6641_v29 = vld [vmem:[#allocation4 + $0xf48] sm:$0xff] }
 0x4d6   :  { %12800 = vmatpush1.bf16.msra.mxu1 %v17986_v40  ;;  %v5791_v19 = vpop.f32.mrb[15].mxu0  ;;  %12473 = vmatprep.subr.bf16.mxu0 %v17993_v42  ;;  %v5914_v6 = vpop.f32.mrb[15].mxu1  ;;  %v18018_v40 = vcombine.low %v6609_v61, %v6613_v23  ;;  %v18025_v42 = vcombine.high %v6616_v2, %v6620_v36  ;;  %v18024_v55 = vcombine.low %v6616_v2, %v6620_v36  ;;  %v6645_v61 = vld [vmem:[#allocation4 + $0xf68] sm:$0xff]  ;;  %v6652_v2 = vld [vmem:[#allocation4 + $0xfa0] sm:$0xff] }
 0x4d7   :  { %12801 = vmatprep.subr.bf16.mxu1 %v17995_v43  ;;  %v18027_v43 = vcombine.high %v6617_v60, %v6621_v37  ;;  %v18026_v63 = vcombine.low %v6617_v60, %v6621_v37  ;;  %v18033_v19 = vcombine.high %v6624_v16, %v6628_v46  ;;  %v6636_v6 = vld [vmem:[#allocation4 + $0xf20] sm:$0xff]  ;;  %v19022_v36 = vadd.f32 %v20573_v57, %v1051_v27  ;;  %v6649_v60 = vld [vmem:[#allocation4 + $0xf88] sm:$0xff] }
 0x4d8   :  { %v6653_v37 = vld [vmem:[#allocation4 + $0xfa8] sm:$0xff] }
 0x4d9   :  { %12474 = vmatpush1.bf16.msra.mxu0 %v17992_v59  ;;  %v20676_v59 = vsub.s32 6, %v20545_v49  ;;  %v18034_v49 = vcombine.low %v6625_v51, %v6629_v34  ;;  %v18059_v46 = vcombine.high %v6649_v60, %v6653_v37 }
 0x4da   :  { %12802 = vmatpush1.bf16.msra.mxu1 %v17994_v3  ;;  %12475 = vmatprep.subr.bf16.mxu0 %v18001_v4  ;;  %v18035_v3 = vcombine.high %v6625_v51, %v6629_v34  ;;  %v6632_v4 = vld [vmem:[#allocation4 + $0xf00] sm:$0xff] }
 0x4db   :  { %12803 = vmatprep.subr.bf16.mxu1 %v18003_v7  ;;  %v6633_v7 = vld [vmem:[#allocation4 + $0xf08] sm:$0xff]  ;;  %v1039_v12 = vrot.slane %v20639_v35, %v20676_v59  ;;  %v18040_v23 = vcombine.low %v6632_v4, %v6636_v6  ;;  %v6656_v51 = vld [vmem:[#allocation4 + $0xfc0] sm:$0xff] }
 0x4dc   :  { %v18042_v35 = vcombine.low %v6633_v7, %v6637_v9  ;;  %v6660_v34 = vld [vmem:[#allocation4 + $0xfe0] sm:$0xff] }
 0x4dd   :  { %12476 = vmatpush1.bf16.msra.mxu0 %v18000_v38  ;;  %v18041_v38 = vcombine.high %v6632_v4, %v6636_v6  ;;  %v20694_v4 = vld [vmem:[#allocation9 + $0x22] ss:$4 sm:$0xff] }
 0x4de   :  { %12804 = vmatpush1.bf16.msra.mxu1 %v18002_v20  ;;  %12477 = vmatprep.subr.bf16.mxu0 %v18009_v22  ;;  %v18043_v20 = vcombine.high %v6633_v7, %v6637_v9  ;;  %v6640_v22 = vld [vmem:[#allocation4 + $0xf40] sm:$0xff]  ;;  %v18058_v7 = vcombine.low %v6649_v60, %v6653_v37  ;;  %v18065_v9 = vcombine.high %v6656_v51, %v6660_v34 }
 0x4df   :  { %12805 = vmatprep.subr.bf16.mxu1 %v18011_v26  ;;  %v6644_v26 = vld [vmem:[#allocation4 + $0xf60] sm:$0xff] }
 0x4e1   :  { %12478 = vmatpush1.bf16.msra.mxu0 %v18008_v31  ;;  %v19019_v31 = vadd.f32 %v20530_v15, %v1039_v12  ;;  %v5965_v15 = vrot.slane %v20647_v48, %v20676_v59  ;;  %v6664_v12 = vld [vmem:[#allocation4 + $0x1000] sm:$0xff] }
 0x4e2   :  { %12806 = vmatpush1.bf16.msra.mxu1 %v18010_v32  ;;  %12479 = vmatprep.subr.bf16.mxu0 %v18017_v33  ;;  %v18049_v32 = vcombine.high %v6640_v22, %v6644_v26  ;;  %v18051_v33 = vcombine.high %v6641_v29, %v6645_v61 }
 0x4e3   :  { %12807 = vmatprep.subr.bf16.mxu1 %v18019_v5  ;;  %v6648_v5 = vld [vmem:[#allocation4 + $0xf80] sm:$0xff] }
 0x4e4   :  { %v18057_v16 = vcombine.high %v6648_v5, %v6652_v2  ;;  %v18056_v48 = vcombine.low %v6648_v5, %v6652_v2  ;;  %v6673_v5 = vld [vmem:[#allocation4 + $0x1048] sm:$0xff] }
 0x4e5   :  { %12480 = vmatpush1.bf16.msra.mxu0 %v18016_v39  ;;  %v20686_v39 = vld [vmem:[#allocation9 + $0x21] ss:$4 sm:$0xff] }
 0x4e6   :  { %12808 = vmatpush1.bf16.msra.mxu1 %v18018_v40  ;;  %12481 = vmatprep.subr.bf16.mxu0 %v18025_v42  ;;  %v18048_v40 = vcombine.low %v6640_v22, %v6644_v26  ;;  %v5922_v42 = vmax.f32 %v19019_v31, 0.0  ;;  %v5977_v57 = vrot.slane %v20686_v39, %v20548_v56  ;;  %v6665_v22 = vld [vmem:[#allocation4 + $0x1008] sm:$0xff] }
 0x4e7   :  { %12809 = vmatprep.subr.bf16.mxu1 %v18027_v43  ;;  %v18050_v43 = vcombine.low %v6641_v29, %v6645_v61  ;;  %v6669_v26 = vld [vmem:[#allocation4 + $0x1028] sm:$0xff] }
 0x4e8   :  { %v6024_v6 = vmul.f32 %v5965_v15, %v5922_v42  ;;  %v6677_v2 = vld [vmem:[#allocation4 + $0x1068] sm:$0xff]  ;;  %v18074_v60 = vcombine.low %v6665_v22, %v6669_v26  ;;  %v6684_v42 = vld [vmem:[#allocation4 + $0x10a0] sm:$0xff] }
 0x4e9   :  { %12482 = vmatpush1.bf16.msra.mxu0 %v18024_v55  ;;  %v5925_v55 = vmax.f32 %v19022_v36, 0.0 }
 0x4ea   :  { %12810 = vmatpush1.bf16.msra.mxu1 %v18026_v63  ;;  %12483 = vmatprep.subr.bf16.mxu0 %v18033_v19  ;;  %v6657_v63 = vld [vmem:[#allocation4 + $0xfc8] sm:$0xff] }
 0x4eb   :  { %12811 = vmatprep.subr.bf16.mxu1 %v18035_v3  ;;  %v6661_v19 = vld [vmem:[#allocation4 + $0xfe8] sm:$0xff]  ;;  %v6067_v3 = vrot.slane %v20653_v24, %v20676_v59  ;;  %v18064_v24 = vcombine.low %v6656_v51, %v6660_v34  ;;  %v18082_v34 = vcombine.low %v6673_v5, %v6677_v2 }
 0x4ec   :  { %v18066_v29 = vcombine.low %v6657_v63, %v6661_v19 }
 0x4ed   :  { %12484 = vmatpush1.bf16.msra.mxu0 %v18032_v17  ;;  %v18067_v17 = vcombine.high %v6657_v63, %v6661_v19  ;;  %v6126_v27 = vadd.f32 %v6067_v3, %v6024_v6  ;;  %v6688_v63 = vld [vmem:[#allocation4 + $0x10c0] sm:$0xff]  ;;  %v6689_v3 = vld [vmem:[#allocation4 + $0x10c8] sm:$0xff] }
 0x4ee   :  { %12812 = vmatpush1.bf16.msra.mxu1 %v18034_v49  ;;  %12485 = vmatprep.subr.bf16.mxu0 %v18041_v38  ;;  %v6668_v49 = vld [vmem:[#allocation4 + $0x1020] sm:$0xff]  ;;  %v6027_v38 = vmul.f32 %v5977_v57, %v5925_v55 }
 0x4ef   :  { %12813 = vmatprep.subr.bf16.mxu1 %v18043_v20  ;;  %v6079_v20 = vrot.slane %v20694_v4, %v20548_v56  ;;  %v18073_v61 = vcombine.high %v6664_v12, %v6668_v49  ;;  %v20698_v36 = vpack.c.bf16 %v6126_v27, %v6126_v27  ;;  %v6692_v19 = vld [vmem:[#allocation4 + $0x10e0] sm:$0xff] }
 0x4f1   :  { %12486 = vmatpush1.bf16.msra.mxu0 %v18040_v23  ;;  %v18075_v23 = vcombine.high %v6665_v22, %v6669_v26  ;;  %v6129_v31 = vadd.f32 %v6079_v20, %v6027_v38  ;;  %v6697_v38 = vld [vmem:[#allocation4 + $0x1108] sm:$0xff]  ;;  %v18096_v22 = vcombine.low %v6688_v63, %v6692_v19 }
 0x4f2   :  { %12814 = vmatpush1.bf16.msra.mxu1 %v18042_v35  ;;  %12487 = vmatprep.subr.bf16.mxu0 %v18049_v32  ;;  %v6672_v35 = vld [vmem:[#allocation4 + $0x1040] sm:$0xff]  ;;  %v6701_v20 = vld [vmem:[#allocation4 + $0x1128] sm:$0xff] }
 0x4f3   :  { %12815 = vmatprep.subr.bf16.mxu1 %v18051_v33  ;;  %v6676_v32 = vld [vmem:[#allocation4 + $0x1060] sm:$0xff]  ;;  %v18072_v33 = vcombine.low %v6664_v12, %v6668_v49  ;;  %v20700_v15 = vpack.c.bf16 %v6129_v31, %v6129_v31  ;;  %v18107_v27 = vcombine.high %v6697_v38, %v6701_v20  ;;  %v6709_v31 = vld [vmem:[#allocation4 + $0x1168] sm:$0xff] }
 0x4f4   :  { %v18081_v37 = vcombine.high %v6672_v35, %v6676_v32  ;;  %v18080_v51 = vcombine.low %v6672_v35, %v6676_v32  ;;  %v6696_v12 = vld [vmem:[#allocation4 + $0x1100] sm:$0xff]  ;;  %v18106_v32 = vcombine.low %v6697_v38, %v6701_v20 }
 0x4f5   :  { %12488 = vmatpush1.bf16.msra.mxu0 %v18048_v40  ;;  %v6680_v40 = vld [vmem:[#allocation4 + $0x1080] sm:$0xff] }
 0x4f6   :  { %12816 = vmatpush1.bf16.msra.mxu1 %v18050_v43  ;;  %12489 = vmatprep.subr.bf16.mxu0 %v18057_v16  ;;  %v18083_v43 = vcombine.high %v6673_v5, %v6677_v2  ;;  %v6681_v16 = vld [vmem:[#allocation4 + $0x1088] sm:$0xff]  ;;  %v18089_v55 = vcombine.high %v6680_v40, %v6684_v42  ;;  %v18088_v6 = vcombine.low %v6680_v40, %v6684_v42  ;;  %v6700_v49 = vld [vmem:[#allocation4 + $0x1120] sm:$0xff] }
 0x4f7   :  { %12817 = vmatprep.subr.bf16.mxu1 %v18059_v46  ;;  %v6685_v46 = vld [vmem:[#allocation4 + $0x10a8] sm:$0xff]  ;;  %v18104_v35 = vcombine.low %v6696_v12, %v6700_v49  ;;  %v6712_v2 = vld [vmem:[#allocation4 + $0x1180] sm:$0xff] }
 0x4f8   :  { %v18091_v57 = vcombine.high %v6681_v16, %v6685_v46  ;;  %v6717_v40 = vld [vmem:[#allocation4 + $0x11a8] sm:$0xff] }
 0x4f9   :  { %12490 = vmatpush1.bf16.msra.mxu0 %v18056_v48  ;;  %v6693_v48 = vld [vmem:[#allocation4 + $0x10e8] sm:$0xff] }
 0x4fa   :  { %12818 = vmatpush1.bf16.msra.mxu1 %v18058_v7  ;;  %12491 = vmatprep.subr.bf16.mxu0 %v18065_v9  ;;  %v18090_v7 = vcombine.low %v6681_v16, %v6685_v46  ;;  %v18097_v9 = vcombine.high %v6688_v63, %v6692_v19  ;;  %v18098_v26 = vcombine.low %v6689_v3, %v6693_v48 }
 0x4fb   :  { %12819 = vmatprep.subr.bf16.mxu1 %v18067_v17  ;;  %v18099_v17 = vcombine.high %v6689_v3, %v6693_v48 }
 0x4fd   :  { %12492 = vmatpush1.bf16.msra.mxu0 %v18064_v24  ;;  %v18105_v24 = vcombine.high %v6696_v12, %v6700_v49 }
 0x4fe   :  { %12820 = vmatpush1.bf16.msra.mxu1 %v18066_v29  ;;  %12502 = vmatprep.subr.bf16.mxu0 %v18073_v61  ;;  %v6704_v29 = vld [vmem:[#allocation4 + $0x1140] sm:$0xff] }
 0x4ff   :  { %12830 = vmatprep.subr.bf16.mxu1 %v18075_v23  ;;  %v6708_v61 = vld [vmem:[#allocation4 + $0x1160] sm:$0xff]  ;;  %v6705_v23 = vld [vmem:[#allocation4 + $0x1148] sm:$0xff] }
 0x500   :  { %12494 = vmatmul.mubr.bf16.vlgmr.msra.gmra.mrb[16].mxu0 %v20698_v36  ;;  %v18115_v5 = vcombine.high %v6705_v23, %v6709_v31  ;;  %v18112_v42 = vcombine.low %v6704_v29, %v6708_v61 }
 0x501   :  { %12822 = vmatmul.mubr.bf16.vlgmr.msra.gmra.mrb[16].mxu1 %v20698_v36  ;;  %12503 = vmatpush1.bf16.msra.mxu0 %v18072_v33  ;;  %v18113_v33 = vcombine.high %v6704_v29, %v6708_v61 }
 0x502   :  { %12534 = vmatprep.mubr.bf16.mxu0 %v20700_v15  ;;  %12831 = vmatpush1.bf16.msra.mxu1 %v18074_v60  ;;  %v6716_v60 = vld [vmem:[#allocation4 + $0x11a0] sm:$0xff] }
 0x503   :  { %12862 = vmatprep.mubr.bf16.mxu1 %v20700_v15  ;;  %12504 = vmatprep.subr.bf16.mxu0 %v18081_v37  ;;  %v6713_v37 = vld [vmem:[#allocation4 + $0x1188] sm:$0xff]  ;;  %v18121_v16 = vcombine.high %v6712_v2, %v6716_v60  ;;  %v18120_v63 = vcombine.low %v6712_v2, %v6716_v60 }
 0x504   :  { %12832 = vmatprep.subr.bf16.mxu1 %v18083_v43  ;;  %v18114_v43 = vcombine.low %v6705_v23, %v6709_v31  ;;  %v18123_v46 = vcombine.high %v6713_v37, %v6717_v40  ;;  %v18122_v19 = vcombine.low %v6713_v37, %v6717_v40 }
 0x505   :  { %12505 = vmatpush1.bf16.msra.mxu0 %v18080_v51  ;;  %v6720_v51 = vld [vmem:[#allocation4 + $0x11c0] sm:$0xff] }
 0x506   :  { %12833 = vmatpush1.bf16.msra.mxu1 %v18082_v34  ;;  %12506 = vmatprep.subr.bf16.mxu0 %v18089_v55  ;;  %v6724_v34 = vld [vmem:[#allocation4 + $0x11e0] sm:$0xff]  ;;  %v6721_v55 = vld [vmem:[#allocation4 + $0x11c8] sm:$0xff] }
 0x507   :  { %12834 = vmatprep.subr.bf16.mxu1 %v18091_v57  ;;  %v6725_v57 = vld [vmem:[#allocation4 + $0x11e8] sm:$0xff]  ;;  %v18129_v3 = vcombine.high %v6720_v51, %v6724_v34  ;;  %v18128_v12 = vcombine.low %v6720_v51, %v6724_v34 }
 0x508   :  { %v18131_v48 = vcombine.high %v6721_v55, %v6725_v57  ;;  %v18130_v49 = vcombine.low %v6721_v55, %v6725_v57 }
 0x509   :  { %12507 = vmatpush1.bf16.msra.mxu0 %v18088_v6  ;;  %v6728_v6 = vld [vmem:[#allocation4 + $0x1200] sm:$0xff] }
 0x50a   :  { %12835 = vmatpush1.bf16.msra.mxu1 %v18090_v7  ;;  %12508 = vmatprep.subr.bf16.mxu0 %v18097_v9  ;;  %v6732_v7 = vld [vmem:[#allocation4 + $0x1220] sm:$0xff]  ;;  %v6729_v9 = vld [vmem:[#allocation4 + $0x1208] sm:$0xff] }
 0x50b   :  { %12836 = vmatprep.subr.bf16.mxu1 %v18099_v17  ;;  %v6733_v17 = vld [vmem:[#allocation4 + $0x1228] sm:$0xff]  ;;  %v18137_v38 = vcombine.high %v6728_v6, %v6732_v7  ;;  %v18136_v29 = vcombine.low %v6728_v6, %v6732_v7  ;;  %v1047_v7 = vrot.slane %v20678_v14, %v20578_v45 }
 0x50c   :  { %v18139_v20 = vcombine.high %v6729_v9, %v6733_v17  ;;  %v18138_v61 = vcombine.low %v6729_v9, %v6733_v17 }
 0x50d   :  { %12509 = vmatpush1.bf16.msra.mxu0 %v18096_v22  ;;  %v6736_v22 = vld [vmem:[#allocation4 + $0x1240] sm:$0xff] }
 0x50e   :  { %12837 = vmatpush1.bf16.msra.mxu1 %v18098_v26  ;;  %12510 = vmatprep.subr.bf16.mxu0 %v18105_v24  ;;  %v6740_v26 = vld [vmem:[#allocation4 + $0x1260] sm:$0xff]  ;;  %v6737_v24 = vld [vmem:[#allocation4 + $0x1248] sm:$0xff] }
 0x50f   :  { %12838 = vmatprep.subr.bf16.mxu1 %v18107_v27  ;;  %v6741_v27 = vld [vmem:[#allocation4 + $0x1268] sm:$0xff]  ;;  %v18145_v23 = vcombine.high %v6736_v22, %v6740_v26  ;;  %v18144_v2 = vcombine.low %v6736_v22, %v6740_v26 }
 0x510   :  { %v18147_v31 = vcombine.high %v6737_v24, %v6741_v27  ;;  %v18146_v60 = vcombine.low %v6737_v24, %v6741_v27  ;;  %v6769_v22 = vld [vmem:[#allocation4 + $0x1348] sm:$0xff]  ;;  %v19021_v27 = vadd.f32 %v20569_v50, %v1047_v7  ;;  %v6796_v7 = vld [vmem:[#allocation4 + $0x1420] sm:$0xff] }
 0x511   :  { %12511 = vmatpush1.bf16.msra.mxu0 %v18104_v35  ;;  %v6744_v35 = vld [vmem:[#allocation4 + $0x1280] sm:$0xff]  ;;  %v6773_v26 = vld [vmem:[#allocation4 + $0x1368] sm:$0xff] }
 0x512   :  { %12839 = vmatpush1.bf16.msra.mxu1 %v18106_v32  ;;  %12512 = vmatprep.subr.bf16.mxu0 %v18113_v33  ;;  %v6748_v32 = vld [vmem:[#allocation4 + $0x12a0] sm:$0xff]  ;;  %v6745_v33 = vld [vmem:[#allocation4 + $0x1288] sm:$0xff]  ;;  %v18178_v50 = vcombine.low %v6769_v22, %v6773_v26 }
 0x513   :  { %12840 = vmatprep.subr.bf16.mxu1 %v18115_v5  ;;  %v6749_v5 = vld [vmem:[#allocation4 + $0x12a8] sm:$0xff]  ;;  %v18153_v37 = vcombine.high %v6744_v35, %v6748_v32  ;;  %v18152_v51 = vcombine.low %v6744_v35, %v6748_v32  ;;  %v6780_v35 = vld [vmem:[#allocation4 + $0x13a0] sm:$0xff] }
 0x514   :  { %v18155_v40 = vcombine.high %v6745_v33, %v6749_v5  ;;  %v18154_v34 = vcombine.low %v6745_v33, %v6749_v5  ;;  %v6777_v33 = vld [vmem:[#allocation4 + $0x1388] sm:$0xff] }
 0x515   :  { %12513 = vmatpush1.bf16.msra.mxu0 %v18112_v42  ;;  %v6752_v42 = vld [vmem:[#allocation4 + $0x12c0] sm:$0xff]  ;;  %v6781_v5 = vld [vmem:[#allocation4 + $0x13a8] sm:$0xff] }
 0x516   :  { %12841 = vmatpush1.bf16.msra.mxu1 %v18114_v43  ;;  %12514 = vmatprep.subr.bf16.mxu0 %v18121_v16  ;;  %v6756_v43 = vld [vmem:[#allocation4 + $0x12e0] sm:$0xff]  ;;  %v6753_v16 = vld [vmem:[#allocation4 + $0x12c8] sm:$0xff] }
 0x517   :  { %12842 = vmatprep.subr.bf16.mxu1 %v18123_v46  ;;  %v6757_v46 = vld [vmem:[#allocation4 + $0x12e8] sm:$0xff]  ;;  %v18161_v55 = vcombine.high %v6752_v42, %v6756_v43  ;;  %v18160_v6 = vcombine.low %v6752_v42, %v6756_v43  ;;  %v18187_v42 = vcombine.high %v6777_v33, %v6781_v5  ;;  %v6784_v43 = vld [vmem:[#allocation4 + $0x13c0] sm:$0xff] }
 0x518   :  { %v18163_v57 = vcombine.high %v6753_v16, %v6757_v46  ;;  %v18162_v9 = vcombine.low %v6753_v16, %v6757_v46  ;;  %v6788_v16 = vld [vmem:[#allocation4 + $0x13e0] sm:$0xff] }
 0x519   :  { %12515 = vmatpush1.bf16.msra.mxu0 %v18120_v63  ;;  %v6760_v63 = vld [vmem:[#allocation4 + $0x1300] sm:$0xff] }
 0x51a   :  { %12843 = vmatpush1.bf16.msra.mxu1 %v18122_v19  ;;  %12516 = vmatprep.subr.bf16.mxu0 %v18129_v3  ;;  %v6764_v19 = vld [vmem:[#allocation4 + $0x1320] sm:$0xff]  ;;  %v6761_v3 = vld [vmem:[#allocation4 + $0x1308] sm:$0xff] }
 0x51b   :  { %12844 = vmatprep.subr.bf16.mxu1 %v18131_v48  ;;  %v6765_v48 = vld [vmem:[#allocation4 + $0x1328] sm:$0xff]  ;;  %v18169_v17 = vcombine.high %v6760_v63, %v6764_v19  ;;  %v18168_v24 = vcombine.low %v6760_v63, %v6764_v19  ;;  %v18186_v19 = vcombine.low %v6777_v33, %v6781_v5 }
 0x51d   :  { %12517 = vmatpush1.bf16.msra.mxu0 %v18128_v12  ;;  %v18171_v12 = vcombine.high %v6761_v3, %v6765_v48 }
 0x51e   :  { %12845 = vmatpush1.bf16.msra.mxu1 %v18130_v49  ;;  %12518 = vmatprep.subr.bf16.mxu0 %v18137_v38  ;;  %v6768_v49 = vld [vmem:[#allocation4 + $0x1340] sm:$0xff] }
 0x51f   :  { %12846 = vmatprep.subr.bf16.mxu1 %v18139_v20  ;;  %v6772_v38 = vld [vmem:[#allocation4 + $0x1360] sm:$0xff]  ;;  %v1059_v20 = vrot.slane %v20678_v14, %v20581_v52 }
 0x521   :  { %12519 = vmatpush1.bf16.msra.mxu0 %v18136_v29  ;;  %v18170_v29 = vcombine.low %v6761_v3, %v6765_v48  ;;  %v19024_v32 = vadd.f32 %v20575_v58, %v1059_v20  ;;  %v5985_v58 = vrot.slane %v20686_v39, %v20581_v52  ;;  %v18193_v3 = vcombine.high %v6784_v43, %v6788_v16 }
 0x522   :  { %12847 = vmatpush1.bf16.msra.mxu1 %v18138_v61  ;;  %12520 = vmatprep.subr.bf16.mxu0 %v18145_v23  ;;  %v18177_v61 = vcombine.high %v6768_v49, %v6772_v38  ;;  %v18179_v23 = vcombine.high %v6769_v22, %v6773_v26 }
 0x523   :  { %12848 = vmatprep.subr.bf16.mxu1 %v18147_v31  ;;  %v6776_v31 = vld [vmem:[#allocation4 + $0x1380] sm:$0xff]  ;;  %v5927_v46 = vmax.f32 %v19024_v32, 0.0 }
 0x525   :  { %12521 = vmatpush1.bf16.msra.mxu0 %v18144_v2  ;;  %v18176_v2 = vcombine.low %v6768_v49, %v6772_v38  ;;  %v6797_v49 = vld [vmem:[#allocation4 + $0x1428] sm:$0xff]  ;;  %v18192_v38 = vcombine.low %v6784_v43, %v6788_v16 }
 0x526   :  { %12849 = vmatpush1.bf16.msra.mxu1 %v18146_v60  ;;  %12522 = vmatprep.subr.bf16.mxu0 %v18153_v37  ;;  %v5924_v60 = vmax.f32 %v19021_v27, 0.0  ;;  %v5973_v37 = vrot.slane %v20686_v39, %v20578_v45 }
 0x527   :  { %12850 = vmatprep.subr.bf16.mxu1 %v18155_v40  ;;  %v18185_v40 = vcombine.high %v6776_v31, %v6780_v35 }
 0x528   :  { %v6026_v63 = vmul.f32 %v5973_v37, %v5924_v60  ;;  %v6812_v60 = vld [vmem:[#allocation4 + $0x14a0] sm:$0xff] }
 0x529   :  { %12523 = vmatpush1.bf16.msra.mxu0 %v18152_v51  ;;  %v6785_v51 = vld [vmem:[#allocation4 + $0x13c8] sm:$0xff] }
 0x52a   :  { %12851 = vmatpush1.bf16.msra.mxu1 %v18154_v34  ;;  %12524 = vmatprep.subr.bf16.mxu0 %v18161_v55  ;;  %v6789_v34 = vld [vmem:[#allocation4 + $0x13e8] sm:$0xff]  ;;  %v6075_v55 = vrot.slane %v20694_v4, %v20578_v45 }
 0x52b   :  { %12852 = vmatprep.subr.bf16.mxu1 %v18163_v57  ;;  %v18184_v57 = vcombine.low %v6776_v31, %v6780_v35  ;;  %v18195_v48 = vcombine.high %v6785_v51, %v6789_v34  ;;  %v18194_v22 = vcombine.low %v6785_v51, %v6789_v34  ;;  %v6801_v31 = vld [vmem:[#allocation4 + $0x1448] sm:$0xff]  ;;  %v6816_v51 = vld [vmem:[#allocation4 + $0x14c0] sm:$0xff] }
 0x52c   :  { %v6128_v20 = vadd.f32 %v6075_v55, %v6026_v63  ;;  %v6805_v35 = vld [vmem:[#allocation4 + $0x1468] sm:$0xff]  ;;  %v6820_v34 = vld [vmem:[#allocation4 + $0x14e0] sm:$0xff] }
 0x52d   :  { %12525 = vmatpush1.bf16.msra.mxu0 %v18160_v6  ;;  %v6792_v6 = vld [vmem:[#allocation4 + $0x1400] sm:$0xff]  ;;  %v18210_v16 = vcombine.low %v6801_v31, %v6805_v35  ;;  %v6817_v55 = vld [vmem:[#allocation4 + $0x14c8] sm:$0xff] }
 0x52e   :  { %12853 = vmatpush1.bf16.msra.mxu1 %v18162_v9  ;;  %12526 = vmatprep.subr.bf16.mxu0 %v18169_v17  ;;  %v6029_v9 = vmul.f32 %v5985_v58, %v5927_v46  ;;  %v6087_v17 = vrot.slane %v20694_v4, %v20581_v52  ;;  %v18201_v26 = vcombine.high %v6792_v6, %v6796_v7 }
 0x52f   :  { %12854 = vmatprep.subr.bf16.mxu1 %v18171_v12  ;;  %v6793_v12 = vld [vmem:[#allocation4 + $0x1408] sm:$0xff]  ;;  %v20720_v32 = vpack.c.bf16 %v6128_v20, %v6128_v20 }
 0x530   :  { %v6131_v27 = vadd.f32 %v6087_v17, %v6029_v9  ;;  %v18202_v33 = vcombine.low %v6793_v12, %v6797_v49  ;;  %v6825_v9 = vld [vmem:[#allocation4 + $0x1508] sm:$0xff] }
 0x531   :  { %12527 = vmatpush1.bf16.msra.mxu0 %v18168_v24  ;;  %v18203_v24 = vcombine.high %v6793_v12, %v6797_v49  ;;  %v6829_v17 = vld [vmem:[#allocation4 + $0x1528] sm:$0xff]  ;;  %v18224_v12 = vcombine.low %v6816_v51, %v6820_v34 }
 0x532   :  { %12855 = vmatpush1.bf16.msra.mxu1 %v18170_v29  ;;  %12528 = vmatprep.subr.bf16.mxu0 %v18177_v61  ;;  %v6800_v29 = vld [vmem:[#allocation4 + $0x1440] sm:$0xff]  ;;  %v20722_v37 = vpack.c.bf16 %v6131_v27, %v6131_v27  ;;  %v18235_v20 = vcombine.high %v6825_v9, %v6829_v17  ;;  %v6837_v27 = vld [vmem:[#allocation4 + $0x1568] sm:$0xff] }
 0x533   :  { %12856 = vmatprep.subr.bf16.mxu1 %v18179_v23  ;;  %v6804_v61 = vld [vmem:[#allocation4 + $0x1460] sm:$0xff]  ;;  %v18200_v23 = vcombine.low %v6792_v6, %v6796_v7 }
 0x534   :  { %v18209_v5 = vcombine.high %v6800_v29, %v6804_v61  ;;  %v18208_v43 = vcombine.low %v6800_v29, %v6804_v61  ;;  %v6824_v6 = vld [vmem:[#allocation4 + $0x1500] sm:$0xff]  ;;  %v18234_v61 = vcombine.low %v6825_v9, %v6829_v17 }
 0x535   :  { %12529 = vmatpush1.bf16.msra.mxu0 %v18176_v2  ;;  %v6808_v2 = vld [vmem:[#allocation4 + $0x1480] sm:$0xff] }
 0x536   :  { %12857 = vmatpush1.bf16.msra.mxu1 %v18178_v50  ;;  %12530 = vmatprep.subr.bf16.mxu0 %v18185_v40  ;;  %v18211_v50 = vcombine.high %v6801_v31, %v6805_v35  ;;  %v6809_v40 = vld [vmem:[#allocation4 + $0x1488] sm:$0xff]  ;;  %v18217_v46 = vcombine.high %v6808_v2, %v6812_v60  ;;  %v18216_v63 = vcombine.low %v6808_v2, %v6812_v60  ;;  %v6828_v7 = vld [vmem:[#allocation4 + $0x1520] sm:$0xff] }
 0x537   :  { %12858 = vmatprep.subr.bf16.mxu1 %v18187_v42  ;;  %v6813_v42 = vld [vmem:[#allocation4 + $0x14a8] sm:$0xff]  ;;  %v18232_v29 = vcombine.low %v6824_v6, %v6828_v7  ;;  %v6840_v35 = vld [vmem:[#allocation4 + $0x1580] sm:$0xff] }
 0x538   :  { %v18219_v58 = vcombine.high %v6809_v40, %v6813_v42  ;;  %v6845_v2 = vld [vmem:[#allocation4 + $0x15a8] sm:$0xff] }
 0x539   :  { %12531 = vmatpush1.bf16.msra.mxu0 %v18184_v57  ;;  %v6821_v57 = vld [vmem:[#allocation4 + $0x14e8] sm:$0xff] }
 0x53a   :  { %12859 = vmatpush1.bf16.msra.mxu1 %v18186_v19  ;;  %12532 = vmatprep.subr.bf16.mxu0 %v18193_v3  ;;  %v18218_v19 = vcombine.low %v6809_v40, %v6813_v42  ;;  %v18225_v3 = vcombine.high %v6816_v51, %v6820_v34  ;;  %v18226_v49 = vcombine.low %v6817_v55, %v6821_v57 }
 0x53b   :  { %12860 = vmatprep.subr.bf16.mxu1 %v18195_v48  ;;  %v18227_v48 = vcombine.high %v6817_v55, %v6821_v57 }
 0x53d   :  { %12533 = vmatpush1.bf16.msra.mxu0 %v18192_v38  ;;  %v18233_v38 = vcombine.high %v6824_v6, %v6828_v7 }
 0x53e   :  { %12861 = vmatpush1.bf16.msra.mxu1 %v18194_v22  ;;  %12543 = vmatprep.subr.bf16.mxu0 %v18201_v26  ;;  %v6832_v22 = vld [vmem:[#allocation4 + $0x1540] sm:$0xff] }
 0x53f   :  { %12871 = vmatprep.subr.bf16.mxu1 %v18203_v24  ;;  %v6836_v26 = vld [vmem:[#allocation4 + $0x1560] sm:$0xff]  ;;  %v6833_v24 = vld [vmem:[#allocation4 + $0x1548] sm:$0xff] }
 0x540   :  { %12535 = vmatmul.mubr.bf16.vlgmr.msra.gmra.mrb[16].mxu0 %v20720_v32  ;;  %v18243_v31 = vcombine.high %v6833_v24, %v6837_v27  ;;  %v18240_v60 = vcombine.low %v6832_v22, %v6836_v26 }
 0x541   :  { %12863 = vmatmul.mubr.bf16.vlgmr.msra.gmra.mrb[16].mxu1 %v20720_v32  ;;  %12544 = vmatpush1.bf16.msra.mxu0 %v18200_v23  ;;  %v18241_v23 = vcombine.high %v6832_v22, %v6836_v26 }
 0x542   :  { %12575 = vmatprep.mubr.bf16.mxu0 %v20722_v37  ;;  %12872 = vmatpush1.bf16.msra.mxu1 %v18202_v33  ;;  %v6844_v33 = vld [vmem:[#allocation4 + $0x15a0] sm:$0xff] }
 0x543   :  { %12903 = vmatprep.mubr.bf16.mxu1 %v20722_v37  ;;  %12545 = vmatprep.subr.bf16.mxu0 %v18209_v5  ;;  %v6841_v5 = vld [vmem:[#allocation4 + $0x1588] sm:$0xff]  ;;  %v18249_v40 = vcombine.high %v6840_v35, %v6844_v33  ;;  %v18248_v51 = vcombine.low %v6840_v35, %v6844_v33 }
 0x544   :  { %12873 = vmatprep.subr.bf16.mxu1 %v18211_v50  ;;  %v18242_v50 = vcombine.low %v6833_v24, %v6837_v27  ;;  %v18251_v42 = vcombine.high %v6841_v5, %v6845_v2  ;;  %v18250_v34 = vcombine.low %v6841_v5, %v6845_v2 }
 0x545   :  { %12546 = vmatpush1.bf16.msra.mxu0 %v18208_v43  ;;  %v6848_v43 = vld [vmem:[#allocation4 + $0x15c0] sm:$0xff] }
 0x546   :  { %12874 = vmatpush1.bf16.msra.mxu1 %v18210_v16  ;;  %12547 = vmatprep.subr.bf16.mxu0 %v18217_v46  ;;  %v6852_v16 = vld [vmem:[#allocation4 + $0x15e0] sm:$0xff]  ;;  %v6849_v46 = vld [vmem:[#allocation4 + $0x15c8] sm:$0xff] }
 0x547   :  { %12875 = vmatprep.subr.bf16.mxu1 %v18219_v58  ;;  %v6853_v58 = vld [vmem:[#allocation4 + $0x15e8] sm:$0xff]  ;;  %v18257_v55 = vcombine.high %v6848_v43, %v6852_v16  ;;  %v18256_v6 = vcombine.low %v6848_v43, %v6852_v16 }
 0x548   :  { %v18259_v57 = vcombine.high %v6849_v46, %v6853_v58  ;;  %v18258_v7 = vcombine.low %v6849_v46, %v6853_v58 }
 0x549   :  { %12548 = vmatpush1.bf16.msra.mxu0 %v18216_v63  ;;  %v6856_v63 = vld [vmem:[#allocation4 + $0x1600] sm:$0xff] }
 0x54a   :  { %12876 = vmatpush1.bf16.msra.mxu1 %v18218_v19  ;;  %12549 = vmatprep.subr.bf16.mxu0 %v18225_v3  ;;  %v6860_v19 = vld [vmem:[#allocation4 + $0x1620] sm:$0xff]  ;;  %v6857_v3 = vld [vmem:[#allocation4 + $0x1608] sm:$0xff] }
 0x54b   :  { %12877 = vmatprep.subr.bf16.mxu1 %v18227_v48  ;;  %v6861_v48 = vld [vmem:[#allocation4 + $0x1628] sm:$0xff]  ;;  %v18265_v9 = vcombine.high %v6856_v63, %v6860_v19  ;;  %v18264_v22 = vcombine.low %v6856_v63, %v6860_v19  ;;  %v1055_v19 = vrot.slane %v20678_v14, %v20606_v62 }
 0x54c   :  { %v18267_v17 = vcombine.high %v6857_v3, %v6861_v48  ;;  %v18266_v26 = vcombine.low %v6857_v3, %v6861_v48 }
 0x54d   :  { %12550 = vmatpush1.bf16.msra.mxu0 %v18224_v12  ;;  %v6864_v12 = vld [vmem:[#allocation4 + $0x1640] sm:$0xff] }
 0x54e   :  { %12878 = vmatpush1.bf16.msra.mxu1 %v18226_v49  ;;  %12551 = vmatprep.subr.bf16.mxu0 %v18233_v38  ;;  %v6868_v49 = vld [vmem:[#allocation4 + $0x1660] sm:$0xff]  ;;  %v6865_v38 = vld [vmem:[#allocation4 + $0x1648] sm:$0xff] }
 0x54f   :  { %12879 = vmatprep.subr.bf16.mxu1 %v18235_v20  ;;  %v6869_v20 = vld [vmem:[#allocation4 + $0x1668] sm:$0xff]  ;;  %v18273_v24 = vcombine.high %v6864_v12, %v6868_v49  ;;  %v18272_v35 = vcombine.low %v6864_v12, %v6868_v49 }
 0x550   :  { %v18275_v27 = vcombine.high %v6865_v38, %v6869_v20  ;;  %v18274_v33 = vcombine.low %v6865_v38, %v6869_v20  ;;  %v6897_v12 = vld [vmem:[#allocation4 + $0x1748] sm:$0xff]  ;;  %v19023_v20 = vadd.f32 %v20571_v53, %v1055_v19 }
 0x551   :  { %12552 = vmatpush1.bf16.msra.mxu0 %v18232_v29  ;;  %v6872_v29 = vld [vmem:[#allocation4 + $0x1680] sm:$0xff]  ;;  %v6901_v49 = vld [vmem:[#allocation4 + $0x1768] sm:$0xff] }
 0x552   :  { %12880 = vmatpush1.bf16.msra.mxu1 %v18234_v61  ;;  %12553 = vmatprep.subr.bf16.mxu0 %v18241_v23  ;;  %v6876_v61 = vld [vmem:[#allocation4 + $0x16a0] sm:$0xff]  ;;  %v6873_v23 = vld [vmem:[#allocation4 + $0x1688] sm:$0xff]  ;;  %v18306_v53 = vcombine.low %v6897_v12, %v6901_v49 }
 0x553   :  { %12881 = vmatprep.subr.bf16.mxu1 %v18243_v31  ;;  %v6877_v31 = vld [vmem:[#allocation4 + $0x16a8] sm:$0xff]  ;;  %v18281_v5 = vcombine.high %v6872_v29, %v6876_v61  ;;  %v18280_v43 = vcombine.low %v6872_v29, %v6876_v61  ;;  %v6908_v29 = vld [vmem:[#allocation4 + $0x17a0] sm:$0xff] }
 0x554   :  { %v18283_v2 = vcombine.high %v6873_v23, %v6877_v31  ;;  %v18282_v16 = vcombine.low %v6873_v23, %v6877_v31  ;;  %v6905_v23 = vld [vmem:[#allocation4 + $0x1788] sm:$0xff] }
 0x555   :  { %12554 = vmatpush1.bf16.msra.mxu0 %v18240_v60  ;;  %v6880_v60 = vld [vmem:[#allocation4 + $0x16c0] sm:$0xff]  ;;  %v6909_v31 = vld [vmem:[#allocation4 + $0x17a8] sm:$0xff] }
 0x556   :  { %12882 = vmatpush1.bf16.msra.mxu1 %v18242_v50  ;;  %12555 = vmatprep.subr.bf16.mxu0 %v18249_v40  ;;  %v6884_v50 = vld [vmem:[#allocation4 + $0x16e0] sm:$0xff]  ;;  %v6881_v40 = vld [vmem:[#allocation4 + $0x16c8] sm:$0xff] }
 0x557   :  { %12883 = vmatprep.subr.bf16.mxu1 %v18251_v42  ;;  %v6885_v42 = vld [vmem:[#allocation4 + $0x16e8] sm:$0xff]  ;;  %v18289_v46 = vcombine.high %v6880_v60, %v6884_v50  ;;  %v18288_v63 = vcombine.low %v6880_v60, %v6884_v50  ;;  %v6912_v60 = vld [vmem:[#allocation4 + $0x17c0] sm:$0xff] }
 0x558   :  { %v18291_v58 = vcombine.high %v6881_v40, %v6885_v42  ;;  %v18290_v3 = vcombine.low %v6881_v40, %v6885_v42  ;;  %v6916_v50 = vld [vmem:[#allocation4 + $0x17e0] sm:$0xff]  ;;  %v6913_v42 = vld [vmem:[#allocation4 + $0x17c8] sm:$0xff] }
 0x559   :  { %12556 = vmatpush1.bf16.msra.mxu0 %v18248_v51  ;;  %v6888_v51 = vld [vmem:[#allocation4 + $0x1700] sm:$0xff] }
 0x55a   :  { %12884 = vmatpush1.bf16.msra.mxu1 %v18250_v34  ;;  %12557 = vmatprep.subr.bf16.mxu0 %v18257_v55  ;;  %v6892_v34 = vld [vmem:[#allocation4 + $0x1720] sm:$0xff]  ;;  %v6889_v55 = vld [vmem:[#allocation4 + $0x1708] sm:$0xff] }
 0x55b   :  { %12885 = vmatprep.subr.bf16.mxu1 %v18259_v57  ;;  %v6893_v57 = vld [vmem:[#allocation4 + $0x1728] sm:$0xff]  ;;  %v18297_v48 = vcombine.high %v6888_v51, %v6892_v34  ;;  %v18296_v38 = vcombine.low %v6888_v51, %v6892_v34  ;;  %v18314_v51 = vcombine.low %v6905_v23, %v6909_v31  ;;  %v18321_v34 = vcombine.high %v6912_v60, %v6916_v50 }
 0x55d   :  { %12558 = vmatpush1.bf16.msra.mxu0 %v18256_v6  ;;  %v18299_v6 = vcombine.high %v6889_v55, %v6893_v57 }
 0x55e   :  { %12886 = vmatpush1.bf16.msra.mxu1 %v18258_v7  ;;  %12559 = vmatprep.subr.bf16.mxu0 %v18265_v9  ;;  %v6896_v7 = vld [vmem:[#allocation4 + $0x1740] sm:$0xff] }
 0x55f   :  { %12887 = vmatprep.subr.bf16.mxu1 %v18267_v17  ;;  %v6900_v9 = vld [vmem:[#allocation4 + $0x1760] sm:$0xff]  ;;  %v1067_v17 = vrot.slane %v20678_v14, %v20609_v8 }
 0x560   :  { %v18304_v14 = vcombine.low %v6896_v7, %v6900_v9 }
 0x561   :  { %12560 = vmatpush1.bf16.msra.mxu0 %v18264_v22  ;;  %v18298_v22 = vcombine.low %v6889_v55, %v6893_v57  ;;  %v19026_v61 = vadd.f32 %v20671_v10, %v1067_v17  ;;  %v5993_v10 = vrot.slane %v20686_v39, %v20609_v8  ;;  %v6920_v57 = vld [vmem:[#allocation4 + $0x1800] sm:$0xff] }
 0x562   :  { %12888 = vmatpush1.bf16.msra.mxu1 %v18266_v26  ;;  %12561 = vmatprep.subr.bf16.mxu0 %v18273_v24  ;;  %v18305_v26 = vcombine.high %v6896_v7, %v6900_v9  ;;  %v18307_v24 = vcombine.high %v6897_v12, %v6901_v49 }
 0x563   :  { %12889 = vmatprep.subr.bf16.mxu1 %v18275_v27  ;;  %v6904_v27 = vld [vmem:[#allocation4 + $0x1780] sm:$0xff]  ;;  %v5929_v40 = vmax.f32 %v19026_v61, 0.0 }
 0x564   :  { %v6936_v61 = vld [vmem:[#allocation4 + $0x1880] sm:$0xff] }
 0x565   :  { %12562 = vmatpush1.bf16.msra.mxu0 %v18272_v35  ;;  %v5926_v35 = vmax.f32 %v19023_v20, 0.0  ;;  %v6031_v19 = vmul.f32 %v5993_v10, %v5929_v40  ;;  %v6932_v20 = vld [vmem:[#allocation4 + $0x1860] sm:$0xff]  ;;  %v6945_v10 = vld [vmem:[#allocation4 + $0x18c8] sm:$0xff] }
 0x566   :  { %12890 = vmatpush1.bf16.msra.mxu1 %v18274_v33  ;;  %12563 = vmatprep.subr.bf16.mxu0 %v18281_v5  ;;  %v5981_v33 = vrot.slane %v20686_v39, %v20606_v62  ;;  %v18313_v5 = vcombine.high %v6904_v27, %v6908_v29  ;;  %v6095_v39 = vrot.slane %v20694_v4, %v20609_v8  ;;  %v6948_v40 = vld [vmem:[#allocation4 + $0x18e0] sm:$0xff] }
 0x567   :  { %12891 = vmatprep.subr.bf16.mxu1 %v18283_v2  ;;  %v18315_v2 = vcombine.high %v6905_v23, %v6909_v31  ;;  %v6940_v23 = vld [vmem:[#allocation4 + $0x18a0] sm:$0xff] }
 0x568   :  { %v6133_v49 = vadd.f32 %v6095_v39, %v6031_v19 }
 0x569   :  { %12564 = vmatpush1.bf16.msra.mxu0 %v18280_v43  ;;  %v6917_v43 = vld [vmem:[#allocation4 + $0x17e8] sm:$0xff] }
 0x56a   :  { %12892 = vmatpush1.bf16.msra.mxu1 %v18282_v16  ;;  %12565 = vmatprep.subr.bf16.mxu0 %v18289_v46  ;;  %v6083_v16 = vrot.slane %v20694_v4, %v20606_v62  ;;  %v18312_v46 = vcombine.low %v6904_v27, %v6908_v29  ;;  %v18323_v55 = vcombine.high %v6913_v42, %v6917_v43 }
 0x56b   :  { %12893 = vmatprep.subr.bf16.mxu1 %v18291_v58  ;;  %v6028_v58 = vmul.f32 %v5981_v33, %v5926_v35  ;;  %v18322_v9 = vcombine.low %v6913_v42, %v6917_v43  ;;  %v20744_v31 = vpack.c.bf16 %v6133_v49, %v6133_v49  ;;  %v6937_v35 = vld [vmem:[#allocation4 + $0x1888] sm:$0xff]  ;;  %v18344_v43 = vcombine.low %v6936_v61, %v6940_v23 }
 0x56c   :  { %v6941_v33 = vld [vmem:[#allocation4 + $0x18a8] sm:$0xff] }
 0x56d   :  { %12566 = vmatpush1.bf16.msra.mxu0 %v18288_v63  ;;  %v6924_v63 = vld [vmem:[#allocation4 + $0x1820] sm:$0xff]  ;;  %v6130_v7 = vadd.f32 %v6083_v16, %v6028_v58  ;;  %v6949_v42 = vld [vmem:[#allocation4 + $0x18e8] sm:$0xff]  ;;  %v18346_v16 = vcombine.low %v6937_v35, %v6941_v33 }
 0x56e   :  { %12894 = vmatpush1.bf16.msra.mxu1 %v18290_v3  ;;  %12567 = vmatprep.subr.bf16.mxu0 %v18297_v48  ;;  %v6921_v3 = vld [vmem:[#allocation4 + $0x1808] sm:$0xff]  ;;  %v18329_v17 = vcombine.high %v6920_v57, %v6924_v63  ;;  %v18355_v58 = vcombine.high %v6945_v10, %v6949_v42  ;;  %v18354_v19 = vcombine.low %v6945_v10, %v6949_v42  ;;  %v6988_v10 = vld [vmem:[#allocation4 + $0x1a20] sm:$0xff] }
 0x56f   :  { %12895 = vmatprep.subr.bf16.mxu1 %v18299_v6  ;;  %v6925_v48 = vld [vmem:[#allocation4 + $0x1828] sm:$0xff]  ;;  %v18320_v6 = vcombine.low %v6912_v60, %v6916_v50  ;;  %v20742_v27 = vpack.c.bf16 %v6130_v7, %v6130_v7  ;;  %v18347_v60 = vcombine.high %v6937_v35, %v6941_v33  ;;  %v6944_v50 = vld [vmem:[#allocation4 + $0x18c0] sm:$0xff] }
 0x570   :  { %v18331_v12 = vcombine.high %v6921_v3, %v6925_v48  ;;  %v18330_v4 = vcombine.low %v6921_v3, %v6925_v48  ;;  %v6960_v48 = vld [vmem:[#allocation4 + $0x1940] sm:$0xff]  ;;  %v6961_v7 = vld [vmem:[#allocation4 + $0x1948] sm:$0xff] }
 0x571   :  { %12568 = vmatpush1.bf16.msra.mxu0 %v18296_v38  ;;  %v6928_v38 = vld [vmem:[#allocation4 + $0x1840] sm:$0xff]  ;;  %v6977_v33 = vld [vmem:[#allocation4 + $0x19c8] sm:$0xff] }
 0x572   :  { %12896 = vmatpush1.bf16.msra.mxu1 %v18298_v22  ;;  %12569 = vmatprep.subr.bf16.mxu0 %v18305_v26  ;;  %v18328_v22 = vcombine.low %v6920_v57, %v6924_v63  ;;  %v6929_v26 = vld [vmem:[#allocation4 + $0x1848] sm:$0xff]  ;;  %v18337_v29 = vcombine.high %v6928_v38, %v6932_v20  ;;  %v18352_v63 = vcombine.low %v6944_v50, %v6948_v40  ;;  %v6980_v35 = vld [vmem:[#allocation4 + $0x19e0] sm:$0xff] }
 0x573   :  { %12897 = vmatprep.subr.bf16.mxu1 %v18307_v24  ;;  %v6933_v24 = vld [vmem:[#allocation4 + $0x1868] sm:$0xff] }
 0x574   :  { %v6957_v57 = vld [vmem:[#allocation4 + $0x1928] sm:$0xff] }
 0x575   :  { %12570 = vmatpush1.bf16.msra.mxu0 %v18304_v14  ;;  %v18339_v14 = vcombine.high %v6929_v26, %v6933_v24  ;;  %v6985_v42 = vld [vmem:[#allocation4 + $0x1a08] sm:$0xff] }
 0x576   :  { %12898 = vmatpush1.bf16.msra.mxu1 %v18306_v53  ;;  %12571 = vmatprep.subr.bf16.mxu0 %v18313_v5  ;;  %v18336_v53 = vcombine.low %v6928_v38, %v6932_v20  ;;  %v18338_v5 = vcombine.low %v6929_v26, %v6933_v24  ;;  %v6968_v20 = vld [vmem:[#allocation4 + $0x1980] sm:$0xff]  ;;  %v6969_v26 = vld [vmem:[#allocation4 + $0x1988] sm:$0xff] }
 0x577   :  { %12899 = vmatprep.subr.bf16.mxu1 %v18315_v2  ;;  %v18345_v2 = vcombine.high %v6936_v61, %v6940_v23  ;;  %v6973_v24 = vld [vmem:[#allocation4 + $0x19a8] sm:$0xff] }
 0x578   :  { %v18379_v23 = vcombine.high %v6969_v26, %v6973_v24 }
 0x579   :  { %12572 = vmatpush1.bf16.msra.mxu0 %v18312_v46  ;;  %v18353_v46 = vcombine.high %v6944_v50, %v6948_v40  ;;  %v6984_v40 = vld [vmem:[#allocation4 + $0x1a00] sm:$0xff] }
 0x57a   :  { %12900 = vmatpush1.bf16.msra.mxu1 %v18314_v51  ;;  %12573 = vmatprep.subr.bf16.mxu0 %v18321_v34  ;;  %v6952_v51 = vld [vmem:[#allocation4 + $0x1900] sm:$0xff] }
 0x57b   :  { %12901 = vmatprep.subr.bf16.mxu1 %v18323_v55  ;;  %v6956_v34 = vld [vmem:[#allocation4 + $0x1920] sm:$0xff]  ;;  %v6953_v55 = vld [vmem:[#allocation4 + $0x1908] sm:$0xff] }
 0x57c   :  { %v18361_v39 = vcombine.high %v6952_v51, %v6956_v34  ;;  %v18363_v3 = vcombine.high %v6953_v55, %v6957_v57 }
 0x57d   :  { %12574 = vmatpush1.bf16.msra.mxu0 %v18320_v6  ;;  %v6964_v6 = vld [vmem:[#allocation4 + $0x1960] sm:$0xff] }
 0x57e   :  { %12902 = vmatpush1.bf16.msra.mxu1 %v18322_v9  ;;  %12584 = vmatprep.subr.bf16.mxu0 %v18329_v17  ;;  %v6965_v9 = vld [vmem:[#allocation4 + $0x1968] sm:$0xff]  ;;  %v18360_v17 = vcombine.low %v6952_v51, %v6956_v34  ;;  %v18369_v49 = vcombine.high %v6960_v48, %v6964_v6  ;;  %v6992_v34 = vld [vmem:[#allocation4 + $0x1a40] sm:$0xff] }
 0x57f   :  { %12912 = vmatprep.subr.bf16.mxu1 %v18331_v12  ;;  %v18362_v12 = vcombine.low %v6953_v55, %v6957_v57  ;;  %v18371_v38 = vcombine.high %v6961_v7, %v6965_v9  ;;  %v6996_v55 = vld [vmem:[#allocation4 + $0x1a60] sm:$0xff]  ;;  %v6993_v57 = vld [vmem:[#allocation4 + $0x1a48] sm:$0xff] }
 0x580   :  { %12576 = vmatmul.mubr.bf16.vlgmr.msra.gmra.mrb[16].mxu0 %v20742_v27 }
 0x581   :  { %12904 = vmatmul.mubr.bf16.vlgmr.msra.gmra.mrb[16].mxu1 %v20742_v27  ;;  %12585 = vmatpush1.bf16.msra.mxu0 %v18328_v22  ;;  %v6972_v22 = vld [vmem:[#allocation4 + $0x19a0] sm:$0xff] }
 0x582   :  { %12616 = vmatprep.mubr.bf16.mxu0 %v20744_v31  ;;  %12913 = vmatpush1.bf16.msra.mxu1 %v18330_v4  ;;  %v18368_v4 = vcombine.low %v6960_v48, %v6964_v6  ;;  %v18377_v61 = vcombine.high %v6968_v20, %v6972_v22  ;;  %v7000_v6 = vld [vmem:[#allocation4 + $0x1a80] sm:$0xff] }
 0x583   :  { %12944 = vmatprep.mubr.bf16.mxu1 %v20744_v31  ;;  %12586 = vmatprep.subr.bf16.mxu0 %v18337_v29  ;;  %v18370_v29 = vcombine.low %v6961_v7, %v6965_v9  ;;  %v7004_v7 = vld [vmem:[#allocation4 + $0x1aa0] sm:$0xff]  ;;  %v7001_v9 = vld [vmem:[#allocation4 + $0x1a88] sm:$0xff] }
 0x584   :  { %12914 = vmatprep.subr.bf16.mxu1 %v18339_v14  ;;  %v6976_v14 = vld [vmem:[#allocation4 + $0x19c0] sm:$0xff] }
 0x585   :  { %12587 = vmatpush1.bf16.msra.mxu0 %v18336_v53  ;;  %v6981_v53 = vld [vmem:[#allocation4 + $0x19e8] sm:$0xff] }
 0x586   :  { %12915 = vmatpush1.bf16.msra.mxu1 %v18338_v5  ;;  %12588 = vmatprep.subr.bf16.mxu0 %v18345_v2  ;;  %v18376_v5 = vcombine.low %v6968_v20, %v6972_v22  ;;  %v18378_v2 = vcombine.low %v6969_v26, %v6973_v24  ;;  %v18387_v50 = vcombine.high %v6977_v33, %v6981_v53  ;;  %v7008_v22 = vld [vmem:[#allocation4 + $0x1ac0] sm:$0xff]  ;;  %v7009_v24 = vld [vmem:[#allocation4 + $0x1ac8] sm:$0xff] }
 0x587   :  { %12916 = vmatprep.subr.bf16.mxu1 %v18347_v60  ;;  %v18385_v60 = vcombine.high %v6976_v14, %v6980_v35  ;;  %v7012_v26 = vld [vmem:[#allocation4 + $0x1ae0] sm:$0xff] }
 0x589   :  { %12589 = vmatpush1.bf16.msra.mxu0 %v18344_v43  ;;  %v6989_v43 = vld [vmem:[#allocation4 + $0x1a28] sm:$0xff] }
 0x58a   :  { %12917 = vmatpush1.bf16.msra.mxu1 %v18346_v16  ;;  %12590 = vmatprep.subr.bf16.mxu0 %v18353_v46  ;;  %v18384_v16 = vcombine.low %v6976_v14, %v6980_v35  ;;  %v18386_v46 = vcombine.low %v6977_v33, %v6981_v53  ;;  %v18395_v51 = vcombine.high %v6985_v42, %v6989_v43  ;;  %v7016_v35 = vld [vmem:[#allocation4 + $0x1b00] sm:$0xff]  ;;  %v7017_v53 = vld [vmem:[#allocation4 + $0x1b08] sm:$0xff] }
 0x58b   :  { %12918 = vmatprep.subr.bf16.mxu1 %v18355_v58  ;;  %v18393_v58 = vcombine.high %v6984_v40, %v6988_v10  ;;  %v7020_v33 = vld [vmem:[#allocation4 + $0x1b20] sm:$0xff] }
 0x58d   :  { %12591 = vmatpush1.bf16.msra.mxu0 %v18352_v63  ;;  %v6997_v63 = vld [vmem:[#allocation4 + $0x1a68] sm:$0xff] }
 0x58e   :  { %12919 = vmatpush1.bf16.msra.mxu1 %v18354_v19  ;;  %12592 = vmatprep.subr.bf16.mxu0 %v18361_v39  ;;  %v18392_v19 = vcombine.low %v6984_v40, %v6988_v10  ;;  %v18394_v39 = vcombine.low %v6985_v42, %v6989_v43  ;;  %v18403_v48 = vcombine.high %v6993_v57, %v6997_v63  ;;  %v7024_v43 = vld [vmem:[#allocation4 + $0x1b40] sm:$0xff] }
 0x58f   :  { %12920 = vmatprep.subr.bf16.mxu1 %v18363_v3  ;;  %v18401_v3 = vcombine.high %v6992_v34, %v6996_v55  ;;  %v18425_v10 = vcombine.high %v7016_v35, %v7020_v33 }
 0x591   :  { %12593 = vmatpush1.bf16.msra.mxu0 %v18360_v17  ;;  %v7005_v17 = vld [vmem:[#allocation4 + $0x1aa8] sm:$0xff] }
 0x592   :  { %12921 = vmatpush1.bf16.msra.mxu1 %v18362_v12  ;;  %12594 = vmatprep.subr.bf16.mxu0 %v18369_v49  ;;  %v18400_v12 = vcombine.low %v6992_v34, %v6996_v55  ;;  %v18402_v49 = vcombine.low %v6993_v57, %v6997_v63  ;;  %v18411_v20 = vcombine.high %v7001_v9, %v7005_v17 }
 0x593   :  { %12922 = vmatprep.subr.bf16.mxu1 %v18371_v38  ;;  %v18409_v38 = vcombine.high %v7000_v6, %v7004_v7  ;;  %v18424_v34 = vcombine.low %v7016_v35, %v7020_v33 }
 0x595   :  { %12595 = vmatpush1.bf16.msra.mxu0 %v18368_v4  ;;  %v7013_v4 = vld [vmem:[#allocation4 + $0x1ae8] sm:$0xff] }
 0x596   :  { %12923 = vmatpush1.bf16.msra.mxu1 %v18370_v29  ;;  %12596 = vmatprep.subr.bf16.mxu0 %v18377_v61  ;;  %v18408_v29 = vcombine.low %v7000_v6, %v7004_v7  ;;  %v18410_v61 = vcombine.low %v7001_v9, %v7005_v17  ;;  %v18419_v14 = vcombine.high %v7009_v24, %v7013_v4  ;;  %v7033_v6 = vld [vmem:[#allocation4 + $0x1b88] sm:$0xff] }
 0x597   :  { %12924 = vmatprep.subr.bf16.mxu1 %v18379_v23  ;;  %v18417_v23 = vcombine.high %v7008_v22, %v7012_v26  ;;  %v18418_v40 = vcombine.low %v7009_v24, %v7013_v4  ;;  %v7037_v7 = vld [vmem:[#allocation4 + $0x1ba8] sm:$0xff] }
 0x598   :  { %v7041_v4 = vld [vmem:[#allocation4 + $0x1bc8] sm:$0xff]  ;;  %v18442_v33 = vcombine.low %v7033_v6, %v7037_v7 }
 0x599   :  { %12597 = vmatpush1.bf16.msra.mxu0 %v18376_v5  ;;  %v7021_v5 = vld [vmem:[#allocation4 + $0x1b28] sm:$0xff] }
 0x59a   :  { %12925 = vmatpush1.bf16.msra.mxu1 %v18378_v2  ;;  %12598 = vmatprep.subr.bf16.mxu0 %v18385_v60  ;;  %v18416_v2 = vcombine.low %v7008_v22, %v7012_v26  ;;  %v20750_v60 = vld [vmem:[#allocation9 + $0x20] ss:$4 sm:$0xff]  ;;  %v18427_v42 = vcombine.high %v7017_v53, %v7021_v5  ;;  %v18426_v57 = vcombine.low %v7017_v53, %v7021_v5 }
 0x59b   :  { %12926 = vmatprep.subr.bf16.mxu1 %v18387_v50  ;;  %v1063_v50 = vrot.slane %v20750_v60, %v20634_v13  ;;  %v7040_v22 = vld [vmem:[#allocation4 + $0x1bc0] sm:$0xff] }
 0x59c   :  { %v7044_v26 = vld [vmem:[#allocation4 + $0x1be0] sm:$0xff] }
 0x59d   :  { %12599 = vmatpush1.bf16.msra.mxu0 %v18384_v16  ;;  %v7028_v16 = vld [vmem:[#allocation4 + $0x1b60] sm:$0xff]  ;;  %v19025_v55 = vadd.f32 %v20667_v25, %v1063_v50  ;;  %v18449_v53 = vcombine.high %v7040_v22, %v7044_v26 }
 0x59e   :  { %12927 = vmatpush1.bf16.msra.mxu1 %v18386_v46  ;;  %12600 = vmatprep.subr.bf16.mxu0 %v18393_v58  ;;  %v1075_v46 = vrot.slane %v20750_v60, %v20637_v21  ;;  %v7025_v58 = vld [vmem:[#allocation4 + $0x1b48] sm:$0xff]  ;;  %v18433_v63 = vcombine.high %v7024_v43, %v7028_v16  ;;  %v18432_v9 = vcombine.low %v7024_v43, %v7028_v16  ;;  %v7052_v50 = vld [vmem:[#allocation4 + $0x1c20] sm:$0xff] }
 0x59f   :  { %12928 = vmatprep.subr.bf16.mxu1 %v18395_v51  ;;  %v7029_v51 = vld [vmem:[#allocation4 + $0x1b68] sm:$0xff]  ;;  %v5928_v17 = vmax.f32 %v19025_v55, 0.0  ;;  %v18448_v16 = vcombine.low %v7040_v22, %v7044_v26 }
 0x5a0   :  { %v7053_v43 = vld [vmem:[#allocation4 + $0x1c28] sm:$0xff] }
 0x5a1   :  { %12601 = vmatpush1.bf16.msra.mxu0 %v18392_v19  ;;  %v18435_v19 = vcombine.high %v7025_v58, %v7029_v51 }
 0x5a2   :  { %12929 = vmatpush1.bf16.msra.mxu1 %v18394_v39  ;;  %12602 = vmatprep.subr.bf16.mxu0 %v18401_v3  ;;  %v7032_v39 = vld [vmem:[#allocation4 + $0x1b80] sm:$0xff] }
 0x5a3   :  { %12930 = vmatprep.subr.bf16.mxu1 %v18403_v48  ;;  %v7036_v3 = vld [vmem:[#allocation4 + $0x1ba0] sm:$0xff]  ;;  %v19028_v48 = vadd.f32 %v20673_v54, %v1075_v46 }
 0x5a5   :  { %12603 = vmatpush1.bf16.msra.mxu0 %v18400_v12  ;;  %v20758_v12 = vld [vmem:[#allocation9 + $0x21] ss:$4 sm:$0xff]  ;;  %v5931_v24 = vmax.f32 %v19028_v48, 0.0 }
 0x5a6   :  { %12931 = vmatpush1.bf16.msra.mxu1 %v18402_v49  ;;  %12604 = vmatprep.subr.bf16.mxu0 %v18409_v38  ;;  %v5989_v25 = vrot.slane %v20758_v12, %v20634_v13  ;;  %v18434_v49 = vcombine.low %v7025_v58, %v7029_v51  ;;  %v18441_v38 = vcombine.high %v7032_v39, %v7036_v3 }
 0x5a7   :  { %12932 = vmatprep.subr.bf16.mxu1 %v18411_v20  ;;  %v18443_v20 = vcombine.high %v7033_v6, %v7037_v7  ;;  %v6001_v54 = vrot.slane %v20758_v12, %v20637_v21 }
 0x5a8   :  { %v6030_v35 = vmul.f32 %v5989_v25, %v5928_v17  ;;  %v7068_v17 = vld [vmem:[#allocation4 + $0x1ca0] sm:$0xff] }
 0x5a9   :  { %12605 = vmatpush1.bf16.msra.mxu0 %v18408_v29  ;;  %v7045_v29 = vld [vmem:[#allocation4 + $0x1be8] sm:$0xff] }
 0x5aa   :  { %12933 = vmatpush1.bf16.msra.mxu1 %v18410_v61  ;;  %12606 = vmatprep.subr.bf16.mxu0 %v18417_v23  ;;  %v20764_v61 = vld [vmem:[#allocation9 + $0x22] ss:$4 sm:$0xff]  ;;  %v18451_v5 = vcombine.high %v7041_v4, %v7045_v29  ;;  %v18450_v58 = vcombine.low %v7041_v4, %v7045_v29 }
 0x5ab   :  { %12934 = vmatprep.subr.bf16.mxu1 %v18419_v14  ;;  %v6091_v23 = vrot.slane %v20764_v61, %v20634_v13  ;;  %v18440_v14 = vcombine.low %v7032_v39, %v7036_v3  ;;  %v7057_v39 = vld [vmem:[#allocation4 + $0x1c48] sm:$0xff]  ;;  %v7072_v4 = vld [vmem:[#allocation4 + $0x1cc0] sm:$0xff] }
 0x5ac   :  { %v7061_v3 = vld [vmem:[#allocation4 + $0x1c68] sm:$0xff]  ;;  %v7076_v29 = vld [vmem:[#allocation4 + $0x1ce0] sm:$0xff] }
 0x5ad   :  { %12607 = vmatpush1.bf16.msra.mxu0 %v18416_v2  ;;  %v7048_v2 = vld [vmem:[#allocation4 + $0x1c00] sm:$0xff]  ;;  %v6132_v46 = vadd.f32 %v6091_v23, %v6030_v35  ;;  %v18466_v26 = vcombine.low %v7057_v39, %v7061_v3  ;;  %v7073_v23 = vld [vmem:[#allocation4 + $0x1cc8] sm:$0xff] }
 0x5ae   :  { %12935 = vmatpush1.bf16.msra.mxu1 %v18418_v40  ;;  %12608 = vmatprep.subr.bf16.mxu0 %v18425_v10  ;;  %v6033_v40 = vmul.f32 %v6001_v54, %v5931_v24  ;;  %v6103_v10 = vrot.slane %v20764_v61, %v20637_v21  ;;  %v18457_v51 = vcombine.high %v7048_v2, %v7052_v50 }
 0x5af   :  { %12936 = vmatprep.subr.bf16.mxu1 %v18427_v42  ;;  %v7049_v42 = vld [vmem:[#allocation4 + $0x1c08] sm:$0xff]  ;;  %v20770_v48 = vpack.c.bf16 %v6132_v46, %v6132_v46 }
 0x5b0   :  { %v6135_v55 = vadd.f32 %v6103_v10, %v6033_v40  ;;  %v18458_v6 = vcombine.low %v7049_v42, %v7053_v43  ;;  %v7081_v40 = vld [vmem:[#allocation4 + $0x1d08] sm:$0xff] }
 0x5b1   :  { %12609 = vmatpush1.bf16.msra.mxu0 %v18424_v34  ;;  %v18459_v34 = vcombine.high %v7049_v42, %v7053_v43  ;;  %v7085_v10 = vld [vmem:[#allocation4 + $0x1d28] sm:$0xff]  ;;  %v18480_v42 = vcombine.low %v7072_v4, %v7076_v29 }
 0x5b2   :  { %12937 = vmatpush1.bf16.msra.mxu1 %v18426_v57  ;;  %12610 = vmatprep.subr.bf16.mxu0 %v18433_v63  ;;  %v7056_v57 = vld [vmem:[#allocation4 + $0x1c40] sm:$0xff]  ;;  %v20772_v25 = vpack.c.bf16 %v6135_v55, %v6135_v55  ;;  %v18491_v46 = vcombine.high %v7081_v40, %v7085_v10  ;;  %v7093_v55 = vld [vmem:[#allocation4 + $0x1d68] sm:$0xff] }
 0x5b3   :  { %12938 = vmatprep.subr.bf16.mxu1 %v18435_v19  ;;  %v7060_v63 = vld [vmem:[#allocation4 + $0x1c60] sm:$0xff]  ;;  %v18456_v19 = vcombine.low %v7048_v2, %v7052_v50 }
 0x5b4   :  { %v18465_v7 = vcombine.high %v7056_v57, %v7060_v63  ;;  %v18464_v22 = vcombine.low %v7056_v57, %v7060_v63  ;;  %v7080_v2 = vld [vmem:[#allocation4 + $0x1d00] sm:$0xff]  ;;  %v18490_v63 = vcombine.low %v7081_v40, %v7085_v10 }
 0x5b5   :  { %12611 = vmatpush1.bf16.msra.mxu0 %v18432_v9  ;;  %v7064_v9 = vld [vmem:[#allocation4 + $0x1c80] sm:$0xff] }
 0x5b6   :  { %12939 = vmatpush1.bf16.msra.mxu1 %v18434_v49  ;;  %12612 = vmatprep.subr.bf16.mxu0 %v18441_v38  ;;  %v18467_v49 = vcombine.high %v7057_v39, %v7061_v3  ;;  %v7065_v38 = vld [vmem:[#allocation4 + $0x1c88] sm:$0xff]  ;;  %v18473_v24 = vcombine.high %v7064_v9, %v7068_v17  ;;  %v18472_v35 = vcombine.low %v7064_v9, %v7068_v17  ;;  %v7084_v50 = vld [vmem:[#allocation4 + $0x1d20] sm:$0xff] }
 0x5b7   :  { %12940 = vmatprep.subr.bf16.mxu1 %v18443_v20  ;;  %v7069_v20 = vld [vmem:[#allocation4 + $0x1ca8] sm:$0xff]  ;;  %v18488_v57 = vcombine.low %v7080_v2, %v7084_v50  ;;  %v7096_v3 = vld [vmem:[#allocation4 + $0x1d80] sm:$0xff] }
 0x5b8   :  { %v18475_v54 = vcombine.high %v7065_v38, %v7069_v20  ;;  %v7101_v9 = vld [vmem:[#allocation4 + $0x1da8] sm:$0xff] }
 0x5b9   :  { %12613 = vmatpush1.bf16.msra.mxu0 %v18440_v14  ;;  %v7077_v14 = vld [vmem:[#allocation4 + $0x1ce8] sm:$0xff] }
 0x5ba   :  { %12941 = vmatpush1.bf16.msra.mxu1 %v18442_v33  ;;  %12614 = vmatprep.subr.bf16.mxu0 %v18449_v53  ;;  %v18474_v33 = vcombine.low %v7065_v38, %v7069_v20  ;;  %v18481_v53 = vcombine.high %v7072_v4, %v7076_v29  ;;  %v18482_v43 = vcombine.low %v7073_v23, %v7077_v14 }
 0x5bb   :  { %12942 = vmatprep.subr.bf16.mxu1 %v18451_v5  ;;  %v18483_v5 = vcombine.high %v7073_v23, %v7077_v14 }
 0x5bd   :  { %12615 = vmatpush1.bf16.msra.mxu0 %v18448_v16  ;;  %v18489_v16 = vcombine.high %v7080_v2, %v7084_v50 }
 0x5be   :  { %12943 = vmatpush1.bf16.msra.mxu1 %v18450_v58  ;;  %12625 = vmatprep.subr.bf16.mxu0 %v18457_v51  ;;  %v7088_v58 = vld [vmem:[#allocation4 + $0x1d40] sm:$0xff] }
 0x5bf   :  { %12953 = vmatprep.subr.bf16.mxu1 %v18459_v34  ;;  %v7092_v51 = vld [vmem:[#allocation4 + $0x1d60] sm:$0xff]  ;;  %v7089_v34 = vld [vmem:[#allocation4 + $0x1d48] sm:$0xff] }
 0x5c0   :  { %12617 = vmatmul.mubr.bf16.vlgmr.msra.gmra.mrb[16].mxu0 %v20770_v48  ;;  %v18499_v39 = vcombine.high %v7089_v34, %v7093_v55  ;;  %v18496_v17 = vcombine.low %v7088_v58, %v7092_v51 }
 0x5c1   :  { %12945 = vmatmul.mubr.bf16.vlgmr.msra.gmra.mrb[16].mxu1 %v20770_v48  ;;  %12626 = vmatpush1.bf16.msra.mxu0 %v18456_v19  ;;  %v18497_v19 = vcombine.high %v7088_v58, %v7092_v51 }
 0x5c2   :  { %12657 = vmatprep.mubr.bf16.mxu0 %v20772_v25  ;;  %12954 = vmatpush1.bf16.msra.mxu1 %v18458_v6  ;;  %v7100_v6 = vld [vmem:[#allocation4 + $0x1da0] sm:$0xff] }
 0x5c3   :  { %12985 = vmatprep.mubr.bf16.mxu1 %v20772_v25  ;;  %12627 = vmatprep.subr.bf16.mxu0 %v18465_v7  ;;  %v7097_v7 = vld [vmem:[#allocation4 + $0x1d88] sm:$0xff]  ;;  %v18505_v38 = vcombine.high %v7096_v3, %v7100_v6  ;;  %v18504_v4 = vcombine.low %v7096_v3, %v7100_v6 }
 0x5c4   :  { %12955 = vmatprep.subr.bf16.mxu1 %v18467_v49  ;;  %v18498_v49 = vcombine.low %v7089_v34, %v7093_v55  ;;  %v18507_v20 = vcombine.high %v7097_v7, %v7101_v9  ;;  %v18506_v29 = vcombine.low %v7097_v7, %v7101_v9 }
 0x5c5   :  { %12628 = vmatpush1.bf16.msra.mxu0 %v18464_v22  ;;  %v7104_v22 = vld [vmem:[#allocation4 + $0x1dc0] sm:$0xff] }
 0x5c6   :  { %12956 = vmatpush1.bf16.msra.mxu1 %v18466_v26  ;;  %12629 = vmatprep.subr.bf16.mxu0 %v18473_v24  ;;  %v7108_v26 = vld [vmem:[#allocation4 + $0x1de0] sm:$0xff]  ;;  %v7105_v24 = vld [vmem:[#allocation4 + $0x1dc8] sm:$0xff] }
 0x5c7   :  { %12957 = vmatprep.subr.bf16.mxu1 %v18475_v54  ;;  %v7109_v54 = vld [vmem:[#allocation4 + $0x1de8] sm:$0xff]  ;;  %v18513_v23 = vcombine.high %v7104_v22, %v7108_v26  ;;  %v18512_v2 = vcombine.low %v7104_v22, %v7108_v26 }
 0x5c8   :  { %v18515_v14 = vcombine.high %v7105_v24, %v7109_v54  ;;  %v18514_v50 = vcombine.low %v7105_v24, %v7109_v54 }
 0x5c9   :  { %12630 = vmatpush1.bf16.msra.mxu0 %v18472_v35  ;;  %v7112_v35 = vld [vmem:[#allocation4 + $0x1e00] sm:$0xff] }
 0x5ca   :  { %12958 = vmatpush1.bf16.msra.mxu1 %v18474_v33  ;;  %12631 = vmatprep.subr.bf16.mxu0 %v18481_v53  ;;  %v7116_v33 = vld [vmem:[#allocation4 + $0x1e20] sm:$0xff]  ;;  %v7113_v53 = vld [vmem:[#allocation4 + $0x1e08] sm:$0xff] }
 0x5cb   :  { %12959 = vmatprep.subr.bf16.mxu1 %v18483_v5  ;;  %v7117_v5 = vld [vmem:[#allocation4 + $0x1e28] sm:$0xff]  ;;  %v18521_v40 = vcombine.high %v7112_v35, %v7116_v33  ;;  %v18520_v58 = vcombine.low %v7112_v35, %v7116_v33  ;;  %v1071_v33 = vrot.slane %v20750_v60, %v20676_v59 }
 0x5cc   :  { %v18523_v10 = vcombine.high %v7113_v53, %v7117_v5  ;;  %v18522_v51 = vcombine.low %v7113_v53, %v7117_v5 }
 0x5cd   :  { %12632 = vmatpush1.bf16.msra.mxu0 %v18480_v42  ;;  %v7120_v42 = vld [vmem:[#allocation4 + $0x1e40] sm:$0xff] }
 0x5ce   :  { %12960 = vmatpush1.bf16.msra.mxu1 %v18482_v43  ;;  %12633 = vmatprep.subr.bf16.mxu0 %v18489_v16  ;;  %v7124_v43 = vld [vmem:[#allocation4 + $0x1e60] sm:$0xff]  ;;  %v7121_v16 = vld [vmem:[#allocation4 + $0x1e48] sm:$0xff] }
 0x5cf   :  { %12961 = vmatprep.subr.bf16.mxu1 %v18491_v46  ;;  %v7125_v46 = vld [vmem:[#allocation4 + $0x1e68] sm:$0xff]  ;;  %v18529_v34 = vcombine.high %v7120_v42, %v7124_v43  ;;  %v18528_v3 = vcombine.low %v7120_v42, %v7124_v43 }
 0x5d0   :  { %v18531_v55 = vcombine.high %v7121_v16, %v7125_v46  ;;  %v18530_v6 = vcombine.low %v7121_v16, %v7125_v46  ;;  %v7157_v42 = vld [vmem:[#allocation4 + $0x1f68] sm:$0xff]  ;;  %v19027_v16 = vadd.f32 %v20669_v47, %v1071_v33 }
 0x5d1   :  { %12634 = vmatpush1.bf16.msra.mxu0 %v18488_v57  ;;  %v7128_v57 = vld [vmem:[#allocation4 + $0x1e80] sm:$0xff] }
 0x5d2   :  { %12962 = vmatpush1.bf16.msra.mxu1 %v18490_v63  ;;  %12635 = vmatprep.subr.bf16.mxu0 %v18497_v19  ;;  %v7132_v63 = vld [vmem:[#allocation4 + $0x1ea0] sm:$0xff]  ;;  %v7129_v19 = vld [vmem:[#allocation4 + $0x1e88] sm:$0xff] }
 0x5d3   :  { %12963 = vmatprep.subr.bf16.mxu1 %v18499_v39  ;;  %v7133_v39 = vld [vmem:[#allocation4 + $0x1ea8] sm:$0xff]  ;;  %v18537_v7 = vcombine.high %v7128_v57, %v7132_v63  ;;  %v18536_v22 = vcombine.low %v7128_v57, %v7132_v63 }
 0x5d4   :  { %v18539_v9 = vcombine.high %v7129_v19, %v7133_v39  ;;  %v18538_v26 = vcombine.low %v7129_v19, %v7133_v39  ;;  %v7165_v57 = vld [vmem:[#allocation4 + $0x1fa8] sm:$0xff]  ;;  %v5930_v19 = vmax.f32 %v19027_v16, 0.0  ;;  %v5997_v39 = vrot.slane %v20758_v12, %v20676_v59 }
 0x5d5   :  { %12636 = vmatpush1.bf16.msra.mxu0 %v18496_v17  ;;  %v7136_v17 = vld [vmem:[#allocation4 + $0x1ec0] sm:$0xff] }
 0x5d6   :  { %12964 = vmatpush1.bf16.msra.mxu1 %v18498_v49  ;;  %12637 = vmatprep.subr.bf16.mxu0 %v18505_v38  ;;  %v7140_v49 = vld [vmem:[#allocation4 + $0x1ee0] sm:$0xff]  ;;  %v7137_v38 = vld [vmem:[#allocation4 + $0x1ec8] sm:$0xff] }
 0x5d7   :  { %12965 = vmatprep.subr.bf16.mxu1 %v18507_v20  ;;  %v7141_v20 = vld [vmem:[#allocation4 + $0x1ee8] sm:$0xff]  ;;  %v18545_v24 = vcombine.high %v7136_v17, %v7140_v49  ;;  %v18544_v35 = vcombine.low %v7136_v17, %v7140_v49 }
 0x5d8   :  { %v18547_v54 = vcombine.high %v7137_v38, %v7141_v20  ;;  %v18546_v53 = vcombine.low %v7137_v38, %v7141_v20  ;;  %v7169_v17 = vld [vmem:[#allocation4 + $0x1fc8] sm:$0xff]  ;;  %v6099_v38 = vrot.slane %v20764_v61, %v20676_v59 }
 0x5d9   :  { %12638 = vmatpush1.bf16.msra.mxu0 %v18504_v4  ;;  %v7144_v4 = vld [vmem:[#allocation4 + $0x1f00] sm:$0xff]  ;;  %v7173_v49 = vld [vmem:[#allocation4 + $0x1fe8] sm:$0xff] }
 0x5da   :  { %12966 = vmatpush1.bf16.msra.mxu1 %v18506_v29  ;;  %12639 = vmatprep.subr.bf16.mxu0 %v18513_v23  ;;  %v7148_v29 = vld [vmem:[#allocation4 + $0x1f20] sm:$0xff]  ;;  %v7145_v23 = vld [vmem:[#allocation4 + $0x1f08] sm:$0xff]  ;;  %v18578_v33 = vcombine.low %v7169_v17, %v7173_v49 }
 0x5db   :  { %12967 = vmatprep.subr.bf16.mxu1 %v18515_v14  ;;  %v7149_v14 = vld [vmem:[#allocation4 + $0x1f28] sm:$0xff]  ;;  %v18553_v5 = vcombine.high %v7144_v4, %v7148_v29  ;;  %v18552_v43 = vcombine.low %v7144_v4, %v7148_v29  ;;  %v6158_v4 = vld [vmem:[#allocation4 + $0x30] sm:$0xff]  ;;  %v6155_v29 = vld [vmem:[#allocation4 + $0x18] sm:$0xff] }
 0x5dc   :  { %v18554_v46 = vcombine.low %v7145_v23, %v7149_v14 }
 0x5dd   :  { %12640 = vmatpush1.bf16.msra.mxu0 %v18512_v2  ;;  %v18555_v2 = vcombine.high %v7145_v23, %v7149_v14  ;;  %v6159_v23 = vld [vmem:[#allocation4 + $0x38] sm:$0xff] }
 0x5de   :  { %12968 = vmatpush1.bf16.msra.mxu1 %v18514_v50  ;;  %12641 = vmatprep.subr.bf16.mxu0 %v18521_v40  ;;  %v7152_v50 = vld [vmem:[#allocation4 + $0x1f40] sm:$0xff] }
 0x5df   :  { %12969 = vmatprep.subr.bf16.mxu1 %v18523_v10  ;;  %v7156_v40 = vld [vmem:[#allocation4 + $0x1f60] sm:$0xff]  ;;  %v7153_v10 = vld [vmem:[#allocation4 + $0x1f48] sm:$0xff] }
 0x5e0   :  { %v18563_v60 = vcombine.high %v7153_v10, %v7157_v42  ;;  %v18560_v63 = vcombine.low %v7152_v50, %v7156_v40 }
 0x5e1   :  { %12642 = vmatpush1.bf16.msra.mxu0 %v18520_v58  ;;  %v18561_v58 = vcombine.high %v7152_v50, %v7156_v40  ;;  %v6163_v40 = vld [vmem:[#allocation4 + $0x58] sm:$0xff] }
 0x5e2   :  { %12970 = vmatpush1.bf16.msra.mxu1 %v18522_v51  ;;  %12643 = vmatprep.subr.bf16.mxu0 %v18529_v34  ;;  %v7160_v51 = vld [vmem:[#allocation4 + $0x1f80] sm:$0xff] }
 0x5e3   :  { %12971 = vmatprep.subr.bf16.mxu1 %v18531_v55  ;;  %v7164_v34 = vld [vmem:[#allocation4 + $0x1fa0] sm:$0xff]  ;;  %v7161_v55 = vld [vmem:[#allocation4 + $0x1f88] sm:$0xff] }
 0x5e4   :  { %v18569_v47 = vcombine.high %v7160_v51, %v7164_v34  ;;  %v18568_v20 = vcombine.low %v7160_v51, %v7164_v34  ;;  %v6171_v51 = vld [vmem:[#allocation4 + $0x98] sm:$0xff] }
 0x5e5   :  { %12644 = vmatpush1.bf16.msra.mxu0 %v18528_v3  ;;  %v18562_v3 = vcombine.low %v7153_v10, %v7157_v42  ;;  %v6167_v10 = vld [vmem:[#allocation4 + $0x78] sm:$0xff] }
 0x5e6   :  { %12972 = vmatpush1.bf16.msra.mxu1 %v18530_v6  ;;  %12645 = vmatprep.subr.bf16.mxu0 %v18537_v7  ;;  %v18571_v6 = vcombine.high %v7161_v55, %v7165_v57  ;;  %v7168_v7 = vld [vmem:[#allocation4 + $0x1fc0] sm:$0xff]  ;;  %v6175_v34 = vld [vmem:[#allocation4 + $0xb8] sm:$0xff] }
 0x5e7   :  { %12973 = vmatprep.subr.bf16.mxu1 %v18539_v9  ;;  %v7172_v9 = vld [vmem:[#allocation4 + $0x1fe0] sm:$0xff] }
 0x5e8   :  { %v18577_v12 = vcombine.high %v7168_v7, %v7172_v9  ;;  %v18576_v14 = vcombine.low %v7168_v7, %v7172_v9  ;;  %v17582_v9 = vcombine.low %v6171_v51, %v6175_v34 }
 0x5e9   :  { %12646 = vmatpush1.bf16.msra.mxu0 %v18536_v22  ;;  %v6032_v22 = vmul.f32 %v5997_v39, %v5930_v19  ;;  %v17583_v19 = vcombine.high %v6171_v51, %v6175_v34  ;;  %v6178_v39 = vld [vmem:[#allocation4 + $0xd0] sm:$0xff]  ;;  %v6211_v51 = vld [vmem:[#allocation4 + $0x1d8] sm:$0xff] }
 0x5ea   :  { %12974 = vmatpush1.bf16.msra.mxu1 %v18538_v26  ;;  %12647 = vmatprep.subr.bf16.mxu0 %v18545_v24  ;;  %v18570_v26 = vcombine.low %v7161_v55, %v7165_v57  ;;  %v18579_v24 = vcombine.high %v7169_v17, %v7173_v49  ;;  %v17574_v57 = vcombine.low %v6163_v40, %v6167_v10  ;;  %v6215_v34 = vld [vmem:[#allocation4 + $0x1f8] sm:$0xff] }
 0x5eb   :  { %12975 = vmatprep.subr.bf16.mxu1 %v18547_v54  ;;  %v6154_v54 = vld [vmem:[#allocation4 + $0x10] sm:$0xff] }
 0x5ec   :  { %v17565_v61 = vcombine.high %v6154_v54, %v6158_v4  ;;  %v17564_v50 = vcombine.low %v6154_v54, %v6158_v4  ;;  %v6194_v4 = vld [vmem:[#allocation4 + $0x150] sm:$0xff] }
 0x5ed   :  { %12648 = vmatpush1.bf16.msra.mxu0 %v18544_v35  ;;  %v6134_v35 = vadd.f32 %v6099_v38, %v6032_v22  ;;  %v6186_v38 = vld [vmem:[#allocation4 + $0x110] sm:$0xff]  ;;  %v6187_v22 = vld [vmem:[#allocation4 + $0x118] sm:$0xff] }
 0x5ee   :  { %12976 = vmatpush1.bf16.msra.mxu1 %v18546_v53  ;;  %12649 = vmatprep.subr.bf16.mxu0 %v18553_v5  ;;  %v17567_v53 = vcombine.high %v6155_v29, %v6159_v23  ;;  %v6162_v5 = vld [vmem:[#allocation4 + $0x50] sm:$0xff] }
 0x5ef   :  { %12977 = vmatprep.subr.bf16.mxu1 %v18555_v2  ;;  %v6166_v2 = vld [vmem:[#allocation4 + $0x70] sm:$0xff]  ;;  %v20785_v42 = vpack.c.bf16 %v6134_v35, %v6134_v35 }
 0x5f0   :  { %v17573_v16 = vcombine.high %v6162_v5, %v6166_v2  ;;  %v17572_v55 = vcombine.low %v6162_v5, %v6166_v2  ;;  %v6202_v5 = vld [vmem:[#allocation4 + $0x190] sm:$0xff] }
 0x5f1   :  { %12650 = vmatpush1.bf16.msra.mxu0 %v18552_v43  ;;  %v17566_v43 = vcombine.low %v6155_v29, %v6159_v23  ;;  %v6198_v29 = vld [vmem:[#allocation4 + $0x170] sm:$0xff]  ;;  %v6195_v23 = vld [vmem:[#allocation4 + $0x158] sm:$0xff] }
 0x5f2   :  { %12978 = vmatpush1.bf16.msra.mxu1 %v18554_v46  ;;  %12651 = vmatprep.subr.bf16.mxu0 %v18561_v58  ;;  %v6170_v46 = vld [vmem:[#allocation4 + $0x90] sm:$0xff] }
 0x5f3   :  { %12979 = vmatprep.subr.bf16.mxu1 %v18563_v60  ;;  %v6174_v58 = vld [vmem:[#allocation4 + $0xb0] sm:$0xff]  ;;  %v17575_v60 = vcombine.high %v6163_v40, %v6167_v10  ;;  %v6207_v40 = vld [vmem:[#allocation4 + $0x1b8] sm:$0xff]  ;;  %v17604_v10 = vcombine.low %v6194_v4, %v6198_v29 }
 0x5f4   :  { %v17580_v7 = vcombine.low %v6170_v46, %v6174_v58  ;;  %v6206_v2 = vld [vmem:[#allocation4 + $0x1b0] sm:$0xff] }
 0x5f5   :  { %12652 = vmatpush1.bf16.msra.mxu0 %v18560_v63  ;;  %v17581_v63 = vcombine.high %v6170_v46, %v6174_v58  ;;  %v6210_v58 = vld [vmem:[#allocation4 + $0x1d0] sm:$0xff] }
 0x5f6   :  { %12980 = vmatpush1.bf16.msra.mxu1 %v18562_v3  ;;  %12653 = vmatprep.subr.bf16.mxu0 %v18569_v47  ;;  %v6182_v3 = vld [vmem:[#allocation4 + $0xf0] sm:$0xff]  ;;  %v6179_v47 = vld [vmem:[#allocation4 + $0xd8] sm:$0xff] }
 0x5f7   :  { %12981 = vmatprep.subr.bf16.mxu1 %v18571_v6  ;;  %v6183_v6 = vld [vmem:[#allocation4 + $0xf8] sm:$0xff]  ;;  %v17589_v17 = vcombine.high %v6178_v39, %v6182_v3 }
 0x5f8   :  { %v17591_v49 = vcombine.high %v6179_v47, %v6183_v6 }
 0x5f9   :  { %12654 = vmatpush1.bf16.msra.mxu0 %v18568_v20  ;;  %v6190_v20 = vld [vmem:[#allocation4 + $0x130] sm:$0xff] }
 0x5fa   :  { %12982 = vmatpush1.bf16.msra.mxu1 %v18570_v26  ;;  %12655 = vmatprep.subr.bf16.mxu0 %v18577_v12  ;;  %v6191_v26 = vld [vmem:[#allocation4 + $0x138] sm:$0xff]  ;;  %v17590_v12 = vcombine.low %v6179_v47, %v6183_v6  ;;  %v17596_v35 = vcombine.low %v6186_v38, %v6190_v20 }
 0x5fb   :  { %12983 = vmatprep.subr.bf16.mxu1 %v18579_v24  ;;  %v17597_v24 = vcombine.high %v6186_v38, %v6190_v20  ;;  %v17599_v54 = vcombine.high %v6187_v22, %v6191_v26  ;;  %v6219_v47 = vld [vmem:[#allocation4 + $0x218] sm:$0xff]  ;;  %v6226_v38 = vld [vmem:[#allocation4 + $0x250] sm:$0xff] }
 0x5fc   :  { %v6223_v6 = vld [vmem:[#allocation4 + $0x238] sm:$0xff]  ;;  %v6230_v20 = vld [vmem:[#allocation4 + $0x270] sm:$0xff] }
 0x5fd   :  { %12656 = vmatpush1.bf16.msra.mxu0 %v18576_v14  ;;  %v6199_v14 = vld [vmem:[#allocation4 + $0x178] sm:$0xff] }
 0x5fe   :  { %12984 = vmatpush1.bf16.msra.mxu1 %v18578_v33  ;;  %12994 = vmatprep.subr.bf16.mxu0 %v17565_v61  ;;  %v17598_v33 = vcombine.low %v6187_v22, %v6191_v26  ;;  %v17605_v61 = vcombine.high %v6194_v4, %v6198_v29  ;;  %v6227_v22 = vld [vmem:[#allocation4 + $0x258] sm:$0xff]  ;;  %v6234_v4 = vld [vmem:[#allocation4 + $0x290] sm:$0xff] }
 0x5ff   :  { %13322 = vmatprep.subr.bf16.mxu1 %v17567_v53  ;;  %v17607_v53 = vcombine.high %v6195_v23, %v6199_v14  ;;  %v6231_v26 = vld [vmem:[#allocation4 + $0x278] sm:$0xff]  ;;  %v6238_v29 = vld [vmem:[#allocation4 + $0x2b0] sm:$0xff] }
 0x600   :  { %12658 = vmatmul.mubr.bf16.vlgmr.msra.gmra.mrb[16].mxu0 %v20785_v42 }
 0x601   :  { %12986 = vmatmul.mubr.bf16.vlgmr.msra.gmra.mrb[16].mxu1 %v20785_v42  ;;  %12995 = vmatpush1.bf16.msra.mxu0 %v17564_v50  ;;  %v6203_v50 = vld [vmem:[#allocation4 + $0x198] sm:$0xff] }
 0x602   :  { %13026 = vmatprep.mubr.bf16.mxu0 %v20563_v0  ;;  %13323 = vmatpush1.bf16.msra.mxu1 %v17566_v43  ;;  %v17606_v43 = vcombine.low %v6195_v23, %v6199_v14  ;;  %v17615_v46 = vcombine.high %v6203_v50, %v6207_v40  ;;  %v6235_v23 = vld [vmem:[#allocation4 + $0x298] sm:$0xff] }
 0x603   :  { %13354 = vmatprep.mubr.bf16.mxu1 %v20563_v0  ;;  %12996 = vmatprep.subr.bf16.mxu0 %v17573_v16  ;;  %v17588_v0 = vcombine.low %v6178_v39, %v6182_v3  ;;  %v17613_v16 = vcombine.high %v6202_v5, %v6206_v2  ;;  %v6218_v39 = vld [vmem:[#allocation4 + $0x210] sm:$0xff]  ;;  %v6239_v14 = vld [vmem:[#allocation4 + $0x2b8] sm:$0xff] }
 0x604   :  { %13324 = vmatprep.subr.bf16.mxu1 %v17575_v60  ;;  %v6214_v60 = vld [vmem:[#allocation4 + $0x1f0] sm:$0xff] }
 0x605   :  { %12997 = vmatpush1.bf16.msra.mxu0 %v17572_v55  ;;  %v17612_v55 = vcombine.low %v6202_v5, %v6206_v2  ;;  %v6222_v3 = vld [vmem:[#allocation4 + $0x230] sm:$0xff] }
 0x606   :  { %13325 = vmatpush1.bf16.msra.mxu1 %v17574_v57  ;;  %12998 = vmatprep.subr.bf16.mxu0 %v17581_v63  ;;  %v17614_v57 = vcombine.low %v6203_v50, %v6207_v40  ;;  %v17621_v63 = vcombine.high %v6210_v58, %v6214_v60  ;;  %v6242_v5 = vld [vmem:[#allocation4 + $0x2d0] sm:$0xff]  ;;  %v6243_v50 = vld [vmem:[#allocation4 + $0x2d8] sm:$0xff] }
 0x607   :  { %13326 = vmatprep.subr.bf16.mxu1 %v17583_v19  ;;  %v17623_v19 = vcombine.high %v6211_v51, %v6215_v34  ;;  %v6246_v2 = vld [vmem:[#allocation4 + $0x2f0] sm:$0xff]  ;;  %v6247_v40 = vld [vmem:[#allocation4 + $0x2f8] sm:$0xff] }
 0x609   :  { %12999 = vmatpush1.bf16.msra.mxu0 %v17580_v7  ;;  %v17620_v7 = vcombine.low %v6210_v58, %v6214_v60  ;;  %v6250_v58 = vld [vmem:[#allocation4 + $0x310] sm:$0xff] }
 0x60a   :  { %13327 = vmatpush1.bf16.msra.mxu1 %v17582_v9  ;;  %13000 = vmatprep.subr.bf16.mxu0 %v17589_v17  ;;  %v17622_v9 = vcombine.low %v6211_v51, %v6215_v34  ;;  %v17629_v17 = vcombine.high %v6218_v39, %v6222_v3  ;;  %v6254_v60 = vld [vmem:[#allocation4 + $0x330] sm:$0xff]  ;;  %v6251_v51 = vld [vmem:[#allocation4 + $0x318] sm:$0xff] }
 0x60b   :  { %13328 = vmatprep.subr.bf16.mxu1 %v17591_v49  ;;  %v17631_v49 = vcombine.high %v6219_v47, %v6223_v6  ;;  %v6255_v34 = vld [vmem:[#allocation4 + $0x338] sm:$0xff] }
 0x60d   :  { %13001 = vmatpush1.bf16.msra.mxu0 %v17588_v0  ;;  %v17628_v0 = vcombine.low %v6218_v39, %v6222_v3  ;;  %v6258_v39 = vld [vmem:[#allocation4 + $0x350] sm:$0xff] }
 0x60e   :  { %13329 = vmatpush1.bf16.msra.mxu1 %v17590_v12  ;;  %13002 = vmatprep.subr.bf16.mxu0 %v17597_v24  ;;  %v17630_v12 = vcombine.low %v6219_v47, %v6223_v6  ;;  %v17637_v24 = vcombine.high %v6226_v38, %v6230_v20  ;;  %v6262_v3 = vld [vmem:[#allocation4 + $0x370] sm:$0xff]  ;;  %v6259_v47 = vld [vmem:[#allocation4 + $0x358] sm:$0xff] }
 0x60f   :  { %13330 = vmatprep.subr.bf16.mxu1 %v17599_v54  ;;  %v17639_v54 = vcombine.high %v6227_v22, %v6231_v26  ;;  %v6263_v6 = vld [vmem:[#allocation4 + $0x378] sm:$0xff] }
 0x611   :  { %13003 = vmatpush1.bf16.msra.mxu0 %v17596_v35  ;;  %v17636_v35 = vcombine.low %v6226_v38, %v6230_v20  ;;  %v6266_v38 = vld [vmem:[#allocation4 + $0x390] sm:$0xff] }
 0x612   :  { %13331 = vmatpush1.bf16.msra.mxu1 %v17598_v33  ;;  %13004 = vmatprep.subr.bf16.mxu0 %v17605_v61  ;;  %v17638_v33 = vcombine.low %v6227_v22, %v6231_v26  ;;  %v17645_v61 = vcombine.high %v6234_v4, %v6238_v29  ;;  %v6270_v20 = vld [vmem:[#allocation4 + $0x3b0] sm:$0xff]  ;;  %v6267_v22 = vld [vmem:[#allocation4 + $0x398] sm:$0xff] }
 0x613   :  { %13332 = vmatprep.subr.bf16.mxu1 %v17607_v53  ;;  %v17647_v53 = vcombine.high %v6235_v23, %v6239_v14  ;;  %v6271_v26 = vld [vmem:[#allocation4 + $0x3b8] sm:$0xff] }
 0x615   :  { %13005 = vmatpush1.bf16.msra.mxu0 %v17604_v10  ;;  %v17644_v10 = vcombine.low %v6234_v4, %v6238_v29  ;;  %v6274_v4 = vld [vmem:[#allocation4 + $0x3d0] sm:$0xff] }
 0x616   :  { %13333 = vmatpush1.bf16.msra.mxu1 %v17606_v43  ;;  %13006 = vmatprep.subr.bf16.mxu0 %v17613_v16  ;;  %v17646_v43 = vcombine.low %v6235_v23, %v6239_v14  ;;  %v17653_v16 = vcombine.high %v6242_v5, %v6246_v2  ;;  %v6278_v29 = vld [vmem:[#allocation4 + $0x3f0] sm:$0xff]  ;;  %v6275_v23 = vld [vmem:[#allocation4 + $0x3d8] sm:$0xff] }
 0x617   :  { %13334 = vmatprep.subr.bf16.mxu1 %v17615_v46  ;;  %v17655_v46 = vcombine.high %v6243_v50, %v6247_v40  ;;  %v6279_v14 = vld [vmem:[#allocation4 + $0x3f8] sm:$0xff] }
 0x619   :  { %13007 = vmatpush1.bf16.msra.mxu0 %v17612_v55  ;;  %v17652_v55 = vcombine.low %v6242_v5, %v6246_v2  ;;  %v6282_v5 = vld [vmem:[#allocation4 + $0x410] sm:$0xff] }
 0x61a   :  { %13335 = vmatpush1.bf16.msra.mxu1 %v17614_v57  ;;  %13008 = vmatprep.subr.bf16.mxu0 %v17621_v63  ;;  %v17654_v57 = vcombine.low %v6243_v50, %v6247_v40  ;;  %v17661_v63 = vcombine.high %v6250_v58, %v6254_v60  ;;  %v6286_v2 = vld [vmem:[#allocation4 + $0x430] sm:$0xff]  ;;  %v6283_v50 = vld [vmem:[#allocation4 + $0x418] sm:$0xff] }
 0x61b   :  { %13336 = vmatprep.subr.bf16.mxu1 %v17623_v19  ;;  %v17663_v19 = vcombine.high %v6251_v51, %v6255_v34  ;;  %v6287_v40 = vld [vmem:[#allocation4 + $0x438] sm:$0xff] }
 0x61d   :  { %13009 = vmatpush1.bf16.msra.mxu0 %v17620_v7  ;;  %v17660_v7 = vcombine.low %v6250_v58, %v6254_v60  ;;  %v6290_v58 = vld [vmem:[#allocation4 + $0x450] sm:$0xff] }
 0x61e   :  { %13337 = vmatpush1.bf16.msra.mxu1 %v17622_v9  ;;  %13010 = vmatprep.subr.bf16.mxu0 %v17629_v17  ;;  %v17662_v9 = vcombine.low %v6251_v51, %v6255_v34  ;;  %v17669_v17 = vcombine.high %v6258_v39, %v6262_v3  ;;  %v6294_v60 = vld [vmem:[#allocation4 + $0x470] sm:$0xff]  ;;  %v17692_v51 = vcombine.low %v6282_v5, %v6286_v2  ;;  %v6291_v34 = vld [vmem:[#allocation4 + $0x458] sm:$0xff] }
 0x61f   :  { %13338 = vmatprep.subr.bf16.mxu1 %v17631_v49  ;;  %v17671_v49 = vcombine.high %v6259_v47, %v6263_v6 }
 0x621   :  { %13011 = vmatpush1.bf16.msra.mxu0 %v17628_v0  ;;  %v17668_v0 = vcombine.low %v6258_v39, %v6262_v3  ;;  %v6302_v39 = vld [vmem:[#allocation4 + $0x4b0] sm:$0xff] }
 0x622   :  { %13339 = vmatpush1.bf16.msra.mxu1 %v17630_v12  ;;  %13012 = vmatprep.subr.bf16.mxu0 %v17637_v24  ;;  %v17670_v12 = vcombine.low %v6259_v47, %v6263_v6  ;;  %v17677_v24 = vcombine.high %v6266_v38, %v6270_v20  ;;  %v6299_v47 = vld [vmem:[#allocation4 + $0x498] sm:$0xff] }
 0x623   :  { %13340 = vmatprep.subr.bf16.mxu1 %v17639_v54  ;;  %v17679_v54 = vcombine.high %v6267_v22, %v6271_v26  ;;  %v6303_v6 = vld [vmem:[#allocation4 + $0x4b8] sm:$0xff] }
 0x625   :  { %13013 = vmatpush1.bf16.msra.mxu0 %v17636_v35  ;;  %v17676_v35 = vcombine.low %v6266_v38, %v6270_v20  ;;  %v6306_v38 = vld [vmem:[#allocation4 + $0x4d0] sm:$0xff] }
 0x626   :  { %13341 = vmatpush1.bf16.msra.mxu1 %v17638_v33  ;;  %13014 = vmatprep.subr.bf16.mxu0 %v17645_v61  ;;  %v17678_v33 = vcombine.low %v6267_v22, %v6271_v26  ;;  %v17685_v61 = vcombine.high %v6274_v4, %v6278_v29  ;;  %v6310_v20 = vld [vmem:[#allocation4 + $0x4f0] sm:$0xff]  ;;  %v6307_v22 = vld [vmem:[#allocation4 + $0x4d8] sm:$0xff] }
 0x627   :  { %13342 = vmatprep.subr.bf16.mxu1 %v17647_v53  ;;  %v17687_v53 = vcombine.high %v6275_v23, %v6279_v14  ;;  %v6311_v26 = vld [vmem:[#allocation4 + $0x4f8] sm:$0xff] }
 0x629   :  { %13015 = vmatpush1.bf16.msra.mxu0 %v17644_v10  ;;  %v17684_v10 = vcombine.low %v6274_v4, %v6278_v29  ;;  %v6318_v4 = vld [vmem:[#allocation4 + $0x530] sm:$0xff]  ;;  %v6315_v29 = vld [vmem:[#allocation4 + $0x518] sm:$0xff] }
 0x62a   :  { %13343 = vmatpush1.bf16.msra.mxu1 %v17646_v43  ;;  %13016 = vmatprep.subr.bf16.mxu0 %v17653_v16  ;;  %v17686_v43 = vcombine.low %v6275_v23, %v6279_v14  ;;  %v17693_v16 = vcombine.high %v6282_v5, %v6286_v2  ;;  %v6319_v23 = vld [vmem:[#allocation4 + $0x538] sm:$0xff]  ;;  %v17718_v14 = vcombine.low %v6307_v22, %v6311_v26 }
 0x62b   :  { %13344 = vmatprep.subr.bf16.mxu1 %v17655_v46  ;;  %v17695_v46 = vcombine.high %v6283_v50, %v6287_v40  ;;  %v6323_v5 = vld [vmem:[#allocation4 + $0x558] sm:$0xff] }
 0x62c   :  { %v6327_v2 = vld [vmem:[#allocation4 + $0x578] sm:$0xff] }
 0x62d   :  { %13017 = vmatpush1.bf16.msra.mxu0 %v17652_v55  ;;  %v6295_v55 = vld [vmem:[#allocation4 + $0x478] sm:$0xff] }
 0x62e   :  { %13345 = vmatpush1.bf16.msra.mxu1 %v17654_v57  ;;  %13018 = vmatprep.subr.bf16.mxu0 %v17661_v63  ;;  %v17694_v57 = vcombine.low %v6283_v50, %v6287_v40  ;;  %v17701_v63 = vcombine.high %v6290_v58, %v6294_v60  ;;  %v17703_v3 = vcombine.high %v6291_v34, %v6295_v55 }
 0x62f   :  { %13346 = vmatprep.subr.bf16.mxu1 %v17663_v19  ;;  %v6298_v19 = vld [vmem:[#allocation4 + $0x490] sm:$0xff]  ;;  %v17726_v40 = vcombine.low %v6315_v29, %v6319_v23 }
 0x631   :  { %13019 = vmatpush1.bf16.msra.mxu0 %v17660_v7  ;;  %v17700_v7 = vcombine.low %v6290_v58, %v6294_v60  ;;  %v6331_v58 = vld [vmem:[#allocation4 + $0x598] sm:$0xff] }
 0x632   :  { %13347 = vmatpush1.bf16.msra.mxu1 %v17662_v9  ;;  %13020 = vmatprep.subr.bf16.mxu0 %v17669_v17  ;;  %v17702_v9 = vcombine.low %v6291_v34, %v6295_v55  ;;  %v17709_v17 = vcombine.high %v6298_v19, %v6302_v39  ;;  %v6335_v60 = vld [vmem:[#allocation4 + $0x5b8] sm:$0xff]  ;;  %v17734_v34 = vcombine.low %v6323_v5, %v6327_v2 }
 0x633   :  { %13348 = vmatprep.subr.bf16.mxu1 %v17671_v49  ;;  %v17711_v49 = vcombine.high %v6299_v47, %v6303_v6 }
 0x635   :  { %13021 = vmatpush1.bf16.msra.mxu0 %v17668_v0  ;;  %v17708_v0 = vcombine.low %v6298_v19, %v6302_v39  ;;  %v6342_v19 = vld [vmem:[#allocation4 + $0x5f0] sm:$0xff]  ;;  %v6339_v39 = vld [vmem:[#allocation4 + $0x5d8] sm:$0xff] }
 0x636   :  { %13349 = vmatpush1.bf16.msra.mxu1 %v17670_v12  ;;  %13022 = vmatprep.subr.bf16.mxu0 %v17677_v24  ;;  %v17717_v12 = vcombine.high %v6306_v38, %v6310_v20  ;;  %v17719_v24 = vcombine.high %v6307_v22, %v6311_v26 }
 0x637   :  { %13350 = vmatprep.subr.bf16.mxu1 %v17679_v54  ;;  %v6314_v54 = vld [vmem:[#allocation4 + $0x510] sm:$0xff] }
 0x638   :  { %v17724_v50 = vcombine.low %v6314_v54, %v6318_v4 }
 0x639   :  { %13023 = vmatpush1.bf16.msra.mxu0 %v17676_v35  ;;  %v17725_v35 = vcombine.high %v6314_v54, %v6318_v4  ;;  %v6355_v54 = vld [vmem:[#allocation4 + $0x658] sm:$0xff] }
 0x63a   :  { %13351 = vmatpush1.bf16.msra.mxu1 %v17678_v33  ;;  %13024 = vmatprep.subr.bf16.mxu0 %v17685_v61  ;;  %v17727_v33 = vcombine.high %v6315_v29, %v6319_v23  ;;  %v6322_v61 = vld [vmem:[#allocation4 + $0x550] sm:$0xff]  ;;  %v6359_v4 = vld [vmem:[#allocation4 + $0x678] sm:$0xff] }
 0x63b   :  { %13352 = vmatprep.subr.bf16.mxu1 %v17687_v53  ;;  %v6326_v53 = vld [vmem:[#allocation4 + $0x570] sm:$0xff] }
 0x63d   :  { %13025 = vmatpush1.bf16.msra.mxu0 %v17684_v10  ;;  %v17733_v10 = vcombine.high %v6322_v61, %v6326_v53 }
 0x63e   :  { %13353 = vmatpush1.bf16.msra.mxu1 %v17686_v43  ;;  %13035 = vmatprep.subr.bf16.mxu0 %v17693_v16  ;;  %v17735_v43 = vcombine.high %v6323_v5, %v6327_v2  ;;  %v6330_v16 = vld [vmem:[#allocation4 + $0x590] sm:$0xff]  ;;  %v17766_v2 = vcombine.low %v6355_v54, %v6359_v4 }
 0x63f   :  { %13363 = vmatprep.subr.bf16.mxu1 %v17695_v46  ;;  %v6334_v46 = vld [vmem:[#allocation4 + $0x5b0] sm:$0xff] }
 0x640   :  { %13027 = vmatmul.mubr.bf16.vlgmr.msra.gmra.mrb[20].mxu0 %v20597_v11  ;;  %v17741_v55 = vcombine.high %v6330_v16, %v6334_v46 }
 0x641   :  { %13355 = vmatmul.mubr.bf16.vlgmr.msra.gmra.mrb[20].mxu1 %v20597_v11  ;;  %13036 = vmatpush1.bf16.msra.mxu0 %v17692_v51  ;;  %v17710_v11 = vcombine.low %v6299_v47, %v6303_v6  ;;  %v17732_v51 = vcombine.low %v6322_v61, %v6326_v53  ;;  %v17740_v47 = vcombine.low %v6330_v16, %v6334_v46  ;;  %v6363_v61 = vld [vmem:[#allocation4 + $0x698] sm:$0xff] }
 0x642   :  { %13067 = vmatprep.mubr.bf16.mxu0 %v20599_v18  ;;  %13364 = vmatpush1.bf16.msra.mxu1 %v17694_v57  ;;  %v17743_v57 = vcombine.high %v6331_v58, %v6335_v60  ;;  %v17742_v6 = vcombine.low %v6331_v58, %v6335_v60  ;;  %v6367_v53 = vld [vmem:[#allocation4 + $0x6b8] sm:$0xff] }
 0x643   :  { %13395 = vmatprep.mubr.bf16.mxu1 %v20599_v18  ;;  %13037 = vmatprep.subr.bf16.mxu0 %v17701_v63  ;;  %v17716_v18 = vcombine.low %v6306_v38, %v6310_v20  ;;  %v6338_v63 = vld [vmem:[#allocation4 + $0x5d0] sm:$0xff]  ;;  %v6347_v38 = vld [vmem:[#allocation4 + $0x618] sm:$0xff]  ;;  %v17774_v60 = vcombine.low %v6363_v61, %v6367_v53 }
 0x644   :  { %13365 = vmatprep.subr.bf16.mxu1 %v17703_v3  ;;  %v6343_v3 = vld [vmem:[#allocation4 + $0x5f8] sm:$0xff]  ;;  %v17748_v22 = vcombine.low %v6338_v63, %v6342_v19 }
 0x645   :  { %13038 = vmatpush1.bf16.msra.mxu0 %v17700_v7  ;;  %v17749_v7 = vcombine.high %v6338_v63, %v6342_v19  ;;  %v6351_v20 = vld [vmem:[#allocation4 + $0x638] sm:$0xff]  ;;  %v17750_v26 = vcombine.low %v6339_v39, %v6343_v3 }
 0x646   :  { %13366 = vmatpush1.bf16.msra.mxu1 %v17702_v9  ;;  %13039 = vmatprep.subr.bf16.mxu0 %v17709_v17  ;;  %v17751_v9 = vcombine.high %v6339_v39, %v6343_v3  ;;  %v6346_v17 = vld [vmem:[#allocation4 + $0x610] sm:$0xff]  ;;  %v17758_v23 = vcombine.low %v6347_v38, %v6351_v20  ;;  %v6371_v16 = vld [vmem:[#allocation4 + $0x6d8] sm:$0xff] }
 0x647   :  { %13367 = vmatprep.subr.bf16.mxu1 %v17711_v49  ;;  %v6350_v49 = vld [vmem:[#allocation4 + $0x630] sm:$0xff]  ;;  %v6375_v46 = vld [vmem:[#allocation4 + $0x6f8] sm:$0xff] }
 0x648   :  { %v17756_v29 = vcombine.low %v6346_v17, %v6350_v49  ;;  %v6379_v63 = vld [vmem:[#allocation4 + $0x718] sm:$0xff]  ;;  %v17782_v3 = vcombine.low %v6371_v16, %v6375_v46 }
 0x649   :  { %13040 = vmatpush1.bf16.msra.mxu0 %v17708_v0  ;;  %v17757_v0 = vcombine.high %v6346_v17, %v6350_v49  ;;  %v6383_v19 = vld [vmem:[#allocation4 + $0x738] sm:$0xff] }
 0x64a   :  { %13368 = vmatpush1.bf16.msra.mxu1 %v17710_v11  ;;  %13041 = vmatprep.subr.bf16.mxu0 %v17717_v12  ;;  %v17759_v11 = vcombine.high %v6347_v38, %v6351_v20  ;;  %v6354_v12 = vld [vmem:[#allocation4 + $0x650] sm:$0xff]  ;;  %v6387_v17 = vld [vmem:[#allocation4 + $0x758] sm:$0xff]  ;;  %v17790_v20 = vcombine.low %v6379_v63, %v6383_v19 }
 0x64b   :  { %13369 = vmatprep.subr.bf16.mxu1 %v17719_v24  ;;  %v6358_v24 = vld [vmem:[#allocation4 + $0x670] sm:$0xff]  ;;  %v6391_v49 = vld [vmem:[#allocation4 + $0x778] sm:$0xff] }
 0x64c   :  { %v17764_v5 = vcombine.low %v6354_v12, %v6358_v24 }
 0x64d   :  { %13042 = vmatpush1.bf16.msra.mxu0 %v17716_v18  ;;  %v17765_v18 = vcombine.high %v6354_v12, %v6358_v24  ;;  %v6395_v12 = vld [vmem:[#allocation4 + $0x798] sm:$0xff] }
 0x64e   :  { %13370 = vmatpush1.bf16.msra.mxu1 %v17718_v14  ;;  %13043 = vmatprep.subr.bf16.mxu0 %v17725_v35  ;;  %v17767_v14 = vcombine.high %v6355_v54, %v6359_v4  ;;  %v6362_v35 = vld [vmem:[#allocation4 + $0x690] sm:$0xff]  ;;  %v6399_v24 = vld [vmem:[#allocation4 + $0x7b8] sm:$0xff]  ;;  %v17798_v4 = vcombine.low %v6387_v17, %v6391_v49 }
 0x64f   :  { %13371 = vmatprep.subr.bf16.mxu1 %v17727_v33  ;;  %v6366_v33 = vld [vmem:[#allocation4 + $0x6b0] sm:$0xff] }
 0x650   :  { %v17772_v58 = vcombine.low %v6362_v35, %v6366_v33 }
 0x651   :  { %13044 = vmatpush1.bf16.msra.mxu0 %v17724_v50  ;;  %v17773_v50 = vcombine.high %v6362_v35, %v6366_v33  ;;  %v6403_v35 = vld [vmem:[#allocation4 + $0x7d8] sm:$0xff] }
 0x652   :  { %13372 = vmatpush1.bf16.msra.mxu1 %v17726_v40  ;;  %13045 = vmatprep.subr.bf16.mxu0 %v17733_v10  ;;  %v17775_v40 = vcombine.high %v6363_v61, %v6367_v53  ;;  %v6370_v10 = vld [vmem:[#allocation4 + $0x6d0] sm:$0xff]  ;;  %v6407_v33 = vld [vmem:[#allocation4 + $0x7f8] sm:$0xff]  ;;  %v17806_v53 = vcombine.low %v6395_v12, %v6399_v24 }
 0x653   :  { %13373 = vmatprep.subr.bf16.mxu1 %v17735_v43  ;;  %v6374_v43 = vld [vmem:[#allocation4 + $0x6f0] sm:$0xff] }
 0x654   :  { %v17780_v39 = vcombine.low %v6370_v10, %v6374_v43 }
 0x655   :  { %13046 = vmatpush1.bf16.msra.mxu0 %v17732_v51  ;;  %v17781_v51 = vcombine.high %v6370_v10, %v6374_v43  ;;  %v6411_v10 = vld [vmem:[#allocation4 + $0x818] sm:$0xff] }
 0x656   :  { %13374 = vmatpush1.bf16.msra.mxu1 %v17734_v34  ;;  %13047 = vmatprep.subr.bf16.mxu0 %v17741_v55  ;;  %v17783_v34 = vcombine.high %v6371_v16, %v6375_v46  ;;  %v6378_v55 = vld [vmem:[#allocation4 + $0x710] sm:$0xff]  ;;  %v6415_v43 = vld [vmem:[#allocation4 + $0x838] sm:$0xff]  ;;  %v17814_v46 = vcombine.low %v6403_v35, %v6407_v33 }
 0x657   :  { %13375 = vmatprep.subr.bf16.mxu1 %v17743_v57  ;;  %v6382_v57 = vld [vmem:[#allocation4 + $0x730] sm:$0xff] }
 0x658   :  { %v17788_v38 = vcombine.low %v6378_v55, %v6382_v57 }
 0x659   :  { %13048 = vmatpush1.bf16.msra.mxu0 %v17740_v47  ;;  %v17789_v47 = vcombine.high %v6378_v55, %v6382_v57  ;;  %v6419_v57 = vld [vmem:[#allocation4 + $0x858] sm:$0xff] }
 0x65a   :  { %13376 = vmatpush1.bf16.msra.mxu1 %v17742_v6  ;;  %13049 = vmatprep.subr.bf16.mxu0 %v17749_v7  ;;  %v17791_v6 = vcombine.high %v6379_v63, %v6383_v19  ;;  %v6386_v7 = vld [vmem:[#allocation4 + $0x750] sm:$0xff]  ;;  %v6423_v63 = vld [vmem:[#allocation4 + $0x878] sm:$0xff]  ;;  %v17822_v19 = vcombine.low %v6411_v10, %v6415_v43 }
 0x65b   :  { %13377 = vmatprep.subr.bf16.mxu1 %v17751_v9  ;;  %v6390_v9 = vld [vmem:[#allocation4 + $0x770] sm:$0xff] }
 0x65c   :  { %v17796_v54 = vcombine.low %v6386_v7, %v6390_v9 }
 0x65d   :  { %13050 = vmatpush1.bf16.msra.mxu0 %v17748_v22  ;;  %v17797_v22 = vcombine.high %v6386_v7, %v6390_v9  ;;  %v6427_v7 = vld [vmem:[#allocation4 + $0x898] sm:$0xff] }
 0x65e   :  { %13378 = vmatpush1.bf16.msra.mxu1 %v17750_v26  ;;  %13051 = vmatprep.subr.bf16.mxu0 %v17757_v0  ;;  %v17799_v26 = vcombine.high %v6387_v17, %v6391_v49  ;;  %v6394_v0 = vld [vmem:[#allocation4 + $0x790] sm:$0xff]  ;;  %v6431_v9 = vld [vmem:[#allocation4 + $0x8b8] sm:$0xff]  ;;  %v17830_v49 = vcombine.low %v6419_v57, %v6423_v63 }
 0x65f   :  { %13379 = vmatprep.subr.bf16.mxu1 %v17759_v11  ;;  %v6398_v11 = vld [vmem:[#allocation4 + $0x7b0] sm:$0xff] }
 0x660   :  { %v17804_v61 = vcombine.low %v6394_v0, %v6398_v11 }
 0x661   :  { %13052 = vmatpush1.bf16.msra.mxu0 %v17756_v29  ;;  %v17805_v29 = vcombine.high %v6394_v0, %v6398_v11  ;;  %v6435_v0 = vld [vmem:[#allocation4 + $0x8d8] sm:$0xff] }
 0x662   :  { %13380 = vmatpush1.bf16.msra.mxu1 %v17758_v23  ;;  %13053 = vmatprep.subr.bf16.mxu0 %v17765_v18  ;;  %v17807_v23 = vcombine.high %v6395_v12, %v6399_v24  ;;  %v6402_v18 = vld [vmem:[#allocation4 + $0x7d0] sm:$0xff]  ;;  %v6439_v11 = vld [vmem:[#allocation4 + $0x8f8] sm:$0xff] }
 0x663   :  { %13381 = vmatprep.subr.bf16.mxu1 %v17767_v14  ;;  %v6406_v14 = vld [vmem:[#allocation4 + $0x7f0] sm:$0xff] }
 0x664   :  { %v17812_v16 = vcombine.low %v6402_v18, %v6406_v14 }
 0x665   :  { %13054 = vmatpush1.bf16.msra.mxu0 %v17764_v5  ;;  %v17813_v5 = vcombine.high %v6402_v18, %v6406_v14  ;;  %v6447_v18 = vld [vmem:[#allocation4 + $0x938] sm:$0xff]  ;;  %v17846_v14 = vcombine.low %v6435_v0, %v6439_v11 }
 0x666   :  { %13382 = vmatpush1.bf16.msra.mxu1 %v17766_v2  ;;  %13055 = vmatprep.subr.bf16.mxu0 %v17773_v50  ;;  %v17815_v2 = vcombine.high %v6403_v35, %v6407_v33  ;;  %v6410_v50 = vld [vmem:[#allocation4 + $0x810] sm:$0xff] }
 0x667   :  { %13383 = vmatprep.subr.bf16.mxu1 %v17775_v40  ;;  %v6414_v40 = vld [vmem:[#allocation4 + $0x830] sm:$0xff] }
 0x668   :  { %v17820_v55 = vcombine.low %v6410_v50, %v6414_v40 }
 0x669   :  { %13056 = vmatpush1.bf16.msra.mxu0 %v17772_v58  ;;  %v17821_v58 = vcombine.high %v6410_v50, %v6414_v40 }
 0x66a   :  { %13384 = vmatpush1.bf16.msra.mxu1 %v17774_v60  ;;  %13057 = vmatprep.subr.bf16.mxu0 %v17781_v51  ;;  %v17823_v60 = vcombine.high %v6411_v10, %v6415_v43  ;;  %v6418_v51 = vld [vmem:[#allocation4 + $0x850] sm:$0xff] }
 0x66b   :  { %13385 = vmatprep.subr.bf16.mxu1 %v17783_v34  ;;  %v6422_v34 = vld [vmem:[#allocation4 + $0x870] sm:$0xff] }
 0x66c   :  { %v17828_v17 = vcombine.low %v6418_v51, %v6422_v34 }
 0x66d   :  { %13058 = vmatpush1.bf16.msra.mxu0 %v17780_v39  ;;  %v17829_v39 = vcombine.high %v6418_v51, %v6422_v34 }
 0x66e   :  { %13386 = vmatpush1.bf16.msra.mxu1 %v17782_v3  ;;  %13059 = vmatprep.subr.bf16.mxu0 %v17789_v47  ;;  %v6426_v3 = vld [vmem:[#allocation4 + $0x890] sm:$0xff] }
 0x66f   :  { %13387 = vmatprep.subr.bf16.mxu1 %v17791_v6  ;;  %v6430_v47 = vld [vmem:[#allocation4 + $0x8b0] sm:$0xff]  ;;  %v17831_v6 = vcombine.high %v6419_v57, %v6423_v63 }
 0x670   :  { %v17836_v12 = vcombine.low %v6426_v3, %v6430_v47  ;;  %v6466_v63 = vld [vmem:[#allocation4 + $0x9d0] sm:$0xff] }
 0x671   :  { %13060 = vmatpush1.bf16.msra.mxu0 %v17788_v38  ;;  %v17837_v38 = vcombine.high %v6426_v3, %v6430_v47  ;;  %v6471_v3 = vld [vmem:[#allocation4 + $0x9f8] sm:$0xff] }
 0x672   :  { %13388 = vmatpush1.bf16.msra.mxu1 %v17790_v20  ;;  %13061 = vmatprep.subr.bf16.mxu0 %v17797_v22  ;;  %v17839_v20 = vcombine.high %v6427_v7, %v6431_v9  ;;  %v6434_v22 = vld [vmem:[#allocation4 + $0x8d0] sm:$0xff] }
 0x673   :  { %13389 = vmatprep.subr.bf16.mxu1 %v17799_v26  ;;  %v6438_v26 = vld [vmem:[#allocation4 + $0x8f0] sm:$0xff] }
 0x674   :  { %v17845_v24 = vcombine.high %v6434_v22, %v6438_v26 }
 0x675   :  { %13062 = vmatpush1.bf16.msra.mxu0 %v17796_v54  ;;  %v17847_v54 = vcombine.high %v6435_v0, %v6439_v11 }
 0x676   :  { %13390 = vmatpush1.bf16.msra.mxu1 %v17798_v4  ;;  %13063 = vmatprep.subr.bf16.mxu0 %v17805_v29  ;;  %v6442_v4 = vld [vmem:[#allocation4 + $0x910] sm:$0xff] }
 0x677   :  { %13391 = vmatprep.subr.bf16.mxu1 %v17807_v23  ;;  %v6446_v29 = vld [vmem:[#allocation4 + $0x930] sm:$0xff]  ;;  %v6443_v23 = vld [vmem:[#allocation4 + $0x918] sm:$0xff] }
 0x678   :  { %v17853_v35 = vcombine.high %v6442_v4, %v6446_v29  ;;  %v17855_v33 = vcombine.high %v6443_v23, %v6447_v18  ;;  %v17852_v50 = vcombine.low %v6442_v4, %v6446_v29  ;;  %v17854_v40 = vcombine.low %v6443_v23, %v6447_v18 }
 0x679   :  { %13064 = vmatpush1.bf16.msra.mxu0 %v17804_v61  ;;  %v6450_v61 = vld [vmem:[#allocation4 + $0x950] sm:$0xff] }
 0x67a   :  { %13392 = vmatpush1.bf16.msra.mxu1 %v17806_v53  ;;  %13065 = vmatprep.subr.bf16.mxu0 %v17813_v5  ;;  %v6454_v53 = vld [vmem:[#allocation4 + $0x970] sm:$0xff]  ;;  %v6451_v5 = vld [vmem:[#allocation4 + $0x958] sm:$0xff] }
 0x67b   :  { %13393 = vmatprep.subr.bf16.mxu1 %v17815_v2  ;;  %v6455_v2 = vld [vmem:[#allocation4 + $0x978] sm:$0xff]  ;;  %v17861_v10 = vcombine.high %v6450_v61, %v6454_v53  ;;  %v17860_v51 = vcombine.low %v6450_v61, %v6454_v53 }
 0x67c   :  { %v17863_v43 = vcombine.high %v6451_v5, %v6455_v2  ;;  %v17862_v34 = vcombine.low %v6451_v5, %v6455_v2 }
 0x67d   :  { %13066 = vmatpush1.bf16.msra.mxu0 %v17812_v16  ;;  %v6458_v16 = vld [vmem:[#allocation4 + $0x990] sm:$0xff] }
 0x67e   :  { %13394 = vmatpush1.bf16.msra.mxu1 %v17814_v46  ;;  %13076 = vmatprep.subr.bf16.mxu0 %v17821_v58  ;;  %v6462_v46 = vld [vmem:[#allocation4 + $0x9b0] sm:$0xff]  ;;  %v6459_v58 = vld [vmem:[#allocation4 + $0x998] sm:$0xff] }
 0x67f   :  { %13404 = vmatprep.subr.bf16.mxu1 %v17823_v60  ;;  %v6463_v60 = vld [vmem:[#allocation4 + $0x9b8] sm:$0xff]  ;;  %v17868_v47 = vcombine.low %v6458_v16, %v6462_v46 }
 0x680   :  { %13068 = vmatmul.mubr.bf16.vlgmr.msra.gmra.mrb[20].mxu0 %v20625_v28  ;;  %v17871_v57 = vcombine.high %v6459_v58, %v6463_v60 }
 0x681   :  { %13396 = vmatmul.mubr.bf16.vlgmr.msra.gmra.mrb[20].mxu1 %v20625_v28  ;;  %13077 = vmatpush1.bf16.msra.mxu0 %v17820_v55  ;;  %v17838_v28 = vcombine.low %v6427_v7, %v6431_v9  ;;  %v17869_v55 = vcombine.high %v6458_v16, %v6462_v46 }
 0x682   :  { %13108 = vmatprep.mubr.bf16.mxu0 %v20627_v30  ;;  %13405 = vmatpush1.bf16.msra.mxu1 %v17822_v19  ;;  %v6470_v19 = vld [vmem:[#allocation4 + $0x9f0] sm:$0xff] }
 0x683   :  { %13436 = vmatprep.mubr.bf16.mxu1 %v20627_v30  ;;  %13078 = vmatprep.subr.bf16.mxu0 %v17829_v39  ;;  %v17844_v30 = vcombine.low %v6434_v22, %v6438_v26  ;;  %v6467_v39 = vld [vmem:[#allocation4 + $0x9d8] sm:$0xff]  ;;  %v17877_v7 = vcombine.high %v6466_v63, %v6470_v19  ;;  %v17876_v22 = vcombine.low %v6466_v63, %v6470_v19 }
 0x684   :  { %13406 = vmatprep.subr.bf16.mxu1 %v17831_v6  ;;  %v17870_v6 = vcombine.low %v6459_v58, %v6463_v60  ;;  %v17879_v9 = vcombine.high %v6467_v39, %v6471_v3  ;;  %v17878_v26 = vcombine.low %v6467_v39, %v6471_v3 }
 0x685   :  { %13079 = vmatpush1.bf16.msra.mxu0 %v17828_v17  ;;  %v6474_v17 = vld [vmem:[#allocation4 + $0xa10] sm:$0xff] }
 0x686   :  { %13407 = vmatpush1.bf16.msra.mxu1 %v17830_v49  ;;  %13080 = vmatprep.subr.bf16.mxu0 %v17837_v38  ;;  %v6478_v49 = vld [vmem:[#allocation4 + $0xa30] sm:$0xff]  ;;  %v6475_v38 = vld [vmem:[#allocation4 + $0xa18] sm:$0xff] }
 0x687   :  { %13408 = vmatprep.subr.bf16.mxu1 %v17839_v20  ;;  %v6479_v20 = vld [vmem:[#allocation4 + $0xa38] sm:$0xff]  ;;  %v17885_v0 = vcombine.high %v6474_v17, %v6478_v49  ;;  %v17884_v4 = vcombine.low %v6474_v17, %v6478_v49 }
 0x688   :  { %v17887_v11 = vcombine.high %v6475_v38, %v6479_v20  ;;  %v17886_v29 = vcombine.low %v6475_v38, %v6479_v20 }
 0x689   :  { %13081 = vmatpush1.bf16.msra.mxu0 %v17836_v12  ;;  %v6482_v12 = vld [vmem:[#allocation4 + $0xa50] sm:$0xff] }
 0x68a   :  { %13409 = vmatpush1.bf16.msra.mxu1 %v17838_v28  ;;  %13082 = vmatprep.subr.bf16.mxu0 %v17845_v24  ;;  %v6486_v28 = vld [vmem:[#allocation4 + $0xa70] sm:$0xff]  ;;  %v6483_v24 = vld [vmem:[#allocation4 + $0xa58] sm:$0xff] }
 0x68b   :  { %13410 = vmatprep.subr.bf16.mxu1 %v17847_v54  ;;  %v6487_v54 = vld [vmem:[#allocation4 + $0xa78] sm:$0xff]  ;;  %v17893_v23 = vcombine.high %v6482_v12, %v6486_v28  ;;  %v17892_v61 = vcombine.low %v6482_v12, %v6486_v28 }
 0x68c   :  { %v17895_v18 = vcombine.high %v6483_v24, %v6487_v54  ;;  %v17894_v53 = vcombine.low %v6483_v24, %v6487_v54 }
 0x68d   :  { %13083 = vmatpush1.bf16.msra.mxu0 %v17844_v30  ;;  %v6490_v30 = vld [vmem:[#allocation4 + $0xa90] sm:$0xff] }
 0x68e   :  { %13411 = vmatpush1.bf16.msra.mxu1 %v17846_v14  ;;  %13084 = vmatprep.subr.bf16.mxu0 %v17853_v35  ;;  %v6494_v14 = vld [vmem:[#allocation4 + $0xab0] sm:$0xff]  ;;  %v6491_v35 = vld [vmem:[#allocation4 + $0xa98] sm:$0xff] }
 0x68f   :  { %13412 = vmatprep.subr.bf16.mxu1 %v17855_v33  ;;  %v6495_v33 = vld [vmem:[#allocation4 + $0xab8] sm:$0xff]  ;;  %v17901_v5 = vcombine.high %v6490_v30, %v6494_v14  ;;  %v17900_v16 = vcombine.low %v6490_v30, %v6494_v14 }
 0x690   :  { %v17903_v2 = vcombine.high %v6491_v35, %v6495_v33  ;;  %v17902_v46 = vcombine.low %v6491_v35, %v6495_v33 }
 0x691   :  { %13085 = vmatpush1.bf16.msra.mxu0 %v17852_v50  ;;  %v6498_v50 = vld [vmem:[#allocation4 + $0xad0] sm:$0xff] }
 0x692   :  { %13413 = vmatpush1.bf16.msra.mxu1 %v17854_v40  ;;  %13086 = vmatprep.subr.bf16.mxu0 %v17861_v10  ;;  %v6502_v40 = vld [vmem:[#allocation4 + $0xaf0] sm:$0xff]  ;;  %v6499_v10 = vld [vmem:[#allocation4 + $0xad8] sm:$0xff] }
 0x693   :  { %13414 = vmatprep.subr.bf16.mxu1 %v17863_v43  ;;  %v6503_v43 = vld [vmem:[#allocation4 + $0xaf8] sm:$0xff]  ;;  %v17909_v58 = vcombine.high %v6498_v50, %v6502_v40  ;;  %v17908_v63 = vcombine.low %v6498_v50, %v6502_v40 }
 0x694   :  { %v17911_v60 = vcombine.high %v6499_v10, %v6503_v43  ;;  %v17910_v19 = vcombine.low %v6499_v10, %v6503_v43 }
 0x695   :  { %13087 = vmatpush1.bf16.msra.mxu0 %v17860_v51  ;;  %v6506_v51 = vld [vmem:[#allocation4 + $0xb10] sm:$0xff] }
 0x696   :  { %13415 = vmatpush1.bf16.msra.mxu1 %v17862_v34  ;;  %13088 = vmatprep.subr.bf16.mxu0 %v17869_v55  ;;  %v6510_v34 = vld [vmem:[#allocation4 + $0xb30] sm:$0xff]  ;;  %v6507_v55 = vld [vmem:[#allocation4 + $0xb18] sm:$0xff] }
 0x697   :  { %13416 = vmatprep.subr.bf16.mxu1 %v17871_v57  ;;  %v6511_v57 = vld [vmem:[#allocation4 + $0xb38] sm:$0xff]  ;;  %v17917_v39 = vcombine.high %v6506_v51, %v6510_v34  ;;  %v17916_v17 = vcombine.low %v6506_v51, %v6510_v34 }
 0x698   :  { %v17919_v3 = vcombine.high %v6507_v55, %v6511_v57  ;;  %v17918_v49 = vcombine.low %v6507_v55, %v6511_v57  ;;  %v6551_v51 = vld [vmem:[#allocation4 + $0xc78] sm:$0xff]  ;;  %v6554_v57 = vld [vmem:[#allocation4 + $0xc90] sm:$0xff] }
 0x699   :  { %13089 = vmatpush1.bf16.msra.mxu0 %v17868_v47  ;;  %v6514_v47 = vld [vmem:[#allocation4 + $0xb50] sm:$0xff] }
 0x69a   :  { %13417 = vmatpush1.bf16.msra.mxu1 %v17870_v6  ;;  %13090 = vmatprep.subr.bf16.mxu0 %v17877_v7  ;;  %v6518_v6 = vld [vmem:[#allocation4 + $0xb70] sm:$0xff]  ;;  %v6515_v7 = vld [vmem:[#allocation4 + $0xb58] sm:$0xff] }
 0x69b   :  { %13418 = vmatprep.subr.bf16.mxu1 %v17879_v9  ;;  %v6519_v9 = vld [vmem:[#allocation4 + $0xb78] sm:$0xff]  ;;  %v17925_v38 = vcombine.high %v6514_v47, %v6518_v6  ;;  %v17924_v12 = vcombine.low %v6514_v47, %v6518_v6 }
 0x69c   :  { %v17927_v20 = vcombine.high %v6515_v7, %v6519_v9  ;;  %v17926_v28 = vcombine.low %v6515_v7, %v6519_v9 }
 0x69d   :  { %13091 = vmatpush1.bf16.msra.mxu0 %v17876_v22  ;;  %v6522_v22 = vld [vmem:[#allocation4 + $0xb90] sm:$0xff] }
 0x69e   :  { %13419 = vmatpush1.bf16.msra.mxu1 %v17878_v26  ;;  %13092 = vmatprep.subr.bf16.mxu0 %v17885_v0  ;;  %v6526_v26 = vld [vmem:[#allocation4 + $0xbb0] sm:$0xff]  ;;  %v6523_v0 = vld [vmem:[#allocation4 + $0xb98] sm:$0xff] }
 0x69f   :  { %13420 = vmatprep.subr.bf16.mxu1 %v17887_v11  ;;  %v6527_v11 = vld [vmem:[#allocation4 + $0xbb8] sm:$0xff]  ;;  %v17933_v24 = vcombine.high %v6522_v22, %v6526_v26  ;;  %v17932_v30 = vcombine.low %v6522_v22, %v6526_v26 }
 0x6a0   :  { %v17935_v54 = vcombine.high %v6523_v0, %v6527_v11  ;;  %v17934_v14 = vcombine.low %v6523_v0, %v6527_v11  ;;  %v6570_v11 = vld [vmem:[#allocation4 + $0xd10] sm:$0xff] }
 0x6a1   :  { %13093 = vmatpush1.bf16.msra.mxu0 %v17884_v4  ;;  %v6530_v4 = vld [vmem:[#allocation4 + $0xbd0] sm:$0xff] }
 0x6a2   :  { %13421 = vmatpush1.bf16.msra.mxu1 %v17886_v29  ;;  %13094 = vmatprep.subr.bf16.mxu0 %v17893_v23  ;;  %v6534_v29 = vld [vmem:[#allocation4 + $0xbf0] sm:$0xff]  ;;  %v6531_v23 = vld [vmem:[#allocation4 + $0xbd8] sm:$0xff] }
 0x6a3   :  { %13422 = vmatprep.subr.bf16.mxu1 %v17895_v18  ;;  %v6535_v18 = vld [vmem:[#allocation4 + $0xbf8] sm:$0xff]  ;;  %v17941_v35 = vcombine.high %v6530_v4, %v6534_v29  ;;  %v17940_v50 = vcombine.low %v6530_v4, %v6534_v29 }
 0x6a4   :  { %v17943_v33 = vcombine.high %v6531_v23, %v6535_v18  ;;  %v17942_v40 = vcombine.low %v6531_v23, %v6535_v18  ;;  %v6578_v23 = vld [vmem:[#allocation4 + $0xd50] sm:$0xff] }
 0x6a5   :  { %13095 = vmatpush1.bf16.msra.mxu0 %v17892_v61  ;;  %v6538_v61 = vld [vmem:[#allocation4 + $0xc10] sm:$0xff] }
 0x6a6   :  { %13423 = vmatpush1.bf16.msra.mxu1 %v17894_v53  ;;  %13096 = vmatprep.subr.bf16.mxu0 %v17901_v5  ;;  %v6542_v53 = vld [vmem:[#allocation4 + $0xc30] sm:$0xff]  ;;  %v6539_v5 = vld [vmem:[#allocation4 + $0xc18] sm:$0xff] }
 0x6a7   :  { %13424 = vmatprep.subr.bf16.mxu1 %v17903_v2  ;;  %v6543_v2 = vld [vmem:[#allocation4 + $0xc38] sm:$0xff]  ;;  %v17949_v10 = vcombine.high %v6538_v61, %v6542_v53  ;;  %v6582_v18 = vld [vmem:[#allocation4 + $0xd70] sm:$0xff] }
 0x6a8   :  { %v17951_v43 = vcombine.high %v6539_v5, %v6543_v2  ;;  %v17950_v34 = vcombine.low %v6539_v5, %v6543_v2  ;;  %v6586_v5 = vld [vmem:[#allocation4 + $0xd90] sm:$0xff] }
 0x6a9   :  { %13097 = vmatpush1.bf16.msra.mxu0 %v17900_v16  ;;  %v6546_v16 = vld [vmem:[#allocation4 + $0xc50] sm:$0xff] }
 0x6aa   :  { %13425 = vmatpush1.bf16.msra.mxu1 %v17902_v46  ;;  %13098 = vmatprep.subr.bf16.mxu0 %v17909_v58  ;;  %v6550_v46 = vld [vmem:[#allocation4 + $0xc70] sm:$0xff]  ;;  %v17948_v58 = vcombine.low %v6538_v61, %v6542_v53  ;;  %v17989_v61 = vcombine.high %v6578_v23, %v6582_v18 }
 0x6ab   :  { %13426 = vmatprep.subr.bf16.mxu1 %v17911_v60  ;;  %v6547_v60 = vld [vmem:[#allocation4 + $0xc58] sm:$0xff]  ;;  %v17957_v55 = vcombine.high %v6546_v16, %v6550_v46  ;;  %v17956_v47 = vcombine.low %v6546_v16, %v6550_v46  ;;  %v6590_v2 = vld [vmem:[#allocation4 + $0xdb0] sm:$0xff] }
 0x6ac   :  { %v17958_v6 = vcombine.low %v6547_v60, %v6551_v51  ;;  %v17997_v16 = vcombine.high %v6586_v5, %v6590_v2 }
 0x6ad   :  { %13099 = vmatpush1.bf16.msra.mxu0 %v17908_v63  ;;  %v6558_v63 = vld [vmem:[#allocation4 + $0xcb0] sm:$0xff] }
 0x6ae   :  { %13427 = vmatpush1.bf16.msra.mxu1 %v17910_v19  ;;  %13100 = vmatprep.subr.bf16.mxu0 %v17917_v39  ;;  %v17959_v19 = vcombine.high %v6547_v60, %v6551_v51  ;;  %v6555_v39 = vld [vmem:[#allocation4 + $0xc98] sm:$0xff]  ;;  %v17965_v7 = vcombine.high %v6554_v57, %v6558_v63  ;;  %v17964_v22 = vcombine.low %v6554_v57, %v6558_v63  ;;  %v6594_v60 = vld [vmem:[#allocation4 + $0xdd0] sm:$0xff] }
 0x6af   :  { %13428 = vmatprep.subr.bf16.mxu1 %v17919_v3  ;;  %v6559_v3 = vld [vmem:[#allocation4 + $0xcb8] sm:$0xff]  ;;  %v6598_v51 = vld [vmem:[#allocation4 + $0xdf0] sm:$0xff] }
 0x6b0   :  { %v17967_v9 = vcombine.high %v6555_v39, %v6559_v3  ;;  %v6595_v57 = vld [vmem:[#allocation4 + $0xdd8] sm:$0xff] }
 0x6b1   :  { %13101 = vmatpush1.bf16.msra.mxu0 %v17916_v17  ;;  %v6562_v17 = vld [vmem:[#allocation4 + $0xcd0] sm:$0xff]  ;;  %v6599_v63 = vld [vmem:[#allocation4 + $0xdf8] sm:$0xff] }
 0x6b2   :  { %13429 = vmatpush1.bf16.msra.mxu1 %v17918_v49  ;;  %13102 = vmatprep.subr.bf16.mxu0 %v17925_v38  ;;  %v6566_v49 = vld [vmem:[#allocation4 + $0xcf0] sm:$0xff]  ;;  %v6563_v38 = vld [vmem:[#allocation4 + $0xcd8] sm:$0xff] }
 0x6b3   :  { %13430 = vmatprep.subr.bf16.mxu1 %v17927_v20  ;;  %v6567_v20 = vld [vmem:[#allocation4 + $0xcf8] sm:$0xff]  ;;  %v17973_v26 = vcombine.high %v6562_v17, %v6566_v49 }
 0x6b4   :  { %v17975_v0 = vcombine.high %v6563_v38, %v6567_v20 }
 0x6b5   :  { %13103 = vmatpush1.bf16.msra.mxu0 %v17924_v12  ;;  %v6574_v12 = vld [vmem:[#allocation4 + $0xd30] sm:$0xff] }
 0x6b6   :  { %13431 = vmatpush1.bf16.msra.mxu1 %v17926_v28  ;;  %13104 = vmatprep.subr.bf16.mxu0 %v17933_v24  ;;  %v6571_v28 = vld [vmem:[#allocation4 + $0xd18] sm:$0xff]  ;;  %v17981_v4 = vcombine.high %v6570_v11, %v6574_v12 }
 0x6b7   :  { %13432 = vmatprep.subr.bf16.mxu1 %v17935_v54  ;;  %v6575_v24 = vld [vmem:[#allocation4 + $0xd38] sm:$0xff]  ;;  %v17974_v54 = vcombine.low %v6563_v38, %v6567_v20  ;;  %v6602_v38 = vld [vmem:[#allocation4 + $0xe10] sm:$0xff] }
 0x6b8   :  { %v17983_v29 = vcombine.high %v6571_v28, %v6575_v24  ;;  %v6606_v20 = vld [vmem:[#allocation4 + $0xe30] sm:$0xff] }
 0x6b9   :  { %13105 = vmatpush1.bf16.msra.mxu0 %v17932_v30  ;;  %v6579_v30 = vld [vmem:[#allocation4 + $0xd58] sm:$0xff] }
 0x6ba   :  { %13433 = vmatpush1.bf16.msra.mxu1 %v17934_v14  ;;  %13106 = vmatprep.subr.bf16.mxu0 %v17941_v35  ;;  %v6583_v14 = vld [vmem:[#allocation4 + $0xd78] sm:$0xff]  ;;  %v17980_v35 = vcombine.low %v6570_v11, %v6574_v12  ;;  %v18013_v11 = vcombine.high %v6602_v38, %v6606_v20 }
 0x6bb   :  { %13434 = vmatprep.subr.bf16.mxu1 %v17943_v33  ;;  %v17982_v33 = vcombine.low %v6571_v28, %v6575_v24  ;;  %v17991_v53 = vcombine.high %v6579_v30, %v6583_v14  ;;  %v6610_v28 = vld [vmem:[#allocation4 + $0xe50] sm:$0xff] }
 0x6bc   :  { %v6614_v24 = vld [vmem:[#allocation4 + $0xe70] sm:$0xff] }
 0x6bd   :  { %13107 = vmatpush1.bf16.msra.mxu0 %v17940_v50  ;;  %v6587_v50 = vld [vmem:[#allocation4 + $0xd98] sm:$0xff] }
 0x6be   :  { %13435 = vmatpush1.bf16.msra.mxu1 %v17942_v40  ;;  %13117 = vmatprep.subr.bf16.mxu0 %v17949_v10  ;;  %v6591_v40 = vld [vmem:[#allocation4 + $0xdb8] sm:$0xff]  ;;  %v17988_v10 = vcombine.low %v6578_v23, %v6582_v18  ;;  %v18021_v23 = vcombine.high %v6610_v28, %v6614_v24 }
 0x6bf   :  { %13445 = vmatprep.subr.bf16.mxu1 %v17951_v43  ;;  %v17990_v43 = vcombine.low %v6579_v30, %v6583_v14  ;;  %v6618_v30 = vld [vmem:[#allocation4 + $0xe90] sm:$0xff] }
 0x6c0   :  { %13109 = vmatmul.mubr.bf16.vlgmr.msra.gmra.mrb[20].mxu0 %v20659_v1  ;;  %v6622_v14 = vld [vmem:[#allocation4 + $0xeb0] sm:$0xff] }
 0x6c1   :  { %13437 = vmatmul.mubr.bf16.vlgmr.msra.gmra.mrb[20].mxu1 %v20659_v1  ;;  %13118 = vmatpush1.bf16.msra.mxu0 %v17948_v58  ;;  %v17966_v1 = vcombine.low %v6555_v39, %v6559_v3  ;;  %v17999_v58 = vcombine.high %v6587_v50, %v6591_v40  ;;  %v17996_v3 = vcombine.low %v6586_v5, %v6590_v2 }
 0x6c2   :  { %13149 = vmatprep.mubr.bf16.mxu0 %v20661_v44  ;;  %13446 = vmatpush1.bf16.msra.mxu1 %v17950_v34  ;;  %v18029_v5 = vcombine.high %v6618_v30, %v6622_v14 }
 0x6c3   :  { %13477 = vmatprep.mubr.bf16.mxu1 %v20661_v44  ;;  %13119 = vmatprep.subr.bf16.mxu0 %v17957_v55  ;;  %v17972_v44 = vcombine.low %v6562_v17, %v6566_v49  ;;  %v18007_v49 = vcombine.high %v6595_v57, %v6599_v63 }
 0x6c4   :  { %13447 = vmatprep.subr.bf16.mxu1 %v17959_v19 }
 0x6c5   :  { %13120 = vmatpush1.bf16.msra.mxu0 %v17956_v47 }
 0x6c6   :  { %13448 = vmatpush1.bf16.msra.mxu1 %v17958_v6  ;;  %13121 = vmatprep.subr.bf16.mxu0 %v17965_v7  ;;  %v17998_v7 = vcombine.low %v6587_v50, %v6591_v40  ;;  %v6626_v50 = vld [vmem:[#allocation4 + $0xed0] sm:$0xff] }
 0x6c7   :  { %13449 = vmatprep.subr.bf16.mxu1 %v17967_v9  ;;  %v18005_v9 = vcombine.high %v6594_v60, %v6598_v51  ;;  %v6630_v40 = vld [vmem:[#allocation4 + $0xef0] sm:$0xff] }
 0x6c9   :  { %13122 = vmatpush1.bf16.msra.mxu0 %v17964_v22  ;;  %v6603_v22 = vld [vmem:[#allocation4 + $0xe18] sm:$0xff] }
 0x6ca   :  { %13450 = vmatpush1.bf16.msra.mxu1 %v17966_v1  ;;  %13123 = vmatprep.subr.bf16.mxu0 %v17973_v26  ;;  %v6607_v1 = vld [vmem:[#allocation4 + $0xe38] sm:$0xff]  ;;  %v18004_v26 = vcombine.low %v6594_v60, %v6598_v51  ;;  %v18037_v60 = vcombine.high %v6626_v50, %v6630_v40 }
 0x6cb   :  { %13451 = vmatprep.subr.bf16.mxu1 %v17975_v0  ;;  %v18006_v0 = vcombine.low %v6595_v57, %v6599_v63  ;;  %v18015_v12 = vcombine.high %v6603_v22, %v6607_v1  ;;  %v6634_v57 = vld [vmem:[#allocation4 + $0xf10] sm:$0xff] }
 0x6cc   :  { %v6638_v63 = vld [vmem:[#allocation4 + $0xf30] sm:$0xff] }
 0x6cd   :  { %13124 = vmatpush1.bf16.msra.mxu0 %v17972_v44  ;;  %v6611_v44 = vld [vmem:[#allocation4 + $0xe58] sm:$0xff] }
 0x6ce   :  { %13452 = vmatpush1.bf16.msra.mxu1 %v17974_v54  ;;  %13125 = vmatprep.subr.bf16.mxu0 %v17981_v4  ;;  %v6615_v54 = vld [vmem:[#allocation4 + $0xe78] sm:$0xff]  ;;  %v18012_v4 = vcombine.low %v6602_v38, %v6606_v20 }
 0x6cf   :  { %13453 = vmatprep.subr.bf16.mxu1 %v17983_v29  ;;  %v18014_v29 = vcombine.low %v6603_v22, %v6607_v1  ;;  %v18023_v18 = vcombine.high %v6611_v44, %v6615_v54  ;;  %v6643_v38 = vld [vmem:[#allocation4 + $0xf58] sm:$0xff]  ;;  %v18044_v22 = vcombine.low %v6634_v57, %v6638_v63 }
 0x6d0   :  { %v6647_v20 = vld [vmem:[#allocation4 + $0xf78] sm:$0xff] }
 0x6d1   :  { %13126 = vmatpush1.bf16.msra.mxu0 %v17980_v35  ;;  %v6619_v35 = vld [vmem:[#allocation4 + $0xe98] sm:$0xff] }
 0x6d2   :  { %13454 = vmatpush1.bf16.msra.mxu1 %v17982_v33  ;;  %13127 = vmatprep.subr.bf16.mxu0 %v17989_v61  ;;  %v6623_v33 = vld [vmem:[#allocation4 + $0xeb8] sm:$0xff]  ;;  %v18020_v61 = vcombine.low %v6610_v28, %v6614_v24 }
 0x6d3   :  { %v20803_v46 = vpop.f32.mrb[16].mxu0  ;;  %13455 = vmatprep.subr.bf16.mxu1 %v17991_v53  ;;  %v18022_v53 = vcombine.low %v6611_v44, %v6615_v54  ;;  %v18031_v2 = vcombine.high %v6619_v35, %v6623_v33  ;;  %v6651_v28 = vld [vmem:[#allocation4 + $0xf98] sm:$0xff]  ;;  %v18054_v54 = vcombine.low %v6643_v38, %v6647_v20 }
 0x6d4   :  { %v20805_v34 = vpop.f32.mrb[16].mxu1  ;;  %v20807_v55 = vpop.f32.mrb[17].mxu0  ;;  %v6655_v24 = vld [vmem:[#allocation4 + $0xfb8] sm:$0xff] }
 0x6d5   :  { %v20809_v19 = vpop.f32.mrb[17].mxu1  ;;  %v12663_v39 = vpop.f32.mrb[18].mxu0  ;;  %13128 = vmatpush1.bf16.msra.mxu0 %v17988_v10  ;;  %v6627_v10 = vld [vmem:[#allocation4 + $0xed8] sm:$0xff] }
 0x6d6   :  { %v12991_v47 = vpop.f32.mrb[18].mxu1  ;;  %13456 = vmatpush1.bf16.msra.mxu1 %v17990_v43  ;;  %v12664_v6 = vpop.f32.mrb[19].mxu0  ;;  %13129 = vmatprep.subr.bf16.mxu0 %v17997_v16  ;;  %v6631_v43 = vld [vmem:[#allocation4 + $0xef8] sm:$0xff]  ;;  %v18028_v16 = vcombine.low %v6618_v30, %v6622_v14 }
 0x6d7   :  { %v12992_v17 = vpop.f32.mrb[19].mxu1  ;;  %13457 = vmatprep.subr.bf16.mxu1 %v17999_v58  ;;  %v18030_v58 = vcombine.low %v6619_v35, %v6623_v33  ;;  %v18039_v51 = vcombine.high %v6627_v10, %v6631_v43  ;;  %v6635_v39 = vld [vmem:[#allocation4 + $0xf18] sm:$0xff]  ;;  %v18036_v47 = vcombine.low %v6626_v50, %v6630_v40  ;;  %v18038_v6 = vcombine.low %v6627_v10, %v6631_v43 }
 0x6d8   :  { %v6642_v17 = vld [vmem:[#allocation4 + $0xf50] sm:$0xff]  ;;  %v6659_v30 = vld [vmem:[#allocation4 + $0xfd8] sm:$0xff]  ;;  %v18062_v33 = vcombine.low %v6651_v28, %v6655_v24 }
 0x6d9   :  { %13130 = vmatpush1.bf16.msra.mxu0 %v17996_v3  ;;  %v6639_v3 = vld [vmem:[#allocation4 + $0xf38] sm:$0xff] }
 0x6da   :  { %13458 = vmatpush1.bf16.msra.mxu1 %v17998_v7  ;;  %13131 = vmatprep.subr.bf16.mxu0 %v18005_v9  ;;  %v18045_v7 = vcombine.high %v6634_v57, %v6638_v63  ;;  %v18047_v9 = vcombine.high %v6635_v39, %v6639_v3  ;;  %v18046_v1 = vcombine.low %v6635_v39, %v6639_v3  ;;  %v6663_v14 = vld [vmem:[#allocation4 + $0xff8] sm:$0xff] }
 0x6db   :  { %13459 = vmatprep.subr.bf16.mxu1 %v18007_v49  ;;  %v6646_v49 = vld [vmem:[#allocation4 + $0xf70] sm:$0xff]  ;;  %v6667_v50 = vld [vmem:[#allocation4 + $0x1018] sm:$0xff]  ;;  %v18070_v43 = vcombine.low %v6659_v30, %v6663_v14 }
 0x6dc   :  { %v18052_v44 = vcombine.low %v6642_v17, %v6646_v49  ;;  %v6671_v40 = vld [vmem:[#allocation4 + $0x1038] sm:$0xff] }
 0x6dd   :  { %13132 = vmatpush1.bf16.msra.mxu0 %v18004_v26  ;;  %v18053_v26 = vcombine.high %v6642_v17, %v6646_v49  ;;  %v6675_v63 = vld [vmem:[#allocation4 + $0x1058] sm:$0xff]  ;;  %v18078_v3 = vcombine.low %v6667_v50, %v6671_v40 }
 0x6de   :  { %13460 = vmatpush1.bf16.msra.mxu1 %v18006_v0  ;;  %13133 = vmatprep.subr.bf16.mxu0 %v18013_v11  ;;  %v18055_v0 = vcombine.high %v6643_v38, %v6647_v20  ;;  %v6650_v11 = vld [vmem:[#allocation4 + $0xf90] sm:$0xff]  ;;  %v6679_v39 = vld [vmem:[#allocation4 + $0x1078] sm:$0xff] }
 0x6df   :  { %13461 = vmatprep.subr.bf16.mxu1 %v18015_v12  ;;  %v6654_v12 = vld [vmem:[#allocation4 + $0xfb0] sm:$0xff]  ;;  %v6683_v17 = vld [vmem:[#allocation4 + $0x1098] sm:$0xff]  ;;  %v18086_v20 = vcombine.low %v6675_v63, %v6679_v39 }
 0x6e0   :  { %v18060_v35 = vcombine.low %v6650_v11, %v6654_v12  ;;  %v6687_v49 = vld [vmem:[#allocation4 + $0x10b8] sm:$0xff] }
 0x6e1   :  { %13134 = vmatpush1.bf16.msra.mxu0 %v18012_v4  ;;  %v18061_v4 = vcombine.high %v6650_v11, %v6654_v12  ;;  %v6691_v11 = vld [vmem:[#allocation4 + $0x10d8] sm:$0xff] }
 0x6e2   :  { %13462 = vmatpush1.bf16.msra.mxu1 %v18014_v29  ;;  %13135 = vmatprep.subr.bf16.mxu0 %v18021_v23  ;;  %v18063_v29 = vcombine.high %v6651_v28, %v6655_v24  ;;  %v6658_v23 = vld [vmem:[#allocation4 + $0xfd0] sm:$0xff]  ;;  %v6695_v12 = vld [vmem:[#allocation4 + $0x10f8] sm:$0xff] }
 0x6e3   :  { %13463 = vmatprep.subr.bf16.mxu1 %v18023_v18  ;;  %v6662_v18 = vld [vmem:[#allocation4 + $0xff0] sm:$0xff] }
 0x6e4   :  { %v18068_v10 = vcombine.low %v6658_v23, %v6662_v18 }
 0x6e5   :  { %13136 = vmatpush1.bf16.msra.mxu0 %v18020_v61  ;;  %v18069_v61 = vcombine.high %v6658_v23, %v6662_v18  ;;  %v6703_v23 = vld [vmem:[#allocation4 + $0x1138] sm:$0xff]  ;;  %v18102_v18 = vcombine.low %v6691_v11, %v6695_v12 }
 0x6e6   :  { %13464 = vmatpush1.bf16.msra.mxu1 %v18022_v53  ;;  %13137 = vmatprep.subr.bf16.mxu0 %v18029_v5  ;;  %v18071_v53 = vcombine.high %v6659_v30, %v6663_v14  ;;  %v6666_v5 = vld [vmem:[#allocation4 + $0x1010] sm:$0xff] }
 0x6e7   :  { %13465 = vmatprep.subr.bf16.mxu1 %v18031_v2  ;;  %v6670_v2 = vld [vmem:[#allocation4 + $0x1030] sm:$0xff] }
 0x6e8   :  { %v18076_v57 = vcombine.low %v6666_v5, %v6670_v2 }
 0x6e9   :  { %13138 = vmatpush1.bf16.msra.mxu0 %v18028_v16  ;;  %v18077_v16 = vcombine.high %v6666_v5, %v6670_v2 }
 0x6ea   :  { %13466 = vmatpush1.bf16.msra.mxu1 %v18030_v58  ;;  %13139 = vmatprep.subr.bf16.mxu0 %v18037_v60  ;;  %v18079_v58 = vcombine.high %v6667_v50, %v6671_v40  ;;  %v6674_v60 = vld [vmem:[#allocation4 + $0x1050] sm:$0xff] }
 0x6eb   :  { %13467 = vmatprep.subr.bf16.mxu1 %v18039_v51  ;;  %v6678_v51 = vld [vmem:[#allocation4 + $0x1070] sm:$0xff] }
 0x6ec   :  { %v18084_v38 = vcombine.low %v6674_v60, %v6678_v51 }
 0x6ed   :  { %13140 = vmatpush1.bf16.msra.mxu0 %v18036_v47  ;;  %v18085_v47 = vcombine.high %v6674_v60, %v6678_v51 }
 0x6ee   :  { %13468 = vmatpush1.bf16.msra.mxu1 %v18038_v6  ;;  %13141 = vmatprep.subr.bf16.mxu0 %v18045_v7  ;;  %v6682_v6 = vld [vmem:[#allocation4 + $0x1090] sm:$0xff] }
 0x6ef   :  { %13469 = vmatprep.subr.bf16.mxu1 %v18047_v9  ;;  %v6686_v7 = vld [vmem:[#allocation4 + $0x10b0] sm:$0xff]  ;;  %v18087_v9 = vcombine.high %v6675_v63, %v6679_v39 }
 0x6f0   :  { %v18092_v28 = vcombine.low %v6682_v6, %v6686_v7  ;;  %v6722_v39 = vld [vmem:[#allocation4 + $0x11d0] sm:$0xff] }
 0x6f1   :  { %13142 = vmatpush1.bf16.msra.mxu0 %v18044_v22  ;;  %v18093_v22 = vcombine.high %v6682_v6, %v6686_v7  ;;  %v6727_v6 = vld [vmem:[#allocation4 + $0x11f8] sm:$0xff] }
 0x6f2   :  { %13470 = vmatpush1.bf16.msra.mxu1 %v18046_v1  ;;  %13143 = vmatprep.subr.bf16.mxu0 %v18053_v26  ;;  %v18095_v1 = vcombine.high %v6683_v17, %v6687_v49  ;;  %v6690_v26 = vld [vmem:[#allocation4 + $0x10d0] sm:$0xff] }
 0x6f3   :  { %13471 = vmatprep.subr.bf16.mxu1 %v18055_v0  ;;  %v6694_v0 = vld [vmem:[#allocation4 + $0x10f0] sm:$0xff] }
 0x6f4   :  { %v18101_v24 = vcombine.high %v6690_v26, %v6694_v0 }
 0x6f5   :  { %13144 = vmatpush1.bf16.msra.mxu0 %v18052_v44  ;;  %v18103_v44 = vcombine.high %v6691_v11, %v6695_v12 }
 0x6f6   :  { %13472 = vmatpush1.bf16.msra.mxu1 %v18054_v54  ;;  %13145 = vmatprep.subr.bf16.mxu0 %v18061_v4  ;;  %v6698_v54 = vld [vmem:[#allocation4 + $0x1110] sm:$0xff] }
 0x6f7   :  { %13473 = vmatprep.subr.bf16.mxu1 %v18063_v29  ;;  %v6702_v4 = vld [vmem:[#allocation4 + $0x1130] sm:$0xff]  ;;  %v6699_v29 = vld [vmem:[#allocation4 + $0x1118] sm:$0xff] }
 0x6f8   :  { %v18109_v30 = vcombine.high %v6698_v54, %v6702_v4  ;;  %v18111_v14 = vcombine.high %v6699_v29, %v6703_v23  ;;  %v18108_v5 = vcombine.low %v6698_v54, %v6702_v4  ;;  %v18110_v2 = vcombine.low %v6699_v29, %v6703_v23 }
 0x6f9   :  { %13146 = vmatpush1.bf16.msra.mxu0 %v18060_v35  ;;  %v6706_v35 = vld [vmem:[#allocation4 + $0x1150] sm:$0xff] }
 0x6fa   :  { %13474 = vmatpush1.bf16.msra.mxu1 %v18062_v33  ;;  %13147 = vmatprep.subr.bf16.mxu0 %v18069_v61  ;;  %v6710_v33 = vld [vmem:[#allocation4 + $0x1170] sm:$0xff]  ;;  %v6707_v61 = vld [vmem:[#allocation4 + $0x1158] sm:$0xff] }
 0x6fb   :  { %13475 = vmatprep.subr.bf16.mxu1 %v18071_v53  ;;  %v6711_v53 = vld [vmem:[#allocation4 + $0x1178] sm:$0xff]  ;;  %v18117_v50 = vcombine.high %v6706_v35, %v6710_v33  ;;  %v18116_v60 = vcombine.low %v6706_v35, %v6710_v33 }
 0x6fc   :  { %v18119_v40 = vcombine.high %v6707_v61, %v6711_v53  ;;  %v18118_v51 = vcombine.low %v6707_v61, %v6711_v53 }
 0x6fd   :  { %13148 = vmatpush1.bf16.msra.mxu0 %v18068_v10  ;;  %v6714_v10 = vld [vmem:[#allocation4 + $0x1190] sm:$0xff] }
 0x6fe   :  { %13476 = vmatpush1.bf16.msra.mxu1 %v18070_v43  ;;  %13158 = vmatprep.subr.bf16.mxu0 %v18077_v16  ;;  %v6718_v43 = vld [vmem:[#allocation4 + $0x11b0] sm:$0xff]  ;;  %v6715_v16 = vld [vmem:[#allocation4 + $0x1198] sm:$0xff] }
 0x6ff   :  { %13486 = vmatprep.subr.bf16.mxu1 %v18079_v58  ;;  %v6719_v58 = vld [vmem:[#allocation4 + $0x11b8] sm:$0xff]  ;;  %v18124_v7 = vcombine.low %v6714_v10, %v6718_v43 }
 0x700   :  { %13150 = vmatmul.mubr.bf16.vlgmr.msra.gmra.mrb[20].mxu0 %v20698_v36  ;;  %v18127_v63 = vcombine.high %v6715_v16, %v6719_v58 }
 0x701   :  { %13478 = vmatmul.mubr.bf16.vlgmr.msra.gmra.mrb[20].mxu1 %v20698_v36  ;;  %13159 = vmatpush1.bf16.msra.mxu0 %v18076_v57  ;;  %v18094_v36 = vcombine.low %v6683_v17, %v6687_v49  ;;  %v18125_v57 = vcombine.high %v6714_v10, %v6718_v43 }
 0x702   :  { %13190 = vmatprep.mubr.bf16.mxu0 %v20700_v15  ;;  %13487 = vmatpush1.bf16.msra.mxu1 %v18078_v3  ;;  %v6726_v3 = vld [vmem:[#allocation4 + $0x11f0] sm:$0xff] }
 0x703   :  { %13518 = vmatprep.mubr.bf16.mxu1 %v20700_v15  ;;  %13160 = vmatprep.subr.bf16.mxu0 %v18085_v47  ;;  %v18100_v15 = vcombine.low %v6690_v26, %v6694_v0  ;;  %v6723_v47 = vld [vmem:[#allocation4 + $0x11d8] sm:$0xff]  ;;  %v18133_v17 = vcombine.high %v6722_v39, %v6726_v3  ;;  %v18132_v26 = vcombine.low %v6722_v39, %v6726_v3 }
 0x704   :  { %13488 = vmatprep.subr.bf16.mxu1 %v18087_v9  ;;  %v18126_v9 = vcombine.low %v6715_v16, %v6719_v58  ;;  %v18135_v49 = vcombine.high %v6723_v47, %v6727_v6  ;;  %v18134_v0 = vcombine.low %v6723_v47, %v6727_v6 }
 0x705   :  { %13161 = vmatpush1.bf16.msra.mxu0 %v18084_v38  ;;  %v6730_v38 = vld [vmem:[#allocation4 + $0x1210] sm:$0xff] }
 0x706   :  { %13489 = vmatpush1.bf16.msra.mxu1 %v18086_v20  ;;  %13162 = vmatprep.subr.bf16.mxu0 %v18093_v22  ;;  %v6734_v20 = vld [vmem:[#allocation4 + $0x1230] sm:$0xff]  ;;  %v6731_v22 = vld [vmem:[#allocation4 + $0x1218] sm:$0xff] }
 0x707   :  { %13490 = vmatprep.subr.bf16.mxu1 %v18095_v1  ;;  %v6735_v1 = vld [vmem:[#allocation4 + $0x1238] sm:$0xff]  ;;  %v18141_v11 = vcombine.high %v6730_v38, %v6734_v20  ;;  %v18140_v54 = vcombine.low %v6730_v38, %v6734_v20 }
 0x708   :  { %v18143_v12 = vcombine.high %v6731_v22, %v6735_v1  ;;  %v18142_v4 = vcombine.low %v6731_v22, %v6735_v1 }
 0x709   :  { %13163 = vmatpush1.bf16.msra.mxu0 %v18092_v28  ;;  %v6738_v28 = vld [vmem:[#allocation4 + $0x1250] sm:$0xff] }
 0x70a   :  { %13491 = vmatpush1.bf16.msra.mxu1 %v18094_v36  ;;  %13164 = vmatprep.subr.bf16.mxu0 %v18101_v24  ;;  %v6742_v36 = vld [vmem:[#allocation4 + $0x1270] sm:$0xff]  ;;  %v6739_v24 = vld [vmem:[#allocation4 + $0x1258] sm:$0xff] }
 0x70b   :  { %13492 = vmatprep.subr.bf16.mxu1 %v18103_v44  ;;  %v6743_v44 = vld [vmem:[#allocation4 + $0x1278] sm:$0xff]  ;;  %v18149_v29 = vcombine.high %v6738_v28, %v6742_v36  ;;  %v18148_v35 = vcombine.low %v6738_v28, %v6742_v36 }
 0x70c   :  { %v18151_v23 = vcombine.high %v6739_v24, %v6743_v44  ;;  %v18150_v33 = vcombine.low %v6739_v24, %v6743_v44 }
 0x70d   :  { %13165 = vmatpush1.bf16.msra.mxu0 %v18100_v15  ;;  %v6746_v15 = vld [vmem:[#allocation4 + $0x1290] sm:$0xff] }
 0x70e   :  { %13493 = vmatpush1.bf16.msra.mxu1 %v18102_v18  ;;  %13166 = vmatprep.subr.bf16.mxu0 %v18109_v30  ;;  %v6750_v18 = vld [vmem:[#allocation4 + $0x12b0] sm:$0xff]  ;;  %v6747_v30 = vld [vmem:[#allocation4 + $0x1298] sm:$0xff] }
 0x70f   :  { %13494 = vmatprep.subr.bf16.mxu1 %v18111_v14  ;;  %v6751_v14 = vld [vmem:[#allocation4 + $0x12b8] sm:$0xff]  ;;  %v18157_v61 = vcombine.high %v6746_v15, %v6750_v18  ;;  %v18156_v10 = vcombine.low %v6746_v15, %v6750_v18 }
 0x710   :  { %v18159_v53 = vcombine.high %v6747_v30, %v6751_v14  ;;  %v18158_v43 = vcombine.low %v6747_v30, %v6751_v14 }
 0x711   :  { %13167 = vmatpush1.bf16.msra.mxu0 %v18108_v5  ;;  %v6754_v5 = vld [vmem:[#allocation4 + $0x12d0] sm:$0xff] }
 0x712   :  { %13495 = vmatpush1.bf16.msra.mxu1 %v18110_v2  ;;  %13168 = vmatprep.subr.bf16.mxu0 %v18117_v50  ;;  %v6758_v2 = vld [vmem:[#allocation4 + $0x12f0] sm:$0xff]  ;;  %v6755_v50 = vld [vmem:[#allocation4 + $0x12d8] sm:$0xff] }
 0x713   :  { %13496 = vmatprep.subr.bf16.mxu1 %v18119_v40  ;;  %v6759_v40 = vld [vmem:[#allocation4 + $0x12f8] sm:$0xff]  ;;  %v18165_v16 = vcombine.high %v6754_v5, %v6758_v2  ;;  %v18164_v39 = vcombine.low %v6754_v5, %v6758_v2 }
 0x714   :  { %v18167_v58 = vcombine.high %v6755_v50, %v6759_v40  ;;  %v18166_v3 = vcombine.low %v6755_v50, %v6759_v40 }
 0x715   :  { %13169 = vmatpush1.bf16.msra.mxu0 %v18116_v60  ;;  %v6762_v60 = vld [vmem:[#allocation4 + $0x1310] sm:$0xff] }
 0x716   :  { %13497 = vmatpush1.bf16.msra.mxu1 %v18118_v51  ;;  %13170 = vmatprep.subr.bf16.mxu0 %v18125_v57  ;;  %v6766_v51 = vld [vmem:[#allocation4 + $0x1330] sm:$0xff]  ;;  %v6763_v57 = vld [vmem:[#allocation4 + $0x1318] sm:$0xff] }
 0x717   :  { %13498 = vmatprep.subr.bf16.mxu1 %v18127_v63  ;;  %v6767_v63 = vld [vmem:[#allocation4 + $0x1338] sm:$0xff]  ;;  %v18173_v47 = vcombine.high %v6762_v60, %v6766_v51  ;;  %v18172_v38 = vcombine.low %v6762_v60, %v6766_v51 }
 0x718   :  { %v18175_v6 = vcombine.high %v6763_v57, %v6767_v63  ;;  %v18174_v20 = vcombine.low %v6763_v57, %v6767_v63  ;;  %v6807_v60 = vld [vmem:[#allocation4 + $0x1478] sm:$0xff]  ;;  %v6810_v63 = vld [vmem:[#allocation4 + $0x1490] sm:$0xff] }
 0x719   :  { %13171 = vmatpush1.bf16.msra.mxu0 %v18124_v7  ;;  %v6770_v7 = vld [vmem:[#allocation4 + $0x1350] sm:$0xff] }
 0x71a   :  { %13499 = vmatpush1.bf16.msra.mxu1 %v18126_v9  ;;  %13172 = vmatprep.subr.bf16.mxu0 %v18133_v17  ;;  %v6774_v9 = vld [vmem:[#allocation4 + $0x1370] sm:$0xff]  ;;  %v6771_v17 = vld [vmem:[#allocation4 + $0x1358] sm:$0xff] }
 0x71b   :  { %13500 = vmatprep.subr.bf16.mxu1 %v18135_v49  ;;  %v6775_v49 = vld [vmem:[#allocation4 + $0x1378] sm:$0xff]  ;;  %v18181_v22 = vcombine.high %v6770_v7, %v6774_v9  ;;  %v18180_v28 = vcombine.low %v6770_v7, %v6774_v9 }
 0x71c   :  { %v18183_v1 = vcombine.high %v6771_v17, %v6775_v49  ;;  %v18182_v36 = vcombine.low %v6771_v17, %v6775_v49 }
 0x71d   :  { %13173 = vmatpush1.bf16.msra.mxu0 %v18132_v26  ;;  %v6778_v26 = vld [vmem:[#allocation4 + $0x1390] sm:$0xff] }
 0x71e   :  { %13501 = vmatpush1.bf16.msra.mxu1 %v18134_v0  ;;  %13174 = vmatprep.subr.bf16.mxu0 %v18141_v11  ;;  %v6782_v0 = vld [vmem:[#allocation4 + $0x13b0] sm:$0xff]  ;;  %v6779_v11 = vld [vmem:[#allocation4 + $0x1398] sm:$0xff] }
 0x71f   :  { %13502 = vmatprep.subr.bf16.mxu1 %v18143_v12  ;;  %v6783_v12 = vld [vmem:[#allocation4 + $0x13b8] sm:$0xff]  ;;  %v18189_v24 = vcombine.high %v6778_v26, %v6782_v0  ;;  %v18188_v15 = vcombine.low %v6778_v26, %v6782_v0 }
 0x720   :  { %v18191_v44 = vcombine.high %v6779_v11, %v6783_v12  ;;  %v18190_v18 = vcombine.low %v6779_v11, %v6783_v12  ;;  %v6826_v12 = vld [vmem:[#allocation4 + $0x1510] sm:$0xff] }
 0x721   :  { %13175 = vmatpush1.bf16.msra.mxu0 %v18140_v54  ;;  %v6786_v54 = vld [vmem:[#allocation4 + $0x13d0] sm:$0xff] }
 0x722   :  { %13503 = vmatpush1.bf16.msra.mxu1 %v18142_v4  ;;  %13176 = vmatprep.subr.bf16.mxu0 %v18149_v29  ;;  %v6790_v4 = vld [vmem:[#allocation4 + $0x13f0] sm:$0xff]  ;;  %v6787_v29 = vld [vmem:[#allocation4 + $0x13d8] sm:$0xff] }
 0x723   :  { %13504 = vmatprep.subr.bf16.mxu1 %v18151_v23  ;;  %v6791_v23 = vld [vmem:[#allocation4 + $0x13f8] sm:$0xff]  ;;  %v18197_v30 = vcombine.high %v6786_v54, %v6790_v4  ;;  %v18196_v5 = vcombine.low %v6786_v54, %v6790_v4 }
 0x724   :  { %v18199_v14 = vcombine.high %v6787_v29, %v6791_v23  ;;  %v18198_v2 = vcombine.low %v6787_v29, %v6791_v23  ;;  %v6834_v29 = vld [vmem:[#allocation4 + $0x1550] sm:$0xff] }
 0x725   :  { %13177 = vmatpush1.bf16.msra.mxu0 %v18148_v35  ;;  %v6794_v35 = vld [vmem:[#allocation4 + $0x1410] sm:$0xff] }
 0x726   :  { %13505 = vmatpush1.bf16.msra.mxu1 %v18150_v33  ;;  %13178 = vmatprep.subr.bf16.mxu0 %v18157_v61  ;;  %v6798_v33 = vld [vmem:[#allocation4 + $0x1430] sm:$0xff]  ;;  %v6795_v61 = vld [vmem:[#allocation4 + $0x1418] sm:$0xff] }
 0x727   :  { %13506 = vmatprep.subr.bf16.mxu1 %v18159_v53  ;;  %v6799_v53 = vld [vmem:[#allocation4 + $0x1438] sm:$0xff]  ;;  %v18205_v50 = vcombine.high %v6794_v35, %v6798_v33  ;;  %v6838_v23 = vld [vmem:[#allocation4 + $0x1570] sm:$0xff] }
 0x728   :  { %v18207_v40 = vcombine.high %v6795_v61, %v6799_v53  ;;  %v18206_v51 = vcombine.low %v6795_v61, %v6799_v53  ;;  %v6842_v61 = vld [vmem:[#allocation4 + $0x1590] sm:$0xff] }
 0x729   :  { %13179 = vmatpush1.bf16.msra.mxu0 %v18156_v10  ;;  %v6802_v10 = vld [vmem:[#allocation4 + $0x1450] sm:$0xff] }
 0x72a   :  { %13507 = vmatpush1.bf16.msra.mxu1 %v18158_v43  ;;  %13180 = vmatprep.subr.bf16.mxu0 %v18165_v16  ;;  %v6806_v43 = vld [vmem:[#allocation4 + $0x1470] sm:$0xff]  ;;  %v18204_v16 = vcombine.low %v6794_v35, %v6798_v33  ;;  %v18245_v35 = vcombine.high %v6834_v29, %v6838_v23 }
 0x72b   :  { %13508 = vmatprep.subr.bf16.mxu1 %v18167_v58  ;;  %v6803_v58 = vld [vmem:[#allocation4 + $0x1458] sm:$0xff]  ;;  %v18213_v57 = vcombine.high %v6802_v10, %v6806_v43  ;;  %v18212_v7 = vcombine.low %v6802_v10, %v6806_v43  ;;  %v6846_v53 = vld [vmem:[#allocation4 + $0x15b0] sm:$0xff] }
 0x72c   :  { %v18214_v9 = vcombine.low %v6803_v58, %v6807_v60  ;;  %v18253_v10 = vcombine.high %v6842_v61, %v6846_v53 }
 0x72d   :  { %13181 = vmatpush1.bf16.msra.mxu0 %v18164_v39  ;;  %v6814_v39 = vld [vmem:[#allocation4 + $0x14b0] sm:$0xff] }
 0x72e   :  { %13509 = vmatpush1.bf16.msra.mxu1 %v18166_v3  ;;  %13182 = vmatprep.subr.bf16.mxu0 %v18173_v47  ;;  %v18215_v3 = vcombine.high %v6803_v58, %v6807_v60  ;;  %v6811_v47 = vld [vmem:[#allocation4 + $0x1498] sm:$0xff]  ;;  %v18221_v17 = vcombine.high %v6810_v63, %v6814_v39  ;;  %v18220_v26 = vcombine.low %v6810_v63, %v6814_v39  ;;  %v6854_v58 = vld [vmem:[#allocation4 + $0x15f0] sm:$0xff] }
 0x72f   :  { %13510 = vmatprep.subr.bf16.mxu1 %v18175_v6  ;;  %v6815_v6 = vld [vmem:[#allocation4 + $0x14b8] sm:$0xff] }
 0x730   :  { %v18223_v49 = vcombine.high %v6811_v47, %v6815_v6  ;;  %v6851_v60 = vld [vmem:[#allocation4 + $0x15d8] sm:$0xff] }
 0x731   :  { %13183 = vmatpush1.bf16.msra.mxu0 %v18172_v38  ;;  %v6818_v38 = vld [vmem:[#allocation4 + $0x14d0] sm:$0xff] }
 0x732   :  { %13511 = vmatpush1.bf16.msra.mxu1 %v18174_v20  ;;  %13184 = vmatprep.subr.bf16.mxu0 %v18181_v22  ;;  %v6822_v20 = vld [vmem:[#allocation4 + $0x14f0] sm:$0xff]  ;;  %v6819_v22 = vld [vmem:[#allocation4 + $0x14d8] sm:$0xff] }
 0x733   :  { %13512 = vmatprep.subr.bf16.mxu1 %v18183_v1  ;;  %v6823_v1 = vld [vmem:[#allocation4 + $0x14f8] sm:$0xff]  ;;  %v18229_v0 = vcombine.high %v6818_v38, %v6822_v20 }
 0x734   :  { %v18231_v11 = vcombine.high %v6819_v22, %v6823_v1 }
 0x735   :  { %13185 = vmatpush1.bf16.msra.mxu0 %v18180_v28  ;;  %v6830_v28 = vld [vmem:[#allocation4 + $0x1530] sm:$0xff] }
 0x736   :  { %13513 = vmatpush1.bf16.msra.mxu1 %v18182_v36  ;;  %13186 = vmatprep.subr.bf16.mxu0 %v18189_v24  ;;  %v6827_v36 = vld [vmem:[#allocation4 + $0x1518] sm:$0xff]  ;;  %v18237_v54 = vcombine.high %v6826_v12, %v6830_v28 }
 0x737   :  { %13514 = vmatprep.subr.bf16.mxu1 %v18191_v44  ;;  %v6831_v24 = vld [vmem:[#allocation4 + $0x1538] sm:$0xff]  ;;  %v18230_v44 = vcombine.low %v6819_v22, %v6823_v1  ;;  %v6866_v22 = vld [vmem:[#allocation4 + $0x1650] sm:$0xff] }
 0x738   :  { %v18239_v4 = vcombine.high %v6827_v36, %v6831_v24  ;;  %v6870_v1 = vld [vmem:[#allocation4 + $0x1670] sm:$0xff] }
 0x739   :  { %13187 = vmatpush1.bf16.msra.mxu0 %v18188_v15  ;;  %v6835_v15 = vld [vmem:[#allocation4 + $0x1558] sm:$0xff] }
 0x73a   :  { %13515 = vmatpush1.bf16.msra.mxu1 %v18190_v18  ;;  %13188 = vmatprep.subr.bf16.mxu0 %v18197_v30  ;;  %v6839_v18 = vld [vmem:[#allocation4 + $0x1578] sm:$0xff]  ;;  %v18236_v30 = vcombine.low %v6826_v12, %v6830_v28  ;;  %v18277_v12 = vcombine.high %v6866_v22, %v6870_v1 }
 0x73b   :  { %13516 = vmatprep.subr.bf16.mxu1 %v18199_v14  ;;  %v18238_v14 = vcombine.low %v6827_v36, %v6831_v24  ;;  %v18247_v33 = vcombine.high %v6835_v15, %v6839_v18  ;;  %v6874_v36 = vld [vmem:[#allocation4 + $0x1690] sm:$0xff] }
 0x73c   :  { %v6878_v24 = vld [vmem:[#allocation4 + $0x16b0] sm:$0xff] }
 0x73d   :  { %13189 = vmatpush1.bf16.msra.mxu0 %v18196_v5  ;;  %v6843_v5 = vld [vmem:[#allocation4 + $0x1598] sm:$0xff] }
 0x73e   :  { %13517 = vmatpush1.bf16.msra.mxu1 %v18198_v2  ;;  %13199 = vmatprep.subr.bf16.mxu0 %v18205_v50  ;;  %v6847_v2 = vld [vmem:[#allocation4 + $0x15b8] sm:$0xff]  ;;  %v18244_v50 = vcombine.low %v6834_v29, %v6838_v23  ;;  %v18285_v29 = vcombine.high %v6874_v36, %v6878_v24 }
 0x73f   :  { %13527 = vmatprep.subr.bf16.mxu1 %v18207_v40  ;;  %v18246_v40 = vcombine.low %v6835_v15, %v6839_v18  ;;  %v18255_v43 = vcombine.high %v6843_v5, %v6847_v2  ;;  %v18254_v63 = vcombine.low %v6843_v5, %v6847_v2  ;;  %v6882_v15 = vld [vmem:[#allocation4 + $0x16d0] sm:$0xff] }
 0x740   :  { %13191 = vmatmul.mubr.bf16.vlgmr.msra.gmra.mrb[20].mxu0 %v20720_v32  ;;  %v6886_v18 = vld [vmem:[#allocation4 + $0x16f0] sm:$0xff] }
 0x741   :  { %13519 = vmatmul.mubr.bf16.vlgmr.msra.gmra.mrb[20].mxu1 %v20720_v32  ;;  %13200 = vmatpush1.bf16.msra.mxu0 %v18204_v16  ;;  %v18222_v32 = vcombine.low %v6811_v47, %v6815_v6  ;;  %v6850_v16 = vld [vmem:[#allocation4 + $0x15d0] sm:$0xff] }
 0x742   :  { %13231 = vmatprep.mubr.bf16.mxu0 %v20722_v37  ;;  %13528 = vmatpush1.bf16.msra.mxu1 %v18206_v51  ;;  %v6855_v51 = vld [vmem:[#allocation4 + $0x15f8] sm:$0xff]  ;;  %v18261_v39 = vcombine.high %v6850_v16, %v6854_v58  ;;  %v6858_v47 = vld [vmem:[#allocation4 + $0x1610] sm:$0xff] }
 0x743   :  { %13559 = vmatprep.mubr.bf16.mxu1 %v20722_v37  ;;  %13201 = vmatprep.subr.bf16.mxu0 %v18213_v57  ;;  %v18228_v37 = vcombine.low %v6818_v38, %v6822_v20  ;;  %v18252_v57 = vcombine.low %v6842_v61, %v6846_v53  ;;  %v6862_v6 = vld [vmem:[#allocation4 + $0x1630] sm:$0xff]  ;;  %v18293_v61 = vcombine.high %v6882_v15, %v6886_v18 }
 0x744   :  { %13529 = vmatprep.subr.bf16.mxu1 %v18215_v3  ;;  %v18263_v3 = vcombine.high %v6851_v60, %v6855_v51  ;;  %v18269_v38 = vcombine.high %v6858_v47, %v6862_v6  ;;  %v6890_v5 = vld [vmem:[#allocation4 + $0x1710] sm:$0xff] }
 0x745   :  { %13202 = vmatpush1.bf16.msra.mxu0 %v18212_v7  ;;  %v6859_v7 = vld [vmem:[#allocation4 + $0x1618] sm:$0xff]  ;;  %v6894_v2 = vld [vmem:[#allocation4 + $0x1730] sm:$0xff] }
 0x746   :  { %13530 = vmatpush1.bf16.msra.mxu1 %v18214_v9  ;;  %13203 = vmatprep.subr.bf16.mxu0 %v18221_v17  ;;  %v6863_v9 = vld [vmem:[#allocation4 + $0x1638] sm:$0xff]  ;;  %v18260_v17 = vcombine.low %v6850_v16, %v6854_v58  ;;  %v18301_v16 = vcombine.high %v6890_v5, %v6894_v2 }
 0x747   :  { %13531 = vmatprep.subr.bf16.mxu1 %v18223_v49  ;;  %v18262_v49 = vcombine.low %v6851_v60, %v6855_v51  ;;  %v18271_v20 = vcombine.high %v6859_v7, %v6863_v9  ;;  %v6898_v60 = vld [vmem:[#allocation4 + $0x1750] sm:$0xff] }
 0x748   :  { %v6902_v51 = vld [vmem:[#allocation4 + $0x1770] sm:$0xff] }
 0x749   :  { %13204 = vmatpush1.bf16.msra.mxu0 %v18220_v26  ;;  %v6867_v26 = vld [vmem:[#allocation4 + $0x1658] sm:$0xff] }
 0x74a   :  { %13532 = vmatpush1.bf16.msra.mxu1 %v18222_v32  ;;  %13205 = vmatprep.subr.bf16.mxu0 %v18229_v0  ;;  %v6871_v32 = vld [vmem:[#allocation4 + $0x1678] sm:$0xff]  ;;  %v18268_v0 = vcombine.low %v6858_v47, %v6862_v6  ;;  %v18309_v47 = vcombine.high %v6898_v60, %v6902_v51 }
 0x74b   :  { %13533 = vmatprep.subr.bf16.mxu1 %v18231_v11  ;;  %v18270_v11 = vcombine.low %v6859_v7, %v6863_v9  ;;  %v18279_v28 = vcombine.high %v6867_v26, %v6871_v32  ;;  %v6906_v7 = vld [vmem:[#allocation4 + $0x1790] sm:$0xff] }
 0x74c   :  { %v6910_v9 = vld [vmem:[#allocation4 + $0x17b0] sm:$0xff] }
 0x74d   :  { %13206 = vmatpush1.bf16.msra.mxu0 %v18228_v37  ;;  %v6875_v37 = vld [vmem:[#allocation4 + $0x1698] sm:$0xff] }
 0x74e   :  { %13534 = vmatpush1.bf16.msra.mxu1 %v18230_v44  ;;  %13207 = vmatprep.subr.bf16.mxu0 %v18237_v54  ;;  %v6879_v44 = vld [vmem:[#allocation4 + $0x16b8] sm:$0xff]  ;;  %v18276_v54 = vcombine.low %v6866_v22, %v6870_v1  ;;  %v18317_v22 = vcombine.high %v6906_v7, %v6910_v9 }
 0x74f   :  { %13535 = vmatprep.subr.bf16.mxu1 %v18239_v4  ;;  %v18278_v4 = vcombine.low %v6867_v26, %v6871_v32  ;;  %v18287_v23 = vcombine.high %v6875_v37, %v6879_v44  ;;  %v6914_v26 = vld [vmem:[#allocation4 + $0x17d0] sm:$0xff] }
 0x750   :  { %v6918_v32 = vld [vmem:[#allocation4 + $0x17f0] sm:$0xff] }
 0x751   :  { %13208 = vmatpush1.bf16.msra.mxu0 %v18236_v30  ;;  %v6883_v30 = vld [vmem:[#allocation4 + $0x16d8] sm:$0xff] }
 0x752   :  { %13536 = vmatpush1.bf16.msra.mxu1 %v18238_v14  ;;  %13209 = vmatprep.subr.bf16.mxu0 %v18245_v35  ;;  %v6887_v14 = vld [vmem:[#allocation4 + $0x16f8] sm:$0xff]  ;;  %v18284_v35 = vcombine.low %v6874_v36, %v6878_v24  ;;  %v18325_v36 = vcombine.high %v6914_v26, %v6918_v32 }
 0x753   :  { %13537 = vmatprep.subr.bf16.mxu1 %v18247_v33  ;;  %v18286_v33 = vcombine.low %v6875_v37, %v6879_v44  ;;  %v18295_v53 = vcombine.high %v6883_v30, %v6887_v14  ;;  %v6922_v37 = vld [vmem:[#allocation4 + $0x1810] sm:$0xff] }
 0x754   :  { %v6926_v44 = vld [vmem:[#allocation4 + $0x1830] sm:$0xff] }
 0x755   :  { %13210 = vmatpush1.bf16.msra.mxu0 %v18244_v50  ;;  %v6891_v50 = vld [vmem:[#allocation4 + $0x1718] sm:$0xff] }
 0x756   :  { %13538 = vmatpush1.bf16.msra.mxu1 %v18246_v40  ;;  %13211 = vmatprep.subr.bf16.mxu0 %v18253_v10  ;;  %v6895_v40 = vld [vmem:[#allocation4 + $0x1738] sm:$0xff]  ;;  %v18292_v10 = vcombine.low %v6882_v15, %v6886_v18  ;;  %v18333_v15 = vcombine.high %v6922_v37, %v6926_v44 }
 0x757   :  { %13539 = vmatprep.subr.bf16.mxu1 %v18255_v43  ;;  %v18294_v43 = vcombine.low %v6883_v30, %v6887_v14  ;;  %v18303_v58 = vcombine.high %v6891_v50, %v6895_v40  ;;  %v6930_v30 = vld [vmem:[#allocation4 + $0x1850] sm:$0xff] }
 0x758   :  { %v6934_v14 = vld [vmem:[#allocation4 + $0x1870] sm:$0xff] }
 0x759   :  { %13212 = vmatpush1.bf16.msra.mxu0 %v18252_v57  ;;  %v6899_v57 = vld [vmem:[#allocation4 + $0x1758] sm:$0xff] }
 0x75a   :  { %13540 = vmatpush1.bf16.msra.mxu1 %v18254_v63  ;;  %13213 = vmatprep.subr.bf16.mxu0 %v18261_v39  ;;  %v6903_v63 = vld [vmem:[#allocation4 + $0x1778] sm:$0xff]  ;;  %v18300_v39 = vcombine.low %v6890_v5, %v6894_v2  ;;  %v18341_v5 = vcombine.high %v6930_v30, %v6934_v14  ;;  %v6938_v2 = vld [vmem:[#allocation4 + $0x1890] sm:$0xff] }
 0x75b   :  { %13541 = vmatprep.subr.bf16.mxu1 %v18263_v3  ;;  %v18302_v3 = vcombine.low %v6891_v50, %v6895_v40  ;;  %v18311_v6 = vcombine.high %v6899_v57, %v6903_v63  ;;  %v6942_v50 = vld [vmem:[#allocation4 + $0x18b0] sm:$0xff] }
 0x75d   :  { %13214 = vmatpush1.bf16.msra.mxu0 %v18260_v17  ;;  %v6907_v17 = vld [vmem:[#allocation4 + $0x1798] sm:$0xff] }
 0x75e   :  { %13542 = vmatpush1.bf16.msra.mxu1 %v18262_v49  ;;  %13215 = vmatprep.subr.bf16.mxu0 %v18269_v38  ;;  %v6911_v49 = vld [vmem:[#allocation4 + $0x17b8] sm:$0xff]  ;;  %v18308_v38 = vcombine.low %v6898_v60, %v6902_v51  ;;  %v18349_v60 = vcombine.high %v6938_v2, %v6942_v50 }
 0x75f   :  { %13543 = vmatprep.subr.bf16.mxu1 %v18271_v20  ;;  %v18310_v20 = vcombine.low %v6899_v57, %v6903_v63  ;;  %v18319_v1 = vcombine.high %v6907_v17, %v6911_v49  ;;  %v6946_v57 = vld [vmem:[#allocation4 + $0x18d0] sm:$0xff] }
 0x760   :  { %v6950_v63 = vld [vmem:[#allocation4 + $0x18f0] sm:$0xff] }
 0x761   :  { %13216 = vmatpush1.bf16.msra.mxu0 %v18268_v0  ;;  %v6915_v0 = vld [vmem:[#allocation4 + $0x17d8] sm:$0xff] }
 0x762   :  { %13544 = vmatpush1.bf16.msra.mxu1 %v18270_v11  ;;  %13217 = vmatprep.subr.bf16.mxu0 %v18277_v12  ;;  %v6919_v11 = vld [vmem:[#allocation4 + $0x17f8] sm:$0xff]  ;;  %v18316_v12 = vcombine.low %v6906_v7, %v6910_v9  ;;  %v6954_v9 = vld [vmem:[#allocation4 + $0x1910] sm:$0xff] }
 0x763   :  { %13545 = vmatprep.subr.bf16.mxu1 %v18279_v28  ;;  %v18318_v28 = vcombine.low %v6907_v17, %v6911_v49  ;;  %v18327_v24 = vcombine.high %v6915_v0, %v6919_v11  ;;  %v6958_v17 = vld [vmem:[#allocation4 + $0x1930] sm:$0xff]  ;;  %v6955_v49 = vld [vmem:[#allocation4 + $0x1918] sm:$0xff] }
 0x765   :  { %13218 = vmatpush1.bf16.msra.mxu0 %v18276_v54  ;;  %v6923_v54 = vld [vmem:[#allocation4 + $0x1818] sm:$0xff] }
 0x766   :  { %13546 = vmatpush1.bf16.msra.mxu1 %v18278_v4  ;;  %13219 = vmatprep.subr.bf16.mxu0 %v18285_v29  ;;  %v6927_v4 = vld [vmem:[#allocation4 + $0x1838] sm:$0xff]  ;;  %v18324_v29 = vcombine.low %v6914_v26, %v6918_v32  ;;  %v6962_v26 = vld [vmem:[#allocation4 + $0x1950] sm:$0xff] }
 0x767   :  { %13547 = vmatprep.subr.bf16.mxu1 %v18287_v23  ;;  %v18326_v23 = vcombine.low %v6915_v0, %v6919_v11  ;;  %v18335_v18 = vcombine.high %v6923_v54, %v6927_v4  ;;  %v6966_v32 = vld [vmem:[#allocation4 + $0x1970] sm:$0xff]  ;;  %v6963_v0 = vld [vmem:[#allocation4 + $0x1958] sm:$0xff] }
 0x768   :  { %v6967_v11 = vld [vmem:[#allocation4 + $0x1978] sm:$0xff] }
 0x769   :  { %13220 = vmatpush1.bf16.msra.mxu0 %v18284_v35  ;;  %v18332_v35 = vcombine.low %v6922_v37, %v6926_v44  ;;  %v6970_v37 = vld [vmem:[#allocation4 + $0x1990] sm:$0xff] }
 0x76a   :  { %13548 = vmatpush1.bf16.msra.mxu1 %v18286_v33  ;;  %13221 = vmatprep.subr.bf16.mxu0 %v18293_v61  ;;  %v6931_v33 = vld [vmem:[#allocation4 + $0x1858] sm:$0xff]  ;;  %v6974_v44 = vld [vmem:[#allocation4 + $0x19b0] sm:$0xff] }
 0x76b   :  { %13549 = vmatprep.subr.bf16.mxu1 %v18295_v53  ;;  %v6935_v61 = vld [vmem:[#allocation4 + $0x1878] sm:$0xff]  ;;  %v18334_v53 = vcombine.low %v6923_v54, %v6927_v4 }
 0x76c   :  { %v18343_v40 = vcombine.high %v6931_v33, %v6935_v61  ;;  %v6971_v54 = vld [vmem:[#allocation4 + $0x1998] sm:$0xff] }
 0x76d   :  { %13222 = vmatpush1.bf16.msra.mxu0 %v18292_v10  ;;  %v6939_v10 = vld [vmem:[#allocation4 + $0x1898] sm:$0xff] }
 0x76e   :  { %13550 = vmatpush1.bf16.msra.mxu1 %v18294_v43  ;;  %13223 = vmatprep.subr.bf16.mxu0 %v18301_v16  ;;  %v6943_v43 = vld [vmem:[#allocation4 + $0x18b8] sm:$0xff]  ;;  %v18340_v16 = vcombine.low %v6930_v30, %v6934_v14  ;;  %v6978_v30 = vld [vmem:[#allocation4 + $0x19d0] sm:$0xff] }
 0x76f   :  { %13551 = vmatprep.subr.bf16.mxu1 %v18303_v58  ;;  %v18342_v58 = vcombine.low %v6931_v33, %v6935_v61  ;;  %v18351_v51 = vcombine.high %v6939_v10, %v6943_v43  ;;  %v6975_v4 = vld [vmem:[#allocation4 + $0x19b8] sm:$0xff]  ;;  %v6982_v14 = vld [vmem:[#allocation4 + $0x19f0] sm:$0xff]  ;;  %v18380_v61 = vcombine.low %v6970_v37, %v6974_v44 }
 0x770   :  { %v6983_v33 = vld [vmem:[#allocation4 + $0x19f8] sm:$0xff] }
 0x771   :  { %13224 = vmatpush1.bf16.msra.mxu0 %v18300_v39  ;;  %v6947_v39 = vld [vmem:[#allocation4 + $0x18d8] sm:$0xff] }
 0x772   :  { %13552 = vmatpush1.bf16.msra.mxu1 %v18302_v3  ;;  %13225 = vmatprep.subr.bf16.mxu0 %v18309_v47  ;;  %v6951_v3 = vld [vmem:[#allocation4 + $0x18f8] sm:$0xff]  ;;  %v18348_v47 = vcombine.low %v6938_v2, %v6942_v50  ;;  %v6986_v50 = vld [vmem:[#allocation4 + $0x1a10] sm:$0xff] }
 0x773   :  { %13553 = vmatprep.subr.bf16.mxu1 %v18311_v6  ;;  %v18357_v6 = vcombine.high %v6946_v57, %v6950_v63  ;;  %v18359_v7 = vcombine.high %v6947_v39, %v6951_v3 }
 0x775   :  { %13226 = vmatpush1.bf16.msra.mxu0 %v18308_v38  ;;  %v6959_v38 = vld [vmem:[#allocation4 + $0x1938] sm:$0xff] }
 0x776   :  { %13554 = vmatpush1.bf16.msra.mxu1 %v18310_v20  ;;  %13227 = vmatprep.subr.bf16.mxu0 %v18317_v22  ;;  %v18358_v20 = vcombine.low %v6947_v39, %v6951_v3  ;;  %v18365_v22 = vcombine.high %v6954_v9, %v6958_v17  ;;  %v6995_v39 = vld [vmem:[#allocation4 + $0x1a58] sm:$0xff] }
 0x777   :  { %13555 = vmatprep.subr.bf16.mxu1 %v18319_v1  ;;  %v18367_v1 = vcombine.high %v6955_v49, %v6959_v38  ;;  %v6999_v3 = vld [vmem:[#allocation4 + $0x1a78] sm:$0xff] }
 0x779   :  { %13228 = vmatpush1.bf16.msra.mxu0 %v18316_v12  ;;  %v18364_v12 = vcombine.low %v6954_v9, %v6958_v17  ;;  %v7002_v9 = vld [vmem:[#allocation4 + $0x1a90] sm:$0xff] }
 0x77a   :  { %13556 = vmatpush1.bf16.msra.mxu1 %v18318_v28  ;;  %13229 = vmatprep.subr.bf16.mxu0 %v18325_v36  ;;  %v18366_v28 = vcombine.low %v6955_v49, %v6959_v38  ;;  %v18373_v36 = vcombine.high %v6962_v26, %v6966_v32  ;;  %v7006_v17 = vld [vmem:[#allocation4 + $0x1ab0] sm:$0xff]  ;;  %v7003_v49 = vld [vmem:[#allocation4 + $0x1a98] sm:$0xff] }
 0x77b   :  { %13557 = vmatprep.subr.bf16.mxu1 %v18327_v24  ;;  %v18375_v24 = vcombine.high %v6963_v0, %v6967_v11  ;;  %v7007_v38 = vld [vmem:[#allocation4 + $0x1ab8] sm:$0xff] }
 0x77d   :  { %13230 = vmatpush1.bf16.msra.mxu0 %v18324_v29  ;;  %v18372_v29 = vcombine.low %v6962_v26, %v6966_v32  ;;  %v7010_v26 = vld [vmem:[#allocation4 + $0x1ad0] sm:$0xff] }
 0x77e   :  { %13558 = vmatpush1.bf16.msra.mxu1 %v18326_v23  ;;  %13240 = vmatprep.subr.bf16.mxu0 %v18333_v15  ;;  %v18374_v23 = vcombine.low %v6963_v0, %v6967_v11  ;;  %v18381_v15 = vcombine.high %v6970_v37, %v6974_v44  ;;  %v7014_v32 = vld [vmem:[#allocation4 + $0x1af0] sm:$0xff]  ;;  %v7011_v0 = vld [vmem:[#allocation4 + $0x1ad8] sm:$0xff] }
 0x77f   :  { %13568 = vmatprep.subr.bf16.mxu1 %v18335_v18  ;;  %v18383_v18 = vcombine.high %v6971_v54, %v6975_v4  ;;  %v7015_v11 = vld [vmem:[#allocation4 + $0x1af8] sm:$0xff]  ;;  %v7018_v37 = vld [vmem:[#allocation4 + $0x1b10] sm:$0xff] }
 0x780   :  { %13232 = vmatmul.mubr.bf16.vlgmr.msra.gmra.mrb[20].mxu0 %v20742_v27  ;;  %v7022_v44 = vld [vmem:[#allocation4 + $0x1b30] sm:$0xff] }
 0x781   :  { %13560 = vmatmul.mubr.bf16.vlgmr.msra.gmra.mrb[20].mxu1 %v20742_v27  ;;  %13241 = vmatpush1.bf16.msra.mxu0 %v18332_v35  ;;  %v18350_v27 = vcombine.low %v6939_v10, %v6943_v43  ;;  %v6979_v35 = vld [vmem:[#allocation4 + $0x19d8] sm:$0xff] }
 0x782   :  { %13272 = vmatprep.mubr.bf16.mxu0 %v20744_v31  ;;  %13569 = vmatpush1.bf16.msra.mxu1 %v18334_v53  ;;  %v18382_v53 = vcombine.low %v6971_v54, %v6975_v4  ;;  %v18391_v2 = vcombine.high %v6979_v35, %v6983_v33  ;;  %v6987_v10 = vld [vmem:[#allocation4 + $0x1a18] sm:$0xff] }
 0x783   :  { %13600 = vmatprep.mubr.bf16.mxu1 %v20744_v31  ;;  %13242 = vmatprep.subr.bf16.mxu0 %v18341_v5  ;;  %v18356_v31 = vcombine.low %v6946_v57, %v6950_v63  ;;  %v18389_v5 = vcombine.high %v6978_v30, %v6982_v14  ;;  %v6991_v43 = vld [vmem:[#allocation4 + $0x1a38] sm:$0xff]  ;;  %v6994_v57 = vld [vmem:[#allocation4 + $0x1a50] sm:$0xff] }
 0x784   :  { %13570 = vmatprep.subr.bf16.mxu1 %v18343_v40  ;;  %v6990_v40 = vld [vmem:[#allocation4 + $0x1a30] sm:$0xff]  ;;  %v7019_v54 = vld [vmem:[#allocation4 + $0x1b18] sm:$0xff] }
 0x785   :  { %13243 = vmatpush1.bf16.msra.mxu0 %v18340_v16  ;;  %v18388_v16 = vcombine.low %v6978_v30, %v6982_v14  ;;  %v6998_v63 = vld [vmem:[#allocation4 + $0x1a70] sm:$0xff]  ;;  %v7023_v4 = vld [vmem:[#allocation4 + $0x1b38] sm:$0xff] }
 0x786   :  { %13571 = vmatpush1.bf16.msra.mxu1 %v18342_v58  ;;  %13244 = vmatprep.subr.bf16.mxu0 %v18349_v60  ;;  %v18390_v58 = vcombine.low %v6979_v35, %v6983_v33  ;;  %v18397_v60 = vcombine.high %v6986_v50, %v6990_v40  ;;  %v7026_v30 = vld [vmem:[#allocation4 + $0x1b50] sm:$0xff]  ;;  %v7027_v35 = vld [vmem:[#allocation4 + $0x1b58] sm:$0xff] }
 0x787   :  { %13572 = vmatprep.subr.bf16.mxu1 %v18351_v51  ;;  %v18399_v51 = vcombine.high %v6987_v10, %v6991_v43  ;;  %v7030_v14 = vld [vmem:[#allocation4 + $0x1b70] sm:$0xff]  ;;  %v7031_v33 = vld [vmem:[#allocation4 + $0x1b78] sm:$0xff] }
 0x789   :  { %13245 = vmatpush1.bf16.msra.mxu0 %v18348_v47  ;;  %v18396_v47 = vcombine.low %v6986_v50, %v6990_v40  ;;  %v7034_v50 = vld [vmem:[#allocation4 + $0x1b90] sm:$0xff] }
 0x78a   :  { %13573 = vmatpush1.bf16.msra.mxu1 %v18350_v27  ;;  %13246 = vmatprep.subr.bf16.mxu0 %v18357_v6  ;;  %v18398_v27 = vcombine.low %v6987_v10, %v6991_v43  ;;  %v18405_v6 = vcombine.high %v6994_v57, %v6998_v63  ;;  %v7038_v40 = vld [vmem:[#allocation4 + $0x1bb0] sm:$0xff]  ;;  %v7035_v10 = vld [vmem:[#allocation4 + $0x1b98] sm:$0xff] }
 0x78b   :  { %13574 = vmatprep.subr.bf16.mxu1 %v18359_v7  ;;  %v18407_v7 = vcombine.high %v6995_v39, %v6999_v3  ;;  %v7039_v43 = vld [vmem:[#allocation4 + $0x1bb8] sm:$0xff] }
 0x78d   :  { %13247 = vmatpush1.bf16.msra.mxu0 %v18356_v31  ;;  %v18404_v31 = vcombine.low %v6994_v57, %v6998_v63  ;;  %v7042_v57 = vld [vmem:[#allocation4 + $0x1bd0] sm:$0xff] }
 0x78e   :  { %13575 = vmatpush1.bf16.msra.mxu1 %v18358_v20  ;;  %13248 = vmatprep.subr.bf16.mxu0 %v18365_v22  ;;  %v18406_v20 = vcombine.low %v6995_v39, %v6999_v3  ;;  %v18413_v22 = vcombine.high %v7002_v9, %v7006_v17  ;;  %v7046_v63 = vld [vmem:[#allocation4 + $0x1bf0] sm:$0xff]  ;;  %v7043_v39 = vld [vmem:[#allocation4 + $0x1bd8] sm:$0xff] }
 0x78f   :  { %13576 = vmatprep.subr.bf16.mxu1 %v18367_v1  ;;  %v18415_v1 = vcombine.high %v7003_v49, %v7007_v38  ;;  %v7047_v3 = vld [vmem:[#allocation4 + $0x1bf8] sm:$0xff] }
 0x791   :  { %13249 = vmatpush1.bf16.msra.mxu0 %v18364_v12  ;;  %v18412_v12 = vcombine.low %v7002_v9, %v7006_v17  ;;  %v7050_v9 = vld [vmem:[#allocation4 + $0x1c10] sm:$0xff] }
 0x792   :  { %13577 = vmatpush1.bf16.msra.mxu1 %v18366_v28  ;;  %13250 = vmatprep.subr.bf16.mxu0 %v18373_v36  ;;  %v18414_v28 = vcombine.low %v7003_v49, %v7007_v38  ;;  %v18421_v36 = vcombine.high %v7010_v26, %v7014_v32  ;;  %v7054_v17 = vld [vmem:[#allocation4 + $0x1c30] sm:$0xff]  ;;  %v7051_v49 = vld [vmem:[#allocation4 + $0x1c18] sm:$0xff] }
 0x793   :  { %13578 = vmatprep.subr.bf16.mxu1 %v18375_v24  ;;  %v18423_v24 = vcombine.high %v7011_v0, %v7015_v11  ;;  %v7055_v38 = vld [vmem:[#allocation4 + $0x1c38] sm:$0xff] }
 0x795   :  { %13251 = vmatpush1.bf16.msra.mxu0 %v18372_v29  ;;  %v18420_v29 = vcombine.low %v7010_v26, %v7014_v32  ;;  %v7058_v26 = vld [vmem:[#allocation4 + $0x1c50] sm:$0xff] }
 0x796   :  { %13579 = vmatpush1.bf16.msra.mxu1 %v18374_v23  ;;  %13252 = vmatprep.subr.bf16.mxu0 %v18381_v15  ;;  %v18422_v23 = vcombine.low %v7011_v0, %v7015_v11  ;;  %v18429_v15 = vcombine.high %v7018_v37, %v7022_v44  ;;  %v7062_v32 = vld [vmem:[#allocation4 + $0x1c70] sm:$0xff]  ;;  %v18460_v0 = vcombine.low %v7050_v9, %v7054_v17  ;;  %v7059_v11 = vld [vmem:[#allocation4 + $0x1c58] sm:$0xff] }
 0x797   :  { %13580 = vmatprep.subr.bf16.mxu1 %v18383_v18  ;;  %v18431_v18 = vcombine.high %v7019_v54, %v7023_v4 }
 0x799   :  { %13253 = vmatpush1.bf16.msra.mxu0 %v18380_v61  ;;  %v18428_v61 = vcombine.low %v7018_v37, %v7022_v44  ;;  %v7070_v37 = vld [vmem:[#allocation4 + $0x1cb0] sm:$0xff] }
 0x79a   :  { %13581 = vmatpush1.bf16.msra.mxu1 %v18382_v53  ;;  %13254 = vmatprep.subr.bf16.mxu0 %v18389_v5  ;;  %v18430_v53 = vcombine.low %v7019_v54, %v7023_v4  ;;  %v18437_v5 = vcombine.high %v7026_v30, %v7030_v14  ;;  %v7067_v54 = vld [vmem:[#allocation4 + $0x1c98] sm:$0xff] }
 0x79b   :  { %13582 = vmatprep.subr.bf16.mxu1 %v18391_v2  ;;  %v18439_v2 = vcombine.high %v7027_v35, %v7031_v33  ;;  %v7071_v4 = vld [vmem:[#allocation4 + $0x1cb8] sm:$0xff] }
 0x79d   :  { %13255 = vmatpush1.bf16.msra.mxu0 %v18388_v16  ;;  %v18436_v16 = vcombine.low %v7026_v30, %v7030_v14  ;;  %v7074_v30 = vld [vmem:[#allocation4 + $0x1cd0] sm:$0xff] }
 0x79e   :  { %13583 = vmatpush1.bf16.msra.mxu1 %v18390_v58  ;;  %13256 = vmatprep.subr.bf16.mxu0 %v18397_v60  ;;  %v18438_v58 = vcombine.low %v7027_v35, %v7031_v33  ;;  %v18445_v60 = vcombine.high %v7034_v50, %v7038_v40  ;;  %v7078_v14 = vld [vmem:[#allocation4 + $0x1cf0] sm:$0xff]  ;;  %v7075_v35 = vld [vmem:[#allocation4 + $0x1cd8] sm:$0xff] }
 0x79f   :  { %13584 = vmatprep.subr.bf16.mxu1 %v18399_v51  ;;  %v18447_v51 = vcombine.high %v7035_v10, %v7039_v43  ;;  %v7079_v33 = vld [vmem:[#allocation4 + $0x1cf8] sm:$0xff] }
 0x7a1   :  { %13257 = vmatpush1.bf16.msra.mxu0 %v18396_v47  ;;  %v18444_v47 = vcombine.low %v7034_v50, %v7038_v40  ;;  %v7086_v50 = vld [vmem:[#allocation4 + $0x1d30] sm:$0xff]  ;;  %v7083_v40 = vld [vmem:[#allocation4 + $0x1d18] sm:$0xff] }
 0x7a2   :  { %13585 = vmatpush1.bf16.msra.mxu1 %v18398_v27  ;;  %13258 = vmatprep.subr.bf16.mxu0 %v18405_v6  ;;  %v18446_v27 = vcombine.low %v7035_v10, %v7039_v43  ;;  %v18453_v6 = vcombine.high %v7042_v57, %v7046_v63  ;;  %v7087_v10 = vld [vmem:[#allocation4 + $0x1d38] sm:$0xff]  ;;  %v18486_v43 = vcombine.low %v7075_v35, %v7079_v33 }
 0x7a3   :  { %13586 = vmatprep.subr.bf16.mxu1 %v18407_v7  ;;  %v18455_v7 = vcombine.high %v7043_v39, %v7047_v3 }
 0x7a5   :  { %13259 = vmatpush1.bf16.msra.mxu0 %v18404_v31  ;;  %v18452_v31 = vcombine.low %v7042_v57, %v7046_v63  ;;  %v7091_v57 = vld [vmem:[#allocation4 + $0x1d58] sm:$0xff] }
 0x7a6   :  { %13587 = vmatpush1.bf16.msra.mxu1 %v18406_v20  ;;  %13260 = vmatprep.subr.bf16.mxu0 %v18413_v22  ;;  %v18454_v20 = vcombine.low %v7043_v39, %v7047_v3  ;;  %v18461_v22 = vcombine.high %v7050_v9, %v7054_v17  ;;  %v7095_v63 = vld [vmem:[#allocation4 + $0x1d78] sm:$0xff]  ;;  %v18494_v3 = vcombine.low %v7083_v40, %v7087_v10 }
 0x7a7   :  { %13588 = vmatprep.subr.bf16.mxu1 %v18415_v1  ;;  %v18463_v1 = vcombine.high %v7051_v49, %v7055_v38  ;;  %v7099_v9 = vld [vmem:[#allocation4 + $0x1d98] sm:$0xff] }
 0x7a8   :  { %v7103_v17 = vld [vmem:[#allocation4 + $0x1db8] sm:$0xff] }
 0x7a9   :  { %13261 = vmatpush1.bf16.msra.mxu0 %v18412_v12  ;;  %v7063_v12 = vld [vmem:[#allocation4 + $0x1c78] sm:$0xff] }
 0x7aa   :  { %13589 = vmatpush1.bf16.msra.mxu1 %v18414_v28  ;;  %13262 = vmatprep.subr.bf16.mxu0 %v18421_v36  ;;  %v18462_v28 = vcombine.low %v7051_v49, %v7055_v38  ;;  %v18469_v36 = vcombine.high %v7058_v26, %v7062_v32  ;;  %v18471_v44 = vcombine.high %v7059_v11, %v7063_v12 }
 0x7ab   :  { %13590 = vmatprep.subr.bf16.mxu1 %v18423_v24  ;;  %v7066_v24 = vld [vmem:[#allocation4 + $0x1c90] sm:$0xff]  ;;  %v18502_v38 = vcombine.low %v7091_v57, %v7095_v63 }
 0x7ad   :  { %13263 = vmatpush1.bf16.msra.mxu0 %v18420_v29  ;;  %v18468_v29 = vcombine.low %v7058_v26, %v7062_v32  ;;  %v7107_v26 = vld [vmem:[#allocation4 + $0x1dd8] sm:$0xff] }
 0x7ae   :  { %13591 = vmatpush1.bf16.msra.mxu1 %v18422_v23  ;;  %13264 = vmatprep.subr.bf16.mxu0 %v18429_v15  ;;  %v18470_v23 = vcombine.low %v7059_v11, %v7063_v12  ;;  %v18477_v15 = vcombine.high %v7066_v24, %v7070_v37  ;;  %v7111_v32 = vld [vmem:[#allocation4 + $0x1df8] sm:$0xff]  ;;  %v18510_v11 = vcombine.low %v7099_v9, %v7103_v17 }
 0x7af   :  { %13592 = vmatprep.subr.bf16.mxu1 %v18431_v18  ;;  %v18479_v18 = vcombine.high %v7067_v54, %v7071_v4 }
 0x7b1   :  { %13265 = vmatpush1.bf16.msra.mxu0 %v18428_v61  ;;  %v18476_v61 = vcombine.low %v7066_v24, %v7070_v37  ;;  %v7118_v24 = vld [vmem:[#allocation4 + $0x1e30] sm:$0xff]  ;;  %v7115_v37 = vld [vmem:[#allocation4 + $0x1e18] sm:$0xff] }
 0x7b2   :  { %13593 = vmatpush1.bf16.msra.mxu1 %v18430_v53  ;;  %13266 = vmatprep.subr.bf16.mxu0 %v18437_v5  ;;  %v18485_v53 = vcombine.high %v7074_v30, %v7078_v14  ;;  %v18487_v5 = vcombine.high %v7075_v35, %v7079_v33 }
 0x7b3   :  { %13594 = vmatprep.subr.bf16.mxu1 %v18439_v2  ;;  %v7082_v2 = vld [vmem:[#allocation4 + $0x1d10] sm:$0xff] }
 0x7b4   :  { %v18492_v39 = vcombine.low %v7082_v2, %v7086_v50 }
 0x7b5   :  { %13267 = vmatpush1.bf16.msra.mxu0 %v18436_v16  ;;  %v18493_v16 = vcombine.high %v7082_v2, %v7086_v50  ;;  %v7131_v2 = vld [vmem:[#allocation4 + $0x1e98] sm:$0xff] }
 0x7b6   :  { %13595 = vmatpush1.bf16.msra.mxu1 %v18438_v58  ;;  %13268 = vmatprep.subr.bf16.mxu0 %v18445_v60  ;;  %v18495_v58 = vcombine.high %v7083_v40, %v7087_v10  ;;  %v7090_v60 = vld [vmem:[#allocation4 + $0x1d50] sm:$0xff]  ;;  %v7135_v50 = vld [vmem:[#allocation4 + $0x1eb8] sm:$0xff] }
 0x7b7   :  { %13596 = vmatprep.subr.bf16.mxu1 %v18447_v51  ;;  %v7094_v51 = vld [vmem:[#allocation4 + $0x1d70] sm:$0xff] }
 0x7b8   :  { %v18500_v49 = vcombine.low %v7090_v60, %v7094_v51 }
 0x7b9   :  { %13269 = vmatpush1.bf16.msra.mxu0 %v18444_v47  ;;  %v18501_v47 = vcombine.high %v7090_v60, %v7094_v51  ;;  %v7139_v60 = vld [vmem:[#allocation4 + $0x1ed8] sm:$0xff] }
 0x7ba   :  { %13597 = vmatpush1.bf16.msra.mxu1 %v18446_v27  ;;  %13270 = vmatprep.subr.bf16.mxu0 %v18453_v6  ;;  %v18503_v27 = vcombine.high %v7091_v57, %v7095_v63  ;;  %v7098_v6 = vld [vmem:[#allocation4 + $0x1d90] sm:$0xff]  ;;  %v7143_v51 = vld [vmem:[#allocation4 + $0x1ef8] sm:$0xff]  ;;  %v18542_v63 = vcombine.low %v7131_v2, %v7135_v50 }
 0x7bb   :  { %13598 = vmatprep.subr.bf16.mxu1 %v18455_v7  ;;  %v7102_v7 = vld [vmem:[#allocation4 + $0x1db0] sm:$0xff] }
 0x7bd   :  { %13271 = vmatpush1.bf16.msra.mxu0 %v18452_v31  ;;  %v18509_v31 = vcombine.high %v7098_v6, %v7102_v7 }
 0x7be   :  { %13599 = vmatpush1.bf16.msra.mxu1 %v18454_v20  ;;  %13281 = vmatprep.subr.bf16.mxu0 %v18461_v22  ;;  %v18511_v20 = vcombine.high %v7099_v9, %v7103_v17  ;;  %v7106_v22 = vld [vmem:[#allocation4 + $0x1dd0] sm:$0xff] }
 0x7bf   :  { %13609 = vmatprep.subr.bf16.mxu1 %v18463_v1  ;;  %v7110_v1 = vld [vmem:[#allocation4 + $0x1df0] sm:$0xff] }
 0x7c0   :  { %13273 = vmatmul.mubr.bf16.vlgmr.msra.gmra.mrb[20].mxu0 %v20770_v48  ;;  %v18517_v12 = vcombine.high %v7106_v22, %v7110_v1  ;;  %v20827_v9 = vld [vmem:[#allocation10] ss:$4 sm:$0xff] }
 0x7c1   :  { %13601 = vmatmul.mubr.bf16.vlgmr.msra.gmra.mrb[20].mxu1 %v20770_v48  ;;  %13282 = vmatpush1.bf16.msra.mxu0 %v18460_v0  ;;  %v18478_v48 = vcombine.low %v7067_v54, %v7071_v4  ;;  %v18508_v0 = vcombine.low %v7098_v6, %v7102_v7  ;;  %v18516_v54 = vcombine.low %v7106_v22, %v7110_v1  ;;  %v7147_v6 = vld [vmem:[#allocation4 + $0x1f18] sm:$0xff]  ;;  %v7158_v22 = vld [vmem:[#allocation4 + $0x1f70] sm:$0xff] }
 0x7c2   :  { %13313 = vmatprep.mubr.bf16.mxu0 %v20772_v25  ;;  %13610 = vmatpush1.bf16.msra.mxu1 %v18462_v28  ;;  %v18519_v28 = vcombine.high %v7107_v26, %v7111_v32  ;;  %v18518_v4 = vcombine.low %v7107_v26, %v7111_v32  ;;  %v7151_v7 = vld [vmem:[#allocation4 + $0x1f38] sm:$0xff]  ;;  %v7185_v1 = vrot.slane %v20827_v9, %v20548_v56 }
 0x7c3   :  { %13641 = vmatprep.mubr.bf16.mxu1 %v20772_v25  ;;  %13283 = vmatprep.subr.bf16.mxu0 %v18469_v36  ;;  %v18484_v25 = vcombine.low %v7074_v30, %v7078_v14  ;;  %v7114_v36 = vld [vmem:[#allocation4 + $0x1e10] sm:$0xff]  ;;  %v7123_v30 = vld [vmem:[#allocation4 + $0x1e58] sm:$0xff] }
 0x7c4   :  { %13611 = vmatprep.subr.bf16.mxu1 %v18471_v44  ;;  %v7119_v44 = vld [vmem:[#allocation4 + $0x1e38] sm:$0xff]  ;;  %v18524_v35 = vcombine.low %v7114_v36, %v7118_v24 }
 0x7c5   :  { %13284 = vmatpush1.bf16.msra.mxu0 %v18468_v29  ;;  %v18525_v29 = vcombine.high %v7114_v36, %v7118_v24  ;;  %v7127_v14 = vld [vmem:[#allocation4 + $0x1e78] sm:$0xff]  ;;  %v18526_v33 = vcombine.low %v7115_v37, %v7119_v44  ;;  %v7162_v36 = vld [vmem:[#allocation4 + $0x1f90] sm:$0xff] }
 0x7c6   :  { %13612 = vmatpush1.bf16.msra.mxu1 %v18470_v23  ;;  %13285 = vmatprep.subr.bf16.mxu0 %v18477_v15  ;;  %v18527_v23 = vcombine.high %v7115_v37, %v7119_v44  ;;  %v7122_v15 = vld [vmem:[#allocation4 + $0x1e50] sm:$0xff]  ;;  %v18534_v10 = vcombine.low %v7123_v30, %v7127_v14  ;;  %v7155_v26 = vld [vmem:[#allocation4 + $0x1f58] sm:$0xff]  ;;  %v19030_v37 = vadd.f32 %v20807_v55, %v7185_v1 }
 0x7c7   :  { %13613 = vmatprep.subr.bf16.mxu1 %v18479_v18  ;;  %v7126_v18 = vld [vmem:[#allocation4 + $0x1e70] sm:$0xff]  ;;  %v7159_v32 = vld [vmem:[#allocation4 + $0x1f78] sm:$0xff] }
 0x7c8   :  { %v18532_v40 = vcombine.low %v7122_v15, %v7126_v18  ;;  %v7166_v24 = vld [vmem:[#allocation4 + $0x1fb0] sm:$0xff]  ;;  %v7163_v44 = vld [vmem:[#allocation4 + $0x1f98] sm:$0xff] }
 0x7c9   :  { %13286 = vmatpush1.bf16.msra.mxu0 %v18476_v61  ;;  %v18533_v61 = vcombine.high %v7122_v15, %v7126_v18  ;;  %v18573_v15 = vcombine.high %v7162_v36, %v7166_v24  ;;  %v7175_v55 = vld [vmem:[#allocation4 + $0x1ff8] sm:$0xff] }
 0x7ca   :  { %13614 = vmatpush1.bf16.msra.mxu1 %v18478_v48  ;;  %13287 = vmatprep.subr.bf16.mxu0 %v18485_v53  ;;  %v18535_v48 = vcombine.high %v7123_v30, %v7127_v14  ;;  %v7130_v53 = vld [vmem:[#allocation4 + $0x1e90] sm:$0xff]  ;;  %v19301_v1 = vld [vmem:[#allocation6 + $0x8c] ss:$16 sps:$4 sm:$0xff]  }
 0x7cb   :  { %13615 = vmatprep.subr.bf16.mxu1 %v18487_v5  ;;  %v7134_v5 = vld [vmem:[#allocation4 + $0x1eb0] sm:$0xff] }
 0x7cc   :  { %v18540_v57 = vcombine.low %v7130_v53, %v7134_v5  ;;  %v7170_v30 = vld [vmem:[#allocation4 + $0x1fd0] sm:$0xff] }
 0x7cd   :  { %13288 = vmatpush1.bf16.msra.mxu0 %v18484_v25  ;;  %v18541_v25 = vcombine.high %v7130_v53, %v7134_v5  ;;  %v7174_v14 = vld [vmem:[#allocation4 + $0x1ff0] sm:$0xff]  ;;  %v18572_v53 = vcombine.low %v7162_v36, %v7166_v24  ;;  %v19313_v24 = vld [vmem:[#allocation6 + $0xcc] ss:$16 sps:$4 sm:$0xff]  }
 0x7ce   :  { %13616 = vmatpush1.bf16.msra.mxu1 %v18486_v43  ;;  %13289 = vmatprep.subr.bf16.mxu0 %v18493_v16  ;;  %v18543_v43 = vcombine.high %v7131_v2, %v7135_v50  ;;  %v7138_v16 = vld [vmem:[#allocation4 + $0x1ed0] sm:$0xff]  ;;  %v18581_v2 = vcombine.high %v7170_v30, %v7174_v14 }
 0x7cf   :  { %13617 = vmatprep.subr.bf16.mxu1 %v18495_v58  ;;  %v7142_v58 = vld [vmem:[#allocation4 + $0x1ef0] sm:$0xff] }
 0x7d0   :  { %v18548_v17 = vcombine.low %v7138_v16, %v7142_v58  ;;  %v19310_v36 = vld [vmem:[#allocation6 + $0xc4] ss:$16 sps:$4 sm:$0xff]  }
 0x7d1   :  { %13290 = vmatpush1.bf16.msra.mxu0 %v18492_v39  ;;  %v18549_v39 = vcombine.high %v7138_v16, %v7142_v58  ;;  %v19274_v16 = vld [vmem:[#allocation6 + $0x4] ss:$16 sps:$4 sm:$0xff]   ;;  %v19277_v58 = vld [vmem:[#allocation6 + $0xc] ss:$16 sps:$4 sm:$0xff]  }
 0x7d2   :  { %13618 = vmatpush1.bf16.msra.mxu1 %v18494_v3  ;;  %13291 = vmatprep.subr.bf16.mxu0 %v18501_v47  ;;  %v18551_v3 = vcombine.high %v7139_v60, %v7143_v51  ;;  %v7146_v47 = vld [vmem:[#allocation4 + $0x1f10] sm:$0xff] }
 0x7d3   :  { %13619 = vmatprep.subr.bf16.mxu1 %v18503_v27  ;;  %v7150_v27 = vld [vmem:[#allocation4 + $0x1f30] sm:$0xff] }
 0x7d5   :  { %13292 = vmatpush1.bf16.msra.mxu0 %v18500_v49  ;;  %v18550_v49 = vcombine.low %v7139_v60, %v7143_v51  ;;  %v19272_v51 = vld [vmem:[#allocation6] ss:$16 sps:$4 sm:$0xff]  }
 0x7d6   :  { %13620 = vmatpush1.bf16.msra.mxu1 %v18502_v38  ;;  %13293 = vmatprep.subr.bf16.mxu0 %v18509_v31  ;;  %v18557_v38 = vcombine.high %v7146_v47, %v7150_v27  ;;  %v18559_v31 = vcombine.high %v7147_v6, %v7151_v7 }
 0x7d7   :  { %13621 = vmatprep.subr.bf16.mxu1 %v18511_v20  ;;  %v7154_v20 = vld [vmem:[#allocation4 + $0x1f50] sm:$0xff] }
 0x7d9   :  { %13294 = vmatpush1.bf16.msra.mxu0 %v18508_v0  ;;  %v18556_v0 = vcombine.low %v7146_v47, %v7150_v27  ;;  %v19278_v47 = vld [vmem:[#allocation6 + $0x20] ss:$16 sps:$4 sm:$0xff]   ;;  %v19281_v27 = vld [vmem:[#allocation6 + $0x28] ss:$16 sps:$4 sm:$0xff]  }
 0x7da   :  { %13622 = vmatpush1.bf16.msra.mxu1 %v18510_v11  ;;  %13295 = vmatprep.subr.bf16.mxu0 %v18517_v12  ;;  %v18558_v11 = vcombine.low %v7147_v6, %v7151_v7  ;;  %v18565_v12 = vcombine.high %v7154_v20, %v7158_v22  ;;  %v19286_v6 = vld [vmem:[#allocation6 + $0x44] ss:$16 sps:$4 sm:$0xff]   ;;  %v19289_v7 = vld [vmem:[#allocation6 + $0x4c] ss:$16 sps:$4 sm:$0xff]  }
 0x7db   :  { %13623 = vmatprep.subr.bf16.mxu1 %v18519_v28  ;;  %v18567_v28 = vcombine.high %v7155_v26, %v7159_v32 }
 0x7dd   :  { %13296 = vmatpush1.bf16.msra.mxu0 %v18516_v54  ;;  %v7167_v54 = vld [vmem:[#allocation4 + $0x1fb8] sm:$0xff] }
 0x7de   :  { %13624 = vmatpush1.bf16.msra.mxu1 %v18518_v4  ;;  %13297 = vmatprep.subr.bf16.mxu0 %v18525_v29  ;;  %v20832_v4 = vld [vmem:[#allocation10 + $0x1] ss:$4 sm:$0xff]  ;;  %v18564_v29 = vcombine.low %v7154_v20, %v7158_v22  ;;  %v18575_v18 = vcombine.high %v7163_v44, %v7167_v54  ;;  %v18574_v5 = vcombine.low %v7163_v44, %v7167_v54 }
 0x7df   :  { %13625 = vmatprep.subr.bf16.mxu1 %v18527_v23  ;;  %v18566_v23 = vcombine.low %v7155_v26, %v7159_v32  ;;  %v19293_v20 = vld [vmem:[#allocation6 + $0x68] ss:$16 sps:$4 sm:$0xff]   ;;  %v19298_v22 = vld [vmem:[#allocation6 + $0x84] ss:$16 sps:$4 sm:$0xff]   ;;  %v19296_v26 = vld [vmem:[#allocation6 + $0x80] ss:$16 sps:$4 sm:$0xff]  }
 0x7e0   :  { %v19299_v32 = vld [vmem:[#allocation6 + $0x88] ss:$16 sps:$4 sm:$0xff]   ;;  %v19316_v54 = vld [vmem:[#allocation6 + $0xe4] ss:$16 sps:$4 sm:$0xff]  }
 0x7e1   :  { %13298 = vmatpush1.bf16.msra.mxu0 %v18524_v35  ;;  %v13651_v35 = vmax.f32 %v19030_v37, 0.0  ;;  %v19308_v37 = vld [vmem:[#allocation6 + $0xc0] ss:$16 sps:$4 sm:$0xff]   ;;  %v19311_v44 = vld [vmem:[#allocation6 + $0xc8] ss:$16 sps:$4 sm:$0xff]  }
 0x7e2   :  { %13626 = vmatpush1.bf16.msra.mxu1 %v18526_v33  ;;  %13299 = vmatprep.subr.bf16.mxu0 %v18533_v61  ;;  %v13668_v33 = vrot.slane %v20832_v4, %v20548_v56  ;;  %v7171_v61 = vld [vmem:[#allocation4 + $0x1fd8] sm:$0xff] }
 0x7e3   :  { %13627 = vmatprep.subr.bf16.mxu1 %v18535_v48  ;;  %v20836_v48 = vld [vmem:[#allocation10 + $0x2] ss:$4 sm:$0xff]  ;;  %v18583_v50 = vcombine.high %v7171_v61, %v7175_v55 }
 0x7e5   :  { %13300 = vmatpush1.bf16.msra.mxu0 %v18532_v40  ;;  %v13702_v40 = vmul.f32 %v13668_v33, %v13651_v35  ;;  %v19323_v35 = vld [vmem:[#allocation6 + $0x108] ss:$16 sps:$4 sm:$0xff]   ;;  %v19328_v33 = vld [vmem:[#allocation6 + $0x124] ss:$16 sps:$4 sm:$0xff]  }
 0x7e6   :  { %13628 = vmatpush1.bf16.msra.mxu1 %v18534_v10  ;;  %13301 = vmatprep.subr.bf16.mxu0 %v18541_v25  ;;  %v13719_v10 = vrot.slane %v20836_v48, %v20548_v56  ;;  %v18580_v25 = vcombine.low %v7170_v30, %v7174_v14  ;;  %v19325_v30 = vld [vmem:[#allocation6 + $0x10c] ss:$16 sps:$4 sm:$0xff]   ;;  %v19320_v14 = vld [vmem:[#allocation6 + $0x100] ss:$16 sps:$4 sm:$0xff]  }
 0x7e7   :  { %13629 = vmatprep.subr.bf16.mxu1 %v18543_v43  ;;  %v18582_v43 = vcombine.low %v7171_v61, %v7175_v55  ;;  %v19331_v61 = vld [vmem:[#allocation6 + $0x12c] ss:$16 sps:$4 sm:$0xff]   ;;  %v19326_v55 = vld [vmem:[#allocation6 + $0x120] ss:$16 sps:$4 sm:$0xff]  }
 0x7e8   :  { %v13753_v60 = vadd.f32 %v13719_v10, %v13702_v40  ;;  %v19335_v40 = vld [vmem:[#allocation6 + $0x148] ss:$16 sps:$4 sm:$0xff]   ;;  %v19340_v10 = vld [vmem:[#allocation6 + $0x164] ss:$16 sps:$4 sm:$0xff]  }
 0x7e9   :  { %13302 = vmatpush1.bf16.msra.mxu0 %v18540_v57  ;;  %v19275_v57 = vld [vmem:[#allocation6 + $0x8] ss:$16 sps:$4 sm:$0xff]  }
 0x7ea   :  { %13630 = vmatpush1.bf16.msra.mxu1 %v18542_v63  ;;  %13303 = vmatprep.subr.bf16.mxu0 %v18549_v39  ;;  %v19280_v63 = vld [vmem:[#allocation6 + $0x24] ss:$16 sps:$4 sm:$0xff]   ;;  %v13761_v39 = vpack.c.bf16 %v13753_v60, %v13753_v60 }
 0x7eb   :  { %13631 = vmatprep.subr.bf16.mxu1 %v18551_v3  ;;  %v19283_v3 = vld [vmem:[#allocation6 + $0x2c] ss:$16 sps:$4 sm:$0xff]   ;;  %v19346_v60 = vld [vmem:[#allocation6 + $0x184] ss:$16 sps:$4 sm:$0xff]  }
 0x7ed   :  { %13304 = vmatpush1.bf16.msra.mxu0 %v18548_v17  ;;  %v19284_v17 = vld [vmem:[#allocation6 + $0x40] ss:$16 sps:$4 sm:$0xff]  }
 0x7ee   :  { %13632 = vmatpush1.bf16.msra.mxu1 %v18550_v49  ;;  %13305 = vmatprep.subr.bf16.mxu0 %v18557_v38  ;;  %v19287_v49 = vld [vmem:[#allocation6 + $0x48] ss:$16 sps:$4 sm:$0xff]   ;;  %v19292_v38 = vld [vmem:[#allocation6 + $0x64] ss:$16 sps:$4 sm:$0xff]  }
 0x7ef   :  { %13633 = vmatprep.subr.bf16.mxu1 %v18559_v31  ;;  %v19295_v31 = vld [vmem:[#allocation6 + $0x6c] ss:$16 sps:$4 sm:$0xff]  }
 0x7f1   :  { %13306 = vmatpush1.bf16.msra.mxu0 %v18556_v0  ;;  %v19304_v0 = vld [vmem:[#allocation6 + $0xa4] ss:$16 sps:$4 sm:$0xff]  }
 0x7f2   :  { %13634 = vmatpush1.bf16.msra.mxu1 %v18558_v11  ;;  %13307 = vmatprep.subr.bf16.mxu0 %v18565_v12  ;;  %v19307_v11 = vld [vmem:[#allocation6 + $0xac] ss:$16 sps:$4 sm:$0xff]   ;;  %v19302_v12 = vld [vmem:[#allocation6 + $0xa0] ss:$16 sps:$4 sm:$0xff]  }
 0x7f3   :  { %13635 = vmatprep.subr.bf16.mxu1 %v18567_v28  ;;  %v19305_v28 = vld [vmem:[#allocation6 + $0xa8] ss:$16 sps:$4 sm:$0xff]  }
 0x7f5   :  { %13308 = vmatpush1.bf16.msra.mxu0 %v18564_v29  ;;  %v19319_v29 = vld [vmem:[#allocation6 + $0xec] ss:$16 sps:$4 sm:$0xff]  }
 0x7f6   :  { %13636 = vmatpush1.bf16.msra.mxu1 %v18566_v23  ;;  %13309 = vmatprep.subr.bf16.mxu0 %v18573_v15  ;;  %v19314_v23 = vld [vmem:[#allocation6 + $0xe0] ss:$16 sps:$4 sm:$0xff]   ;;  %v19317_v15 = vld [vmem:[#allocation6 + $0xe8] ss:$16 sps:$4 sm:$0xff]  }
 0x7f7   :  { %13637 = vmatprep.subr.bf16.mxu1 %v18575_v18  ;;  %v19322_v18 = vld [vmem:[#allocation6 + $0x104] ss:$16 sps:$4 sm:$0xff]  }
 0x7f9   :  { %13310 = vmatpush1.bf16.msra.mxu0 %v18572_v53  ;;  %v19329_v53 = vld [vmem:[#allocation6 + $0x128] ss:$16 sps:$4 sm:$0xff]  }
 0x7fa   :  { %13638 = vmatpush1.bf16.msra.mxu1 %v18574_v5  ;;  %13311 = vmatprep.subr.bf16.mxu0 %v18581_v2  ;;  %v19334_v5 = vld [vmem:[#allocation6 + $0x144] ss:$16 sps:$4 sm:$0xff]   ;;  %v19337_v2 = vld [vmem:[#allocation6 + $0x14c] ss:$16 sps:$4 sm:$0xff]  }
 0x7fb   :  { %13639 = vmatprep.subr.bf16.mxu1 %v18583_v50  ;;  %v19332_v50 = vld [vmem:[#allocation6 + $0x140] ss:$16 sps:$4 sm:$0xff]  }
 0x7fd   :  { %13312 = vmatpush1.bf16.msra.mxu0 %v18580_v25  ;;  %v19343_v25 = vld [vmem:[#allocation6 + $0x16c] ss:$16 sps:$4 sm:$0xff]  }
 0x7fe   :  { %13640 = vmatpush1.bf16.msra.mxu1 %v18582_v43  ;;  %15326 = vmatprep.subr.bf16.mxu0 %v19274_v16  ;;  %v19338_v43 = vld [vmem:[#allocation6 + $0x160] ss:$16 sps:$4 sm:$0xff]   ;;  %v7181_v16 = vrot.slane %v20827_v9, %v20578_v45 }
 0x7ff   :  { %15490 = vmatprep.subr.bf16.mxu1 %v19277_v58  ;;  %v19341_v58 = vld [vmem:[#allocation6 + $0x168] ss:$16 sps:$4 sm:$0xff]  }
 0x800   :  { %13314 = vmatmul.mubr.bf16.vlgmr.msra.gmra.mrb[20].mxu0 %v20785_v42 }
 0x801   :  { %13642 = vmatmul.mubr.bf16.vlgmr.msra.gmra.mrb[20].mxu1 %v20785_v42  ;;  %15327 = vmatpush1.bf16.msra.mxu0 %v19272_v51  ;;  %v19290_v42 = vld [vmem:[#allocation6 + $0x60] ss:$16 sps:$4 sm:$0xff]   ;;  %v19349_v51 = vld [vmem:[#allocation6 + $0x18c] ss:$16 sps:$4 sm:$0xff]  }
 0x802   :  { %15358 = vmatprep.mubr.bf16.mxu0 %v13761_v39  ;;  %15491 = vmatpush1.bf16.msra.mxu1 %v19275_v57  ;;  %v7193_v57 = vrot.slane %v20827_v9, %v20581_v52 }
 0x803   :  { %15522 = vmatprep.mubr.bf16.mxu1 %v13761_v39  ;;  %15328 = vmatprep.subr.bf16.mxu0 %v19280_v63  ;;  %v19344_v63 = vld [vmem:[#allocation6 + $0x180] ss:$16 sps:$4 sm:$0xff]   ;;  %v19029_v39 = vadd.f32 %v20803_v46, %v7181_v16  ;;  %v19361_v46 = vld [vmem:[#allocation6 + $0x1cc] ss:$16 sps:$4 sm:$0xff]  }
 0x804   :  { %15492 = vmatprep.subr.bf16.mxu1 %v19283_v3  ;;  %v19347_v3 = vld [vmem:[#allocation6 + $0x188] ss:$16 sps:$4 sm:$0xff]   ;;  %v19392_v16 = vld [vmem:[#allocation6 + $0x280] ss:$16 sps:$4 sm:$0xff]  }
 0x805   :  { %15329 = vmatpush1.bf16.msra.mxu0 %v19278_v47  ;;  %v19352_v47 = vld [vmem:[#allocation6 + $0x1a4] ss:$16 sps:$4 sm:$0xff]  }
 0x806   :  { %15493 = vmatpush1.bf16.msra.mxu1 %v19281_v27  ;;  %15330 = vmatprep.subr.bf16.mxu0 %v19286_v6  ;;  %v19355_v27 = vld [vmem:[#allocation6 + $0x1ac] ss:$16 sps:$4 sm:$0xff]   ;;  %v19032_v6 = vadd.f32 %v20809_v19, %v7193_v57  ;;  %v13715_v19 = vrot.slane %v20836_v48, %v20578_v45  ;;  %v19398_v57 = vld [vmem:[#allocation6 + $0x2a0] ss:$16 sps:$4 sm:$0xff]  }
 0x807   :  { %15494 = vmatprep.subr.bf16.mxu1 %v19289_v7  ;;  %v19350_v7 = vld [vmem:[#allocation6 + $0x1a0] ss:$16 sps:$4 sm:$0xff]  }
 0x809   :  { %15331 = vmatpush1.bf16.msra.mxu0 %v19284_v17  ;;  %v13650_v17 = vmax.f32 %v19029_v39, 0.0  ;;  %v19406_v39 = vld [vmem:[#allocation6 + $0x2c4] ss:$16 sps:$4 sm:$0xff]  }
 0x80a   :  { %15495 = vmatpush1.bf16.msra.mxu1 %v19287_v49  ;;  %15332 = vmatprep.subr.bf16.mxu0 %v19292_v38  ;;  %v13664_v49 = vrot.slane %v20832_v4, %v20578_v45  ;;  %v19353_v38 = vld [vmem:[#allocation6 + $0x1a8] ss:$16 sps:$4 sm:$0xff]  }
 0x80b   :  { %15496 = vmatprep.subr.bf16.mxu1 %v19295_v31  ;;  %v19358_v31 = vld [vmem:[#allocation6 + $0x1c4] ss:$16 sps:$4 sm:$0xff]  }
 0x80d   :  { %15333 = vmatpush1.bf16.msra.mxu0 %v19290_v42  ;;  %v13653_v42 = vmax.f32 %v19032_v6, 0.0  ;;  %v19412_v6 = vld [vmem:[#allocation6 + $0x2e4] ss:$16 sps:$4 sm:$0xff]  }
 0x80e   :  { %15497 = vmatpush1.bf16.msra.mxu1 %v19293_v20  ;;  %15334 = vmatprep.subr.bf16.mxu0 %v19298_v22  ;;  %v13676_v20 = vrot.slane %v20832_v4, %v20581_v52  ;;  %v19356_v22 = vld [vmem:[#allocation6 + $0x1c0] ss:$16 sps:$4 sm:$0xff]  }
 0x80f   :  { %15498 = vmatprep.subr.bf16.mxu1 %v19301_v1  ;;  %v13701_v1 = vmul.f32 %v13664_v49, %v13650_v17  ;;  %v19410_v17 = vld [vmem:[#allocation6 + $0x2e0] ss:$16 sps:$4 sm:$0xff]   ;;  %v19413_v49 = vld [vmem:[#allocation6 + $0x2e8] ss:$16 sps:$4 sm:$0xff]  }
 0x811   :  { %15335 = vmatpush1.bf16.msra.mxu0 %v19296_v26  ;;  %v19359_v26 = vld [vmem:[#allocation6 + $0x1c8] ss:$16 sps:$4 sm:$0xff]  }
 0x812   :  { %15499 = vmatpush1.bf16.msra.mxu1 %v19299_v32  ;;  %15336 = vmatprep.subr.bf16.mxu0 %v19304_v0  ;;  %v19364_v32 = vld [vmem:[#allocation6 + $0x1e4] ss:$16 sps:$4 sm:$0xff]   ;;  %v19367_v0 = vld [vmem:[#allocation6 + $0x1ec] ss:$16 sps:$4 sm:$0xff]  }
 0x813   :  { %15500 = vmatprep.subr.bf16.mxu1 %v19307_v11  ;;  %v13704_v11 = vmul.f32 %v13676_v20, %v13653_v42  ;;  %v19419_v42 = vld [vmem:[#allocation6 + $0x308] ss:$16 sps:$4 sm:$0xff]   ;;  %v19424_v20 = vld [vmem:[#allocation6 + $0x324] ss:$16 sps:$4 sm:$0xff]  }
 0x815   :  { %15337 = vmatpush1.bf16.msra.mxu0 %v19302_v12  ;;  %v13727_v12 = vrot.slane %v20836_v48, %v20581_v52 }
 0x816   :  { %15501 = vmatpush1.bf16.msra.mxu1 %v19305_v28  ;;  %15338 = vmatprep.subr.bf16.mxu0 %v19310_v36  ;;  %v19362_v28 = vld [vmem:[#allocation6 + $0x1e0] ss:$16 sps:$4 sm:$0xff]   ;;  %v13752_v36 = vadd.f32 %v13715_v19, %v13701_v1  ;;  %v19425_v19 = vld [vmem:[#allocation6 + $0x328] ss:$16 sps:$4 sm:$0xff]  }
 0x817   :  { %15502 = vmatprep.subr.bf16.mxu1 %v19313_v24  ;;  %v19365_v24 = vld [vmem:[#allocation6 + $0x1e8] ss:$16 sps:$4 sm:$0xff]   ;;  %v19422_v1 = vld [vmem:[#allocation6 + $0x320] ss:$16 sps:$4 sm:$0xff]  }
 0x819   :  { %15339 = vmatpush1.bf16.msra.mxu0 %v19308_v37  ;;  %v19370_v37 = vld [vmem:[#allocation6 + $0x204] ss:$16 sps:$4 sm:$0xff]  }
 0x81a   :  { %15503 = vmatpush1.bf16.msra.mxu1 %v19311_v44  ;;  %15340 = vmatprep.subr.bf16.mxu0 %v19316_v54  ;;  %v19373_v44 = vld [vmem:[#allocation6 + $0x20c] ss:$16 sps:$4 sm:$0xff]   ;;  %v13755_v54 = vadd.f32 %v13727_v12, %v13704_v11  ;;  %v19431_v11 = vld [vmem:[#allocation6 + $0x348] ss:$16 sps:$4 sm:$0xff]   ;;  %v19436_v12 = vld [vmem:[#allocation6 + $0x364] ss:$16 sps:$4 sm:$0xff]  }
 0x81b   :  { %15504 = vmatprep.subr.bf16.mxu1 %v19319_v29  ;;  %v19368_v29 = vld [vmem:[#allocation6 + $0x200] ss:$16 sps:$4 sm:$0xff]  }
 0x81d   :  { %15341 = vmatpush1.bf16.msra.mxu0 %v19314_v23  ;;  %v13760_v23 = vpack.c.bf16 %v13752_v36, %v13752_v36  ;;  %v19434_v36 = vld [vmem:[#allocation6 + $0x360] ss:$16 sps:$4 sm:$0xff]  }
 0x81e   :  { %15505 = vmatpush1.bf16.msra.mxu1 %v19317_v15  ;;  %15342 = vmatprep.subr.bf16.mxu0 %v19322_v18  ;;  %v19371_v15 = vld [vmem:[#allocation6 + $0x208] ss:$16 sps:$4 sm:$0xff]   ;;  %v19376_v18 = vld [vmem:[#allocation6 + $0x224] ss:$16 sps:$4 sm:$0xff]  }
 0x81f   :  { %15506 = vmatprep.subr.bf16.mxu1 %v19325_v30  ;;  %v13763_v30 = vpack.c.bf16 %v13755_v54, %v13755_v54  ;;  %v19445_v54 = vld [vmem:[#allocation6 + $0x38c] ss:$16 sps:$4 sm:$0xff]  }
 0x821   :  { %15343 = vmatpush1.bf16.msra.mxu0 %v19320_v14  ;;  %v19379_v14 = vld [vmem:[#allocation6 + $0x22c] ss:$16 sps:$4 sm:$0xff]  }
 0x822   :  { %15507 = vmatpush1.bf16.msra.mxu1 %v19323_v35  ;;  %15344 = vmatprep.subr.bf16.mxu0 %v19328_v33  ;;  %v19374_v35 = vld [vmem:[#allocation6 + $0x220] ss:$16 sps:$4 sm:$0xff]   ;;  %v19377_v33 = vld [vmem:[#allocation6 + $0x228] ss:$16 sps:$4 sm:$0xff]  }
 0x823   :  { %15508 = vmatprep.subr.bf16.mxu1 %v19331_v61  ;;  %v19382_v61 = vld [vmem:[#allocation6 + $0x244] ss:$16 sps:$4 sm:$0xff]  }
 0x825   :  { %15345 = vmatpush1.bf16.msra.mxu0 %v19326_v55  ;;  %v19385_v55 = vld [vmem:[#allocation6 + $0x24c] ss:$16 sps:$4 sm:$0xff]  }
 0x826   :  { %15509 = vmatpush1.bf16.msra.mxu1 %v19329_v53  ;;  %15346 = vmatprep.subr.bf16.mxu0 %v19334_v5  ;;  %v19380_v53 = vld [vmem:[#allocation6 + $0x240] ss:$16 sps:$4 sm:$0xff]   ;;  %v19383_v5 = vld [vmem:[#allocation6 + $0x248] ss:$16 sps:$4 sm:$0xff]  }
 0x827   :  { %15510 = vmatprep.subr.bf16.mxu1 %v19337_v2  ;;  %v19388_v2 = vld [vmem:[#allocation6 + $0x264] ss:$16 sps:$4 sm:$0xff]  }
 0x829   :  { %15347 = vmatpush1.bf16.msra.mxu0 %v19332_v50  ;;  %v19391_v50 = vld [vmem:[#allocation6 + $0x26c] ss:$16 sps:$4 sm:$0xff]  }
 0x82a   :  { %15511 = vmatpush1.bf16.msra.mxu1 %v19335_v40  ;;  %15348 = vmatprep.subr.bf16.mxu0 %v19340_v10  ;;  %v19386_v40 = vld [vmem:[#allocation6 + $0x260] ss:$16 sps:$4 sm:$0xff]   ;;  %v19389_v10 = vld [vmem:[#allocation6 + $0x268] ss:$16 sps:$4 sm:$0xff]  }
 0x82b   :  { %15512 = vmatprep.subr.bf16.mxu1 %v19343_v25  ;;  %v19394_v25 = vld [vmem:[#allocation6 + $0x284] ss:$16 sps:$4 sm:$0xff]  }
 0x82d   :  { %15349 = vmatpush1.bf16.msra.mxu0 %v19338_v43  ;;  %v19397_v43 = vld [vmem:[#allocation6 + $0x28c] ss:$16 sps:$4 sm:$0xff]  }
 0x82e   :  { %15513 = vmatpush1.bf16.msra.mxu1 %v19341_v58  ;;  %15350 = vmatprep.subr.bf16.mxu0 %v19346_v60  ;;  %v19395_v58 = vld [vmem:[#allocation6 + $0x288] ss:$16 sps:$4 sm:$0xff]   ;;  %v19400_v60 = vld [vmem:[#allocation6 + $0x2a4] ss:$16 sps:$4 sm:$0xff]  }
 0x82f   :  { %15514 = vmatprep.subr.bf16.mxu1 %v19349_v51  ;;  %v19403_v51 = vld [vmem:[#allocation6 + $0x2ac] ss:$16 sps:$4 sm:$0xff]  }
 0x831   :  { %15351 = vmatpush1.bf16.msra.mxu0 %v19344_v63  ;;  %v19401_v63 = vld [vmem:[#allocation6 + $0x2a8] ss:$16 sps:$4 sm:$0xff]  }
 0x832   :  { %15515 = vmatpush1.bf16.msra.mxu1 %v19347_v3  ;;  %15352 = vmatprep.subr.bf16.mxu0 %v19352_v47  ;;  %v19409_v3 = vld [vmem:[#allocation6 + $0x2cc] ss:$16 sps:$4 sm:$0xff]   ;;  %v19404_v47 = vld [vmem:[#allocation6 + $0x2c0] ss:$16 sps:$4 sm:$0xff]  }
 0x833   :  { %15516 = vmatprep.subr.bf16.mxu1 %v19355_v27  ;;  %v19407_v27 = vld [vmem:[#allocation6 + $0x2c8] ss:$16 sps:$4 sm:$0xff]  }
 0x835   :  { %15353 = vmatpush1.bf16.msra.mxu0 %v19350_v7  ;;  %v19415_v7 = vld [vmem:[#allocation6 + $0x2ec] ss:$16 sps:$4 sm:$0xff]  }
 0x836   :  { %15517 = vmatpush1.bf16.msra.mxu1 %v19353_v38  ;;  %15354 = vmatprep.subr.bf16.mxu0 %v19358_v31  ;;  %v19418_v38 = vld [vmem:[#allocation6 + $0x304] ss:$16 sps:$4 sm:$0xff]   ;;  %v19421_v31 = vld [vmem:[#allocation6 + $0x30c] ss:$16 sps:$4 sm:$0xff]  }
 0x837   :  { %15518 = vmatprep.subr.bf16.mxu1 %v19361_v46  ;;  %v19416_v46 = vld [vmem:[#allocation6 + $0x300] ss:$16 sps:$4 sm:$0xff]  }
 0x839   :  { %15355 = vmatpush1.bf16.msra.mxu0 %v19356_v22  ;;  %v19427_v22 = vld [vmem:[#allocation6 + $0x32c] ss:$16 sps:$4 sm:$0xff]  }
 0x83a   :  { %15519 = vmatpush1.bf16.msra.mxu1 %v19359_v26  ;;  %15356 = vmatprep.subr.bf16.mxu0 %v19364_v32  ;;  %v19430_v26 = vld [vmem:[#allocation6 + $0x344] ss:$16 sps:$4 sm:$0xff]   ;;  %v19433_v32 = vld [vmem:[#allocation6 + $0x34c] ss:$16 sps:$4 sm:$0xff]  }
 0x83b   :  { %15520 = vmatprep.subr.bf16.mxu1 %v19367_v0  ;;  %v19428_v0 = vld [vmem:[#allocation6 + $0x340] ss:$16 sps:$4 sm:$0xff]  }
 0x83d   :  { %15357 = vmatpush1.bf16.msra.mxu0 %v19362_v28  ;;  %v19439_v28 = vld [vmem:[#allocation6 + $0x36c] ss:$16 sps:$4 sm:$0xff]  }
 0x83e   :  { %15521 = vmatpush1.bf16.msra.mxu1 %v19365_v24  ;;  %15367 = vmatprep.subr.bf16.mxu0 %v19370_v37  ;;  %v7189_v24 = vrot.slane %v20827_v9, %v20606_v62  ;;  %v19437_v37 = vld [vmem:[#allocation6 + $0x368] ss:$16 sps:$4 sm:$0xff]  }
 0x83f   :  { %15531 = vmatprep.subr.bf16.mxu1 %v19373_v44  ;;  %v19442_v44 = vld [vmem:[#allocation6 + $0x384] ss:$16 sps:$4 sm:$0xff]  }
 0x840   :  { %15359 = vmatmul.mubr.bf16.vlgmr.msra.gmra.mrb[24].mxu0 %v13760_v23 }
 0x841   :  { %15523 = vmatmul.mubr.bf16.vlgmr.msra.gmra.mrb[24].mxu1 %v13760_v23  ;;  %15368 = vmatpush1.bf16.msra.mxu0 %v19368_v29  ;;  %v19440_v29 = vld [vmem:[#allocation6 + $0x380] ss:$16 sps:$4 sm:$0xff]   ;;  %v19031_v23 = vadd.f32 %v20805_v34, %v7189_v24  ;;  %v19503_v24 = vld [vmem:[#allocation6 + $0x4c8] ss:$16 sps:$4 sm:$0xff]  }
 0x842   :  { %15399 = vmatprep.mubr.bf16.mxu0 %v13763_v30  ;;  %15532 = vmatpush1.bf16.msra.mxu1 %v19371_v15  ;;  %v19443_v15 = vld [vmem:[#allocation6 + $0x388] ss:$16 sps:$4 sm:$0xff]   ;;  %v19452_v34 = vld [vmem:[#allocation6 + $0x3c0] ss:$16 sps:$4 sm:$0xff]  }
 0x843   :  { %15563 = vmatprep.mubr.bf16.mxu1 %v13763_v30  ;;  %15369 = vmatprep.subr.bf16.mxu0 %v19376_v18  ;;  %v19448_v18 = vld [vmem:[#allocation6 + $0x3a4] ss:$16 sps:$4 sm:$0xff]   ;;  %v19451_v30 = vld [vmem:[#allocation6 + $0x3ac] ss:$16 sps:$4 sm:$0xff]  }
 0x844   :  { %15533 = vmatprep.subr.bf16.mxu1 %v19379_v14  ;;  %v19446_v14 = vld [vmem:[#allocation6 + $0x3a0] ss:$16 sps:$4 sm:$0xff]  }
 0x845   :  { %15370 = vmatpush1.bf16.msra.mxu0 %v19374_v35  ;;  %v13652_v35 = vmax.f32 %v19031_v23, 0.0  ;;  %v19514_v23 = vld [vmem:[#allocation6 + $0x504] ss:$16 sps:$4 sm:$0xff]  }
 0x846   :  { %15534 = vmatpush1.bf16.msra.mxu1 %v19377_v33  ;;  %15371 = vmatprep.subr.bf16.mxu0 %v19382_v61  ;;  %v13672_v33 = vrot.slane %v20832_v4, %v20606_v62  ;;  %v19449_v61 = vld [vmem:[#allocation6 + $0x3a8] ss:$16 sps:$4 sm:$0xff]  }
 0x847   :  { %15535 = vmatprep.subr.bf16.mxu1 %v19385_v55  ;;  %v19454_v55 = vld [vmem:[#allocation6 + $0x3c4] ss:$16 sps:$4 sm:$0xff]  }
 0x849   :  { %15372 = vmatpush1.bf16.msra.mxu0 %v19380_v53  ;;  %v19457_v53 = vld [vmem:[#allocation6 + $0x3cc] ss:$16 sps:$4 sm:$0xff]  }
 0x84a   :  { %15536 = vmatpush1.bf16.msra.mxu1 %v19383_v5  ;;  %15373 = vmatprep.subr.bf16.mxu0 %v19388_v2  ;;  %v13703_v5 = vmul.f32 %v13672_v33, %v13652_v35  ;;  %v13723_v2 = vrot.slane %v20836_v48, %v20606_v62  ;;  %v19523_v35 = vld [vmem:[#allocation6 + $0x52c] ss:$16 sps:$4 sm:$0xff]   ;;  %v19518_v33 = vld [vmem:[#allocation6 + $0x520] ss:$16 sps:$4 sm:$0xff]  }
 0x84b   :  { %15537 = vmatprep.subr.bf16.mxu1 %v19391_v50  ;;  %v19455_v50 = vld [vmem:[#allocation6 + $0x3c8] ss:$16 sps:$4 sm:$0xff]  }
 0x84d   :  { %15374 = vmatpush1.bf16.msra.mxu0 %v19386_v40  ;;  %v19460_v40 = vld [vmem:[#allocation6 + $0x3e4] ss:$16 sps:$4 sm:$0xff]  }
 0x84e   :  { %15538 = vmatpush1.bf16.msra.mxu1 %v19389_v10  ;;  %15375 = vmatprep.subr.bf16.mxu0 %v19394_v25  ;;  %v19463_v10 = vld [vmem:[#allocation6 + $0x3ec] ss:$16 sps:$4 sm:$0xff]   ;;  %v19458_v25 = vld [vmem:[#allocation6 + $0x3e0] ss:$16 sps:$4 sm:$0xff]  }
 0x84f   :  { %15539 = vmatprep.subr.bf16.mxu1 %v19397_v43  ;;  %v13754_v43 = vadd.f32 %v13723_v2, %v13703_v5  ;;  %v19527_v5 = vld [vmem:[#allocation6 + $0x548] ss:$16 sps:$4 sm:$0xff]   ;;  %v19532_v2 = vld [vmem:[#allocation6 + $0x564] ss:$16 sps:$4 sm:$0xff]  }
 0x851   :  { %15376 = vmatpush1.bf16.msra.mxu0 %v19392_v16  ;;  %v19461_v16 = vld [vmem:[#allocation6 + $0x3e8] ss:$16 sps:$4 sm:$0xff]  }
 0x852   :  { %15540 = vmatpush1.bf16.msra.mxu1 %v19395_v58  ;;  %15377 = vmatprep.subr.bf16.mxu0 %v19400_v60  ;;  %v19466_v58 = vld [vmem:[#allocation6 + $0x404] ss:$16 sps:$4 sm:$0xff]   ;;  %v19469_v60 = vld [vmem:[#allocation6 + $0x40c] ss:$16 sps:$4 sm:$0xff]  }
 0x853   :  { %15541 = vmatprep.subr.bf16.mxu1 %v19403_v51  ;;  %v19464_v51 = vld [vmem:[#allocation6 + $0x400] ss:$16 sps:$4 sm:$0xff]  }
 0x855   :  { %15378 = vmatpush1.bf16.msra.mxu0 %v19398_v57  ;;  %v13762_v57 = vpack.c.bf16 %v13754_v43, %v13754_v43  ;;  %v19541_v43 = vld [vmem:[#allocation6 + $0x58c] ss:$16 sps:$4 sm:$0xff]  }
 0x856   :  { %15542 = vmatpush1.bf16.msra.mxu1 %v19401_v63  ;;  %15379 = vmatprep.subr.bf16.mxu0 %v19406_v39  ;;  %v19467_v63 = vld [vmem:[#allocation6 + $0x408] ss:$16 sps:$4 sm:$0xff]   ;;  %v19472_v39 = vld [vmem:[#allocation6 + $0x424] ss:$16 sps:$4 sm:$0xff]  }
 0x857   :  { %15543 = vmatprep.subr.bf16.mxu1 %v19409_v3  ;;  %v19475_v3 = vld [vmem:[#allocation6 + $0x42c] ss:$16 sps:$4 sm:$0xff]  }
 0x859   :  { %15380 = vmatpush1.bf16.msra.mxu0 %v19404_v47  ;;  %v19470_v47 = vld [vmem:[#allocation6 + $0x420] ss:$16 sps:$4 sm:$0xff]  }
 0x85a   :  { %15544 = vmatpush1.bf16.msra.mxu1 %v19407_v27  ;;  %15381 = vmatprep.subr.bf16.mxu0 %v19412_v6  ;;  %v19473_v27 = vld [vmem:[#allocation6 + $0x428] ss:$16 sps:$4 sm:$0xff]   ;;  %v19478_v6 = vld [vmem:[#allocation6 + $0x444] ss:$16 sps:$4 sm:$0xff]  }
 0x85b   :  { %15545 = vmatprep.subr.bf16.mxu1 %v19415_v7  ;;  %v19481_v7 = vld [vmem:[#allocation6 + $0x44c] ss:$16 sps:$4 sm:$0xff]  }
 0x85d   :  { %15382 = vmatpush1.bf16.msra.mxu0 %v19410_v17  ;;  %v19476_v17 = vld [vmem:[#allocation6 + $0x440] ss:$16 sps:$4 sm:$0xff]  }
 0x85e   :  { %15546 = vmatpush1.bf16.msra.mxu1 %v19413_v49  ;;  %15383 = vmatprep.subr.bf16.mxu0 %v19418_v38  ;;  %v19479_v49 = vld [vmem:[#allocation6 + $0x448] ss:$16 sps:$4 sm:$0xff]   ;;  %v19484_v38 = vld [vmem:[#allocation6 + $0x464] ss:$16 sps:$4 sm:$0xff]  }
 0x85f   :  { %15547 = vmatprep.subr.bf16.mxu1 %v19421_v31  ;;  %v19487_v31 = vld [vmem:[#allocation6 + $0x46c] ss:$16 sps:$4 sm:$0xff]  }
 0x861   :  { %15384 = vmatpush1.bf16.msra.mxu0 %v19416_v46  ;;  %v19482_v46 = vld [vmem:[#allocation6 + $0x460] ss:$16 sps:$4 sm:$0xff]  }
 0x862   :  { %15548 = vmatpush1.bf16.msra.mxu1 %v19419_v42  ;;  %15385 = vmatprep.subr.bf16.mxu0 %v19424_v20  ;;  %v19485_v42 = vld [vmem:[#allocation6 + $0x468] ss:$16 sps:$4 sm:$0xff]   ;;  %v19490_v20 = vld [vmem:[#allocation6 + $0x484] ss:$16 sps:$4 sm:$0xff]  }
 0x863   :  { %15549 = vmatprep.subr.bf16.mxu1 %v19427_v22  ;;  %v19493_v22 = vld [vmem:[#allocation6 + $0x48c] ss:$16 sps:$4 sm:$0xff]  }
 0x865   :  { %15386 = vmatpush1.bf16.msra.mxu0 %v19422_v1  ;;  %v19488_v1 = vld [vmem:[#allocation6 + $0x480] ss:$16 sps:$4 sm:$0xff]  }
 0x866   :  { %15550 = vmatpush1.bf16.msra.mxu1 %v19425_v19  ;;  %15387 = vmatprep.subr.bf16.mxu0 %v19430_v26  ;;  %v19491_v19 = vld [vmem:[#allocation6 + $0x488] ss:$16 sps:$4 sm:$0xff]   ;;  %v19496_v26 = vld [vmem:[#allocation6 + $0x4a4] ss:$16 sps:$4 sm:$0xff]  }
 0x867   :  { %15551 = vmatprep.subr.bf16.mxu1 %v19433_v32  ;;  %v19499_v32 = vld [vmem:[#allocation6 + $0x4ac] ss:$16 sps:$4 sm:$0xff]  }
 0x869   :  { %15388 = vmatpush1.bf16.msra.mxu0 %v19428_v0  ;;  %v19494_v0 = vld [vmem:[#allocation6 + $0x4a0] ss:$16 sps:$4 sm:$0xff]  }
 0x86a   :  { %15552 = vmatpush1.bf16.msra.mxu1 %v19431_v11  ;;  %15389 = vmatprep.subr.bf16.mxu0 %v19436_v12  ;;  %v19497_v11 = vld [vmem:[#allocation6 + $0x4a8] ss:$16 sps:$4 sm:$0xff]   ;;  %v19502_v12 = vld [vmem:[#allocation6 + $0x4c4] ss:$16 sps:$4 sm:$0xff]  }
 0x86b   :  { %15553 = vmatprep.subr.bf16.mxu1 %v19439_v28  ;;  %v19505_v28 = vld [vmem:[#allocation6 + $0x4cc] ss:$16 sps:$4 sm:$0xff]  }
 0x86d   :  { %15390 = vmatpush1.bf16.msra.mxu0 %v19434_v36  ;;  %v19500_v36 = vld [vmem:[#allocation6 + $0x4c0] ss:$16 sps:$4 sm:$0xff]  }
 0x86e   :  { %15554 = vmatpush1.bf16.msra.mxu1 %v19437_v37  ;;  %15391 = vmatprep.subr.bf16.mxu0 %v19442_v44  ;;  %v19508_v37 = vld [vmem:[#allocation6 + $0x4e4] ss:$16 sps:$4 sm:$0xff]   ;;  %v19511_v44 = vld [vmem:[#allocation6 + $0x4ec] ss:$16 sps:$4 sm:$0xff]  }
 0x86f   :  { %15555 = vmatprep.subr.bf16.mxu1 %v19445_v54  ;;  %v19506_v54 = vld [vmem:[#allocation6 + $0x4e0] ss:$16 sps:$4 sm:$0xff]  }
 0x871   :  { %15392 = vmatpush1.bf16.msra.mxu0 %v19440_v29  ;;  %v19509_v29 = vld [vmem:[#allocation6 + $0x4e8] ss:$16 sps:$4 sm:$0xff]  }
 0x872   :  { %15556 = vmatpush1.bf16.msra.mxu1 %v19443_v15  ;;  %15393 = vmatprep.subr.bf16.mxu0 %v19448_v18  ;;  %v19517_v15 = vld [vmem:[#allocation6 + $0x50c] ss:$16 sps:$4 sm:$0xff]   ;;  %v19512_v18 = vld [vmem:[#allocation6 + $0x500] ss:$16 sps:$4 sm:$0xff]  }
 0x873   :  { %15557 = vmatprep.subr.bf16.mxu1 %v19451_v30  ;;  %v19515_v30 = vld [vmem:[#allocation6 + $0x508] ss:$16 sps:$4 sm:$0xff]  }
 0x875   :  { %15394 = vmatpush1.bf16.msra.mxu0 %v19446_v14  ;;  %v19520_v14 = vld [vmem:[#allocation6 + $0x524] ss:$16 sps:$4 sm:$0xff]  }
 0x876   :  { %15558 = vmatpush1.bf16.msra.mxu1 %v19449_v61  ;;  %15395 = vmatprep.subr.bf16.mxu0 %v19454_v55  ;;  %v19521_v61 = vld [vmem:[#allocation6 + $0x528] ss:$16 sps:$4 sm:$0xff]   ;;  %v19526_v55 = vld [vmem:[#allocation6 + $0x544] ss:$16 sps:$4 sm:$0xff]  }
 0x877   :  { %15559 = vmatprep.subr.bf16.mxu1 %v19457_v53  ;;  %v19529_v53 = vld [vmem:[#allocation6 + $0x54c] ss:$16 sps:$4 sm:$0xff]  }
 0x879   :  { %15396 = vmatpush1.bf16.msra.mxu0 %v19452_v34  ;;  %v19524_v34 = vld [vmem:[#allocation6 + $0x540] ss:$16 sps:$4 sm:$0xff]  }
 0x87a   :  { %15560 = vmatpush1.bf16.msra.mxu1 %v19455_v50  ;;  %15397 = vmatprep.subr.bf16.mxu0 %v19460_v40  ;;  %v19535_v50 = vld [vmem:[#allocation6 + $0x56c] ss:$16 sps:$4 sm:$0xff]   ;;  %v19530_v40 = vld [vmem:[#allocation6 + $0x560] ss:$16 sps:$4 sm:$0xff]  }
 0x87b   :  { %15561 = vmatprep.subr.bf16.mxu1 %v19463_v10  ;;  %v19533_v10 = vld [vmem:[#allocation6 + $0x568] ss:$16 sps:$4 sm:$0xff]  }
 0x87d   :  { %15398 = vmatpush1.bf16.msra.mxu0 %v19458_v25  ;;  %v19538_v25 = vld [vmem:[#allocation6 + $0x584] ss:$16 sps:$4 sm:$0xff]  }
 0x87e   :  { %15562 = vmatpush1.bf16.msra.mxu1 %v19461_v16  ;;  %15408 = vmatprep.subr.bf16.mxu0 %v19466_v58  ;;  %v19536_v16 = vld [vmem:[#allocation6 + $0x580] ss:$16 sps:$4 sm:$0xff]   ;;  %v19539_v58 = vld [vmem:[#allocation6 + $0x588] ss:$16 sps:$4 sm:$0xff]  }
 0x87f   :  { %15572 = vmatprep.subr.bf16.mxu1 %v19469_v60  ;;  %v19544_v60 = vld [vmem:[#allocation6 + $0x5a4] ss:$16 sps:$4 sm:$0xff]  }
 0x880   :  { %15400 = vmatmul.mubr.bf16.vlgmr.msra.gmra.mrb[24].mxu0 %v13762_v57 }
 0x881   :  { %15564 = vmatmul.mubr.bf16.vlgmr.msra.gmra.mrb[24].mxu1 %v13762_v57  ;;  %15409 = vmatpush1.bf16.msra.mxu0 %v19464_v51  ;;  %v19547_v51 = vld [vmem:[#allocation6 + $0x5ac] ss:$16 sps:$4 sm:$0xff]   ;;  %v19542_v57 = vld [vmem:[#allocation6 + $0x5a0] ss:$16 sps:$4 sm:$0xff]  }
 0x882   :  { %15573 = vmatpush1.bf16.msra.mxu1 %v19467_v63  ;;  %15410 = vmatprep.subr.bf16.mxu0 %v19472_v39  ;;  %v19545_v63 = vld [vmem:[#allocation6 + $0x5a8] ss:$16 sps:$4 sm:$0xff]   ;;  %v19550_v39 = vld [vmem:[#allocation6 + $0x5c4] ss:$16 sps:$4 sm:$0xff]  }
 0x883   :  { %15574 = vmatprep.subr.bf16.mxu1 %v19475_v3  ;;  %v19553_v3 = vld [vmem:[#allocation6 + $0x5cc] ss:$16 sps:$4 sm:$0xff]  }
 0x885   :  { %15411 = vmatpush1.bf16.msra.mxu0 %v19470_v47  ;;  %v19548_v47 = vld [vmem:[#allocation6 + $0x5c0] ss:$16 sps:$4 sm:$0xff]  }
 0x886   :  { %15575 = vmatpush1.bf16.msra.mxu1 %v19473_v27  ;;  %15412 = vmatprep.subr.bf16.mxu0 %v19478_v6  ;;  %v19551_v27 = vld [vmem:[#allocation6 + $0x5c8] ss:$16 sps:$4 sm:$0xff]   ;;  %v19556_v6 = vld [vmem:[#allocation6 + $0x5e4] ss:$16 sps:$4 sm:$0xff]  }
 0x887   :  { %15576 = vmatprep.subr.bf16.mxu1 %v19481_v7  ;;  %v19559_v7 = vld [vmem:[#allocation6 + $0x5ec] ss:$16 sps:$4 sm:$0xff]  }
 0x889   :  { %15413 = vmatpush1.bf16.msra.mxu0 %v19476_v17  ;;  %v19554_v17 = vld [vmem:[#allocation6 + $0x5e0] ss:$16 sps:$4 sm:$0xff]  }
 0x88a   :  { %15577 = vmatpush1.bf16.msra.mxu1 %v19479_v49  ;;  %15414 = vmatprep.subr.bf16.mxu0 %v19484_v38  ;;  %v19557_v49 = vld [vmem:[#allocation6 + $0x5e8] ss:$16 sps:$4 sm:$0xff]   ;;  %v19562_v38 = vld [vmem:[#allocation6 + $0x604] ss:$16 sps:$4 sm:$0xff]  }
 0x88b   :  { %15578 = vmatprep.subr.bf16.mxu1 %v19487_v31  ;;  %v19565_v31 = vld [vmem:[#allocation6 + $0x60c] ss:$16 sps:$4 sm:$0xff]  }
 0x88d   :  { %15415 = vmatpush1.bf16.msra.mxu0 %v19482_v46  ;;  %v7197_v46 = vrot.slane %v20827_v9, %v20634_v13 }
 0x88e   :  { %15579 = vmatpush1.bf16.msra.mxu1 %v19485_v42  ;;  %15416 = vmatprep.subr.bf16.mxu0 %v19490_v20  ;;  %v7201_v42 = vrot.slane %v20827_v9, %v20609_v8  ;;  %v7209_v20 = vrot.slane %v20827_v9, %v20637_v21  ;;  %v13692_v9 = vrot.slane %v20832_v4, %v20637_v21 }
 0x88f   :  { %15580 = vmatprep.subr.bf16.mxu1 %v19493_v22 }
 0x891   :  { %15417 = vmatpush1.bf16.msra.mxu0 %v19488_v1 }
 0x892   :  { %15581 = vmatpush1.bf16.msra.mxu1 %v19491_v19  ;;  %15418 = vmatprep.subr.bf16.mxu0 %v19496_v26  ;;  %v13680_v19 = vrot.slane %v20832_v4, %v20634_v13 }
 0x893   :  { %15582 = vmatprep.subr.bf16.mxu1 %v19499_v32 }
 0x895   :  { %15419 = vmatpush1.bf16.msra.mxu0 %v19494_v0 }
 0x896   :  { %15583 = vmatpush1.bf16.msra.mxu1 %v19497_v11  ;;  %15420 = vmatprep.subr.bf16.mxu0 %v19502_v12  ;;  %v13684_v11 = vrot.slane %v20832_v4, %v20609_v8  ;;  %v19563_v4 = vld [vmem:[#allocation6 + $0x608] ss:$16 sps:$4 sm:$0xff]  }
 0x897   :  { %15584 = vmatprep.subr.bf16.mxu1 %v19505_v28 }
 0x899   :  { %15421 = vmatpush1.bf16.msra.mxu0 %v19500_v36 }
 0x89a   :  { %15585 = vmatpush1.bf16.msra.mxu1 %v19503_v24  ;;  %15422 = vmatprep.subr.bf16.mxu0 %v19508_v37  ;;  %v13731_v24 = vrot.slane %v20836_v48, %v20634_v13 }
 0x89b   :  { %15586 = vmatprep.subr.bf16.mxu1 %v19511_v44 }
 0x89d   :  { %15423 = vmatpush1.bf16.msra.mxu0 %v19506_v54 }
 0x89e   :  { %15587 = vmatpush1.bf16.msra.mxu1 %v19509_v29  ;;  %15424 = vmatprep.subr.bf16.mxu0 %v19514_v23 }
 0x89f   :  { %15588 = vmatprep.subr.bf16.mxu1 %v19517_v15  ;;  %v13735_v15 = vrot.slane %v20836_v48, %v20609_v8 }
 0x8a1   :  { %15425 = vmatpush1.bf16.msra.mxu0 %v19512_v18 }
 0x8a2   :  { %15589 = vmatpush1.bf16.msra.mxu1 %v19515_v30  ;;  %15426 = vmatprep.subr.bf16.mxu0 %v19520_v14  ;;  %v13743_v14 = vrot.slane %v20836_v48, %v20637_v21  ;;  %v19569_v21 = vld [vmem:[#allocation6 + $0x628] ss:$16 sps:$4 sm:$0xff]   ;;  %v19574_v48 = vld [vmem:[#allocation6 + $0x644] ss:$16 sps:$4 sm:$0xff]  }
 0x8a3   :  { %15590 = vmatprep.subr.bf16.mxu1 %v19523_v35 }
 0x8a5   :  { %15427 = vmatpush1.bf16.msra.mxu0 %v19518_v33 }
 0x8a6   :  { %15591 = vmatpush1.bf16.msra.mxu1 %v19521_v61  ;;  %15428 = vmatprep.subr.bf16.mxu0 %v19526_v55 }
 0x8a7   :  { %15592 = vmatprep.subr.bf16.mxu1 %v19529_v53 }
 0x8a9   :  { %15429 = vmatpush1.bf16.msra.mxu0 %v19524_v34  ;;  %v19560_v34 = vld [vmem:[#allocation6 + $0x600] ss:$16 sps:$4 sm:$0xff]  }
 0x8aa   :  { %15593 = vmatpush1.bf16.msra.mxu1 %v19527_v5  ;;  %15430 = vmatprep.subr.bf16.mxu0 %v19532_v2  ;;  %v19568_v2 = vld [vmem:[#allocation6 + $0x624] ss:$16 sps:$4 sm:$0xff]  }
 0x8ab   :  { %15594 = vmatprep.subr.bf16.mxu1 %v19535_v50  ;;  %v19571_v50 = vld [vmem:[#allocation6 + $0x62c] ss:$16 sps:$4 sm:$0xff]  }
 0x8ad   :  { %15431 = vmatpush1.bf16.msra.mxu0 %v19530_v40  ;;  %v19566_v40 = vld [vmem:[#allocation6 + $0x620] ss:$16 sps:$4 sm:$0xff]  }
 0x8ae   :  { %15595 = vmatpush1.bf16.msra.mxu1 %v19533_v10  ;;  %15432 = vmatprep.subr.bf16.mxu0 %v19538_v25  ;;  %v19577_v10 = vld [vmem:[#allocation6 + $0x64c] ss:$16 sps:$4 sm:$0xff]   ;;  %v19572_v25 = vld [vmem:[#allocation6 + $0x640] ss:$16 sps:$4 sm:$0xff]  }
 0x8af   :  { %15596 = vmatprep.subr.bf16.mxu1 %v19541_v43  ;;  %v19575_v43 = vld [vmem:[#allocation6 + $0x648] ss:$16 sps:$4 sm:$0xff]  }
 0x8b1   :  { %15433 = vmatpush1.bf16.msra.mxu0 %v19536_v16  ;;  %v19580_v16 = vld [vmem:[#allocation6 + $0x664] ss:$16 sps:$4 sm:$0xff]  }
 0x8b2   :  { %15597 = vmatpush1.bf16.msra.mxu1 %v19539_v58  ;;  %15434 = vmatprep.subr.bf16.mxu0 %v19544_v60  ;;  %v19583_v58 = vld [vmem:[#allocation6 + $0x66c] ss:$16 sps:$4 sm:$0xff]   ;;  %v19578_v60 = vld [vmem:[#allocation6 + $0x660] ss:$16 sps:$4 sm:$0xff]  }
 0x8b3   :  { %15598 = vmatprep.subr.bf16.mxu1 %v19547_v51  ;;  %v19581_v51 = vld [vmem:[#allocation6 + $0x668] ss:$16 sps:$4 sm:$0xff]  }
 0x8b5   :  { %15435 = vmatpush1.bf16.msra.mxu0 %v19542_v57  ;;  %v19586_v57 = vld [vmem:[#allocation6 + $0x684] ss:$16 sps:$4 sm:$0xff]  }
 0x8b6   :  { %15599 = vmatpush1.bf16.msra.mxu1 %v19545_v63  ;;  %15436 = vmatprep.subr.bf16.mxu0 %v19550_v39  ;;  %v19589_v63 = vld [vmem:[#allocation6 + $0x68c] ss:$16 sps:$4 sm:$0xff]   ;;  %v19584_v39 = vld [vmem:[#allocation6 + $0x680] ss:$16 sps:$4 sm:$0xff]  }
 0x8b7   :  { %15600 = vmatprep.subr.bf16.mxu1 %v19553_v3  ;;  %v19587_v3 = vld [vmem:[#allocation6 + $0x688] ss:$16 sps:$4 sm:$0xff]  }
 0x8b9   :  { %15437 = vmatpush1.bf16.msra.mxu0 %v19548_v47  ;;  %v19592_v47 = vld [vmem:[#allocation6 + $0x6a4] ss:$16 sps:$4 sm:$0xff]  }
 0x8ba   :  { %15601 = vmatpush1.bf16.msra.mxu1 %v19551_v27  ;;  %15438 = vmatprep.subr.bf16.mxu0 %v19556_v6  ;;  %v19595_v27 = vld [vmem:[#allocation6 + $0x6ac] ss:$16 sps:$4 sm:$0xff]   ;;  %v19590_v6 = vld [vmem:[#allocation6 + $0x6a0] ss:$16 sps:$4 sm:$0xff]  }
 0x8bb   :  { %15602 = vmatprep.subr.bf16.mxu1 %v19559_v7  ;;  %v19593_v7 = vld [vmem:[#allocation6 + $0x6a8] ss:$16 sps:$4 sm:$0xff]  }
 0x8bd   :  { %15439 = vmatpush1.bf16.msra.mxu0 %v19554_v17  ;;  %v19598_v17 = vld [vmem:[#allocation6 + $0x6c4] ss:$16 sps:$4 sm:$0xff]  }
 0x8be   :  { %15603 = vmatpush1.bf16.msra.mxu1 %v19557_v49  ;;  %15449 = vmatprep.subr.bf16.mxu0 %v19562_v38  ;;  %v19601_v49 = vld [vmem:[#allocation6 + $0x6cc] ss:$16 sps:$4 sm:$0xff]   ;;  %v19596_v38 = vld [vmem:[#allocation6 + $0x6c0] ss:$16 sps:$4 sm:$0xff]  }
 0x8bf   :  { %15613 = vmatprep.subr.bf16.mxu1 %v19565_v31  ;;  %v19599_v31 = vld [vmem:[#allocation6 + $0x6c8] ss:$16 sps:$4 sm:$0xff]  }
 0x8d3   :  { %v13315_v22 = vpop.f32.mrb[20].mxu0 }
 0x8d4   :  { %v19033_v1 = vadd.f32 %v13315_v22, %v7197_v46  ;;  %v20871_v26 = vpop.f32.mrb[20].mxu1  ;;  %v13317_v32 = vpop.f32.mrb[21].mxu0  ;;  %v19604_v46 = vld [vmem:[#allocation6 + $0x6e4] ss:$16 sps:$4 sm:$0xff]   ;;  %v19605_v22 = vld [vmem:[#allocation6 + $0x6e8] ss:$16 sps:$4 sm:$0xff]  }
 0x8d5   :  { %v19034_v0 = vadd.f32 %v13317_v32, %v7201_v42  ;;  %v13645_v12 = vpop.f32.mrb[21].mxu1  ;;  %v13319_v28 = vpop.f32.mrb[22].mxu0  ;;  %v19607_v42 = vld [vmem:[#allocation6 + $0x6ec] ss:$16 sps:$4 sm:$0xff]   ;;  %v19608_v32 = vld [vmem:[#allocation6 + $0x700] ss:$16 sps:$4 sm:$0xff]  }
 0x8d6   :  { %v13654_v36 = vmax.f32 %v19033_v1, 0.0  ;;  %v19036_v37 = vadd.f32 %v13645_v12, %v7209_v20  ;;  %v13647_v44 = vpop.f32.mrb[22].mxu1  ;;  %v13320_v54 = vpop.f32.mrb[23].mxu0  ;;  %v19602_v20 = vld [vmem:[#allocation6 + $0x6e0] ss:$16 sps:$4 sm:$0xff]  }
 0x8d7   :  { %v13655_v29 = vmax.f32 %v19034_v0, 0.0  ;;  %v13648_v23 = vpop.f32.mrb[23].mxu1  ;;  %v19610_v1 = vld [vmem:[#allocation6 + $0x704] ss:$16 sps:$4 sm:$0xff]   ;;  %v19611_v0 = vld [vmem:[#allocation6 + $0x708] ss:$16 sps:$4 sm:$0xff]  }
 0x8d8   :  { %v13705_v18 = vmul.f32 %v13680_v19, %v13654_v36  ;;  %v13657_v30 = vmax.f32 %v19036_v37, 0.0  ;;  %v19613_v19 = vld [vmem:[#allocation6 + $0x70c] ss:$16 sps:$4 sm:$0xff]   ;;  %v19614_v28 = vld [vmem:[#allocation6 + $0x720] ss:$16 sps:$4 sm:$0xff]  }
 0x8d9   :  { %v13706_v35 = vmul.f32 %v13684_v11, %v13655_v29  ;;  %v19616_v11 = vld [vmem:[#allocation6 + $0x724] ss:$16 sps:$4 sm:$0xff]   ;;  %v19619_v12 = vld [vmem:[#allocation6 + $0x72c] ss:$16 sps:$4 sm:$0xff]   ;;  %v19617_v36 = vld [vmem:[#allocation6 + $0x728] ss:$16 sps:$4 sm:$0xff]  }
 0x8da   :  { %v13756_v33 = vadd.f32 %v13731_v24, %v13705_v18  ;;  %v13708_v61 = vmul.f32 %v13692_v9, %v13657_v30  ;;  %v19622_v24 = vld [vmem:[#allocation6 + $0x744] ss:$16 sps:$4 sm:$0xff]   ;;  %v19625_v37 = vld [vmem:[#allocation6 + $0x74c] ss:$16 sps:$4 sm:$0xff]   ;;  %v19620_v9 = vld [vmem:[#allocation6 + $0x740] ss:$16 sps:$4 sm:$0xff]  }
 0x8db   :  { %v13757_v13 = vadd.f32 %v13735_v15, %v13706_v35  ;;  %v19623_v44 = vld [vmem:[#allocation6 + $0x748] ss:$16 sps:$4 sm:$0xff]   ;;  %v19628_v54 = vld [vmem:[#allocation6 + $0x764] ss:$16 sps:$4 sm:$0xff]   ;;  %v19631_v29 = vld [vmem:[#allocation6 + $0x76c] ss:$16 sps:$4 sm:$0xff]  }
 0x8dc   :  { %v13759_v55 = vadd.f32 %v13743_v14, %v13708_v61  ;;  %v13764_v5 = vpack.c.bf16 %v13756_v33, %v13756_v33  ;;  %v19626_v23 = vld [vmem:[#allocation6 + $0x760] ss:$16 sps:$4 sm:$0xff]   ;;  %v19629_v15 = vld [vmem:[#allocation6 + $0x768] ss:$16 sps:$4 sm:$0xff]   ;;  %v19634_v14 = vld [vmem:[#allocation6 + $0x784] ss:$16 sps:$4 sm:$0xff]  }
 0x8dd   :  { %v13765_v53 = vpack.c.bf16 %v13757_v13, %v13757_v13  ;;  %v19834_v18 = vld [vmem:[#allocation10] ss:$4 sm:$0xff] }
 0x8de   :  { %v13767_v8 = vpack.c.bf16 %v13759_v55, %v13759_v55  ;;  %v7205_v30 = vrot.slane %v19834_v18, %v20676_v59  ;;  %v19637_v35 = vld [vmem:[#allocation6 + $0x78c] ss:$16 sps:$4 sm:$0xff]   ;;  %v19632_v33 = vld [vmem:[#allocation6 + $0x780] ss:$16 sps:$4 sm:$0xff]   ;;  %v19635_v61 = vld [vmem:[#allocation6 + $0x788] ss:$16 sps:$4 sm:$0xff]  }
 0x8df   :  { %15440 = vmatprep.mubr.bf16.mxu0 %v13765_v53  ;;  %15604 = vmatprep.mubr.bf16.mxu1 %v13765_v53  ;;  %v19640_v55 = vld [vmem:[#allocation6 + $0x7a4] ss:$16 sps:$4 sm:$0xff]   ;;  %v19643_v53 = vld [vmem:[#allocation6 + $0x7ac] ss:$16 sps:$4 sm:$0xff]  }
 0x8e0   :  { %15441 = vmatmul.mubr.bf16.vlgmr.msra.gmra.mrb[24].mxu0 %v13764_v5  ;;  %15605 = vmatmul.mubr.bf16.vlgmr.msra.gmra.mrb[24].mxu1 %v13764_v5  ;;  %v19035_v13 = vadd.f32 %v20871_v26, %v7205_v30  ;;  %v19647_v26 = vld [vmem:[#allocation6 + $0x7c8] ss:$16 sps:$4 sm:$0xff]   ;;  %v19706_v18 = vld [vmem:[#allocation7 + $0x104] ss:$8 sps:$4 sm:$0xff]  }
 0x8e1   :  { %15450 = vmatpush1.bf16.msra.mxu0 %v19560_v34  ;;  %15614 = vmatpush1.bf16.msra.mxu1 %v19563_v4  ;;  %v19638_v34 = vld [vmem:[#allocation6 + $0x7a0] ss:$16 sps:$4 sm:$0xff]   ;;  %v19641_v4 = vld [vmem:[#allocation6 + $0x7a8] ss:$16 sps:$4 sm:$0xff]  }
 0x8e2   :  { %15481 = vmatprep.mubr.bf16.mxu0 %v13767_v8  ;;  %15645 = vmatprep.mubr.bf16.mxu1 %v13767_v8  ;;  %v13656_v5 = vmax.f32 %v19035_v13, 0.0  ;;  %v19646_v8 = vld [vmem:[#allocation6 + $0x7c4] ss:$16 sps:$4 sm:$0xff]   ;;  %v19752_v30 = vld [vmem:[#allocation15] ss:$8 sps:$4 sm:$0xff]  }
 0x8e3   :  { %15451 = vmatprep.subr.bf16.mxu0 %v19568_v2  ;;  %15615 = vmatprep.subr.bf16.mxu1 %v19571_v50  ;;  %v19835_v2 = vld [vmem:[#allocation10 + $0x1] ss:$4 sm:$0xff] }
 0x8e4   :  { %v13688_v50 = vrot.slane %v19835_v2, %v20676_v59  ;;  %v19758_v13 = vld [vmem:[#allocation15 + $0x20] ss:$8 sps:$4 sm:$0xff]   ;;  %v19767_v2 = vld [vmem:[#allocation15 + $0x50] ss:$8 sps:$4 sm:$0xff]  }
 0x8e5   :  { %15452 = vmatpush1.bf16.msra.mxu0 %v19566_v40  ;;  %15616 = vmatpush1.bf16.msra.mxu1 %v19569_v21  ;;  %v19649_v40 = vld [vmem:[#allocation6 + $0x7cc] ss:$16 sps:$4 sm:$0xff]   ;;  %v19644_v21 = vld [vmem:[#allocation6 + $0x7c0] ss:$16 sps:$4 sm:$0xff]  }
 0x8e6   :  { %15453 = vmatprep.subr.bf16.mxu0 %v19574_v48  ;;  %15617 = vmatprep.subr.bf16.mxu1 %v19577_v10  ;;  %v13707_v48 = vmul.f32 %v13688_v50, %v13656_v5  ;;  %v19836_v10 = vld [vmem:[#allocation10 + $0x2] ss:$4 sm:$0xff] }
 0x8e7   :  { %v19769_v5 = vld [vmem:[#allocation15 + $0x54] ss:$8 sps:$4 sm:$0xff]   ;;  %v19772_v50 = vld [vmem:[#allocation15 + $0x64] ss:$8 sps:$4 sm:$0xff]  }
 0x8e9   :  { %15454 = vmatpush1.bf16.msra.mxu0 %v19572_v25  ;;  %15618 = vmatpush1.bf16.msra.mxu1 %v19575_v43  ;;  %v13739_v25 = vrot.slane %v19836_v10, %v20676_v59  ;;  %v19652_v43 = vld [vmem:[#allocation6 + $0x7e4] ss:$16 sps:$4 sm:$0xff]   ;;  %v19659_v59 = vld [vmem:[#allocation7 + $0x10] ss:$8 sps:$4 sm:$0xff]  }
 0x8ea   :  { %15455 = vmatprep.subr.bf16.mxu0 %v19580_v16  ;;  %15619 = vmatprep.subr.bf16.mxu1 %v19583_v58  ;;  %v19655_v16 = vld [vmem:[#allocation6 + $0x7ec] ss:$16 sps:$4 sm:$0xff]   ;;  %v19650_v58 = vld [vmem:[#allocation6 + $0x7e0] ss:$16 sps:$4 sm:$0xff]  }
 0x8eb   :  { %v19781_v10 = vld [vmem:[#allocation15 + $0x94] ss:$8 sps:$4 sm:$0xff]  }
 0x8ed   :  { %15456 = vmatpush1.bf16.msra.mxu0 %v19578_v60  ;;  %15620 = vmatpush1.bf16.msra.mxu1 %v19581_v51  ;;  %v19653_v60 = vld [vmem:[#allocation6 + $0x7e8] ss:$16 sps:$4 sm:$0xff]   ;;  %v13758_v51 = vadd.f32 %v13739_v25, %v13707_v48 }
 0x8ee   :  { %15457 = vmatprep.subr.bf16.mxu0 %v19586_v57  ;;  %15621 = vmatprep.subr.bf16.mxu1 %v19589_v63  ;;  %v19658_v57 = vld [vmem:[#allocation7 + $0x4] ss:$8 sps:$4 sm:$0xff]   ;;  %v19656_v63 = vld [vmem:[#allocation7] ss:$8 sps:$4 sm:$0xff]  }
 0x8ef   :  { %v19776_v48 = vld [vmem:[#allocation15 + $0x80] ss:$8 sps:$4 sm:$0xff]   ;;  %v19779_v25 = vld [vmem:[#allocation15 + $0x90] ss:$8 sps:$4 sm:$0xff]  }
 0x8f1   :  { %15458 = vmatpush1.bf16.msra.mxu0 %v19584_v39  ;;  %15622 = vmatpush1.bf16.msra.mxu1 %v19587_v3  ;;  %v13766_v39 = vpack.c.bf16 %v13758_v51, %v13758_v51  ;;  %v19661_v3 = vld [vmem:[#allocation7 + $0x14] ss:$8 sps:$4 sm:$0xff]  }
 0x8f2   :  { %15459 = vmatprep.subr.bf16.mxu0 %v19592_v47  ;;  %15623 = vmatprep.subr.bf16.mxu1 %v19595_v27  ;;  %v19664_v47 = vld [vmem:[#allocation7 + $0x24] ss:$8 sps:$4 sm:$0xff]   ;;  %v19662_v27 = vld [vmem:[#allocation7 + $0x20] ss:$8 sps:$4 sm:$0xff]  }
 0x8f3   :  { %v19790_v51 = vld [vmem:[#allocation15 + $0xc4] ss:$8 sps:$4 sm:$0xff]  }
 0x8f5   :  { %15460 = vmatpush1.bf16.msra.mxu0 %v19590_v6  ;;  %15624 = vmatpush1.bf16.msra.mxu1 %v19593_v7  ;;  %v19667_v6 = vld [vmem:[#allocation7 + $0x34] ss:$8 sps:$4 sm:$0xff]   ;;  %v19665_v7 = vld [vmem:[#allocation7 + $0x30] ss:$8 sps:$4 sm:$0xff]  }
 0x8f6   :  { %15461 = vmatprep.subr.bf16.mxu0 %v19598_v17  ;;  %15625 = vmatprep.subr.bf16.mxu1 %v19601_v49  ;;  %v19670_v17 = vld [vmem:[#allocation7 + $0x44] ss:$8 sps:$4 sm:$0xff]   ;;  %v19668_v49 = vld [vmem:[#allocation7 + $0x40] ss:$8 sps:$4 sm:$0xff]  }
 0x8f9   :  { %15462 = vmatpush1.bf16.msra.mxu0 %v19596_v38  ;;  %15626 = vmatpush1.bf16.msra.mxu1 %v19599_v31  ;;  %v19673_v38 = vld [vmem:[#allocation7 + $0x54] ss:$8 sps:$4 sm:$0xff]   ;;  %v19671_v31 = vld [vmem:[#allocation7 + $0x50] ss:$8 sps:$4 sm:$0xff]  }
 0x8fa   :  { %15463 = vmatprep.subr.bf16.mxu0 %v19604_v46  ;;  %15627 = vmatprep.subr.bf16.mxu1 %v19607_v42  ;;  %v19676_v46 = vld [vmem:[#allocation7 + $0x64] ss:$8 sps:$4 sm:$0xff]   ;;  %v19674_v42 = vld [vmem:[#allocation7 + $0x60] ss:$8 sps:$4 sm:$0xff]  }
 0x8fd   :  { %15464 = vmatpush1.bf16.msra.mxu0 %v19602_v20  ;;  %15628 = vmatpush1.bf16.msra.mxu1 %v19605_v22  ;;  %v19679_v20 = vld [vmem:[#allocation7 + $0x74] ss:$8 sps:$4 sm:$0xff]   ;;  %v19677_v22 = vld [vmem:[#allocation7 + $0x70] ss:$8 sps:$4 sm:$0xff]  }
 0x8fe   :  { %15465 = vmatprep.subr.bf16.mxu0 %v19610_v1  ;;  %15629 = vmatprep.subr.bf16.mxu1 %v19613_v19  ;;  %v19682_v1 = vld [vmem:[#allocation7 + $0x84] ss:$8 sps:$4 sm:$0xff]   ;;  %v19680_v19 = vld [vmem:[#allocation7 + $0x80] ss:$8 sps:$4 sm:$0xff]  }
 0x901   :  { %15466 = vmatpush1.bf16.msra.mxu0 %v19608_v32  ;;  %15630 = vmatpush1.bf16.msra.mxu1 %v19611_v0  ;;  %v19685_v32 = vld [vmem:[#allocation7 + $0x94] ss:$8 sps:$4 sm:$0xff]   ;;  %v19683_v0 = vld [vmem:[#allocation7 + $0x90] ss:$8 sps:$4 sm:$0xff]  }
 0x902   :  { %15467 = vmatprep.subr.bf16.mxu0 %v19616_v11  ;;  %15631 = vmatprep.subr.bf16.mxu1 %v19619_v12  ;;  %v19688_v11 = vld [vmem:[#allocation7 + $0xa4] ss:$8 sps:$4 sm:$0xff]   ;;  %v19686_v12 = vld [vmem:[#allocation7 + $0xa0] ss:$8 sps:$4 sm:$0xff]  }
 0x905   :  { %15468 = vmatpush1.bf16.msra.mxu0 %v19614_v28  ;;  %15632 = vmatpush1.bf16.msra.mxu1 %v19617_v36  ;;  %v19691_v28 = vld [vmem:[#allocation7 + $0xb4] ss:$8 sps:$4 sm:$0xff]   ;;  %v19689_v36 = vld [vmem:[#allocation7 + $0xb0] ss:$8 sps:$4 sm:$0xff]  }
 0x906   :  { %15469 = vmatprep.subr.bf16.mxu0 %v19622_v24  ;;  %15633 = vmatprep.subr.bf16.mxu1 %v19625_v37  ;;  %v19694_v24 = vld [vmem:[#allocation7 + $0xc4] ss:$8 sps:$4 sm:$0xff]   ;;  %v19692_v37 = vld [vmem:[#allocation7 + $0xc0] ss:$8 sps:$4 sm:$0xff]  }
 0x909   :  { %15470 = vmatpush1.bf16.msra.mxu0 %v19620_v9  ;;  %15634 = vmatpush1.bf16.msra.mxu1 %v19623_v44  ;;  %v19697_v9 = vld [vmem:[#allocation7 + $0xd4] ss:$8 sps:$4 sm:$0xff]   ;;  %v19695_v44 = vld [vmem:[#allocation7 + $0xd0] ss:$8 sps:$4 sm:$0xff]  }
 0x90a   :  { %15471 = vmatprep.subr.bf16.mxu0 %v19628_v54  ;;  %15635 = vmatprep.subr.bf16.mxu1 %v19631_v29  ;;  %v19700_v54 = vld [vmem:[#allocation7 + $0xe4] ss:$8 sps:$4 sm:$0xff]   ;;  %v19698_v29 = vld [vmem:[#allocation7 + $0xe0] ss:$8 sps:$4 sm:$0xff]  }
 0x90d   :  { %15472 = vmatpush1.bf16.msra.mxu0 %v19626_v23  ;;  %15636 = vmatpush1.bf16.msra.mxu1 %v19629_v15  ;;  %v19703_v23 = vld [vmem:[#allocation7 + $0xf4] ss:$8 sps:$4 sm:$0xff]   ;;  %v19701_v15 = vld [vmem:[#allocation7 + $0xf0] ss:$8 sps:$4 sm:$0xff]  }
 0x90e   :  { %15473 = vmatprep.subr.bf16.mxu0 %v19634_v14  ;;  %15637 = vmatprep.subr.bf16.mxu1 %v19637_v35  ;;  %v19754_v14 = vld [vmem:[#allocation15 + $0x4] ss:$8 sps:$4 sm:$0xff]   ;;  %v19757_v35 = vld [vmem:[#allocation15 + $0x14] ss:$8 sps:$4 sm:$0xff]  }
 0x911   :  { %15474 = vmatpush1.bf16.msra.mxu0 %v19632_v33  ;;  %15638 = vmatpush1.bf16.msra.mxu1 %v19635_v61  ;;  %v19755_v33 = vld [vmem:[#allocation15 + $0x10] ss:$8 sps:$4 sm:$0xff]   ;;  %v19760_v61 = vld [vmem:[#allocation15 + $0x24] ss:$8 sps:$4 sm:$0xff]  }
 0x912   :  { %15475 = vmatprep.subr.bf16.mxu0 %v19640_v55  ;;  %15639 = vmatprep.subr.bf16.mxu1 %v19643_v53  ;;  %v19763_v55 = vld [vmem:[#allocation15 + $0x34] ss:$8 sps:$4 sm:$0xff]   ;;  %v19761_v53 = vld [vmem:[#allocation15 + $0x30] ss:$8 sps:$4 sm:$0xff]  }
 0x915   :  { %15476 = vmatpush1.bf16.msra.mxu0 %v19638_v34  ;;  %15640 = vmatpush1.bf16.msra.mxu1 %v19641_v4  ;;  %v19766_v34 = vld [vmem:[#allocation15 + $0x44] ss:$8 sps:$4 sm:$0xff]   ;;  %v19764_v4 = vld [vmem:[#allocation15 + $0x40] ss:$8 sps:$4 sm:$0xff]  }
 0x916   :  { %15477 = vmatprep.subr.bf16.mxu0 %v19646_v8  ;;  %15641 = vmatprep.subr.bf16.mxu1 %v19649_v40  ;;  %v19770_v8 = vld [vmem:[#allocation15 + $0x60] ss:$8 sps:$4 sm:$0xff]   ;;  %v19775_v40 = vld [vmem:[#allocation15 + $0x74] ss:$8 sps:$4 sm:$0xff]  }
 0x919   :  { %15478 = vmatpush1.bf16.msra.mxu0 %v19644_v21  ;;  %15642 = vmatpush1.bf16.msra.mxu1 %v19647_v26  ;;  %v19773_v21 = vld [vmem:[#allocation15 + $0x70] ss:$8 sps:$4 sm:$0xff]   ;;  %v19778_v26 = vld [vmem:[#allocation15 + $0x84] ss:$8 sps:$4 sm:$0xff]  }
 0x91a   :  { %15479 = vmatprep.subr.bf16.mxu0 %v19652_v43  ;;  %15643 = vmatprep.subr.bf16.mxu1 %v19655_v16  ;;  %v19784_v43 = vld [vmem:[#allocation15 + $0xa4] ss:$8 sps:$4 sm:$0xff]   ;;  %v19782_v16 = vld [vmem:[#allocation15 + $0xa0] ss:$8 sps:$4 sm:$0xff]  }
 0x91d   :  { %15480 = vmatpush1.bf16.msra.mxu0 %v19650_v58  ;;  %15644 = vmatpush1.bf16.msra.mxu1 %v19653_v60  ;;  %v19787_v58 = vld [vmem:[#allocation15 + $0xb4] ss:$8 sps:$4 sm:$0xff]   ;;  %v19785_v60 = vld [vmem:[#allocation15 + $0xb0] ss:$8 sps:$4 sm:$0xff]  }
 0x91e   :  { %16112 = vmatprep.subr.bf16.mxu0 %v19658_v57  ;;  %16432 = vmatprep.subr.bf16.mxu1 %v19754_v14  ;;  %v14024_v57 = vld [vmem:[#allocation12] ss:$4 sm:$0xf] }
 0x920   :  { %15482 = vmatmul.mubr.bf16.vlgmr.msra.gmra.mrb[24].mxu0 %v13766_v39  ;;  %15646 = vmatmul.mubr.bf16.vlgmr.msra.gmra.mrb[24].mxu1 %v13766_v39  ;;  %v14029_v39 = vrot.slane %v14024_v57, %v20578_v45 }
 0x921   :  { %16113 = vmatpush1.bf16.msra.mxu0 %v19656_v63  ;;  %16433 = vmatpush1.bf16.msra.mxu1 %v19752_v30  ;;  %v19788_v63 = vld [vmem:[#allocation15 + $0xc0] ss:$8 sps:$4 sm:$0xff]  }
 0x922   :  { %16114 = vmatprep.subr.bf16.mxu0 %v19661_v3  ;;  %16434 = vmatprep.subr.bf16.mxu1 %v19757_v35  ;;  %v14037_v3 = vrot.slane %v14024_v57, %v20606_v62 }
 0x925   :  { %16115 = vmatpush1.bf16.msra.mxu0 %v19659_v59  ;;  %16435 = vmatpush1.bf16.msra.mxu1 %v19755_v33  ;;  %v15659_v59 = vld [vmem:[#allocation12 + $0x1] ss:$4 sm:$0xf] }
 0x926   :  { %16116 = vmatprep.subr.bf16.mxu0 %v19664_v47  ;;  %16436 = vmatprep.subr.bf16.mxu1 %v19760_v61  ;;  %v14033_v47 = vrot.slane %v14024_v57, %v20548_v56 }
 0x929   :  { %16117 = vmatpush1.bf16.msra.mxu0 %v19662_v27  ;;  %16437 = vmatpush1.bf16.msra.mxu1 %v19758_v13  ;;  %v14041_v27 = vrot.slane %v14024_v57, %v20581_v52  ;;  %v19731_v57 = vld [vmem:[#allocation7 + $0x190] ss:$8 sps:$4 sm:$0xff]  }
 0x92a   :  { %16118 = vmatprep.subr.bf16.mxu0 %v19667_v6  ;;  %16438 = vmatprep.subr.bf16.mxu1 %v19763_v55 }
 0x92d   :  { %16119 = vmatpush1.bf16.msra.mxu0 %v19665_v7  ;;  %16439 = vmatpush1.bf16.msra.mxu1 %v19761_v53  ;;  %v15686_v7 = vld [vmem:[#allocation12 + $0x2] ss:$4 sm:$0xf] }
 0x92e   :  { %16120 = vmatprep.subr.bf16.mxu0 %v19670_v17  ;;  %16440 = vmatprep.subr.bf16.mxu1 %v19766_v34  ;;  %v19704_v53 = vld [vmem:[#allocation7 + $0x100] ss:$8 sps:$4 sm:$0xff]   ;;  %v19709_v34 = vld [vmem:[#allocation7 + $0x114] ss:$8 sps:$4 sm:$0xff]  }
 0x931   :  { %16121 = vmatpush1.bf16.msra.mxu0 %v19668_v49  ;;  %16441 = vmatpush1.bf16.msra.mxu1 %v19764_v4 }
 0x932   :  { %16122 = vmatprep.subr.bf16.mxu0 %v19673_v38  ;;  %16442 = vmatprep.subr.bf16.mxu1 %v19769_v5  ;;  %v15664_v38 = vrot.slane %v15659_v59, %v20578_v45  ;;  %v19707_v5 = vld [vmem:[#allocation7 + $0x110] ss:$8 sps:$4 sm:$0xff]  }
 0x935   :  { %16123 = vmatpush1.bf16.msra.mxu0 %v19671_v31  ;;  %16443 = vmatpush1.bf16.msra.mxu1 %v19767_v2  ;;  %v19710_v2 = vld [vmem:[#allocation7 + $0x120] ss:$8 sps:$4 sm:$0xff]  }
 0x936   :  { %16124 = vmatprep.subr.bf16.mxu0 %v19676_v46  ;;  %16444 = vmatprep.subr.bf16.mxu1 %v19772_v50  ;;  %v15672_v46 = vrot.slane %v15659_v59, %v20606_v62  ;;  %v19715_v50 = vld [vmem:[#allocation7 + $0x134] ss:$8 sps:$4 sm:$0xff]  }
 0x939   :  { %16125 = vmatpush1.bf16.msra.mxu0 %v19674_v42  ;;  %16445 = vmatpush1.bf16.msra.mxu1 %v19770_v8  ;;  %v19713_v8 = vld [vmem:[#allocation7 + $0x130] ss:$8 sps:$4 sm:$0xff]  }
 0x93a   :  { %16126 = vmatprep.subr.bf16.mxu0 %v19679_v20  ;;  %16446 = vmatprep.subr.bf16.mxu1 %v19775_v40  ;;  %v19718_v40 = vld [vmem:[#allocation7 + $0x144] ss:$8 sps:$4 sm:$0xff]  }
 0x93d   :  { %16127 = vmatpush1.bf16.msra.mxu0 %v19677_v22  ;;  %16447 = vmatpush1.bf16.msra.mxu1 %v19773_v21  ;;  %v19716_v21 = vld [vmem:[#allocation7 + $0x140] ss:$8 sps:$4 sm:$0xff]  }
 0x93e   :  { %16128 = vmatprep.subr.bf16.mxu0 %v19682_v1  ;;  %16448 = vmatprep.subr.bf16.mxu1 %v19778_v26  ;;  %v15668_v1 = vrot.slane %v15659_v59, %v20548_v56  ;;  %v19721_v26 = vld [vmem:[#allocation7 + $0x154] ss:$8 sps:$4 sm:$0xff]  }
 0x941   :  { %16129 = vmatpush1.bf16.msra.mxu0 %v19680_v19  ;;  %16449 = vmatpush1.bf16.msra.mxu1 %v19776_v48  ;;  %v19719_v48 = vld [vmem:[#allocation7 + $0x150] ss:$8 sps:$4 sm:$0xff]  }
 0x942   :  { %16130 = vmatprep.subr.bf16.mxu0 %v19685_v32  ;;  %16450 = vmatprep.subr.bf16.mxu1 %v19781_v10  ;;  %v15676_v32 = vrot.slane %v15659_v59, %v20581_v52  ;;  %v19724_v10 = vld [vmem:[#allocation7 + $0x164] ss:$8 sps:$4 sm:$0xff]   ;;  %v19737_v59 = vld [vmem:[#allocation7 + $0x1b0] ss:$8 sps:$4 sm:$0xff]  }
 0x945   :  { %16131 = vmatpush1.bf16.msra.mxu0 %v19683_v0  ;;  %16451 = vmatpush1.bf16.msra.mxu1 %v19779_v25  ;;  %v19722_v25 = vld [vmem:[#allocation7 + $0x160] ss:$8 sps:$4 sm:$0xff]  }
 0x946   :  { %16132 = vmatprep.subr.bf16.mxu0 %v19688_v11  ;;  %16452 = vmatprep.subr.bf16.mxu1 %v19784_v43  ;;  %v19727_v43 = vld [vmem:[#allocation7 + $0x174] ss:$8 sps:$4 sm:$0xff]  }
 0x949   :  { %16133 = vmatpush1.bf16.msra.mxu0 %v19686_v12  ;;  %16453 = vmatpush1.bf16.msra.mxu1 %v19782_v16  ;;  %v19725_v16 = vld [vmem:[#allocation7 + $0x170] ss:$8 sps:$4 sm:$0xff]  }
 0x94a   :  { %16134 = vmatprep.subr.bf16.mxu0 %v19691_v28  ;;  %16454 = vmatprep.subr.bf16.mxu1 %v19787_v58  ;;  %v15691_v28 = vrot.slane %v15686_v7, %v20578_v45  ;;  %v19730_v58 = vld [vmem:[#allocation7 + $0x184] ss:$8 sps:$4 sm:$0xff]  }
 0x94d   :  { %16135 = vmatpush1.bf16.msra.mxu0 %v19689_v36  ;;  %16455 = vmatpush1.bf16.msra.mxu1 %v19785_v60  ;;  %v19728_v60 = vld [vmem:[#allocation7 + $0x180] ss:$8 sps:$4 sm:$0xff]  }
 0x94e   :  { %16136 = vmatprep.subr.bf16.mxu0 %v19694_v24  ;;  %16456 = vmatprep.subr.bf16.mxu1 %v19790_v51  ;;  %v15699_v24 = vrot.slane %v15686_v7, %v20606_v62  ;;  %v19733_v51 = vld [vmem:[#allocation7 + $0x194] ss:$8 sps:$4 sm:$0xff]  }
 0x951   :  { %16137 = vmatpush1.bf16.msra.mxu0 %v19692_v37  ;;  %16457 = vmatpush1.bf16.msra.mxu1 %v19788_v63  ;;  %v19736_v63 = vld [vmem:[#allocation7 + $0x1a4] ss:$8 sps:$4 sm:$0xff]  }
 0x952   :  { %16138 = vmatprep.subr.bf16.mxu0 %v19697_v9 }
 0x955   :  { %16139 = vmatpush1.bf16.msra.mxu0 %v19695_v44 }
 0x956   :  { %16140 = vmatprep.subr.bf16.mxu0 %v19700_v54 }
 0x959   :  { %16141 = vmatpush1.bf16.msra.mxu0 %v19698_v29  ;;  %v15695_v29 = vrot.slane %v15686_v7, %v20548_v56 }
 0x95a   :  { %16142 = vmatprep.subr.bf16.mxu0 %v19703_v23  ;;  %v15703_v23 = vrot.slane %v15686_v7, %v20581_v52  ;;  %v19712_v52 = vld [vmem:[#allocation7 + $0x124] ss:$8 sps:$4 sm:$0xff]   ;;  %v19743_v7 = vld [vmem:[#allocation7 + $0x1d0] ss:$8 sps:$4 sm:$0xff]  }
 0x95d   :  { %16143 = vmatpush1.bf16.msra.mxu0 %v19701_v15 }
 0x95e   :  { %16153 = vmatprep.subr.bf16.mxu0 %v19706_v18 }
 0x9f3   :  { %v15483_v6 = vpop.f32.mrb[24].mxu0  ;;  %v15647_v17 = vpop.f32.mrb[24].mxu1 }
 0x9f4   :  { %v19037_v49 = vadd.f32 %v15483_v6, %v14029_v39  ;;  %v19039_v31 = vadd.f32 %v15647_v17, %v14037_v3  ;;  %v15485_v42 = vpop.f32.mrb[25].mxu0  ;;  %v15649_v20 = vpop.f32.mrb[25].mxu1  ;;  %v19734_v39 = vld [vmem:[#allocation7 + $0x1a0] ss:$8 sps:$4 sm:$0xff]   ;;  %v19739_v3 = vld [vmem:[#allocation7 + $0x1b4] ss:$8 sps:$4 sm:$0xff]  }
 0x9f5   :  { %v19038_v22 = vadd.f32 %v15485_v42, %v14033_v47  ;;  %v19040_v19 = vadd.f32 %v15649_v20, %v14041_v27  ;;  %v15487_v0 = vpop.f32.mrb[26].mxu0  ;;  %v15651_v11 = vpop.f32.mrb[26].mxu1  ;;  %v19742_v47 = vld [vmem:[#allocation7 + $0x1c4] ss:$8 sps:$4 sm:$0xff]   ;;  %v19740_v27 = vld [vmem:[#allocation7 + $0x1c0] ss:$8 sps:$4 sm:$0xff]  }
 0x9f6   :  { %v15654_v12 = vmax.f32 %v19037_v49, 0.0  ;;  %v15656_v36 = vmax.f32 %v19039_v31, 0.0  ;;  %v15488_v37 = vpop.f32.mrb[27].mxu0  ;;  %v15652_v9 = vpop.f32.mrb[27].mxu1  ;;  %v19745_v6 = vld [vmem:[#allocation7 + $0x1d4] ss:$8 sps:$4 sm:$0xff]  }
 0x9f7   :  { %v15655_v44 = vmax.f32 %v19038_v22, 0.0  ;;  %v15657_v54 = vmax.f32 %v19040_v19, 0.0  ;;  %v19748_v17 = vld [vmem:[#allocation7 + $0x1e4] ss:$8 sps:$4 sm:$0xff]   ;;  %v19746_v49 = vld [vmem:[#allocation7 + $0x1e0] ss:$8 sps:$4 sm:$0xff]  }
 0x9f8   :  { %v15681_v15 = vmul.f32 %v15664_v38, %v15654_v12  ;;  %v15683_v18 = vmul.f32 %v15672_v46, %v15656_v36  ;;  %v19751_v38 = vld [vmem:[#allocation7 + $0x1f4] ss:$8 sps:$4 sm:$0xff]   ;;  %v19749_v31 = vld [vmem:[#allocation7 + $0x1f0] ss:$8 sps:$4 sm:$0xff]  }
 0x9f9   :  { %v15682_v30 = vmul.f32 %v15668_v1, %v15655_v44  ;;  %v15684_v14 = vmul.f32 %v15676_v32, %v15657_v54  ;;  %v19793_v42 = vld [vmem:[#allocation15 + $0xd4] ss:$8 sps:$4 sm:$0xff]   ;;  %v19791_v20 = vld [vmem:[#allocation15 + $0xd0] ss:$8 sps:$4 sm:$0xff]   ;;  %v19796_v22 = vld [vmem:[#allocation15 + $0xe4] ss:$8 sps:$4 sm:$0xff]  }
 0x9fa   :  { %v15708_v35 = vadd.f32 %v15691_v28, %v15681_v15  ;;  %v20899_v33 = vadd.f32 %v15699_v24, %v15683_v18  ;;  %16458 = vmatprep.subr.bf16.mxu1 %v19793_v42  ;;  %v19794_v1 = vld [vmem:[#allocation15 + $0xe0] ss:$8 sps:$4 sm:$0xff]   ;;  %v19799_v19 = vld [vmem:[#allocation15 + $0xf4] ss:$8 sps:$4 sm:$0xff]   ;;  %v19797_v32 = vld [vmem:[#allocation15 + $0xf0] ss:$8 sps:$4 sm:$0xff]  }
 0x9fb   :  { %v15709_v61 = vadd.f32 %v15695_v29, %v15682_v30  ;;  %v15711_v13 = vadd.f32 %v15703_v23, %v15684_v14  ;;  %16459 = vmatpush1.bf16.msra.mxu1 %v19791_v20  ;;  %v19800_v0 = vld [vmem:[#allocation18 + $0x40] sm:$0xff]   ;;  %v15780_v11 = vld [vmem:[#allocation13] ss:$4 sm:$0x3]  ;;  %v19821_v20 = vld [vmem:[#allocation21 + $0x28] sm:$0xff]  }
 0x9fc   :  { %v15712_v62 = vpack.c.bf16 %v15708_v35, %v15708_v35  ;;  %v15714_v46 = vpack.c.bf16 %v20899_v33, %v20899_v33  ;;  %16460 = vmatprep.subr.bf16.mxu1 %v19796_v22  ;;  %v15785_v12 = vrot.slane %v15780_v11, %v20578_v45  ;;  %v16197_v28 = vld [vmem:[#allocation13 + $0x1] ss:$4 sm:$0x3]  ;;  %v15789_v36 = vrot.slane %v15780_v11, %v20548_v56  ;;  %v16212_v37 = vld [vmem:[#allocation13 + $0x2] ss:$4 sm:$0x3] }
 0x9fd   :  { %v15713_v55 = vpack.c.bf16 %v15709_v61, %v15709_v61  ;;  %v15715_v4 = vpack.c.bf16 %v15711_v13, %v15711_v13  ;;  %v16202_v44 = vrot.slane %v16197_v28, %v20578_v45  ;;  %v16206_v23 = vrot.slane %v16197_v28, %v20548_v56  ;;  %v19820_v42 = vld [vmem:[#allocation21 + $0x20] sm:$0xff]   ;;  %v19822_v22 = vld [vmem:[#allocation21 + $0x30] sm:$0xff]  }
 0x9fe   :  { %v16217_v30 = vrot.slane %v16212_v37, %v20578_v45  ;;  %v16221_v33 = vrot.slane %v16212_v37, %v20548_v56 }
 0x9ff   :  { %16144 = vmatprep.mubr.bf16.mxu0 %v15713_v55  ;;  %16461 = vmatpush1.bf16.msra.mxu1 %v19794_v1  ;;  %v19823_v1 = vld [vmem:[#allocation21 + $0x38] sm:$0xff]  }
 0xa00   :  { %16145 = vmatmul.mubr.bf16.vlgmr.msra.gmra.mrb[28].mxu0 %v15712_v62  ;;  %16462 = vmatprep.subr.bf16.mxu1 %v19799_v19 }
 0xa01   :  { %16154 = vmatpush1.bf16.msra.mxu0 %v19704_v53  ;;  %16185 = vmatprep.mubr.bf16.mxu0 %v15715_v4 }
 0xa02   :  { %16155 = vmatprep.subr.bf16.mxu0 %v19709_v34  ;;  %v19801_v34 = vld [vmem:[#allocation18] sm:$0xff]  }
 0xa03   :  { %16463 = vmatpush1.bf16.msra.mxu1 %v19797_v32  ;;  %v18936_v32 = vld [vmem:[#allocation19] ss:$0 sm:$0xff] }
 0xa04   :  { %18962 = vmatprep.subr.bf16.mxu1 %v19800_v0 }
 0xa05   :  { %16156 = vmatpush1.bf16.msra.mxu0 %v19707_v5  ;;  %v19802_v5 = vld [vmem:[#allocation18 + $0x48] sm:$0xff]  }
 0xa06   :  { %16157 = vmatprep.subr.bf16.mxu0 %v19712_v52  ;;  %v19803_v52 = vld [vmem:[#allocation18 + $0x8] sm:$0xff]  }
 0xa09   :  { %16158 = vmatpush1.bf16.msra.mxu0 %v19710_v2  ;;  %v19804_v2 = vld [vmem:[#allocation18 + $0x50] sm:$0xff]  }
 0xa0a   :  { %16159 = vmatprep.subr.bf16.mxu0 %v19715_v50  ;;  %v19805_v50 = vld [vmem:[#allocation18 + $0x10] sm:$0xff]  }
 0xa0d   :  { %16160 = vmatpush1.bf16.msra.mxu0 %v19713_v8  ;;  %v19806_v8 = vld [vmem:[#allocation18 + $0x58] sm:$0xff]  }
 0xa0e   :  { %16161 = vmatprep.subr.bf16.mxu0 %v19718_v40  ;;  %v19807_v40 = vld [vmem:[#allocation18 + $0x18] sm:$0xff]  }
 0xa11   :  { %16162 = vmatpush1.bf16.msra.mxu0 %v19716_v21  ;;  %v19808_v21 = vld [vmem:[#allocation18 + $0x60] sm:$0xff]  }
 0xa12   :  { %16163 = vmatprep.subr.bf16.mxu0 %v19721_v26  ;;  %v19809_v26 = vld [vmem:[#allocation18 + $0x20] sm:$0xff]  }
 0xa15   :  { %16164 = vmatpush1.bf16.msra.mxu0 %v19719_v48  ;;  %v19810_v48 = vld [vmem:[#allocation18 + $0x68] sm:$0xff]  }
 0xa16   :  { %16165 = vmatprep.subr.bf16.mxu0 %v19724_v10  ;;  %v19811_v10 = vld [vmem:[#allocation18 + $0x28] sm:$0xff]  }
 0xa19   :  { %16166 = vmatpush1.bf16.msra.mxu0 %v19722_v25  ;;  %v19812_v25 = vld [vmem:[#allocation18 + $0x70] sm:$0xff]  }
 0xa1a   :  { %16167 = vmatprep.subr.bf16.mxu0 %v19727_v43  ;;  %v19813_v43 = vld [vmem:[#allocation18 + $0x30] sm:$0xff]  }
 0xa1d   :  { %16168 = vmatpush1.bf16.msra.mxu0 %v19725_v16  ;;  %v19814_v16 = vld [vmem:[#allocation18 + $0x78] sm:$0xff]  }
 0xa1e   :  { %16169 = vmatprep.subr.bf16.mxu0 %v19730_v58  ;;  %v19815_v58 = vld [vmem:[#allocation18 + $0x38] sm:$0xff]  }
 0xa21   :  { %16170 = vmatpush1.bf16.msra.mxu0 %v19728_v60  ;;  %v20184_v60 = vmov 0.0  }
 0xa22   :  { %16171 = vmatprep.subr.bf16.mxu0 %v19733_v51  ;;  %v16260_v51 = vld [vmem:[#allocation16] sm:$0x3] }
 0xa25   :  { %16172 = vmatpush1.bf16.msra.mxu0 %v19731_v57  ;;  %v16265_v57 = vrot.slane %v16260_v51, %v20578_v45  ;;  %v19818_v45 = vld [vmem:[#allocation21 + $0x10] sm:$0xff]  }
 0xa26   :  { %16173 = vmatprep.subr.bf16.mxu0 %v19736_v63  ;;  %v16269_v63 = vrot.slane %v16260_v51, %v20548_v56  ;;  %v19819_v56 = vld [vmem:[#allocation21 + $0x18] sm:$0xff]  }
 0xa29   :  { %16174 = vmatpush1.bf16.msra.mxu0 %v19734_v39 }
 0xa2a   :  { %16175 = vmatprep.subr.bf16.mxu0 %v19739_v3 }
 0xa2d   :  { %16176 = vmatpush1.bf16.msra.mxu0 %v19737_v59 }
 0xa2e   :  { %16177 = vmatprep.subr.bf16.mxu0 %v19742_v47 }
 0xa31   :  { %16178 = vmatpush1.bf16.msra.mxu0 %v19740_v27 }
 0xa32   :  { %16179 = vmatprep.subr.bf16.mxu0 %v19745_v6 }
 0xa35   :  { %16180 = vmatpush1.bf16.msra.mxu0 %v19743_v7 }
 0xa36   :  { %16181 = vmatprep.subr.bf16.mxu0 %v19748_v17 }
 0xa39   :  { %16182 = vmatpush1.bf16.msra.mxu0 %v19746_v49 }
 0xa3a   :  { %16183 = vmatprep.subr.bf16.mxu0 %v19751_v38  ;;  %v19816_v38 = vld [vmem:[#allocation21] sm:$0xff]  }
 0xa3d   :  { %16184 = vmatpush1.bf16.msra.mxu0 %v19749_v31 }
 0xa40   :  { %16186 = vmatmul.mubr.bf16.vlgmr.msra.gmra.mrb[28].mxu0 %v15714_v46  ;;  %v19817_v46 = vld [vmem:[#allocation21 + $0x8] sm:$0xff]  }
 0xb13   :  { %v16187_v24 = vpop.f32.mrb[28].mxu0 }
 0xb14   :  { %v19041_v9 = vadd.f32 %v16187_v24, %v15785_v12  ;;  %v16189_v54 = vpop.f32.mrb[29].mxu0 }
 0xb15   :  { %v19042_v29 = vadd.f32 %v16189_v54, %v15789_v36  ;;  %v16191_v15 = vpop.f32.mrb[30].mxu0 }
 0xb16   :  { %v16194_v18 = vmax.f32 %v19041_v9, 0.0  ;;  %v16192_v14 = vpop.f32.mrb[31].mxu0  ;;  %v18953_v9 = vld [vmem:[#allocation22] ss:$0 sm:$0xff] }
 0xb17   :  { %v16195_v35 = vmax.f32 %v19042_v29, 0.0 }
 0xb18   :  { %v16209_v61 = vmul.f32 %v16202_v44, %v16194_v18 }
 0xb19   :  { %v16210_v13 = vmul.f32 %v16206_v23, %v16195_v35 }
 0xb1a   :  { %v16224_v55 = vadd.f32 %v16217_v30, %v16209_v61  ;;  %v16776_v61 = vand.u32 127, %v1012_v41 }
 0xb1b   :  { %v16225_v53 = vadd.f32 %v16221_v33, %v16210_v13 }
 0xb1c   :  { %v16226_v4 = vpack.c.bf16 %v16224_v55, %v16224_v55  ;;  %vm16777_vm1 = vcmp.eq.s32.totalorder %v16776_v61, 0 }
 0xb1d   :  { %v16227_v62 = vpack.c.bf16 %v16225_v53, %v16225_v53 }
 0xb1f   :  { %16464 = vmatprep.mubr.bf16.mxu1 %v16227_v62 }
 0xb20   :  { %16465 = vmatmul.mubr.bf16.vlgmr.msra.gmra.mrb[28].mxu1 %v16226_v4 }
 0xb21   :  { %18963 = vmatpush3.bf16.msra.mxu1 %v19801_v34 }
 0xb22   :  { %18964 = vmatprep.subr.bf16.mxu1 %v19802_v5 }
 0xb25   :  { %18965 = vmatpush3.bf16.msra.mxu1 %v19803_v52 }
 0xb26   :  { %18966 = vmatprep.subr.bf16.mxu1 %v19804_v2 }
 0xb29   :  { %18967 = vmatpush3.bf16.msra.mxu1 %v19805_v50 }
 0xb2a   :  { %18968 = vmatprep.subr.bf16.mxu1 %v19806_v8 }
 0xb2d   :  { %18969 = vmatpush3.bf16.msra.mxu1 %v19807_v40 }
 0xb2e   :  { %18970 = vmatprep.subr.bf16.mxu1 %v19808_v21 }
 0xb31   :  { %18971 = vmatpush3.bf16.msra.mxu1 %v19809_v26 }
 0xb32   :  { %18972 = vmatprep.subr.bf16.mxu1 %v19810_v48 }
 0xb35   :  { %18973 = vmatpush3.bf16.msra.mxu1 %v19811_v10 }
 0xb36   :  { %18974 = vmatprep.subr.bf16.mxu1 %v19812_v25 }
 0xb39   :  { %18975 = vmatpush3.bf16.msra.mxu1 %v19813_v43 }
 0xb3a   :  { %18976 = vmatprep.subr.bf16.mxu1 %v19814_v16 }
 0xb3d   :  { %18977 = vmatpush3.bf16.msra.mxu1 %v19815_v58 }
 0xb3e   :  { %18993 = vmatprep.subr.bf16.mxu1 %v20184_v60 }
 0xbf3   :  { %v16466_v39 = vpop.f32.mrb[28].mxu1 }
 0xbf4   :  { %v16467_v3 = vadd.f32 %v16466_v39, %v16265_v57  ;;  %v16468_v59 = vpop.f32.mrb[29].mxu1 }
 0xbf5   :  { %v16469_v47 = vadd.f32 %v16468_v59, %v16269_v63  ;;  %v16470_v27 = vpop.f32.mrb[30].mxu1 }
 0xbf6   :  { %v16473_v6 = vmax.f32 %v16467_v3, 0.0  ;;  %v16471_v7 = vpop.f32.mrb[31].mxu1 }
 0xbf7   :  { %v16474_v17 = vmax.f32 %v16469_v47, 0.0 }
 0xbf8   :  { %v16475_v31 = vpack.c.bf16 %v16473_v6, %v16473_v6 }
 0xbf9   :  { %v16476_v49 = vpack.c.bf16 %v16474_v17, %v16474_v17 }
 0xbfb   :  { %16644 = vmatprep.mubr.bf16.mxu1 %v16476_v49 }
 0xbfc   :  { %16645 = vmatmul.mubr.bf16.vlgmr.msra.gmra.mrb[32].mxu1 %v16475_v31 }
 0xbfd   :  { %18994 = vmatpush3.bf16.msra.mxu1 %v19816_v38  ;;  %19009 = vmatprep.mubr.msk.bf16.mxu1 %vm20185_vm0, %v20184_v60 }
 0xbfe   :  { %18995 = vmatprep.subr.bf16.mxu1 %v20184_v60 }
 0xc01   :  { %18996 = vmatpush3.bf16.msra.mxu1 %v19817_v46 }
 0xc02   :  { %18997 = vmatprep.subr.bf16.mxu1 %v20184_v60 }
 0xc05   :  { %18998 = vmatpush3.bf16.msra.mxu1 %v19818_v45 }
 0xc06   :  { %18999 = vmatprep.subr.bf16.mxu1 %v20184_v60 }
 0xc09   :  { %19000 = vmatpush3.bf16.msra.mxu1 %v19819_v56 }
 0xc0a   :  { %19001 = vmatprep.subr.bf16.mxu1 %v20184_v60 }
 0xc0d   :  { %19002 = vmatpush3.bf16.msra.mxu1 %v19820_v42 }
 0xc0e   :  { %19003 = vmatprep.subr.bf16.mxu1 %v20184_v60 }
 0xc11   :  { %19004 = vmatpush3.bf16.msra.mxu1 %v19821_v20 }
 0xc12   :  { %19005 = vmatprep.subr.bf16.mxu1 %v20184_v60 }
 0xc15   :  { %19006 = vmatpush3.bf16.msra.mxu1 %v19822_v22 }
 0xc16   :  { %19007 = vmatprep.subr.bf16.mxu1 %v20184_v60 }
 0xc19   :  { %19008 = vmatpush3.bf16.msra.mxu1 %v19823_v1 }
 0xccf   :  { %v18978_v19 = vpop.f32.mrb[32].mxu1 }
 0xcd0   :  { %v18979_v0 = vpop.f32.mrb[33].mxu1 }
 0xcd1   :  { %v18980_v11 = vadd.f32 %v18979_v0, %v18978_v19  ;;  %v18981_v12 = vpop.f32.mrb[34].mxu1 }
 0xcd2   :  { %v18982_v28 = vpop.f32.mrb[35].mxu1 }
 0xcd3   :  { %v16647_v36 = vadd.f32 %v18980_v11, %v18936_v32 }
 0xcd5   :  { %v16652_v24 = vmax.f32 %v16647_v36, 0.0 }
 0xcd7   :  { %v16653_v37 = vpack.c.bf16 %v16652_v24, %v16652_v24 }
 0xcd9   :  { %19010 = vmatmul.mubr.bf16.vlgmr.msra.gmra.mrb[36].mxu1 %v16653_v37 }
 0xdac   :  { %v16759_v44 = vpop.f32.mrb[36].mxu1 }
 0xdad   :  { %v16760_v54 = vadd.f32 %v18953_v9, %v16759_v44  ;;  %v19011_v29 = vpop.f32.mrb[37].mxu1 }
 0xdae   :  { %v16762_v23 = vpop.f32.mrb[38].mxu1 }
 0xdaf   :  { %v16765_v15 = vand.u32 2147483647, %v16760_v54  ;;  %v19012_v18 = vpop.f32.mrb[39].mxu1  ;;  %vm16769_vm2 = vcmp.ge.f32.partialorder %v16760_v54, 0.0 }
 0xdb1   :  { %v16766_v30 = vsub.f32 0.0, %v16765_v15 }
 0xdb3   :  { %v16767_v14 = vmul.f32 1.442695, %v16766_v30 }
 0xdb5   :  { %19824 = vpow2.f32 %v16767_v14 }
 0xdbf   :  { %v19825_v35 = vpop.eup %19824 }
 0xdc0   :  { %v16770_v33 = vadd.f32 1.0, %v19825_v35 }
 0xdc2   :  { %19826 = vrcp.f32 %v16770_v33 }
 0xdcc   :  { %v19827_v13 = vpop.eup %19826 }
 0xdcd   :  { %v16773_v55 = vmul.f32 %v19827_v13, %v19825_v35 }
 0xdcf   :  { %v16774_v53 = vsel %vm16769_vm2, %v19827_v13, %v16773_v55 }
 0xdd0   :  { %v16778_v62 = vsel %vm16777_vm1, %v16774_v53, %v16760_v54 }
 0xdd1   :  { %16779 = vst [vmem:[%s20930_s15] sm:$0xff] %v16778_v62 }
 0xdd2   :  { %16784 = vsyncpa [#allocation3], 1 }
 0xdd3   :  { %16785 = vsyncpa [#allocation5], 1 }
 0xdd4   :  { %16786 = vsyncpa [#allocation8], 1 }
 0xdd5   :  { %16787 = vsyncpa [#allocation11], 1 }
 0xdd6   :  { %16788 = vsyncpa [#allocation14], 1 }
 0xdd7   :  { %16789 = vsyncpa [#allocation17], 1 }
 0xdd8   :  { %16790 = vsyncpa [#allocation20], 1 }
 0xdd9   :  { %16791 = vsyncpa [#allocation23], 1 }

</bundles_post_ra>
